<compile_context>
chip_gen: v7x
topology: tpu7x:2x2x1
jax: 0.10.0
libtpu: 0.0.40
codegen_flags: <defaults>
</compile_context>

<pallas_src>
import functools

import jax
import jax.numpy as jnp
from jax.experimental import pallas as pl
from jax.experimental.pallas import tpu as pltpu


_VMEM_LIMIT = 32 * 1024 * 1024
_BS = 8                                   # samples per conv grid step

# conv geometry (input pinned to 1x28x28 by the 64*5*5 flatten in the module)
_HW1P = 28 * 28 + 2                       # conv1 input row length (+2 pad)
_OP1 = 26 * 28                            # 728 conv1 outputs per sample (junk cols j>=26)
_OFFS1 = tuple(ki * 28 + kj for ki in range(3) for kj in range(3))
_HW2P = 13 * 13 + 2                       # conv2 input row length (+2 pad)
_OP2 = 11 * 13                            # 143 conv2 outputs per sample (junk cols j>=11)
_OFFS2 = tuple(ki * 13 + kj for ki in range(3) for kj in range(3))


# ---------------------------------------------------------------------------
# Pallas kernels
# ---------------------------------------------------------------------------
def conv1_kernel(x_ref, w_ref, b_ref, o_ref, p_ref, *, bs):
    """conv1 (1->32, 3x3) + bias + ReLU for bs samples, transposed output.

    x_ref: (bs, 786) f32      flattened 28x28 pixels + 2 zero-pad, pixels on lanes
    w_ref: (32, 16)  f32      w[oc, ki*3+kj], cols 9..15 zero (K padded to 16)
    b_ref: (32, 1)   f32
    o_ref: (bs, 32, 728) bf16 out[s, oc, i*28+j]  (cols j>=26 are junk)
    p_ref: (32, 728) f32      double-buffered (16, 728) patch scratch
    """
    p_ref[...] = jnp.zeros_like(p_ref)    # tap-pad rows must be 0 (stale-VMEM guard)
    w = w_ref[...]
    b = b_ref[...]
    for s in range(bs):
        base = (s & 1) * 16
        row = x_ref[pl.ds(s, 1), :]                            # (1, 786)
        for t, off in enumerate(_OFFS1):
            p_ref[pl.ds(base + t, 1), :] = row[:, off:off + _OP1]
        acc = jnp.dot(w, p_ref[pl.ds(base, 16), :],
                      preferred_element_type=jnp.float32)      # (32, 728)
        acc = jnp.maximum(acc + b, 0.0)
        o_ref[s] = acc.astype(o_ref.dtype)


def conv2_kernel(x_ref, w_ref, b_ref, o_ref, p_ref, *, bs):
    """conv2 (32->64, 3x3) + bias + ReLU: one K=288 MXU dot per sample.

    x_ref: (bs, 32, 171) bf16 pooled conv1, per sample (C, 13*13 pixels + 2 pad)
    w_ref: (64, 288) bf16     w[oc, (ki*3+kj)*32 + ic]
    b_ref: (64, 1)   f32
    o_ref: (bs, 64, 143) bf16 out[s, oc, i*13+j]  (cols j>=11 are junk)
    p_ref: (576, 143) bf16    double-buffered (288, 143) patch scratch
    """
    w = w_ref[...]
    b = b_ref[...]
    for s in range(bs):
        base = (s & 1) * 288
        xs = x_ref[s]                                          # (32, 171)
        for t, off in enumerate(_OFFS2):
            p_ref[pl.ds(base + t * 32, 32), :] = xs[:, off:off + _OP2]
        acc = jnp.dot(w, p_ref[pl.ds(base, 288), :],
                      preferred_element_type=jnp.float32)      # (64, 143)
        acc = jnp.maximum(acc + b, 0.0)
        o_ref[s] = acc.astype(o_ref.dtype)


def fc_fused_kernel(x_ref, w1_ref, b1_ref, w2_ref, b2_ref, o_ref):
    """y = relu(x @ w1 + b1) @ w2 + b2; hidden never hits HBM, fc2 padded to 128."""
    h = jnp.dot(x_ref[...], w1_ref[...], preferred_element_type=jnp.float32)
    h = jnp.maximum(h + b1_ref[...], 0.0).astype(jnp.bfloat16)
    y = jnp.dot(h, w2_ref[...], preferred_element_type=jnp.float32)
    o_ref[...] = y + b2_ref[...]


# ---------------------------------------------------------------------------
# pallas_call wrappers
# ---------------------------------------------------------------------------
def conv1_pallas(x, w, b, *, bs=_BS):
    Bp = x.shape[0]
    return pl.pallas_call(
        functools.partial(conv1_kernel, bs=bs),
        out_shape=jax.ShapeDtypeStruct((Bp, 32, _OP1), jnp.bfloat16),
        grid=(Bp // bs,),
        in_specs=[
            pl.BlockSpec((bs, _HW1P), lambda i: (i, 0)),
            pl.BlockSpec((32, 16), lambda i: (0, 0)),
            pl.BlockSpec((32, 1), lambda i: (0, 0)),
        ],
        out_specs=pl.BlockSpec((bs, 32, _OP1), lambda i: (i, 0, 0)),
        scratch_shapes=[pltpu.VMEM((32, _OP1), jnp.float32)],
        compiler_params=pltpu.CompilerParams(
            dimension_semantics=("parallel",), vmem_limit_bytes=_VMEM_LIMIT),
    )(x, w, b)


def conv2_pallas(x, w, b, *, bs=_BS):
    Bp = x.shape[0]
    return pl.pallas_call(
        functools.partial(conv2_kernel, bs=bs),
        out_shape=jax.ShapeDtypeStruct((Bp, 64, _OP2), jnp.bfloat16),
        grid=(Bp // bs,),
        in_specs=[
            pl.BlockSpec((bs, 32, _HW2P), lambda i: (i, 0, 0)),
            pl.BlockSpec((64, 288), lambda i: (0, 0)),
            pl.BlockSpec((64, 1), lambda i: (0, 0)),
        ],
        out_specs=pl.BlockSpec((bs, 64, _OP2), lambda i: (i, 0, 0)),
        scratch_shapes=[pltpu.VMEM((2 * 288, _OP2), jnp.bfloat16)],
        compiler_params=pltpu.CompilerParams(
            dimension_semantics=("parallel",), vmem_limit_bytes=_VMEM_LIMIT),
    )(x, w, b)


def fc_fused_pallas(x_bf16, w1, b1, w2, b2):
    """x:(Bp,1600) bf16 (Bp % 8 == 0) -> (Bp, 128) f32 logits (cols 10..127 junk)."""
    Bp, K = x_bf16.shape
    H, N = w1.shape[1], w2.shape[1]
    tm = 8
    for t in (256, 128, 64, 32, 16, 8):
        if Bp % t == 0:
            tm = t
            break
    return pl.pallas_call(
        fc_fused_kernel,
        out_shape=jax.ShapeDtypeStruct((Bp, N), jnp.float32),
        grid=(Bp // tm,),
        in_specs=[
            pl.BlockSpec((tm, K), lambda i: (i, 0)),
            pl.BlockSpec((K, H), lambda i: (0, 0)),
            pl.BlockSpec((1, H), lambda i: (0, 0)),
            pl.BlockSpec((H, N), lambda i: (0, 0)),
            pl.BlockSpec((1, N), lambda i: (0, 0)),
        ],
        out_specs=pl.BlockSpec((tm, N), lambda i: (i, 0)),
        compiler_params=pltpu.CompilerParams(
            dimension_semantics=("parallel",), vmem_limit_bytes=_VMEM_LIMIT),
    )(x_bf16, w1, b1, w2, b2)


# ---------------------------------------------------------------------------
# Forward pass (mirrors NeuralNetwork.forward)
# ---------------------------------------------------------------------------
def forward(x_nchw, prep, *, bs=_BS):
    B = x_nchw.shape[0]
    Bp = ((B + bs - 1) // bs) * bs          # pad batch to a multiple of bs (>=8)

    # flattened pixels on lanes, +2 zero pad so in-kernel shifted slices stay
    # in bounds; zero-padded samples are dropped at the end.
    x1 = jnp.pad(x_nchw.reshape(B, 28 * 28).astype(jnp.float32),
                 ((0, Bp - B), (0, 2)))

    # conv1 + ReLU (transposed (OC, pixels) layout), then 2x2 max-pool on bf16
    y1 = conv1_pallas(x1, prep["w1"], prep["b1"], bs=bs)          # (Bp, 32, 728)
    p1 = y1.reshape(Bp, 32, 26, 28)[:, :, :, :26]                 # drop junk cols
    p1 = p1.reshape(Bp, 32, 13, 2, 13, 2).max(axis=(3, 5))        # (Bp, 32, 13, 13)
    x2 = jnp.pad(p1.reshape(Bp, 32, 13 * 13), ((0, 0), (0, 0), (0, 2)))

    # conv2 + ReLU (single K=288 dot), then 2x2 max-pool (floor: 11 -> 5)
    y2 = conv2_pallas(x2, prep["w2"], prep["b2"], bs=bs)          # (Bp, 64, 143)
    p2 = y2.reshape(Bp, 64, 11, 13)[:, :, :10, :10]               # drop junk cols
    p2 = p2.reshape(Bp, 64, 5, 2, 5, 2).max(axis=(3, 5))          # (Bp, 64, 5, 5)

    # flatten is already PyTorch's NCHW (C,H,W) order
    flat = p2.reshape(Bp, 64 * 5 * 5)                             # (Bp, 1600) bf16

    # fused fc1(+ReLU)+fc2 (fc2 padded to 128 lanes); slice back to 10 logits
    out = fc_fused_pallas(flat, prep["wf1"], prep["bf1"], prep["wf2"], prep["bf2"])
    return out[:B, :10]

# TODO(synk): nn.CrossEntropyLoss / SGD optimizer are training-only and not part
#             of forward(); load_params/save_params (torch file I/O) not reproduced.


# ---------------------------------------------------------------------------
# One-time parameter preparation (layout/dtype transforms, done once)
# ---------------------------------------------------------------------------
def prepare_params(params):
    w1, w2 = params["w1"], params["w2"]            # (32,1,3,3), (64,32,3,3)
    # conv1: (OC, taps) with taps padded 9->16 (zero cols); f32 MXU dot
    w1t = jnp.zeros((32, 16), jnp.float32).at[:, :9].set(
        w1.reshape(32, 9).astype(jnp.float32))
    # conv2: (OC, 288) with column index (ki*3+kj)*32 + ic, matching the kernel's
    # in-VMEM patch stacking order
    w2t = jnp.transpose(w2, (0, 2, 3, 1)).reshape(64, 288).astype(jnp.bfloat16)
    # fc1: the kernel's (C,H,W) flatten equals PyTorch's view order -> transpose only
    wf1_t = params["wf1"].T.astype(jnp.bfloat16)                  # (1600, 128)
    # fc2: pad N from 10 to 128 so the fused-FC output is lane-dense
    wf2_t = jnp.zeros((128, 128), jnp.float32).at[:, :10].set(
        params["wf2"].T).astype(jnp.bfloat16)
    bf2 = jnp.zeros((1, 128), jnp.float32).at[0, :10].set(params["bf2"])
    return {
        "w1": w1t, "b1": params["b1"].reshape(32, 1).astype(jnp.float32),
        "w2": w2t, "b2": params["b2"].reshape(64, 1).astype(jnp.float32),
        "wf1": wf1_t, "bf1": params["bf1"].reshape(1, 128).astype(jnp.float32),
        "wf2": wf2_t, "bf2": bf2,
    }


def make_params(key):
    ks = jax.random.split(key, 8)
    return {
        "w1":  jax.random.normal(ks[0], (32, 1, 3, 3),     jnp.float32) * 0.10,
        "b1":  jax.random.normal(ks[1], (32,),             jnp.float32) * 0.10,
        "w2":  jax.random.normal(ks[2], (64, 32, 3, 3),    jnp.float32) * 0.05,
        "b2":  jax.random.normal(ks[3], (64,),             jnp.float32) * 0.05,
        "wf1": jax.random.normal(ks[4], (128, 64 * 5 * 5), jnp.float32) * 0.02,
        "bf1": jax.random.normal(ks[5], (128,),            jnp.float32) * 0.02,
        "wf2": jax.random.normal(ks[6], (10, 128),         jnp.float32) * 0.05,
        "bf2": jax.random.normal(ks[7], (10,),             jnp.float32) * 0.05,
    }


if __name__ == "__main__":
    key = jax.random.PRNGKey(0)
    k_x, k_p = jax.random.split(key)

    # The 64*5*5 flatten in the module pins the input to 1x28x28 (MNIST-like).
    x = jax.random.normal(k_x, (2, 1, 28, 28), jnp.float32)       # NCHW, batch=2
    params = make_params(k_p)
    prep = prepare_params(params)

    fwd = jax.jit(forward)
    out = fwd(x, prep)
    jax.block_until_ready(out)
    assert out.shape == (2, 10) and out.dtype == jnp.float32
    assert bool(jnp.all(jnp.isfinite(out)))
    print("KERNEL_OK")
</pallas_src>

<mosaic_0001>
module attributes {stable_mosaic.version = 11 : i64} {
  func.func @conv1_kernel(%arg0: i32, %arg1: memref<8x786xf32, #tpu.memory_space<vmem>>, %arg2: memref<32x16xf32, #tpu.memory_space<vmem>>, %arg3: memref<32x1xf32, #tpu.memory_space<vmem>>, %arg4: memref<8x32x728xbf16, #tpu.memory_space<vmem>>, %arg5: memref<32x728xf32, #tpu.memory_space<vmem>>) attributes {dimension_semantics = [#tpu.dimension_semantics<parallel>], iteration_bounds = array<i64: 1>, scalar_prefetch = 0 : i64, scratch_operands = 1 : i64, tpu.core_type = #tpu.core_type<tc>, window_params = [{transform_indices = @transform_0, window_bounds = array<i64: 8, 786>}, {pipeline_mode = #tpu.pipeline_mode<synchronous>, transform_indices = @transform_1, window_bounds = array<i64: 32, 16>}, {pipeline_mode = #tpu.pipeline_mode<synchronous>, transform_indices = @transform_2, window_bounds = array<i64: 32, 1>}, {transform_indices = @transform_3, window_bounds = array<i64: 8, 32, 728>}]} {
    %cst = arith.constant 0.000000e+00 : f32
    %0 = vector.broadcast %cst : f32 to vector<32x728xf32>
    %c0 = arith.constant 0 : index
    %c0_0 = arith.constant 0 : index
    %1 = vector.load %arg5[%c0, %c0_0] : memref<32x728xf32, #tpu.memory_space<vmem>>, vector<32x728xf32>
    tpu.vector_store %arg5[%c0, %c0_0], %0 {strides = array<i32>} : memref<32x728xf32, #tpu.memory_space<vmem>>, vector<32x728xf32>,
    %c0_1 = arith.constant 0 : index
    %c0_2 = arith.constant 0 : index
    %2 = vector.load %arg2[%c0_1, %c0_2] : memref<32x16xf32, #tpu.memory_space<vmem>>, vector<32x16xf32>
    %c0_3 = arith.constant 0 : index
    %c0_4 = arith.constant 0 : index
    %3 = vector.load %arg3[%c0_3, %c0_4] : memref<32x1xf32, #tpu.memory_space<vmem>>, vector<32x1xf32>
    %c0_5 = arith.constant 0 : index
    %c0_6 = arith.constant 0 : index
    %4 = vector.load %arg1[%c0_5, %c0_6] : memref<8x786xf32, #tpu.memory_space<vmem>>, vector<1x786xf32>
    %5 = vector.extract_strided_slice %4 {offsets = [0, 0], sizes = [1, 728], strides = [1, 1]} : vector<1x786xf32> to vector<1x728xf32>
    %c0_7 = arith.constant 0 : index
    %c0_8 = arith.constant 0 : index
    %6 = vector.load %arg5[%c0_7, %c0_8] : memref<32x728xf32, #tpu.memory_space<vmem>>, vector<1x728xf32>
    tpu.vector_store %arg5[%c0_7, %c0_8], %5 {strides = array<i32>} : memref<32x728xf32, #tpu.memory_space<vmem>>, vector<1x728xf32>,
    %7 = vector.extract_strided_slice %4 {offsets = [0, 1], sizes = [1, 728], strides = [1, 1]} : vector<1x786xf32> to vector<1x728xf32>
    %c1 = arith.constant 1 : index
    %c0_9 = arith.constant 0 : index
    %8 = vector.load %arg5[%c1, %c0_9] : memref<32x728xf32, #tpu.memory_space<vmem>>, vector<1x728xf32>
    tpu.vector_store %arg5[%c1, %c0_9], %7 {strides = array<i32>} : memref<32x728xf32, #tpu.memory_space<vmem>>, vector<1x728xf32>,
    %9 = vector.extract_strided_slice %4 {offsets = [0, 2], sizes = [1, 728], strides = [1, 1]} : vector<1x786xf32> to vector<1x728xf32>
    %c2 = arith.constant 2 : index
    %c0_10 = arith.constant 0 : index
    %10 = vector.load %arg5[%c2, %c0_10] : memref<32x728xf32, #tpu.memory_space<vmem>>, vector<1x728xf32>
    tpu.vector_store %arg5[%c2, %c0_10], %9 {strides = array<i32>} : memref<32x728xf32, #tpu.memory_space<vmem>>, vector<1x728xf32>,
    %11 = vector.extract_strided_slice %4 {offsets = [0, 28], sizes = [1, 728], strides = [1, 1]} : vector<1x786xf32> to vector<1x728xf32>
    %c3 = arith.constant 3 : index
    %c0_11 = arith.constant 0 : index
    %12 = vector.load %arg5[%c3, %c0_11] : memref<32x728xf32, #tpu.memory_space<vmem>>, vector<1x728xf32>
    tpu.vector_store %arg5[%c3, %c0_11], %11 {strides = array<i32>} : memref<32x728xf32, #tpu.memory_space<vmem>>, vector<1x728xf32>,
    %13 = vector.extract_strided_slice %4 {offsets = [0, 29], sizes = [1, 728], strides = [1, 1]} : vector<1x786xf32> to vector<1x728xf32>
    %c4 = arith.constant 4 : index
    %c0_12 = arith.constant 0 : index
    %14 = vector.load %arg5[%c4, %c0_12] : memref<32x728xf32, #tpu.memory_space<vmem>>, vector<1x728xf32>
    tpu.vector_store %arg5[%c4, %c0_12], %13 {strides = array<i32>} : memref<32x728xf32, #tpu.memory_space<vmem>>, vector<1x728xf32>,
    %15 = vector.extract_strided_slice %4 {offsets = [0, 30], sizes = [1, 728], strides = [1, 1]} : vector<1x786xf32> to vector<1x728xf32>
    %c5 = arith.constant 5 : index
    %c0_13 = arith.constant 0 : index
    %16 = vector.load %arg5[%c5, %c0_13] : memref<32x728xf32, #tpu.memory_space<vmem>>, vector<1x728xf32>
    tpu.vector_store %arg5[%c5, %c0_13], %15 {strides = array<i32>} : memref<32x728xf32, #tpu.memory_space<vmem>>, vector<1x728xf32>,
    %17 = vector.extract_strided_slice %4 {offsets = [0, 56], sizes = [1, 728], strides = [1, 1]} : vector<1x786xf32> to vector<1x728xf32>
    %c6 = arith.constant 6 : index
    %c0_14 = arith.constant 0 : index
    %18 = vector.load %arg5[%c6, %c0_14] : memref<32x728xf32, #tpu.memory_space<vmem>>, vector<1x728xf32>
    tpu.vector_store %arg5[%c6, %c0_14], %17 {strides = array<i32>} : memref<32x728xf32, #tpu.memory_space<vmem>>, vector<1x728xf32>,
    %19 = vector.extract_strided_slice %4 {offsets = [0, 57], sizes = [1, 728], strides = [1, 1]} : vector<1x786xf32> to vector<1x728xf32>
    %c7 = arith.constant 7 : index
    %c0_15 = arith.constant 0 : index
    %20 = vector.load %arg5[%c7, %c0_15] : memref<32x728xf32, #tpu.memory_space<vmem>>, vector<1x728xf32>
    tpu.vector_store %arg5[%c7, %c0_15], %19 {strides = array<i32>} : memref<32x728xf32, #tpu.memory_space<vmem>>, vector<1x728xf32>,
    %21 = vector.extract_strided_slice %4 {offsets = [0, 58], sizes = [1, 728], strides = [1, 1]} : vector<1x786xf32> to vector<1x728xf32>
    %c8 = arith.constant 8 : index
    %c0_16 = arith.constant 0 : index
    %22 = vector.load %arg5[%c8, %c0_16] : memref<32x728xf32, #tpu.memory_space<vmem>>, vector<1x728xf32>
    tpu.vector_store %arg5[%c8, %c0_16], %21 {strides = array<i32>} : memref<32x728xf32, #tpu.memory_space<vmem>>, vector<1x728xf32>,
    %c0_17 = arith.constant 0 : index
    %c0_18 = arith.constant 0 : index
    %23 = vector.load %arg5[%c0_17, %c0_18] : memref<32x728xf32, #tpu.memory_space<vmem>>, vector<16x728xf32>
    %cst_19 = arith.constant dense<0.000000e+00> : vector<32x728xf32>
    %24 = tpu.matmul %2, %23, %cst_19 {dimension_numbers = #tpu.dot_dimension_numbers<[1], [0], [0], [1], [0, 0, 1, 1], [], []>} : vector<32x16xf32>, vector<16x728xf32>, vector<32x728xf32> -> vector<32x728xf32>
    %25 = vector.broadcast %3 : vector<32x1xf32> to vector<32x728xf32>
    %26 = arith.addf %24, %25 : vector<32x728xf32>
    %cst_20 = arith.constant 0.000000e+00 : f32
    %27 = vector.broadcast %cst_20 : f32 to vector<32x728xf32>
    %28 = arith.maximumf %26, %27 : vector<32x728xf32>
    %29 = arith.truncf %28 : vector<32x728xf32> to vector<32x728xbf16>
    %c0_21 = arith.constant 0 : index
    %c0_22 = arith.constant 0 : index
    %c0_23 = arith.constant 0 : index
    %30 = vector.load %arg4[%c0_21, %c0_22, %c0_23] : memref<8x32x728xbf16, #tpu.memory_space<vmem>>, vector<1x32x728xbf16>
    %31 = vector.shape_cast %30 : vector<1x32x728xbf16> to vector<32x728xbf16>
    %32 = vector.shape_cast %29 : vector<32x728xbf16> to vector<1x32x728xbf16>
    tpu.vector_store %arg4[%c0_21, %c0_22, %c0_23], %32 {strides = array<i32>} : memref<8x32x728xbf16, #tpu.memory_space<vmem>>, vector<1x32x728xbf16>,
    %c1_24 = arith.constant 1 : index
    %c0_25 = arith.constant 0 : index
    %33 = vector.load %arg1[%c1_24, %c0_25] : memref<8x786xf32, #tpu.memory_space<vmem>>, vector<1x786xf32>
    %34 = vector.extract_strided_slice %33 {offsets = [0, 0], sizes = [1, 728], strides = [1, 1]} : vector<1x786xf32> to vector<1x728xf32>
    %c16 = arith.constant 16 : index
    %c0_26 = arith.constant 0 : index
    %35 = vector.load %arg5[%c16, %c0_26] : memref<32x728xf32, #tpu.memory_space<vmem>>, vector<1x728xf32>
    tpu.vector_store %arg5[%c16, %c0_26], %34 {strides = array<i32>} : memref<32x728xf32, #tpu.memory_space<vmem>>, vector<1x728xf32>,
    %36 = vector.extract_strided_slice %33 {offsets = [0, 1], sizes = [1, 728], strides = [1, 1]} : vector<1x786xf32> to vector<1x728xf32>
    %c17 = arith.constant 17 : index
    %c0_27 = arith.constant 0 : index
    %37 = vector.load %arg5[%c17, %c0_27] : memref<32x728xf32, #tpu.memory_space<vmem>>, vector<1x728xf32>
    tpu.vector_store %arg5[%c17, %c0_27], %36 {strides = array<i32>} : memref<32x728xf32, #tpu.memory_space<vmem>>, vector<1x728xf32>,
    %38 = vector.extract_strided_slice %33 {offsets = [0, 2], sizes = [1, 728], strides = [1, 1]} : vector<1x786xf32> to vector<1x728xf32>
    %c18 = arith.constant 18 : index
    %c0_28 = arith.constant 0 : index
    %39 = vector.load %arg5[%c18, %c0_28] : memref<32x728xf32, #tpu.memory_space<vmem>>, vector<1x728xf32>
    tpu.vector_store %arg5[%c18, %c0_28], %38 {strides = array<i32>} : memref<32x728xf32, #tpu.memory_space<vmem>>, vector<1x728xf32>,
    %40 = vector.extract_strided_slice %33 {offsets = [0, 28], sizes = [1, 728], strides = [1, 1]} : vector<1x786xf32> to vector<1x728xf32>
    %c19 = arith.constant 19 : index
    %c0_29 = arith.constant 0 : index
    %41 = vector.load %arg5[%c19, %c0_29] : memref<32x728xf32, #tpu.memory_space<vmem>>, vector<1x728xf32>
    tpu.vector_store %arg5[%c19, %c0_29], %40 {strides = array<i32>} : memref<32x728xf32, #tpu.memory_space<vmem>>, vector<1x728xf32>,
    %42 = vector.extract_strided_slice %33 {offsets = [0, 29], sizes = [1, 728], strides = [1, 1]} : vector<1x786xf32> to vector<1x728xf32>
    %c20 = arith.constant 20 : index
    %c0_30 = arith.constant 0 : index
    %43 = vector.load %arg5[%c20, %c0_30] : memref<32x728xf32, #tpu.memory_space<vmem>>, vector<1x728xf32>
    tpu.vector_store %arg5[%c20, %c0_30], %42 {strides = array<i32>} : memref<32x728xf32, #tpu.memory_space<vmem>>, vector<1x728xf32>,
    %44 = vector.extract_strided_slice %33 {offsets = [0, 30], sizes = [1, 728], strides = [1, 1]} : vector<1x786xf32> to vector<1x728xf32>
    %c21 = arith.constant 21 : index
    %c0_31 = arith.constant 0 : index
    %45 = vector.load %arg5[%c21, %c0_31] : memref<32x728xf32, #tpu.memory_space<vmem>>, vector<1x728xf32>
    tpu.vector_store %arg5[%c21, %c0_31], %44 {strides = array<i32>} : memref<32x728xf32, #tpu.memory_space<vmem>>, vector<1x728xf32>,
    %46 = vector.extract_strided_slice %33 {offsets = [0, 56], sizes = [1, 728], strides = [1, 1]} : vector<1x786xf32> to vector<1x728xf32>
    %c22 = arith.constant 22 : index
    %c0_32 = arith.constant 0 : index
    %47 = vector.load %arg5[%c22, %c0_32] : memref<32x728xf32, #tpu.memory_space<vmem>>, vector<1x728xf32>
    tpu.vector_store %arg5[%c22, %c0_32], %46 {strides = array<i32>} : memref<32x728xf32, #tpu.memory_space<vmem>>, vector<1x728xf32>,
    %48 = vector.extract_strided_slice %33 {offsets = [0, 57], sizes = [1, 728], strides = [1, 1]} : vector<1x786xf32> to vector<1x728xf32>
    %c23 = arith.constant 23 : index
    %c0_33 = arith.constant 0 : index
    %49 = vector.load %arg5[%c23, %c0_33] : memref<32x728xf32, #tpu.memory_space<vmem>>, vector<1x728xf32>
    tpu.vector_store %arg5[%c23, %c0_33], %48 {strides = array<i32>} : memref<32x728xf32, #tpu.memory_space<vmem>>, vector<1x728xf32>,
    %50 = vector.extract_strided_slice %33 {offsets = [0, 58], sizes = [1, 728], strides = [1, 1]} : vector<1x786xf32> to vector<1x728xf32>
    %c24 = arith.constant 24 : index
    %c0_34 = arith.constant 0 : index
    %51 = vector.load %arg5[%c24, %c0_34] : memref<32x728xf32, #tpu.memory_space<vmem>>, vector<1x728xf32>
    tpu.vector_store %arg5[%c24, %c0_34], %50 {strides = array<i32>} : memref<32x728xf32, #tpu.memory_space<vmem>>, vector<1x728xf32>,
    %c16_35 = arith.constant 16 : index
    %c0_36 = arith.constant 0 : index
    %52 = vector.load %arg5[%c16_35, %c0_36] : memref<32x728xf32, #tpu.memory_space<vmem>>, vector<16x728xf32>
    %cst_37 = arith.constant dense<0.000000e+00> : vector<32x728xf32>
    %53 = tpu.matmul %2, %52, %cst_37 {dimension_numbers = #tpu.dot_dimension_numbers<[1], [0], [0], [1], [0, 0, 1, 1], [], []>} : vector<32x16xf32>, vector<16x728xf32>, vector<32x728xf32> -> vector<32x728xf32>
    %54 = vector.broadcast %3 : vector<32x1xf32> to vector<32x728xf32>
    %55 = arith.addf %53, %54 : vector<32x728xf32>
    %cst_38 = arith.constant 0.000000e+00 : f32
    %56 = vector.broadcast %cst_38 : f32 to vector<32x728xf32>
    %57 = arith.maximumf %55, %56 : vector<32x728xf32>
    %58 = arith.truncf %57 : vector<32x728xf32> to vector<32x728xbf16>
    %c1_39 = arith.constant 1 : index
    %c0_40 = arith.constant 0 : index
    %c0_41 = arith.constant 0 : index
    %59 = vector.load %arg4[%c1_39, %c0_40, %c0_41] : memref<8x32x728xbf16, #tpu.memory_space<vmem>>, vector<1x32x728xbf16>
    %60 = vector.shape_cast %59 : vector<1x32x728xbf16> to vector<32x728xbf16>
    %61 = vector.shape_cast %58 : vector<32x728xbf16> to vector<1x32x728xbf16>
    tpu.vector_store %arg4[%c1_39, %c0_40, %c0_41], %61 {strides = array<i32>} : memref<8x32x728xbf16, #tpu.memory_space<vmem>>, vector<1x32x728xbf16>,
    %c2_42 = arith.constant 2 : index
    %c0_43 = arith.constant 0 : index
    %62 = vector.load %arg1[%c2_42, %c0_43] : memref<8x786xf32, #tpu.memory_space<vmem>>, vector<1x786xf32>
    %63 = vector.extract_strided_slice %62 {offsets = [0, 0], sizes = [1, 728], strides = [1, 1]} : vector<1x786xf32> to vector<1x728xf32>
    %c0_44 = arith.constant 0 : index
    %c0_45 = arith.constant 0 : index
    %64 = vector.load %arg5[%c0_44, %c0_45] : memref<32x728xf32, #tpu.memory_space<vmem>>, vector<1x728xf32>
    tpu.vector_store %arg5[%c0_44, %c0_45], %63 {strides = array<i32>} : memref<32x728xf32, #tpu.memory_space<vmem>>, vector<1x728xf32>,
    %65 = vector.extract_strided_slice %62 {offsets = [0, 1], sizes = [1, 728], strides = [1, 1]} : vector<1x786xf32> to vector<1x728xf32>
    %c1_46 = arith.constant 1 : index
    %c0_47 = arith.constant 0 : index
    %66 = vector.load %arg5[%c1_46, %c0_47] : memref<32x728xf32, #tpu.memory_space<vmem>>, vector<1x728xf32>
    tpu.vector_store %arg5[%c1_46, %c0_47], %65 {strides = array<i32>} : memref<32x728xf32, #tpu.memory_space<vmem>>, vector<1x728xf32>,
    %67 = vector.extract_strided_slice %62 {offsets = [0, 2], sizes = [1, 728], strides = [1, 1]} : vector<1x786xf32> to vector<1x728xf32>
    %c2_48 = arith.constant 2 : index
    %c0_49 = arith.constant 0 : index
    %68 = vector.load %arg5[%c2_48, %c0_49] : memref<32x728xf32, #tpu.memory_space<vmem>>, vector<1x728xf32>
    tpu.vector_store %arg5[%c2_48, %c0_49], %67 {strides = array<i32>} : memref<32x728xf32, #tpu.memory_space<vmem>>, vector<1x728xf32>,
    %69 = vector.extract_strided_slice %62 {offsets = [0, 28], sizes = [1, 728], strides = [1, 1]} : vector<1x786xf32> to vector<1x728xf32>
    %c3_50 = arith.constant 3 : index
    %c0_51 = arith.constant 0 : index
    %70 = vector.load %arg5[%c3_50, %c0_51] : memref<32x728xf32, #tpu.memory_space<vmem>>, vector<1x728xf32>
    tpu.vector_store %arg5[%c3_50, %c0_51], %69 {strides = array<i32>} : memref<32x728xf32, #tpu.memory_space<vmem>>, vector<1x728xf32>,
    %71 = vector.extract_strided_slice %62 {offsets = [0, 29], sizes = [1, 728], strides = [1, 1]} : vector<1x786xf32> to vector<1x728xf32>
    %c4_52 = arith.constant 4 : index
    %c0_53 = arith.constant 0 : index
    %72 = vector.load %arg5[%c4_52, %c0_53] : memref<32x728xf32, #tpu.memory_space<vmem>>, vector<1x728xf32>
    tpu.vector_store %arg5[%c4_52, %c0_53], %71 {strides = array<i32>} : memref<32x728xf32, #tpu.memory_space<vmem>>, vector<1x728xf32>,
    %73 = vector.extract_strided_slice %62 {offsets = [0, 30], sizes = [1, 728], strides = [1, 1]} : vector<1x786xf32> to vector<1x728xf32>
    %c5_54 = arith.constant 5 : index
    %c0_55 = arith.constant 0 : index
    %74 = vector.load %arg5[%c5_54, %c0_55] : memref<32x728xf32, #tpu.memory_space<vmem>>, vector<1x728xf32>
    tpu.vector_store %arg5[%c5_54, %c0_55], %73 {strides = array<i32>} : memref<32x728xf32, #tpu.memory_space<vmem>>, vector<1x728xf32>,
    %75 = vector.extract_strided_slice %62 {offsets = [0, 56], sizes = [1, 728], strides = [1, 1]} : vector<1x786xf32> to vector<1x728xf32>
    %c6_56 = arith.constant 6 : index
    %c0_57 = arith.constant 0 : index
    %76 = vector.load %arg5[%c6_56, %c0_57] : memref<32x728xf32, #tpu.memory_space<vmem>>, vector<1x728xf32>
    tpu.vector_store %arg5[%c6_56, %c0_57], %75 {strides = array<i32>} : memref<32x728xf32, #tpu.memory_space<vmem>>, vector<1x728xf32>,
    %77 = vector.extract_strided_slice %62 {offsets = [0, 57], sizes = [1, 728], strides = [1, 1]} : vector<1x786xf32> to vector<1x728xf32>
    %c7_58 = arith.constant 7 : index
    %c0_59 = arith.constant 0 : index
    %78 = vector.load %arg5[%c7_58, %c0_59] : memref<32x728xf32, #tpu.memory_space<vmem>>, vector<1x728xf32>
    tpu.vector_store %arg5[%c7_58, %c0_59], %77 {strides = array<i32>} : memref<32x728xf32, #tpu.memory_space<vmem>>, vector<1x728xf32>,
    %79 = vector.extract_strided_slice %62 {offsets = [0, 58], sizes = [1, 728], strides = [1, 1]} : vector<1x786xf32> to vector<1x728xf32>
    %c8_60 = arith.constant 8 : index
    %c0_61 = arith.constant 0 : index
    %80 = vector.load %arg5[%c8_60, %c0_61] : memref<32x728xf32, #tpu.memory_space<vmem>>, vector<1x728xf32>
    tpu.vector_store %arg5[%c8_60, %c0_61], %79 {strides = array<i32>} : memref<32x728xf32, #tpu.memory_space<vmem>>, vector<1x728xf32>,
    %c0_62 = arith.constant 0 : index
    %c0_63 = arith.constant 0 : index
    %81 = vector.load %arg5[%c0_62, %c0_63] : memref<32x728xf32, #tpu.memory_space<vmem>>, vector<16x728xf32>
    %cst_64 = arith.constant dense<0.000000e+00> : vector<32x728xf32>
    %82 = tpu.matmul %2, %81, %cst_64 {dimension_numbers = #tpu.dot_dimension_numbers<[1], [0], [0], [1], [0, 0, 1, 1], [], []>} : vector<32x16xf32>, vector<16x728xf32>, vector<32x728xf32> -> vector<32x728xf32>
    %83 = vector.broadcast %3 : vector<32x1xf32> to vector<32x728xf32>
    %84 = arith.addf %82, %83 : vector<32x728xf32>
    %cst_65 = arith.constant 0.000000e+00 : f32
    %85 = vector.broadcast %cst_65 : f32 to vector<32x728xf32>
    %86 = arith.maximumf %84, %85 : vector<32x728xf32>
    %87 = arith.truncf %86 : vector<32x728xf32> to vector<32x728xbf16>
    %c2_66 = arith.constant 2 : index
    %c0_67 = arith.constant 0 : index
    %c0_68 = arith.constant 0 : index
    %88 = vector.load %arg4[%c2_66, %c0_67, %c0_68] : memref<8x32x728xbf16, #tpu.memory_space<vmem>>, vector<1x32x728xbf16>
    %89 = vector.shape_cast %88 : vector<1x32x728xbf16> to vector<32x728xbf16>
    %90 = vector.shape_cast %87 : vector<32x728xbf16> to vector<1x32x728xbf16>
    tpu.vector_store %arg4[%c2_66, %c0_67, %c0_68], %90 {strides = array<i32>} : memref<8x32x728xbf16, #tpu.memory_space<vmem>>, vector<1x32x728xbf16>,
    %c3_69 = arith.constant 3 : index
    %c0_70 = arith.constant 0 : index
    %91 = vector.load %arg1[%c3_69, %c0_70] : memref<8x786xf32, #tpu.memory_space<vmem>>, vector<1x786xf32>
    %92 = vector.extract_strided_slice %91 {offsets = [0, 0], sizes = [1, 728], strides = [1, 1]} : vector<1x786xf32> to vector<1x728xf32>
    %c16_71 = arith.constant 16 : index
    %c0_72 = arith.constant 0 : index
    %93 = vector.load %arg5[%c16_71, %c0_72] : memref<32x728xf32, #tpu.memory_space<vmem>>, vector<1x728xf32>
    tpu.vector_store %arg5[%c16_71, %c0_72], %92 {strides = array<i32>} : memref<32x728xf32, #tpu.memory_space<vmem>>, vector<1x728xf32>,
    %94 = vector.extract_strided_slice %91 {offsets = [0, 1], sizes = [1, 728], strides = [1, 1]} : vector<1x786xf32> to vector<1x728xf32>
    %c17_73 = arith.constant 17 : index
    %c0_74 = arith.constant 0 : index
    %95 = vector.load %arg5[%c17_73, %c0_74] : memref<32x728xf32, #tpu.memory_space<vmem>>, vector<1x728xf32>
    tpu.vector_store %arg5[%c17_73, %c0_74], %94 {strides = array<i32>} : memref<32x728xf32, #tpu.memory_space<vmem>>, vector<1x728xf32>,
    %96 = vector.extract_strided_slice %91 {offsets = [0, 2], sizes = [1, 728], strides = [1, 1]} : vector<1x786xf32> to vector<1x728xf32>
    %c18_75 = arith.constant 18 : index
    %c0_76 = arith.constant 0 : index
    %97 = vector.load %arg5[%c18_75, %c0_76] : memref<32x728xf32, #tpu.memory_space<vmem>>, vector<1x728xf32>
    tpu.vector_store %arg5[%c18_75, %c0_76], %96 {strides = array<i32>} : memref<32x728xf32, #tpu.memory_space<vmem>>, vector<1x728xf32>,
    %98 = vector.extract_strided_slice %91 {offsets = [0, 28], sizes = [1, 728], strides = [1, 1]} : vector<1x786xf32> to vector<1x728xf32>
    %c19_77 = arith.constant 19 : index
    %c0_78 = arith.constant 0 : index
    %99 = vector.load %arg5[%c19_77, %c0_78] : memref<32x728xf32, #tpu.memory_space<vmem>>, vector<1x728xf32>
    tpu.vector_store %arg5[%c19_77, %c0_78], %98 {strides = array<i32>} : memref<32x728xf32, #tpu.memory_space<vmem>>, vector<1x728xf32>,
    %100 = vector.extract_strided_slice %91 {offsets = [0, 29], sizes = [1, 728], strides = [1, 1]} : vector<1x786xf32> to vector<1x728xf32>
    %c20_79 = arith.constant 20 : index
    %c0_80 = arith.constant 0 : index
    %101 = vector.load %arg5[%c20_79, %c0_80] : memref<32x728xf32, #tpu.memory_space<vmem>>, vector<1x728xf32>
    tpu.vector_store %arg5[%c20_79, %c0_80], %100 {strides = array<i32>} : memref<32x728xf32, #tpu.memory_space<vmem>>, vector<1x728xf32>,
    %102 = vector.extract_strided_slice %91 {offsets = [0, 30], sizes = [1, 728], strides = [1, 1]} : vector<1x786xf32> to vector<1x728xf32>
    %c21_81 = arith.constant 21 : index
    %c0_82 = arith.constant 0 : index
    %103 = vector.load %arg5[%c21_81, %c0_82] : memref<32x728xf32, #tpu.memory_space<vmem>>, vector<1x728xf32>
    tpu.vector_store %arg5[%c21_81, %c0_82], %102 {strides = array<i32>} : memref<32x728xf32, #tpu.memory_space<vmem>>, vector<1x728xf32>,
    %104 = vector.extract_strided_slice %91 {offsets = [0, 56], sizes = [1, 728], strides = [1, 1]} : vector<1x786xf32> to vector<1x728xf32>
    %c22_83 = arith.constant 22 : index
    %c0_84 = arith.constant 0 : index
    %105 = vector.load %arg5[%c22_83, %c0_84] : memref<32x728xf32, #tpu.memory_space<vmem>>, vector<1x728xf32>
    tpu.vector_store %arg5[%c22_83, %c0_84], %104 {strides = array<i32>} : memref<32x728xf32, #tpu.memory_space<vmem>>, vector<1x728xf32>,
    %106 = vector.extract_strided_slice %91 {offsets = [0, 57], sizes = [1, 728], strides = [1, 1]} : vector<1x786xf32> to vector<1x728xf32>
    %c23_85 = arith.constant 23 : index
    %c0_86 = arith.constant 0 : index
    %107 = vector.load %arg5[%c23_85, %c0_86] : memref<32x728xf32, #tpu.memory_space<vmem>>, vector<1x728xf32>
    tpu.vector_store %arg5[%c23_85, %c0_86], %106 {strides = array<i32>} : memref<32x728xf32, #tpu.memory_space<vmem>>, vector<1x728xf32>,
    %108 = vector.extract_strided_slice %91 {offsets = [0, 58], sizes = [1, 728], strides = [1, 1]} : vector<1x786xf32> to vector<1x728xf32>
    %c24_87 = arith.constant 24 : index
    %c0_88 = arith.constant 0 : index
    %109 = vector.load %arg5[%c24_87, %c0_88] : memref<32x728xf32, #tpu.memory_space<vmem>>, vector<1x728xf32>
    tpu.vector_store %arg5[%c24_87, %c0_88], %108 {strides = array<i32>} : memref<32x728xf32, #tpu.memory_space<vmem>>, vector<1x728xf32>,
    %c16_89 = arith.constant 16 : index
    %c0_90 = arith.constant 0 : index
    %110 = vector.load %arg5[%c16_89, %c0_90] : memref<32x728xf32, #tpu.memory_space<vmem>>, vector<16x728xf32>
    %cst_91 = arith.constant dense<0.000000e+00> : vector<32x728xf32>
    %111 = tpu.matmul %2, %110, %cst_91 {dimension_numbers = #tpu.dot_dimension_numbers<[1], [0], [0], [1], [0, 0, 1, 1], [], []>} : vector<32x16xf32>, vector<16x728xf32>, vector<32x728xf32> -> vector<32x728xf32>
    %112 = vector.broadcast %3 : vector<32x1xf32> to vector<32x728xf32>
    %113 = arith.addf %111, %112 : vector<32x728xf32>
    %cst_92 = arith.constant 0.000000e+00 : f32
    %114 = vector.broadcast %cst_92 : f32 to vector<32x728xf32>
    %115 = arith.maximumf %113, %114 : vector<32x728xf32>
    %116 = arith.truncf %115 : vector<32x728xf32> to vector<32x728xbf16>
    %c3_93 = arith.constant 3 : index
    %c0_94 = arith.constant 0 : index
    %c0_95 = arith.constant 0 : index
    %117 = vector.load %arg4[%c3_93, %c0_94, %c0_95] : memref<8x32x728xbf16, #tpu.memory_space<vmem>>, vector<1x32x728xbf16>
    %118 = vector.shape_cast %117 : vector<1x32x728xbf16> to vector<32x728xbf16>
    %119 = vector.shape_cast %116 : vector<32x728xbf16> to vector<1x32x728xbf16>
    tpu.vector_store %arg4[%c3_93, %c0_94, %c0_95], %119 {strides = array<i32>} : memref<8x32x728xbf16, #tpu.memory_space<vmem>>, vector<1x32x728xbf16>,
    %c4_96 = arith.constant 4 : index
    %c0_97 = arith.constant 0 : index
    %120 = vector.load %arg1[%c4_96, %c0_97] : memref<8x786xf32, #tpu.memory_space<vmem>>, vector<1x786xf32>
    %121 = vector.extract_strided_slice %120 {offsets = [0, 0], sizes = [1, 728], strides = [1, 1]} : vector<1x786xf32> to vector<1x728xf32>
    %c0_98 = arith.constant 0 : index
    %c0_99 = arith.constant 0 : index
    %122 = vector.load %arg5[%c0_98, %c0_99] : memref<32x728xf32, #tpu.memory_space<vmem>>, vector<1x728xf32>
    tpu.vector_store %arg5[%c0_98, %c0_99], %121 {strides = array<i32>} : memref<32x728xf32, #tpu.memory_space<vmem>>, vector<1x728xf32>,
    %123 = vector.extract_strided_slice %120 {offsets = [0, 1], sizes = [1, 728], strides = [1, 1]} : vector<1x786xf32> to vector<1x728xf32>
    %c1_100 = arith.constant 1 : index
    %c0_101 = arith.constant 0 : index
    %124 = vector.load %arg5[%c1_100, %c0_101] : memref<32x728xf32, #tpu.memory_space<vmem>>, vector<1x728xf32>
    tpu.vector_store %arg5[%c1_100, %c0_101], %123 {strides = array<i32>} : memref<32x728xf32, #tpu.memory_space<vmem>>, vector<1x728xf32>,
    %125 = vector.extract_strided_slice %120 {offsets = [0, 2], sizes = [1, 728], strides = [1, 1]} : vector<1x786xf32> to vector<1x728xf32>
    %c2_102 = arith.constant 2 : index
    %c0_103 = arith.constant 0 : index
    %126 = vector.load %arg5[%c2_102, %c0_103] : memref<32x728xf32, #tpu.memory_space<vmem>>, vector<1x728xf32>
    tpu.vector_store %arg5[%c2_102, %c0_103], %125 {strides = array<i32>} : memref<32x728xf32, #tpu.memory_space<vmem>>, vector<1x728xf32>,
    %127 = vector.extract_strided_slice %120 {offsets = [0, 28], sizes = [1, 728], strides = [1, 1]} : vector<1x786xf32> to vector<1x728xf32>
    %c3_104 = arith.constant 3 : index
    %c0_105 = arith.constant 0 : index
    %128 = vector.load %arg5[%c3_104, %c0_105] : memref<32x728xf32, #tpu.memory_space<vmem>>, vector<1x728xf32>
    tpu.vector_store %arg5[%c3_104, %c0_105], %127 {strides = array<i32>} : memref<32x728xf32, #tpu.memory_space<vmem>>, vector<1x728xf32>,
    %129 = vector.extract_strided_slice %120 {offsets = [0, 29], sizes = [1, 728], strides = [1, 1]} : vector<1x786xf32> to vector<1x728xf32>
    %c4_106 = arith.constant 4 : index
    %c0_107 = arith.constant 0 : index
    %130 = vector.load %arg5[%c4_106, %c0_107] : memref<32x728xf32, #tpu.memory_space<vmem>>, vector<1x728xf32>
    tpu.vector_store %arg5[%c4_106, %c0_107], %129 {strides = array<i32>} : memref<32x728xf32, #tpu.memory_space<vmem>>, vector<1x728xf32>,
    %131 = vector.extract_strided_slice %120 {offsets = [0, 30], sizes = [1, 728], strides = [1, 1]} : vector<1x786xf32> to vector<1x728xf32>
    %c5_108 = arith.constant 5 : index
    %c0_109 = arith.constant 0 : index
    %132 = vector.load %arg5[%c5_108, %c0_109] : memref<32x728xf32, #tpu.memory_space<vmem>>, vector<1x728xf32>
    tpu.vector_store %arg5[%c5_108, %c0_109], %131 {strides = array<i32>} : memref<32x728xf32, #tpu.memory_space<vmem>>, vector<1x728xf32>,
    %133 = vector.extract_strided_slice %120 {offsets = [0, 56], sizes = [1, 728], strides = [1, 1]} : vector<1x786xf32> to vector<1x728xf32>
    %c6_110 = arith.constant 6 : index
    %c0_111 = arith.constant 0 : index
    %134 = vector.load %arg5[%c6_110, %c0_111] : memref<32x728xf32, #tpu.memory_space<vmem>>, vector<1x728xf32>
    tpu.vector_store %arg5[%c6_110, %c0_111], %133 {strides = array<i32>} : memref<32x728xf32, #tpu.memory_space<vmem>>, vector<1x728xf32>,
    %135 = vector.extract_strided_slice %120 {offsets = [0, 57], sizes = [1, 728], strides = [1, 1]} : vector<1x786xf32> to vector<1x728xf32>
    %c7_112 = arith.constant 7 : index
    %c0_113 = arith.constant 0 : index
    %136 = vector.load %arg5[%c7_112, %c0_113] : memref<32x728xf32, #tpu.memory_space<vmem>>, vector<1x728xf32>
    tpu.vector_store %arg5[%c7_112, %c0_113], %135 {strides = array<i32>} : memref<32x728xf32, #tpu.memory_space<vmem>>, vector<1x728xf32>,
    %137 = vector.extract_strided_slice %120 {offsets = [0, 58], sizes = [1, 728], strides = [1, 1]} : vector<1x786xf32> to vector<1x728xf32>
    %c8_114 = arith.constant 8 : index
    %c0_115 = arith.constant 0 : index
    %138 = vector.load %arg5[%c8_114, %c0_115] : memref<32x728xf32, #tpu.memory_space<vmem>>, vector<1x728xf32>
    tpu.vector_store %arg5[%c8_114, %c0_115], %137 {strides = array<i32>} : memref<32x728xf32, #tpu.memory_space<vmem>>, vector<1x728xf32>,
    %c0_116 = arith.constant 0 : index
    %c0_117 = arith.constant 0 : index
    %139 = vector.load %arg5[%c0_116, %c0_117] : memref<32x728xf32, #tpu.memory_space<vmem>>, vector<16x728xf32>
    %cst_118 = arith.constant dense<0.000000e+00> : vector<32x728xf32>
    %140 = tpu.matmul %2, %139, %cst_118 {dimension_numbers = #tpu.dot_dimension_numbers<[1], [0], [0], [1], [0, 0, 1, 1], [], []>} : vector<32x16xf32>, vector<16x728xf32>, vector<32x728xf32> -> vector<32x728xf32>
    %141 = vector.broadcast %3 : vector<32x1xf32> to vector<32x728xf32>
    %142 = arith.addf %140, %141 : vector<32x728xf32>
    %cst_119 = arith.constant 0.000000e+00 : f32
    %143 = vector.broadcast %cst_119 : f32 to vector<32x728xf32>
    %144 = arith.maximumf %142, %143 : vector<32x728xf32>
    %145 = arith.truncf %144 : vector<32x728xf32> to vector<32x728xbf16>
    %c4_120 = arith.constant 4 : index
    %c0_121 = arith.constant 0 : index
    %c0_122 = arith.constant 0 : index
    %146 = vector.load %arg4[%c4_120, %c0_121, %c0_122] : memref<8x32x728xbf16, #tpu.memory_space<vmem>>, vector<1x32x728xbf16>
    %147 = vector.shape_cast %146 : vector<1x32x728xbf16> to vector<32x728xbf16>
    %148 = vector.shape_cast %145 : vector<32x728xbf16> to vector<1x32x728xbf16>
    tpu.vector_store %arg4[%c4_120, %c0_121, %c0_122], %148 {strides = array<i32>} : memref<8x32x728xbf16, #tpu.memory_space<vmem>>, vector<1x32x728xbf16>,
    %c5_123 = arith.constant 5 : index
    %c0_124 = arith.constant 0 : index
    %149 = vector.load %arg1[%c5_123, %c0_124] : memref<8x786xf32, #tpu.memory_space<vmem>>, vector<1x786xf32>
    %150 = vector.extract_strided_slice %149 {offsets = [0, 0], sizes = [1, 728], strides = [1, 1]} : vector<1x786xf32> to vector<1x728xf32>
    %c16_125 = arith.constant 16 : index
    %c0_126 = arith.constant 0 : index
    %151 = vector.load %arg5[%c16_125, %c0_126] : memref<32x728xf32, #tpu.memory_space<vmem>>, vector<1x728xf32>
    tpu.vector_store %arg5[%c16_125, %c0_126], %150 {strides = array<i32>} : memref<32x728xf32, #tpu.memory_space<vmem>>, vector<1x728xf32>,
    %152 = vector.extract_strided_slice %149 {offsets = [0, 1], sizes = [1, 728], strides = [1, 1]} : vector<1x786xf32> to vector<1x728xf32>
    %c17_127 = arith.constant 17 : index
    %c0_128 = arith.constant 0 : index
    %153 = vector.load %arg5[%c17_127, %c0_128] : memref<32x728xf32, #tpu.memory_space<vmem>>, vector<1x728xf32>
    tpu.vector_store %arg5[%c17_127, %c0_128], %152 {strides = array<i32>} : memref<32x728xf32, #tpu.memory_space<vmem>>, vector<1x728xf32>,
    %154 = vector.extract_strided_slice %149 {offsets = [0, 2], sizes = [1, 728], strides = [1, 1]} : vector<1x786xf32> to vector<1x728xf32>
    %c18_129 = arith.constant 18 : index
    %c0_130 = arith.constant 0 : index
    %155 = vector.load %arg5[%c18_129, %c0_130] : memref<32x728xf32, #tpu.memory_space<vmem>>, vector<1x728xf32>
    tpu.vector_store %arg5[%c18_129, %c0_130], %154 {strides = array<i32>} : memref<32x728xf32, #tpu.memory_space<vmem>>, vector<1x728xf32>,
    %156 = vector.extract_strided_slice %149 {offsets = [0, 28], sizes = [1, 728], strides = [1, 1]} : vector<1x786xf32> to vector<1x728xf32>
    %c19_131 = arith.constant 19 : index
    %c0_132 = arith.constant 0 : index
    %157 = vector.load %arg5[%c19_131, %c0_132] : memref<32x728xf32, #tpu.memory_space<vmem>>, vector<1x728xf32>
    tpu.vector_store %arg5[%c19_131, %c0_132], %156 {strides = array<i32>} : memref<32x728xf32, #tpu.memory_space<vmem>>, vector<1x728xf32>,
    %158 = vector.extract_strided_slice %149 {offsets = [0, 29], sizes = [1, 728], strides = [1, 1]} : vector<1x786xf32> to vector<1x728xf32>
    %c20_133 = arith.constant 20 : index
    %c0_134 = arith.constant 0 : index
    %159 = vector.load %arg5[%c20_133, %c0_134] : memref<32x728xf32, #tpu.memory_space<vmem>>, vector<1x728xf32>
    tpu.vector_store %arg5[%c20_133, %c0_134], %158 {strides = array<i32>} : memref<32x728xf32, #tpu.memory_space<vmem>>, vector<1x728xf32>,
    %160 = vector.extract_strided_slice %149 {offsets = [0, 30], sizes = [1, 728], strides = [1, 1]} : vector<1x786xf32> to vector<1x728xf32>
    %c21_135 = arith.constant 21 : index
    %c0_136 = arith.constant 0 : index
    %161 = vector.load %arg5[%c21_135, %c0_136] : memref<32x728xf32, #tpu.memory_space<vmem>>, vector<1x728xf32>
    tpu.vector_store %arg5[%c21_135, %c0_136], %160 {strides = array<i32>} : memref<32x728xf32, #tpu.memory_space<vmem>>, vector<1x728xf32>,
    %162 = vector.extract_strided_slice %149 {offsets = [0, 56], sizes = [1, 728], strides = [1, 1]} : vector<1x786xf32> to vector<1x728xf32>
    %c22_137 = arith.constant 22 : index
    %c0_138 = arith.constant 0 : index
    %163 = vector.load %arg5[%c22_137, %c0_138] : memref<32x728xf32, #tpu.memory_space<vmem>>, vector<1x728xf32>
    tpu.vector_store %arg5[%c22_137, %c0_138], %162 {strides = array<i32>} : memref<32x728xf32, #tpu.memory_space<vmem>>, vector<1x728xf32>,
    %164 = vector.extract_strided_slice %149 {offsets = [0, 57], sizes = [1, 728], strides = [1, 1]} : vector<1x786xf32> to vector<1x728xf32>
    %c23_139 = arith.constant 23 : index
    %c0_140 = arith.constant 0 : index
    %165 = vector.load %arg5[%c23_139, %c0_140] : memref<32x728xf32, #tpu.memory_space<vmem>>, vector<1x728xf32>
    tpu.vector_store %arg5[%c23_139, %c0_140], %164 {strides = array<i32>} : memref<32x728xf32, #tpu.memory_space<vmem>>, vector<1x728xf32>,
    %166 = vector.extract_strided_slice %149 {offsets = [0, 58], sizes = [1, 728], strides = [1, 1]} : vector<1x786xf32> to vector<1x728xf32>
    %c24_141 = arith.constant 24 : index
    %c0_142 = arith.constant 0 : index
    %167 = vector.load %arg5[%c24_141, %c0_142] : memref<32x728xf32, #tpu.memory_space<vmem>>, vector<1x728xf32>
    tpu.vector_store %arg5[%c24_141, %c0_142], %166 {strides = array<i32>} : memref<32x728xf32, #tpu.memory_space<vmem>>, vector<1x728xf32>,
    %c16_143 = arith.constant 16 : index
    %c0_144 = arith.constant 0 : index
    %168 = vector.load %arg5[%c16_143, %c0_144] : memref<32x728xf32, #tpu.memory_space<vmem>>, vector<16x728xf32>
    %cst_145 = arith.constant dense<0.000000e+00> : vector<32x728xf32>
    %169 = tpu.matmul %2, %168, %cst_145 {dimension_numbers = #tpu.dot_dimension_numbers<[1], [0], [0], [1], [0, 0, 1, 1], [], []>} : vector<32x16xf32>, vector<16x728xf32>, vector<32x728xf32> -> vector<32x728xf32>
    %170 = vector.broadcast %3 : vector<32x1xf32> to vector<32x728xf32>
    %171 = arith.addf %169, %170 : vector<32x728xf32>
    %cst_146 = arith.constant 0.000000e+00 : f32
    %172 = vector.broadcast %cst_146 : f32 to vector<32x728xf32>
    %173 = arith.maximumf %171, %172 : vector<32x728xf32>
    %174 = arith.truncf %173 : vector<32x728xf32> to vector<32x728xbf16>
    %c5_147 = arith.constant 5 : index
    %c0_148 = arith.constant 0 : index
    %c0_149 = arith.constant 0 : index
    %175 = vector.load %arg4[%c5_147, %c0_148, %c0_149] : memref<8x32x728xbf16, #tpu.memory_space<vmem>>, vector<1x32x728xbf16>
    %176 = vector.shape_cast %175 : vector<1x32x728xbf16> to vector<32x728xbf16>
    %177 = vector.shape_cast %174 : vector<32x728xbf16> to vector<1x32x728xbf16>
    tpu.vector_store %arg4[%c5_147, %c0_148, %c0_149], %177 {strides = array<i32>} : memref<8x32x728xbf16, #tpu.memory_space<vmem>>, vector<1x32x728xbf16>,
    %c6_150 = arith.constant 6 : index
    %c0_151 = arith.constant 0 : index
    %178 = vector.load %arg1[%c6_150, %c0_151] : memref<8x786xf32, #tpu.memory_space<vmem>>, vector<1x786xf32>
    %179 = vector.extract_strided_slice %178 {offsets = [0, 0], sizes = [1, 728], strides = [1, 1]} : vector<1x786xf32> to vector<1x728xf32>
    %c0_152 = arith.constant 0 : index
    %c0_153 = arith.constant 0 : index
    %180 = vector.load %arg5[%c0_152, %c0_153] : memref<32x728xf32, #tpu.memory_space<vmem>>, vector<1x728xf32>
    tpu.vector_store %arg5[%c0_152, %c0_153], %179 {strides = array<i32>} : memref<32x728xf32, #tpu.memory_space<vmem>>, vector<1x728xf32>,
    %181 = vector.extract_strided_slice %178 {offsets = [0, 1], sizes = [1, 728], strides = [1, 1]} : vector<1x786xf32> to vector<1x728xf32>
    %c1_154 = arith.constant 1 : index
    %c0_155 = arith.constant 0 : index
    %182 = vector.load %arg5[%c1_154, %c0_155] : memref<32x728xf32, #tpu.memory_space<vmem>>, vector<1x728xf32>
    tpu.vector_store %arg5[%c1_154, %c0_155], %181 {strides = array<i32>} : memref<32x728xf32, #tpu.memory_space<vmem>>, vector<1x728xf32>,
    %183 = vector.extract_strided_slice %178 {offsets = [0, 2], sizes = [1, 728], strides = [1, 1]} : vector<1x786xf32> to vector<1x728xf32>
    %c2_156 = arith.constant 2 : index
    %c0_157 = arith.constant 0 : index
    %184 = vector.load %arg5[%c2_156, %c0_157] : memref<32x728xf32, #tpu.memory_space<vmem>>, vector<1x728xf32>
    tpu.vector_store %arg5[%c2_156, %c0_157], %183 {strides = array<i32>} : memref<32x728xf32, #tpu.memory_space<vmem>>, vector<1x728xf32>,
    %185 = vector.extract_strided_slice %178 {offsets = [0, 28], sizes = [1, 728], strides = [1, 1]} : vector<1x786xf32> to vector<1x728xf32>
    %c3_158 = arith.constant 3 : index
    %c0_159 = arith.constant 0 : index
    %186 = vector.load %arg5[%c3_158, %c0_159] : memref<32x728xf32, #tpu.memory_space<vmem>>, vector<1x728xf32>
    tpu.vector_store %arg5[%c3_158, %c0_159], %185 {strides = array<i32>} : memref<32x728xf32, #tpu.memory_space<vmem>>, vector<1x728xf32>,
    %187 = vector.extract_strided_slice %178 {offsets = [0, 29], sizes = [1, 728], strides = [1, 1]} : vector<1x786xf32> to vector<1x728xf32>
    %c4_160 = arith.constant 4 : index
    %c0_161 = arith.constant 0 : index
    %188 = vector.load %arg5[%c4_160, %c0_161] : memref<32x728xf32, #tpu.memory_space<vmem>>, vector<1x728xf32>
    tpu.vector_store %arg5[%c4_160, %c0_161], %187 {strides = array<i32>} : memref<32x728xf32, #tpu.memory_space<vmem>>, vector<1x728xf32>,
    %189 = vector.extract_strided_slice %178 {offsets = [0, 30], sizes = [1, 728], strides = [1, 1]} : vector<1x786xf32> to vector<1x728xf32>
    %c5_162 = arith.constant 5 : index
    %c0_163 = arith.constant 0 : index
    %190 = vector.load %arg5[%c5_162, %c0_163] : memref<32x728xf32, #tpu.memory_space<vmem>>, vector<1x728xf32>
    tpu.vector_store %arg5[%c5_162, %c0_163], %189 {strides = array<i32>} : memref<32x728xf32, #tpu.memory_space<vmem>>, vector<1x728xf32>,
    %191 = vector.extract_strided_slice %178 {offsets = [0, 56], sizes = [1, 728], strides = [1, 1]} : vector<1x786xf32> to vector<1x728xf32>
    %c6_164 = arith.constant 6 : index
    %c0_165 = arith.constant 0 : index
    %192 = vector.load %arg5[%c6_164, %c0_165] : memref<32x728xf32, #tpu.memory_space<vmem>>, vector<1x728xf32>
    tpu.vector_store %arg5[%c6_164, %c0_165], %191 {strides = array<i32>} : memref<32x728xf32, #tpu.memory_space<vmem>>, vector<1x728xf32>,
    %193 = vector.extract_strided_slice %178 {offsets = [0, 57], sizes = [1, 728], strides = [1, 1]} : vector<1x786xf32> to vector<1x728xf32>
    %c7_166 = arith.constant 7 : index
    %c0_167 = arith.constant 0 : index
    %194 = vector.load %arg5[%c7_166, %c0_167] : memref<32x728xf32, #tpu.memory_space<vmem>>, vector<1x728xf32>
    tpu.vector_store %arg5[%c7_166, %c0_167], %193 {strides = array<i32>} : memref<32x728xf32, #tpu.memory_space<vmem>>, vector<1x728xf32>,
    %195 = vector.extract_strided_slice %178 {offsets = [0, 58], sizes = [1, 728], strides = [1, 1]} : vector<1x786xf32> to vector<1x728xf32>
    %c8_168 = arith.constant 8 : index
    %c0_169 = arith.constant 0 : index
    %196 = vector.load %arg5[%c8_168, %c0_169] : memref<32x728xf32, #tpu.memory_space<vmem>>, vector<1x728xf32>
    tpu.vector_store %arg5[%c8_168, %c0_169], %195 {strides = array<i32>} : memref<32x728xf32, #tpu.memory_space<vmem>>, vector<1x728xf32>,
    %c0_170 = arith.constant 0 : index
    %c0_171 = arith.constant 0 : index
    %197 = vector.load %arg5[%c0_170, %c0_171] : memref<32x728xf32, #tpu.memory_space<vmem>>, vector<16x728xf32>
    %cst_172 = arith.constant dense<0.000000e+00> : vector<32x728xf32>
    %198 = tpu.matmul %2, %197, %cst_172 {dimension_numbers = #tpu.dot_dimension_numbers<[1], [0], [0], [1], [0, 0, 1, 1], [], []>} : vector<32x16xf32>, vector<16x728xf32>, vector<32x728xf32> -> vector<32x728xf32>
    %199 = vector.broadcast %3 : vector<32x1xf32> to vector<32x728xf32>
    %200 = arith.addf %198, %199 : vector<32x728xf32>
    %cst_173 = arith.constant 0.000000e+00 : f32
    %201 = vector.broadcast %cst_173 : f32 to vector<32x728xf32>
    %202 = arith.maximumf %200, %201 : vector<32x728xf32>
    %203 = arith.truncf %202 : vector<32x728xf32> to vector<32x728xbf16>
    %c6_174 = arith.constant 6 : index
    %c0_175 = arith.constant 0 : index
    %c0_176 = arith.constant 0 : index
    %204 = vector.load %arg4[%c6_174, %c0_175, %c0_176] : memref<8x32x728xbf16, #tpu.memory_space<vmem>>, vector<1x32x728xbf16>
    %205 = vector.shape_cast %204 : vector<1x32x728xbf16> to vector<32x728xbf16>
    %206 = vector.shape_cast %203 : vector<32x728xbf16> to vector<1x32x728xbf16>
    tpu.vector_store %arg4[%c6_174, %c0_175, %c0_176], %206 {strides = array<i32>} : memref<8x32x728xbf16, #tpu.memory_space<vmem>>, vector<1x32x728xbf16>,
    %c7_177 = arith.constant 7 : index
    %c0_178 = arith.constant 0 : index
    %207 = vector.load %arg1[%c7_177, %c0_178] : memref<8x786xf32, #tpu.memory_space<vmem>>, vector<1x786xf32>
    %208 = vector.extract_strided_slice %207 {offsets = [0, 0], sizes = [1, 728], strides = [1, 1]} : vector<1x786xf32> to vector<1x728xf32>
    %c16_179 = arith.constant 16 : index
    %c0_180 = arith.constant 0 : index
    %209 = vector.load %arg5[%c16_179, %c0_180] : memref<32x728xf32, #tpu.memory_space<vmem>>, vector<1x728xf32>
    tpu.vector_store %arg5[%c16_179, %c0_180], %208 {strides = array<i32>} : memref<32x728xf32, #tpu.memory_space<vmem>>, vector<1x728xf32>,
    %210 = vector.extract_strided_slice %207 {offsets = [0, 1], sizes = [1, 728], strides = [1, 1]} : vector<1x786xf32> to vector<1x728xf32>
    %c17_181 = arith.constant 17 : index
    %c0_182 = arith.constant 0 : index
    %211 = vector.load %arg5[%c17_181, %c0_182] : memref<32x728xf32, #tpu.memory_space<vmem>>, vector<1x728xf32>
    tpu.vector_store %arg5[%c17_181, %c0_182], %210 {strides = array<i32>} : memref<32x728xf32, #tpu.memory_space<vmem>>, vector<1x728xf32>,
    %212 = vector.extract_strided_slice %207 {offsets = [0, 2], sizes = [1, 728], strides = [1, 1]} : vector<1x786xf32> to vector<1x728xf32>
    %c18_183 = arith.constant 18 : index
    %c0_184 = arith.constant 0 : index
    %213 = vector.load %arg5[%c18_183, %c0_184] : memref<32x728xf32, #tpu.memory_space<vmem>>, vector<1x728xf32>
    tpu.vector_store %arg5[%c18_183, %c0_184], %212 {strides = array<i32>} : memref<32x728xf32, #tpu.memory_space<vmem>>, vector<1x728xf32>,
    %214 = vector.extract_strided_slice %207 {offsets = [0, 28], sizes = [1, 728], strides = [1, 1]} : vector<1x786xf32> to vector<1x728xf32>
    %c19_185 = arith.constant 19 : index
    %c0_186 = arith.constant 0 : index
    %215 = vector.load %arg5[%c19_185, %c0_186] : memref<32x728xf32, #tpu.memory_space<vmem>>, vector<1x728xf32>
    tpu.vector_store %arg5[%c19_185, %c0_186], %214 {strides = array<i32>} : memref<32x728xf32, #tpu.memory_space<vmem>>, vector<1x728xf32>,
    %216 = vector.extract_strided_slice %207 {offsets = [0, 29], sizes = [1, 728], strides = [1, 1]} : vector<1x786xf32> to vector<1x728xf32>
    %c20_187 = arith.constant 20 : index
    %c0_188 = arith.constant 0 : index
    %217 = vector.load %arg5[%c20_187, %c0_188] : memref<32x728xf32, #tpu.memory_space<vmem>>, vector<1x728xf32>
    tpu.vector_store %arg5[%c20_187, %c0_188], %216 {strides = array<i32>} : memref<32x728xf32, #tpu.memory_space<vmem>>, vector<1x728xf32>,
    %218 = vector.extract_strided_slice %207 {offsets = [0, 30], sizes = [1, 728], strides = [1, 1]} : vector<1x786xf32> to vector<1x728xf32>
    %c21_189 = arith.constant 21 : index
    %c0_190 = arith.constant 0 : index
    %219 = vector.load %arg5[%c21_189, %c0_190] : memref<32x728xf32, #tpu.memory_space<vmem>>, vector<1x728xf32>
    tpu.vector_store %arg5[%c21_189, %c0_190], %218 {strides = array<i32>} : memref<32x728xf32, #tpu.memory_space<vmem>>, vector<1x728xf32>,
    %220 = vector.extract_strided_slice %207 {offsets = [0, 56], sizes = [1, 728], strides = [1, 1]} : vector<1x786xf32> to vector<1x728xf32>
    %c22_191 = arith.constant 22 : index
    %c0_192 = arith.constant 0 : index
    %221 = vector.load %arg5[%c22_191, %c0_192] : memref<32x728xf32, #tpu.memory_space<vmem>>, vector<1x728xf32>
    tpu.vector_store %arg5[%c22_191, %c0_192], %220 {strides = array<i32>} : memref<32x728xf32, #tpu.memory_space<vmem>>, vector<1x728xf32>,
    %222 = vector.extract_strided_slice %207 {offsets = [0, 57], sizes = [1, 728], strides = [1, 1]} : vector<1x786xf32> to vector<1x728xf32>
    %c23_193 = arith.constant 23 : index
    %c0_194 = arith.constant 0 : index
    %223 = vector.load %arg5[%c23_193, %c0_194] : memref<32x728xf32, #tpu.memory_space<vmem>>, vector<1x728xf32>
    tpu.vector_store %arg5[%c23_193, %c0_194], %222 {strides = array<i32>} : memref<32x728xf32, #tpu.memory_space<vmem>>, vector<1x728xf32>,
    %224 = vector.extract_strided_slice %207 {offsets = [0, 58], sizes = [1, 728], strides = [1, 1]} : vector<1x786xf32> to vector<1x728xf32>
    %c24_195 = arith.constant 24 : index
    %c0_196 = arith.constant 0 : index
    %225 = vector.load %arg5[%c24_195, %c0_196] : memref<32x728xf32, #tpu.memory_space<vmem>>, vector<1x728xf32>
    tpu.vector_store %arg5[%c24_195, %c0_196], %224 {strides = array<i32>} : memref<32x728xf32, #tpu.memory_space<vmem>>, vector<1x728xf32>,
    %c16_197 = arith.constant 16 : index
    %c0_198 = arith.constant 0 : index
    %226 = vector.load %arg5[%c16_197, %c0_198] : memref<32x728xf32, #tpu.memory_space<vmem>>, vector<16x728xf32>
    %cst_199 = arith.constant dense<0.000000e+00> : vector<32x728xf32>
    %227 = tpu.matmul %2, %226, %cst_199 {dimension_numbers = #tpu.dot_dimension_numbers<[1], [0], [0], [1], [0, 0, 1, 1], [], []>} : vector<32x16xf32>, vector<16x728xf32>, vector<32x728xf32> -> vector<32x728xf32>
    %228 = vector.broadcast %3 : vector<32x1xf32> to vector<32x728xf32>
    %229 = arith.addf %227, %228 : vector<32x728xf32>
    %cst_200 = arith.constant 0.000000e+00 : f32
    %230 = vector.broadcast %cst_200 : f32 to vector<32x728xf32>
    %231 = arith.maximumf %229, %230 : vector<32x728xf32>
    %232 = arith.truncf %231 : vector<32x728xf32> to vector<32x728xbf16>
    %c7_201 = arith.constant 7 : index
    %c0_202 = arith.constant 0 : index
    %c0_203 = arith.constant 0 : index
    %233 = vector.load %arg4[%c7_201, %c0_202, %c0_203] : memref<8x32x728xbf16, #tpu.memory_space<vmem>>, vector<1x32x728xbf16>
    %234 = vector.shape_cast %233 : vector<1x32x728xbf16> to vector<32x728xbf16>
    %235 = vector.shape_cast %232 : vector<32x728xbf16> to vector<1x32x728xbf16>
    tpu.vector_store %arg4[%c7_201, %c0_202, %c0_203], %235 {strides = array<i32>} : memref<8x32x728xbf16, #tpu.memory_space<vmem>>, vector<1x32x728xbf16>,
    return
  }
  func.func @transform_0(%arg0: i32) -> (i32, i32) {
    %c0_i32 = arith.constant 0 : i32
    %c0_i32_0 = arith.constant 0 : i32
    return %arg0, %c0_i32 : i32, i32
  }
  func.func @transform_1(%arg0: i32) -> (i32, i32) {
    %c0_i32 = arith.constant 0 : i32
    %c0_i32_0 = arith.constant 0 : i32
    %c0_i32_1 = arith.constant 0 : i32
    return %c0_i32, %c0_i32_0 : i32, i32
  }
  func.func @transform_2(%arg0: i32) -> (i32, i32) {
    %c0_i32 = arith.constant 0 : i32
    %c0_i32_0 = arith.constant 0 : i32
    %c0_i32_1 = arith.constant 0 : i32
    return %c0_i32, %c0_i32_0 : i32, i32
  }
  func.func @transform_3(%arg0: i32) -> (i32, i32, i32) {
    %c0_i32 = arith.constant 0 : i32
    %c0_i32_0 = arith.constant 0 : i32
    %c0_i32_1 = arith.constant 0 : i32
    return %arg0, %c0_i32, %c0_i32_0 : i32, i32, i32
  }
}

module attributes {stable_mosaic.version = 11 : i64} {
  func.func @conv2_kernel(%arg0: i32, %arg1: memref<8x32x171xbf16, #tpu.memory_space<vmem>>, %arg2: memref<64x288xbf16, #tpu.memory_space<vmem>>, %arg3: memref<64x1xf32, #tpu.memory_space<vmem>>, %arg4: memref<8x64x143xbf16, #tpu.memory_space<vmem>>, %arg5: memref<576x143xbf16, #tpu.memory_space<vmem>>) attributes {dimension_semantics = [#tpu.dimension_semantics<parallel>], iteration_bounds = array<i64: 1>, scalar_prefetch = 0 : i64, scratch_operands = 1 : i64, tpu.core_type = #tpu.core_type<tc>, window_params = [{transform_indices = @transform_0, window_bounds = array<i64: 8, 32, 171>}, {pipeline_mode = #tpu.pipeline_mode<synchronous>, transform_indices = @transform_1, window_bounds = array<i64: 64, 288>}, {pipeline_mode = #tpu.pipeline_mode<synchronous>, transform_indices = @transform_2, window_bounds = array<i64: 64, 1>}, {transform_indices = @transform_3, window_bounds = array<i64: 8, 64, 143>}]} {
    %c0 = arith.constant 0 : index
    %c0_0 = arith.constant 0 : index
    %0 = vector.load %arg2[%c0, %c0_0] : memref<64x288xbf16, #tpu.memory_space<vmem>>, vector<64x288xbf16>
    %c0_1 = arith.constant 0 : index
    %c0_2 = arith.constant 0 : index
    %1 = vector.load %arg3[%c0_1, %c0_2] : memref<64x1xf32, #tpu.memory_space<vmem>>, vector<64x1xf32>
    %c0_3 = arith.constant 0 : index
    %c0_4 = arith.constant 0 : index
    %c0_5 = arith.constant 0 : index
    %2 = vector.load %arg1[%c0_3, %c0_4, %c0_5] : memref<8x32x171xbf16, #tpu.memory_space<vmem>>, vector<1x32x171xbf16>
    %3 = vector.shape_cast %2 : vector<1x32x171xbf16> to vector<32x171xbf16>
    %4 = vector.extract_strided_slice %3 {offsets = [0, 0], sizes = [32, 143], strides = [1, 1]} : vector<32x171xbf16> to vector<32x143xbf16>
    %c0_6 = arith.constant 0 : index
    %c0_7 = arith.constant 0 : index
    %5 = vector.load %arg5[%c0_6, %c0_7] : memref<576x143xbf16, #tpu.memory_space<vmem>>, vector<32x143xbf16>
    tpu.vector_store %arg5[%c0_6, %c0_7], %4 {strides = array<i32>} : memref<576x143xbf16, #tpu.memory_space<vmem>>, vector<32x143xbf16>,
    %6 = vector.extract_strided_slice %3 {offsets = [0, 1], sizes = [32, 143], strides = [1, 1]} : vector<32x171xbf16> to vector<32x143xbf16>
    %c32 = arith.constant 32 : index
    %c0_8 = arith.constant 0 : index
    %7 = vector.load %arg5[%c32, %c0_8] : memref<576x143xbf16, #tpu.memory_space<vmem>>, vector<32x143xbf16>
    tpu.vector_store %arg5[%c32, %c0_8], %6 {strides = array<i32>} : memref<576x143xbf16, #tpu.memory_space<vmem>>, vector<32x143xbf16>,
    %8 = vector.extract_strided_slice %3 {offsets = [0, 2], sizes = [32, 143], strides = [1, 1]} : vector<32x171xbf16> to vector<32x143xbf16>
    %c64 = arith.constant 64 : index
    %c0_9 = arith.constant 0 : index
    %9 = vector.load %arg5[%c64, %c0_9] : memref<576x143xbf16, #tpu.memory_space<vmem>>, vector<32x143xbf16>
    tpu.vector_store %arg5[%c64, %c0_9], %8 {strides = array<i32>} : memref<576x143xbf16, #tpu.memory_space<vmem>>, vector<32x143xbf16>,
    %10 = vector.extract_strided_slice %3 {offsets = [0, 13], sizes = [32, 143], strides = [1, 1]} : vector<32x171xbf16> to vector<32x143xbf16>
    %c96 = arith.constant 96 : index
    %c0_10 = arith.constant 0 : index
    %11 = vector.load %arg5[%c96, %c0_10] : memref<576x143xbf16, #tpu.memory_space<vmem>>, vector<32x143xbf16>
    tpu.vector_store %arg5[%c96, %c0_10], %10 {strides = array<i32>} : memref<576x143xbf16, #tpu.memory_space<vmem>>, vector<32x143xbf16>,
    %12 = vector.extract_strided_slice %3 {offsets = [0, 14], sizes = [32, 143], strides = [1, 1]} : vector<32x171xbf16> to vector<32x143xbf16>
    %c128 = arith.constant 128 : index
    %c0_11 = arith.constant 0 : index
    %13 = vector.load %arg5[%c128, %c0_11] : memref<576x143xbf16, #tpu.memory_space<vmem>>, vector<32x143xbf16>
    tpu.vector_store %arg5[%c128, %c0_11], %12 {strides = array<i32>} : memref<576x143xbf16, #tpu.memory_space<vmem>>, vector<32x143xbf16>,
    %14 = vector.extract_strided_slice %3 {offsets = [0, 15], sizes = [32, 143], strides = [1, 1]} : vector<32x171xbf16> to vector<32x143xbf16>
    %c160 = arith.constant 160 : index
    %c0_12 = arith.constant 0 : index
    %15 = vector.load %arg5[%c160, %c0_12] : memref<576x143xbf16, #tpu.memory_space<vmem>>, vector<32x143xbf16>
    tpu.vector_store %arg5[%c160, %c0_12], %14 {strides = array<i32>} : memref<576x143xbf16, #tpu.memory_space<vmem>>, vector<32x143xbf16>,
    %16 = vector.extract_strided_slice %3 {offsets = [0, 26], sizes = [32, 143], strides = [1, 1]} : vector<32x171xbf16> to vector<32x143xbf16>
    %c192 = arith.constant 192 : index
    %c0_13 = arith.constant 0 : index
    %17 = vector.load %arg5[%c192, %c0_13] : memref<576x143xbf16, #tpu.memory_space<vmem>>, vector<32x143xbf16>
    tpu.vector_store %arg5[%c192, %c0_13], %16 {strides = array<i32>} : memref<576x143xbf16, #tpu.memory_space<vmem>>, vector<32x143xbf16>,
    %18 = vector.extract_strided_slice %3 {offsets = [0, 27], sizes = [32, 143], strides = [1, 1]} : vector<32x171xbf16> to vector<32x143xbf16>
    %c224 = arith.constant 224 : index
    %c0_14 = arith.constant 0 : index
    %19 = vector.load %arg5[%c224, %c0_14] : memref<576x143xbf16, #tpu.memory_space<vmem>>, vector<32x143xbf16>
    tpu.vector_store %arg5[%c224, %c0_14], %18 {strides = array<i32>} : memref<576x143xbf16, #tpu.memory_space<vmem>>, vector<32x143xbf16>,
    %20 = vector.extract_strided_slice %3 {offsets = [0, 28], sizes = [32, 143], strides = [1, 1]} : vector<32x171xbf16> to vector<32x143xbf16>
    %c256 = arith.constant 256 : index
    %c0_15 = arith.constant 0 : index
    %21 = vector.load %arg5[%c256, %c0_15] : memref<576x143xbf16, #tpu.memory_space<vmem>>, vector<32x143xbf16>
    tpu.vector_store %arg5[%c256, %c0_15], %20 {strides = array<i32>} : memref<576x143xbf16, #tpu.memory_space<vmem>>, vector<32x143xbf16>,
    %c0_16 = arith.constant 0 : index
    %c0_17 = arith.constant 0 : index
    %22 = vector.load %arg5[%c0_16, %c0_17] : memref<576x143xbf16, #tpu.memory_space<vmem>>, vector<288x143xbf16>
    %cst = arith.constant dense<0.000000e+00> : vector<64x143xf32>
    %23 = tpu.matmul %0, %22, %cst {dimension_numbers = #tpu.dot_dimension_numbers<[1], [0], [0], [1], [0, 0, 1, 1], [], []>} : vector<64x288xbf16>, vector<288x143xbf16>, vector<64x143xf32> -> vector<64x143xf32>
    %24 = vector.broadcast %1 : vector<64x1xf32> to vector<64x143xf32>
    %25 = arith.addf %23, %24 : vector<64x143xf32>
    %cst_18 = arith.constant 0.000000e+00 : f32
    %26 = vector.broadcast %cst_18 : f32 to vector<64x143xf32>
    %27 = arith.maximumf %25, %26 : vector<64x143xf32>
    %28 = arith.truncf %27 : vector<64x143xf32> to vector<64x143xbf16>
    %c0_19 = arith.constant 0 : index
    %c0_20 = arith.constant 0 : index
    %c0_21 = arith.constant 0 : index
    %29 = vector.load %arg4[%c0_19, %c0_20, %c0_21] : memref<8x64x143xbf16, #tpu.memory_space<vmem>>, vector<1x64x143xbf16>
    %30 = vector.shape_cast %29 : vector<1x64x143xbf16> to vector<64x143xbf16>
    %31 = vector.shape_cast %28 : vector<64x143xbf16> to vector<1x64x143xbf16>
    tpu.vector_store %arg4[%c0_19, %c0_20, %c0_21], %31 {strides = array<i32>} : memref<8x64x143xbf16, #tpu.memory_space<vmem>>, vector<1x64x143xbf16>,
    %c1 = arith.constant 1 : index
    %c0_22 = arith.constant 0 : index
    %c0_23 = arith.constant 0 : index
    %32 = vector.load %arg1[%c1, %c0_22, %c0_23] : memref<8x32x171xbf16, #tpu.memory_space<vmem>>, vector<1x32x171xbf16>
    %33 = vector.shape_cast %32 : vector<1x32x171xbf16> to vector<32x171xbf16>
    %34 = vector.extract_strided_slice %33 {offsets = [0, 0], sizes = [32, 143], strides = [1, 1]} : vector<32x171xbf16> to vector<32x143xbf16>
    %c288 = arith.constant 288 : index
    %c0_24 = arith.constant 0 : index
    %35 = vector.load %arg5[%c288, %c0_24] : memref<576x143xbf16, #tpu.memory_space<vmem>>, vector<32x143xbf16>
    tpu.vector_store %arg5[%c288, %c0_24], %34 {strides = array<i32>} : memref<576x143xbf16, #tpu.memory_space<vmem>>, vector<32x143xbf16>,
    %36 = vector.extract_strided_slice %33 {offsets = [0, 1], sizes = [32, 143], strides = [1, 1]} : vector<32x171xbf16> to vector<32x143xbf16>
    %c320 = arith.constant 320 : index
    %c0_25 = arith.constant 0 : index
    %37 = vector.load %arg5[%c320, %c0_25] : memref<576x143xbf16, #tpu.memory_space<vmem>>, vector<32x143xbf16>
    tpu.vector_store %arg5[%c320, %c0_25], %36 {strides = array<i32>} : memref<576x143xbf16, #tpu.memory_space<vmem>>, vector<32x143xbf16>,
    %38 = vector.extract_strided_slice %33 {offsets = [0, 2], sizes = [32, 143], strides = [1, 1]} : vector<32x171xbf16> to vector<32x143xbf16>
    %c352 = arith.constant 352 : index
    %c0_26 = arith.constant 0 : index
    %39 = vector.load %arg5[%c352, %c0_26] : memref<576x143xbf16, #tpu.memory_space<vmem>>, vector<32x143xbf16>
    tpu.vector_store %arg5[%c352, %c0_26], %38 {strides = array<i32>} : memref<576x143xbf16, #tpu.memory_space<vmem>>, vector<32x143xbf16>,
    %40 = vector.extract_strided_slice %33 {offsets = [0, 13], sizes = [32, 143], strides = [1, 1]} : vector<32x171xbf16> to vector<32x143xbf16>
    %c384 = arith.constant 384 : index
    %c0_27 = arith.constant 0 : index
    %41 = vector.load %arg5[%c384, %c0_27] : memref<576x143xbf16, #tpu.memory_space<vmem>>, vector<32x143xbf16>
    tpu.vector_store %arg5[%c384, %c0_27], %40 {strides = array<i32>} : memref<576x143xbf16, #tpu.memory_space<vmem>>, vector<32x143xbf16>,
    %42 = vector.extract_strided_slice %33 {offsets = [0, 14], sizes = [32, 143], strides = [1, 1]} : vector<32x171xbf16> to vector<32x143xbf16>
    %c416 = arith.constant 416 : index
    %c0_28 = arith.constant 0 : index
    %43 = vector.load %arg5[%c416, %c0_28] : memref<576x143xbf16, #tpu.memory_space<vmem>>, vector<32x143xbf16>
    tpu.vector_store %arg5[%c416, %c0_28], %42 {strides = array<i32>} : memref<576x143xbf16, #tpu.memory_space<vmem>>, vector<32x143xbf16>,
    %44 = vector.extract_strided_slice %33 {offsets = [0, 15], sizes = [32, 143], strides = [1, 1]} : vector<32x171xbf16> to vector<32x143xbf16>
    %c448 = arith.constant 448 : index
    %c0_29 = arith.constant 0 : index
    %45 = vector.load %arg5[%c448, %c0_29] : memref<576x143xbf16, #tpu.memory_space<vmem>>, vector<32x143xbf16>
    tpu.vector_store %arg5[%c448, %c0_29], %44 {strides = array<i32>} : memref<576x143xbf16, #tpu.memory_space<vmem>>, vector<32x143xbf16>,
    %46 = vector.extract_strided_slice %33 {offsets = [0, 26], sizes = [32, 143], strides = [1, 1]} : vector<32x171xbf16> to vector<32x143xbf16>
    %c480 = arith.constant 480 : index
    %c0_30 = arith.constant 0 : index
    %47 = vector.load %arg5[%c480, %c0_30] : memref<576x143xbf16, #tpu.memory_space<vmem>>, vector<32x143xbf16>
    tpu.vector_store %arg5[%c480, %c0_30], %46 {strides = array<i32>} : memref<576x143xbf16, #tpu.memory_space<vmem>>, vector<32x143xbf16>,
    %48 = vector.extract_strided_slice %33 {offsets = [0, 27], sizes = [32, 143], strides = [1, 1]} : vector<32x171xbf16> to vector<32x143xbf16>
    %c512 = arith.constant 512 : index
    %c0_31 = arith.constant 0 : index
    %49 = vector.load %arg5[%c512, %c0_31] : memref<576x143xbf16, #tpu.memory_space<vmem>>, vector<32x143xbf16>
    tpu.vector_store %arg5[%c512, %c0_31], %48 {strides = array<i32>} : memref<576x143xbf16, #tpu.memory_space<vmem>>, vector<32x143xbf16>,
    %50 = vector.extract_strided_slice %33 {offsets = [0, 28], sizes = [32, 143], strides = [1, 1]} : vector<32x171xbf16> to vector<32x143xbf16>
    %c544 = arith.constant 544 : index
    %c0_32 = arith.constant 0 : index
    %51 = vector.load %arg5[%c544, %c0_32] : memref<576x143xbf16, #tpu.memory_space<vmem>>, vector<32x143xbf16>
    tpu.vector_store %arg5[%c544, %c0_32], %50 {strides = array<i32>} : memref<576x143xbf16, #tpu.memory_space<vmem>>, vector<32x143xbf16>,
    %c288_33 = arith.constant 288 : index
    %c0_34 = arith.constant 0 : index
    %52 = vector.load %arg5[%c288_33, %c0_34] : memref<576x143xbf16, #tpu.memory_space<vmem>>, vector<288x143xbf16>
    %cst_35 = arith.constant dense<0.000000e+00> : vector<64x143xf32>
    %53 = tpu.matmul %0, %52, %cst_35 {dimension_numbers = #tpu.dot_dimension_numbers<[1], [0], [0], [1], [0, 0, 1, 1], [], []>} : vector<64x288xbf16>, vector<288x143xbf16>, vector<64x143xf32> -> vector<64x143xf32>
    %54 = vector.broadcast %1 : vector<64x1xf32> to vector<64x143xf32>
    %55 = arith.addf %53, %54 : vector<64x143xf32>
    %cst_36 = arith.constant 0.000000e+00 : f32
    %56 = vector.broadcast %cst_36 : f32 to vector<64x143xf32>
    %57 = arith.maximumf %55, %56 : vector<64x143xf32>
    %58 = arith.truncf %57 : vector<64x143xf32> to vector<64x143xbf16>
    %c1_37 = arith.constant 1 : index
    %c0_38 = arith.constant 0 : index
    %c0_39 = arith.constant 0 : index
    %59 = vector.load %arg4[%c1_37, %c0_38, %c0_39] : memref<8x64x143xbf16, #tpu.memory_space<vmem>>, vector<1x64x143xbf16>
    %60 = vector.shape_cast %59 : vector<1x64x143xbf16> to vector<64x143xbf16>
    %61 = vector.shape_cast %58 : vector<64x143xbf16> to vector<1x64x143xbf16>
    tpu.vector_store %arg4[%c1_37, %c0_38, %c0_39], %61 {strides = array<i32>} : memref<8x64x143xbf16, #tpu.memory_space<vmem>>, vector<1x64x143xbf16>,
    %c2 = arith.constant 2 : index
    %c0_40 = arith.constant 0 : index
    %c0_41 = arith.constant 0 : index
    %62 = vector.load %arg1[%c2, %c0_40, %c0_41] : memref<8x32x171xbf16, #tpu.memory_space<vmem>>, vector<1x32x171xbf16>
    %63 = vector.shape_cast %62 : vector<1x32x171xbf16> to vector<32x171xbf16>
    %64 = vector.extract_strided_slice %63 {offsets = [0, 0], sizes = [32, 143], strides = [1, 1]} : vector<32x171xbf16> to vector<32x143xbf16>
    %c0_42 = arith.constant 0 : index
    %c0_43 = arith.constant 0 : index
    %65 = vector.load %arg5[%c0_42, %c0_43] : memref<576x143xbf16, #tpu.memory_space<vmem>>, vector<32x143xbf16>
    tpu.vector_store %arg5[%c0_42, %c0_43], %64 {strides = array<i32>} : memref<576x143xbf16, #tpu.memory_space<vmem>>, vector<32x143xbf16>,
    %66 = vector.extract_strided_slice %63 {offsets = [0, 1], sizes = [32, 143], strides = [1, 1]} : vector<32x171xbf16> to vector<32x143xbf16>
    %c32_44 = arith.constant 32 : index
    %c0_45 = arith.constant 0 : index
    %67 = vector.load %arg5[%c32_44, %c0_45] : memref<576x143xbf16, #tpu.memory_space<vmem>>, vector<32x143xbf16>
    tpu.vector_store %arg5[%c32_44, %c0_45], %66 {strides = array<i32>} : memref<576x143xbf16, #tpu.memory_space<vmem>>, vector<32x143xbf16>,
    %68 = vector.extract_strided_slice %63 {offsets = [0, 2], sizes = [32, 143], strides = [1, 1]} : vector<32x171xbf16> to vector<32x143xbf16>
    %c64_46 = arith.constant 64 : index
    %c0_47 = arith.constant 0 : index
    %69 = vector.load %arg5[%c64_46, %c0_47] : memref<576x143xbf16, #tpu.memory_space<vmem>>, vector<32x143xbf16>
    tpu.vector_store %arg5[%c64_46, %c0_47], %68 {strides = array<i32>} : memref<576x143xbf16, #tpu.memory_space<vmem>>, vector<32x143xbf16>,
    %70 = vector.extract_strided_slice %63 {offsets = [0, 13], sizes = [32, 143], strides = [1, 1]} : vector<32x171xbf16> to vector<32x143xbf16>
    %c96_48 = arith.constant 96 : index
    %c0_49 = arith.constant 0 : index
    %71 = vector.load %arg5[%c96_48, %c0_49] : memref<576x143xbf16, #tpu.memory_space<vmem>>, vector<32x143xbf16>
    tpu.vector_store %arg5[%c96_48, %c0_49], %70 {strides = array<i32>} : memref<576x143xbf16, #tpu.memory_space<vmem>>, vector<32x143xbf16>,
    %72 = vector.extract_strided_slice %63 {offsets = [0, 14], sizes = [32, 143], strides = [1, 1]} : vector<32x171xbf16> to vector<32x143xbf16>
    %c128_50 = arith.constant 128 : index
    %c0_51 = arith.constant 0 : index
    %73 = vector.load %arg5[%c128_50, %c0_51] : memref<576x143xbf16, #tpu.memory_space<vmem>>, vector<32x143xbf16>
    tpu.vector_store %arg5[%c128_50, %c0_51], %72 {strides = array<i32>} : memref<576x143xbf16, #tpu.memory_space<vmem>>, vector<32x143xbf16>,
    %74 = vector.extract_strided_slice %63 {offsets = [0, 15], sizes = [32, 143], strides = [1, 1]} : vector<32x171xbf16> to vector<32x143xbf16>
    %c160_52 = arith.constant 160 : index
    %c0_53 = arith.constant 0 : index
    %75 = vector.load %arg5[%c160_52, %c0_53] : memref<576x143xbf16, #tpu.memory_space<vmem>>, vector<32x143xbf16>
    tpu.vector_store %arg5[%c160_52, %c0_53], %74 {strides = array<i32>} : memref<576x143xbf16, #tpu.memory_space<vmem>>, vector<32x143xbf16>,
    %76 = vector.extract_strided_slice %63 {offsets = [0, 26], sizes = [32, 143], strides = [1, 1]} : vector<32x171xbf16> to vector<32x143xbf16>
    %c192_54 = arith.constant 192 : index
    %c0_55 = arith.constant 0 : index
    %77 = vector.load %arg5[%c192_54, %c0_55] : memref<576x143xbf16, #tpu.memory_space<vmem>>, vector<32x143xbf16>
    tpu.vector_store %arg5[%c192_54, %c0_55], %76 {strides = array<i32>} : memref<576x143xbf16, #tpu.memory_space<vmem>>, vector<32x143xbf16>,
    %78 = vector.extract_strided_slice %63 {offsets = [0, 27], sizes = [32, 143], strides = [1, 1]} : vector<32x171xbf16> to vector<32x143xbf16>
    %c224_56 = arith.constant 224 : index
    %c0_57 = arith.constant 0 : index
    %79 = vector.load %arg5[%c224_56, %c0_57] : memref<576x143xbf16, #tpu.memory_space<vmem>>, vector<32x143xbf16>
    tpu.vector_store %arg5[%c224_56, %c0_57], %78 {strides = array<i32>} : memref<576x143xbf16, #tpu.memory_space<vmem>>, vector<32x143xbf16>,
    %80 = vector.extract_strided_slice %63 {offsets = [0, 28], sizes = [32, 143], strides = [1, 1]} : vector<32x171xbf16> to vector<32x143xbf16>
    %c256_58 = arith.constant 256 : index
    %c0_59 = arith.constant 0 : index
    %81 = vector.load %arg5[%c256_58, %c0_59] : memref<576x143xbf16, #tpu.memory_space<vmem>>, vector<32x143xbf16>
    tpu.vector_store %arg5[%c256_58, %c0_59], %80 {strides = array<i32>} : memref<576x143xbf16, #tpu.memory_space<vmem>>, vector<32x143xbf16>,
    %c0_60 = arith.constant 0 : index
    %c0_61 = arith.constant 0 : index
    %82 = vector.load %arg5[%c0_60, %c0_61] : memref<576x143xbf16, #tpu.memory_space<vmem>>, vector<288x143xbf16>
    %cst_62 = arith.constant dense<0.000000e+00> : vector<64x143xf32>
    %83 = tpu.matmul %0, %82, %cst_62 {dimension_numbers = #tpu.dot_dimension_numbers<[1], [0], [0], [1], [0, 0, 1, 1], [], []>} : vector<64x288xbf16>, vector<288x143xbf16>, vector<64x143xf32> -> vector<64x143xf32>
    %84 = vector.broadcast %1 : vector<64x1xf32> to vector<64x143xf32>
    %85 = arith.addf %83, %84 : vector<64x143xf32>
    %cst_63 = arith.constant 0.000000e+00 : f32
    %86 = vector.broadcast %cst_63 : f32 to vector<64x143xf32>
    %87 = arith.maximumf %85, %86 : vector<64x143xf32>
    %88 = arith.truncf %87 : vector<64x143xf32> to vector<64x143xbf16>
    %c2_64 = arith.constant 2 : index
    %c0_65 = arith.constant 0 : index
    %c0_66 = arith.constant 0 : index
    %89 = vector.load %arg4[%c2_64, %c0_65, %c0_66] : memref<8x64x143xbf16, #tpu.memory_space<vmem>>, vector<1x64x143xbf16>
    %90 = vector.shape_cast %89 : vector<1x64x143xbf16> to vector<64x143xbf16>
    %91 = vector.shape_cast %88 : vector<64x143xbf16> to vector<1x64x143xbf16>
    tpu.vector_store %arg4[%c2_64, %c0_65, %c0_66], %91 {strides = array<i32>} : memref<8x64x143xbf16, #tpu.memory_space<vmem>>, vector<1x64x143xbf16>,
    %c3 = arith.constant 3 : index
    %c0_67 = arith.constant 0 : index
    %c0_68 = arith.constant 0 : index
    %92 = vector.load %arg1[%c3, %c0_67, %c0_68] : memref<8x32x171xbf16, #tpu.memory_space<vmem>>, vector<1x32x171xbf16>
    %93 = vector.shape_cast %92 : vector<1x32x171xbf16> to vector<32x171xbf16>
    %94 = vector.extract_strided_slice %93 {offsets = [0, 0], sizes = [32, 143], strides = [1, 1]} : vector<32x171xbf16> to vector<32x143xbf16>
    %c288_69 = arith.constant 288 : index
    %c0_70 = arith.constant 0 : index
    %95 = vector.load %arg5[%c288_69, %c0_70] : memref<576x143xbf16, #tpu.memory_space<vmem>>, vector<32x143xbf16>
    tpu.vector_store %arg5[%c288_69, %c0_70], %94 {strides = array<i32>} : memref<576x143xbf16, #tpu.memory_space<vmem>>, vector<32x143xbf16>,
    %96 = vector.extract_strided_slice %93 {offsets = [0, 1], sizes = [32, 143], strides = [1, 1]} : vector<32x171xbf16> to vector<32x143xbf16>
    %c320_71 = arith.constant 320 : index
    %c0_72 = arith.constant 0 : index
    %97 = vector.load %arg5[%c320_71, %c0_72] : memref<576x143xbf16, #tpu.memory_space<vmem>>, vector<32x143xbf16>
    tpu.vector_store %arg5[%c320_71, %c0_72], %96 {strides = array<i32>} : memref<576x143xbf16, #tpu.memory_space<vmem>>, vector<32x143xbf16>,
    %98 = vector.extract_strided_slice %93 {offsets = [0, 2], sizes = [32, 143], strides = [1, 1]} : vector<32x171xbf16> to vector<32x143xbf16>
    %c352_73 = arith.constant 352 : index
    %c0_74 = arith.constant 0 : index
    %99 = vector.load %arg5[%c352_73, %c0_74] : memref<576x143xbf16, #tpu.memory_space<vmem>>, vector<32x143xbf16>
    tpu.vector_store %arg5[%c352_73, %c0_74], %98 {strides = array<i32>} : memref<576x143xbf16, #tpu.memory_space<vmem>>, vector<32x143xbf16>,
    %100 = vector.extract_strided_slice %93 {offsets = [0, 13], sizes = [32, 143], strides = [1, 1]} : vector<32x171xbf16> to vector<32x143xbf16>
    %c384_75 = arith.constant 384 : index
    %c0_76 = arith.constant 0 : index
    %101 = vector.load %arg5[%c384_75, %c0_76] : memref<576x143xbf16, #tpu.memory_space<vmem>>, vector<32x143xbf16>
    tpu.vector_store %arg5[%c384_75, %c0_76], %100 {strides = array<i32>} : memref<576x143xbf16, #tpu.memory_space<vmem>>, vector<32x143xbf16>,
    %102 = vector.extract_strided_slice %93 {offsets = [0, 14], sizes = [32, 143], strides = [1, 1]} : vector<32x171xbf16> to vector<32x143xbf16>
    %c416_77 = arith.constant 416 : index
    %c0_78 = arith.constant 0 : index
    %103 = vector.load %arg5[%c416_77, %c0_78] : memref<576x143xbf16, #tpu.memory_space<vmem>>, vector<32x143xbf16>
    tpu.vector_store %arg5[%c416_77, %c0_78], %102 {strides = array<i32>} : memref<576x143xbf16, #tpu.memory_space<vmem>>, vector<32x143xbf16>,
    %104 = vector.extract_strided_slice %93 {offsets = [0, 15], sizes = [32, 143], strides = [1, 1]} : vector<32x171xbf16> to vector<32x143xbf16>
    %c448_79 = arith.constant 448 : index
    %c0_80 = arith.constant 0 : index
    %105 = vector.load %arg5[%c448_79, %c0_80] : memref<576x143xbf16, #tpu.memory_space<vmem>>, vector<32x143xbf16>
    tpu.vector_store %arg5[%c448_79, %c0_80], %104 {strides = array<i32>} : memref<576x143xbf16, #tpu.memory_space<vmem>>, vector<32x143xbf16>,
    %106 = vector.extract_strided_slice %93 {offsets = [0, 26], sizes = [32, 143], strides = [1, 1]} : vector<32x171xbf16> to vector<32x143xbf16>
    %c480_81 = arith.constant 480 : index
    %c0_82 = arith.constant 0 : index
    %107 = vector.load %arg5[%c480_81, %c0_82] : memref<576x143xbf16, #tpu.memory_space<vmem>>, vector<32x143xbf16>
    tpu.vector_store %arg5[%c480_81, %c0_82], %106 {strides = array<i32>} : memref<576x143xbf16, #tpu.memory_space<vmem>>, vector<32x143xbf16>,
    %108 = vector.extract_strided_slice %93 {offsets = [0, 27], sizes = [32, 143], strides = [1, 1]} : vector<32x171xbf16> to vector<32x143xbf16>
    %c512_83 = arith.constant 512 : index
    %c0_84 = arith.constant 0 : index
    %109 = vector.load %arg5[%c512_83, %c0_84] : memref<576x143xbf16, #tpu.memory_space<vmem>>, vector<32x143xbf16>
    tpu.vector_store %arg5[%c512_83, %c0_84], %108 {strides = array<i32>} : memref<576x143xbf16, #tpu.memory_space<vmem>>, vector<32x143xbf16>,
    %110 = vector.extract_strided_slice %93 {offsets = [0, 28], sizes = [32, 143], strides = [1, 1]} : vector<32x171xbf16> to vector<32x143xbf16>
    %c544_85 = arith.constant 544 : index
    %c0_86 = arith.constant 0 : index
    %111 = vector.load %arg5[%c544_85, %c0_86] : memref<576x143xbf16, #tpu.memory_space<vmem>>, vector<32x143xbf16>
    tpu.vector_store %arg5[%c544_85, %c0_86], %110 {strides = array<i32>} : memref<576x143xbf16, #tpu.memory_space<vmem>>, vector<32x143xbf16>,
    %c288_87 = arith.constant 288 : index
    %c0_88 = arith.constant 0 : index
    %112 = vector.load %arg5[%c288_87, %c0_88] : memref<576x143xbf16, #tpu.memory_space<vmem>>, vector<288x143xbf16>
    %cst_89 = arith.constant dense<0.000000e+00> : vector<64x143xf32>
    %113 = tpu.matmul %0, %112, %cst_89 {dimension_numbers = #tpu.dot_dimension_numbers<[1], [0], [0], [1], [0, 0, 1, 1], [], []>} : vector<64x288xbf16>, vector<288x143xbf16>, vector<64x143xf32> -> vector<64x143xf32>
    %114 = vector.broadcast %1 : vector<64x1xf32> to vector<64x143xf32>
    %115 = arith.addf %113, %114 : vector<64x143xf32>
    %cst_90 = arith.constant 0.000000e+00 : f32
    %116 = vector.broadcast %cst_90 : f32 to vector<64x143xf32>
    %117 = arith.maximumf %115, %116 : vector<64x143xf32>
    %118 = arith.truncf %117 : vector<64x143xf32> to vector<64x143xbf16>
    %c3_91 = arith.constant 3 : index
    %c0_92 = arith.constant 0 : index
    %c0_93 = arith.constant 0 : index
    %119 = vector.load %arg4[%c3_91, %c0_92, %c0_93] : memref<8x64x143xbf16, #tpu.memory_space<vmem>>, vector<1x64x143xbf16>
    %120 = vector.shape_cast %119 : vector<1x64x143xbf16> to vector<64x143xbf16>
    %121 = vector.shape_cast %118 : vector<64x143xbf16> to vector<1x64x143xbf16>
    tpu.vector_store %arg4[%c3_91, %c0_92, %c0_93], %121 {strides = array<i32>} : memref<8x64x143xbf16, #tpu.memory_space<vmem>>, vector<1x64x143xbf16>,
    %c4 = arith.constant 4 : index
    %c0_94 = arith.constant 0 : index
    %c0_95 = arith.constant 0 : index
    %122 = vector.load %arg1[%c4, %c0_94, %c0_95] : memref<8x32x171xbf16, #tpu.memory_space<vmem>>, vector<1x32x171xbf16>
    %123 = vector.shape_cast %122 : vector<1x32x171xbf16> to vector<32x171xbf16>
    %124 = vector.extract_strided_slice %123 {offsets = [0, 0], sizes = [32, 143], strides = [1, 1]} : vector<32x171xbf16> to vector<32x143xbf16>
    %c0_96 = arith.constant 0 : index
    %c0_97 = arith.constant 0 : index
    %125 = vector.load %arg5[%c0_96, %c0_97] : memref<576x143xbf16, #tpu.memory_space<vmem>>, vector<32x143xbf16>
    tpu.vector_store %arg5[%c0_96, %c0_97], %124 {strides = array<i32>} : memref<576x143xbf16, #tpu.memory_space<vmem>>, vector<32x143xbf16>,
    %126 = vector.extract_strided_slice %123 {offsets = [0, 1], sizes = [32, 143], strides = [1, 1]} : vector<32x171xbf16> to vector<32x143xbf16>
    %c32_98 = arith.constant 32 : index
    %c0_99 = arith.constant 0 : index
    %127 = vector.load %arg5[%c32_98, %c0_99] : memref<576x143xbf16, #tpu.memory_space<vmem>>, vector<32x143xbf16>
    tpu.vector_store %arg5[%c32_98, %c0_99], %126 {strides = array<i32>} : memref<576x143xbf16, #tpu.memory_space<vmem>>, vector<32x143xbf16>,
    %128 = vector.extract_strided_slice %123 {offsets = [0, 2], sizes = [32, 143], strides = [1, 1]} : vector<32x171xbf16> to vector<32x143xbf16>
    %c64_100 = arith.constant 64 : index
    %c0_101 = arith.constant 0 : index
    %129 = vector.load %arg5[%c64_100, %c0_101] : memref<576x143xbf16, #tpu.memory_space<vmem>>, vector<32x143xbf16>
    tpu.vector_store %arg5[%c64_100, %c0_101], %128 {strides = array<i32>} : memref<576x143xbf16, #tpu.memory_space<vmem>>, vector<32x143xbf16>,
    %130 = vector.extract_strided_slice %123 {offsets = [0, 13], sizes = [32, 143], strides = [1, 1]} : vector<32x171xbf16> to vector<32x143xbf16>
    %c96_102 = arith.constant 96 : index
    %c0_103 = arith.constant 0 : index
    %131 = vector.load %arg5[%c96_102, %c0_103] : memref<576x143xbf16, #tpu.memory_space<vmem>>, vector<32x143xbf16>
    tpu.vector_store %arg5[%c96_102, %c0_103], %130 {strides = array<i32>} : memref<576x143xbf16, #tpu.memory_space<vmem>>, vector<32x143xbf16>,
    %132 = vector.extract_strided_slice %123 {offsets = [0, 14], sizes = [32, 143], strides = [1, 1]} : vector<32x171xbf16> to vector<32x143xbf16>
    %c128_104 = arith.constant 128 : index
    %c0_105 = arith.constant 0 : index
    %133 = vector.load %arg5[%c128_104, %c0_105] : memref<576x143xbf16, #tpu.memory_space<vmem>>, vector<32x143xbf16>
    tpu.vector_store %arg5[%c128_104, %c0_105], %132 {strides = array<i32>} : memref<576x143xbf16, #tpu.memory_space<vmem>>, vector<32x143xbf16>,
    %134 = vector.extract_strided_slice %123 {offsets = [0, 15], sizes = [32, 143], strides = [1, 1]} : vector<32x171xbf16> to vector<32x143xbf16>
    %c160_106 = arith.constant 160 : index
    %c0_107 = arith.constant 0 : index
    %135 = vector.load %arg5[%c160_106, %c0_107] : memref<576x143xbf16, #tpu.memory_space<vmem>>, vector<32x143xbf16>
    tpu.vector_store %arg5[%c160_106, %c0_107], %134 {strides = array<i32>} : memref<576x143xbf16, #tpu.memory_space<vmem>>, vector<32x143xbf16>,
    %136 = vector.extract_strided_slice %123 {offsets = [0, 26], sizes = [32, 143], strides = [1, 1]} : vector<32x171xbf16> to vector<32x143xbf16>
    %c192_108 = arith.constant 192 : index
    %c0_109 = arith.constant 0 : index
    %137 = vector.load %arg5[%c192_108, %c0_109] : memref<576x143xbf16, #tpu.memory_space<vmem>>, vector<32x143xbf16>
    tpu.vector_store %arg5[%c192_108, %c0_109], %136 {strides = array<i32>} : memref<576x143xbf16, #tpu.memory_space<vmem>>, vector<32x143xbf16>,
    %138 = vector.extract_strided_slice %123 {offsets = [0, 27], sizes = [32, 143], strides = [1, 1]} : vector<32x171xbf16> to vector<32x143xbf16>
    %c224_110 = arith.constant 224 : index
    %c0_111 = arith.constant 0 : index
    %139 = vector.load %arg5[%c224_110, %c0_111] : memref<576x143xbf16, #tpu.memory_space<vmem>>, vector<32x143xbf16>
    tpu.vector_store %arg5[%c224_110, %c0_111], %138 {strides = array<i32>} : memref<576x143xbf16, #tpu.memory_space<vmem>>, vector<32x143xbf16>,
    %140 = vector.extract_strided_slice %123 {offsets = [0, 28], sizes = [32, 143], strides = [1, 1]} : vector<32x171xbf16> to vector<32x143xbf16>
    %c256_112 = arith.constant 256 : index
    %c0_113 = arith.constant 0 : index
    %141 = vector.load %arg5[%c256_112, %c0_113] : memref<576x143xbf16, #tpu.memory_space<vmem>>, vector<32x143xbf16>
    tpu.vector_store %arg5[%c256_112, %c0_113], %140 {strides = array<i32>} : memref<576x143xbf16, #tpu.memory_space<vmem>>, vector<32x143xbf16>,
    %c0_114 = arith.constant 0 : index
    %c0_115 = arith.constant 0 : index
    %142 = vector.load %arg5[%c0_114, %c0_115] : memref<576x143xbf16, #tpu.memory_space<vmem>>, vector<288x143xbf16>
    %cst_116 = arith.constant dense<0.000000e+00> : vector<64x143xf32>
    %143 = tpu.matmul %0, %142, %cst_116 {dimension_numbers = #tpu.dot_dimension_numbers<[1], [0], [0], [1], [0, 0, 1, 1], [], []>} : vector<64x288xbf16>, vector<288x143xbf16>, vector<64x143xf32> -> vector<64x143xf32>
    %144 = vector.broadcast %1 : vector<64x1xf32> to vector<64x143xf32>
    %145 = arith.addf %143, %144 : vector<64x143xf32>
    %cst_117 = arith.constant 0.000000e+00 : f32
    %146 = vector.broadcast %cst_117 : f32 to vector<64x143xf32>
    %147 = arith.maximumf %145, %146 : vector<64x143xf32>
    %148 = arith.truncf %147 : vector<64x143xf32> to vector<64x143xbf16>
    %c4_118 = arith.constant 4 : index
    %c0_119 = arith.constant 0 : index
    %c0_120 = arith.constant 0 : index
    %149 = vector.load %arg4[%c4_118, %c0_119, %c0_120] : memref<8x64x143xbf16, #tpu.memory_space<vmem>>, vector<1x64x143xbf16>
    %150 = vector.shape_cast %149 : vector<1x64x143xbf16> to vector<64x143xbf16>
    %151 = vector.shape_cast %148 : vector<64x143xbf16> to vector<1x64x143xbf16>
    tpu.vector_store %arg4[%c4_118, %c0_119, %c0_120], %151 {strides = array<i32>} : memref<8x64x143xbf16, #tpu.memory_space<vmem>>, vector<1x64x143xbf16>,
    %c5 = arith.constant 5 : index
    %c0_121 = arith.constant 0 : index
    %c0_122 = arith.constant 0 : index
    %152 = vector.load %arg1[%c5, %c0_121, %c0_122] : memref<8x32x171xbf16, #tpu.memory_space<vmem>>, vector<1x32x171xbf16>
    %153 = vector.shape_cast %152 : vector<1x32x171xbf16> to vector<32x171xbf16>
    %154 = vector.extract_strided_slice %153 {offsets = [0, 0], sizes = [32, 143], strides = [1, 1]} : vector<32x171xbf16> to vector<32x143xbf16>
    %c288_123 = arith.constant 288 : index
    %c0_124 = arith.constant 0 : index
    %155 = vector.load %arg5[%c288_123, %c0_124] : memref<576x143xbf16, #tpu.memory_space<vmem>>, vector<32x143xbf16>
    tpu.vector_store %arg5[%c288_123, %c0_124], %154 {strides = array<i32>} : memref<576x143xbf16, #tpu.memory_space<vmem>>, vector<32x143xbf16>,
    %156 = vector.extract_strided_slice %153 {offsets = [0, 1], sizes = [32, 143], strides = [1, 1]} : vector<32x171xbf16> to vector<32x143xbf16>
    %c320_125 = arith.constant 320 : index
    %c0_126 = arith.constant 0 : index
    %157 = vector.load %arg5[%c320_125, %c0_126] : memref<576x143xbf16, #tpu.memory_space<vmem>>, vector<32x143xbf16>
    tpu.vector_store %arg5[%c320_125, %c0_126], %156 {strides = array<i32>} : memref<576x143xbf16, #tpu.memory_space<vmem>>, vector<32x143xbf16>,
    %158 = vector.extract_strided_slice %153 {offsets = [0, 2], sizes = [32, 143], strides = [1, 1]} : vector<32x171xbf16> to vector<32x143xbf16>
    %c352_127 = arith.constant 352 : index
    %c0_128 = arith.constant 0 : index
    %159 = vector.load %arg5[%c352_127, %c0_128] : memref<576x143xbf16, #tpu.memory_space<vmem>>, vector<32x143xbf16>
    tpu.vector_store %arg5[%c352_127, %c0_128], %158 {strides = array<i32>} : memref<576x143xbf16, #tpu.memory_space<vmem>>, vector<32x143xbf16>,
    %160 = vector.extract_strided_slice %153 {offsets = [0, 13], sizes = [32, 143], strides = [1, 1]} : vector<32x171xbf16> to vector<32x143xbf16>
    %c384_129 = arith.constant 384 : index
    %c0_130 = arith.constant 0 : index
    %161 = vector.load %arg5[%c384_129, %c0_130] : memref<576x143xbf16, #tpu.memory_space<vmem>>, vector<32x143xbf16>
    tpu.vector_store %arg5[%c384_129, %c0_130], %160 {strides = array<i32>} : memref<576x143xbf16, #tpu.memory_space<vmem>>, vector<32x143xbf16>,
    %162 = vector.extract_strided_slice %153 {offsets = [0, 14], sizes = [32, 143], strides = [1, 1]} : vector<32x171xbf16> to vector<32x143xbf16>
    %c416_131 = arith.constant 416 : index
    %c0_132 = arith.constant 0 : index
    %163 = vector.load %arg5[%c416_131, %c0_132] : memref<576x143xbf16, #tpu.memory_space<vmem>>, vector<32x143xbf16>
    tpu.vector_store %arg5[%c416_131, %c0_132], %162 {strides = array<i32>} : memref<576x143xbf16, #tpu.memory_space<vmem>>, vector<32x143xbf16>,
    %164 = vector.extract_strided_slice %153 {offsets = [0, 15], sizes = [32, 143], strides = [1, 1]} : vector<32x171xbf16> to vector<32x143xbf16>
    %c448_133 = arith.constant 448 : index
    %c0_134 = arith.constant 0 : index
    %165 = vector.load %arg5[%c448_133, %c0_134] : memref<576x143xbf16, #tpu.memory_space<vmem>>, vector<32x143xbf16>
    tpu.vector_store %arg5[%c448_133, %c0_134], %164 {strides = array<i32>} : memref<576x143xbf16, #tpu.memory_space<vmem>>, vector<32x143xbf16>,
    %166 = vector.extract_strided_slice %153 {offsets = [0, 26], sizes = [32, 143], strides = [1, 1]} : vector<32x171xbf16> to vector<32x143xbf16>
    %c480_135 = arith.constant 480 : index
    %c0_136 = arith.constant 0 : index
    %167 = vector.load %arg5[%c480_135, %c0_136] : memref<576x143xbf16, #tpu.memory_space<vmem>>, vector<32x143xbf16>
    tpu.vector_store %arg5[%c480_135, %c0_136], %166 {strides = array<i32>} : memref<576x143xbf16, #tpu.memory_space<vmem>>, vector<32x143xbf16>,
    %168 = vector.extract_strided_slice %153 {offsets = [0, 27], sizes = [32, 143], strides = [1, 1]} : vector<32x171xbf16> to vector<32x143xbf16>
    %c512_137 = arith.constant 512 : index
    %c0_138 = arith.constant 0 : index
    %169 = vector.load %arg5[%c512_137, %c0_138] : memref<576x143xbf16, #tpu.memory_space<vmem>>, vector<32x143xbf16>
    tpu.vector_store %arg5[%c512_137, %c0_138], %168 {strides = array<i32>} : memref<576x143xbf16, #tpu.memory_space<vmem>>, vector<32x143xbf16>,
    %170 = vector.extract_strided_slice %153 {offsets = [0, 28], sizes = [32, 143], strides = [1, 1]} : vector<32x171xbf16> to vector<32x143xbf16>
    %c544_139 = arith.constant 544 : index
    %c0_140 = arith.constant 0 : index
    %171 = vector.load %arg5[%c544_139, %c0_140] : memref<576x143xbf16, #tpu.memory_space<vmem>>, vector<32x143xbf16>
    tpu.vector_store %arg5[%c544_139, %c0_140], %170 {strides = array<i32>} : memref<576x143xbf16, #tpu.memory_space<vmem>>, vector<32x143xbf16>,
    %c288_141 = arith.constant 288 : index
    %c0_142 = arith.constant 0 : index
    %172 = vector.load %arg5[%c288_141, %c0_142] : memref<576x143xbf16, #tpu.memory_space<vmem>>, vector<288x143xbf16>
    %cst_143 = arith.constant dense<0.000000e+00> : vector<64x143xf32>
    %173 = tpu.matmul %0, %172, %cst_143 {dimension_numbers = #tpu.dot_dimension_numbers<[1], [0], [0], [1], [0, 0, 1, 1], [], []>} : vector<64x288xbf16>, vector<288x143xbf16>, vector<64x143xf32> -> vector<64x143xf32>
    %174 = vector.broadcast %1 : vector<64x1xf32> to vector<64x143xf32>
    %175 = arith.addf %173, %174 : vector<64x143xf32>
    %cst_144 = arith.constant 0.000000e+00 : f32
    %176 = vector.broadcast %cst_144 : f32 to vector<64x143xf32>
    %177 = arith.maximumf %175, %176 : vector<64x143xf32>
    %178 = arith.truncf %177 : vector<64x143xf32> to vector<64x143xbf16>
    %c5_145 = arith.constant 5 : index
    %c0_146 = arith.constant 0 : index
    %c0_147 = arith.constant 0 : index
    %179 = vector.load %arg4[%c5_145, %c0_146, %c0_147] : memref<8x64x143xbf16, #tpu.memory_space<vmem>>, vector<1x64x143xbf16>
    %180 = vector.shape_cast %179 : vector<1x64x143xbf16> to vector<64x143xbf16>
    %181 = vector.shape_cast %178 : vector<64x143xbf16> to vector<1x64x143xbf16>
    tpu.vector_store %arg4[%c5_145, %c0_146, %c0_147], %181 {strides = array<i32>} : memref<8x64x143xbf16, #tpu.memory_space<vmem>>, vector<1x64x143xbf16>,
    %c6 = arith.constant 6 : index
    %c0_148 = arith.constant 0 : index
    %c0_149 = arith.constant 0 : index
    %182 = vector.load %arg1[%c6, %c0_148, %c0_149] : memref<8x32x171xbf16, #tpu.memory_space<vmem>>, vector<1x32x171xbf16>
    %183 = vector.shape_cast %182 : vector<1x32x171xbf16> to vector<32x171xbf16>
    %184 = vector.extract_strided_slice %183 {offsets = [0, 0], sizes = [32, 143], strides = [1, 1]} : vector<32x171xbf16> to vector<32x143xbf16>
    %c0_150 = arith.constant 0 : index
    %c0_151 = arith.constant 0 : index
    %185 = vector.load %arg5[%c0_150, %c0_151] : memref<576x143xbf16, #tpu.memory_space<vmem>>, vector<32x143xbf16>
    tpu.vector_store %arg5[%c0_150, %c0_151], %184 {strides = array<i32>} : memref<576x143xbf16, #tpu.memory_space<vmem>>, vector<32x143xbf16>,
    %186 = vector.extract_strided_slice %183 {offsets = [0, 1], sizes = [32, 143], strides = [1, 1]} : vector<32x171xbf16> to vector<32x143xbf16>
    %c32_152 = arith.constant 32 : index
    %c0_153 = arith.constant 0 : index
    %187 = vector.load %arg5[%c32_152, %c0_153] : memref<576x143xbf16, #tpu.memory_space<vmem>>, vector<32x143xbf16>
    tpu.vector_store %arg5[%c32_152, %c0_153], %186 {strides = array<i32>} : memref<576x143xbf16, #tpu.memory_space<vmem>>, vector<32x143xbf16>,
    %188 = vector.extract_strided_slice %183 {offsets = [0, 2], sizes = [32, 143], strides = [1, 1]} : vector<32x171xbf16> to vector<32x143xbf16>
    %c64_154 = arith.constant 64 : index
    %c0_155 = arith.constant 0 : index
    %189 = vector.load %arg5[%c64_154, %c0_155] : memref<576x143xbf16, #tpu.memory_space<vmem>>, vector<32x143xbf16>
    tpu.vector_store %arg5[%c64_154, %c0_155], %188 {strides = array<i32>} : memref<576x143xbf16, #tpu.memory_space<vmem>>, vector<32x143xbf16>,
    %190 = vector.extract_strided_slice %183 {offsets = [0, 13], sizes = [32, 143], strides = [1, 1]} : vector<32x171xbf16> to vector<32x143xbf16>
    %c96_156 = arith.constant 96 : index
    %c0_157 = arith.constant 0 : index
    %191 = vector.load %arg5[%c96_156, %c0_157] : memref<576x143xbf16, #tpu.memory_space<vmem>>, vector<32x143xbf16>
    tpu.vector_store %arg5[%c96_156, %c0_157], %190 {strides = array<i32>} : memref<576x143xbf16, #tpu.memory_space<vmem>>, vector<32x143xbf16>,
    %192 = vector.extract_strided_slice %183 {offsets = [0, 14], sizes = [32, 143], strides = [1, 1]} : vector<32x171xbf16> to vector<32x143xbf16>
    %c128_158 = arith.constant 128 : index
    %c0_159 = arith.constant 0 : index
    %193 = vector.load %arg5[%c128_158, %c0_159] : memref<576x143xbf16, #tpu.memory_space<vmem>>, vector<32x143xbf16>
    tpu.vector_store %arg5[%c128_158, %c0_159], %192 {strides = array<i32>} : memref<576x143xbf16, #tpu.memory_space<vmem>>, vector<32x143xbf16>,
    %194 = vector.extract_strided_slice %183 {offsets = [0, 15], sizes = [32, 143], strides = [1, 1]} : vector<32x171xbf16> to vector<32x143xbf16>
    %c160_160 = arith.constant 160 : index
    %c0_161 = arith.constant 0 : index
    %195 = vector.load %arg5[%c160_160, %c0_161] : memref<576x143xbf16, #tpu.memory_space<vmem>>, vector<32x143xbf16>
    tpu.vector_store %arg5[%c160_160, %c0_161], %194 {strides = array<i32>} : memref<576x143xbf16, #tpu.memory_space<vmem>>, vector<32x143xbf16>,
    %196 = vector.extract_strided_slice %183 {offsets = [0, 26], sizes = [32, 143], strides = [1, 1]} : vector<32x171xbf16> to vector<32x143xbf16>
    %c192_162 = arith.constant 192 : index
    %c0_163 = arith.constant 0 : index
    %197 = vector.load %arg5[%c192_162, %c0_163] : memref<576x143xbf16, #tpu.memory_space<vmem>>, vector<32x143xbf16>
    tpu.vector_store %arg5[%c192_162, %c0_163], %196 {strides = array<i32>} : memref<576x143xbf16, #tpu.memory_space<vmem>>, vector<32x143xbf16>,
    %198 = vector.extract_strided_slice %183 {offsets = [0, 27], sizes = [32, 143], strides = [1, 1]} : vector<32x171xbf16> to vector<32x143xbf16>
    %c224_164 = arith.constant 224 : index
    %c0_165 = arith.constant 0 : index
    %199 = vector.load %arg5[%c224_164, %c0_165] : memref<576x143xbf16, #tpu.memory_space<vmem>>, vector<32x143xbf16>
    tpu.vector_store %arg5[%c224_164, %c0_165], %198 {strides = array<i32>} : memref<576x143xbf16, #tpu.memory_space<vmem>>, vector<32x143xbf16>,
    %200 = vector.extract_strided_slice %183 {offsets = [0, 28], sizes = [32, 143], strides = [1, 1]} : vector<32x171xbf16> to vector<32x143xbf16>
    %c256_166 = arith.constant 256 : index
    %c0_167 = arith.constant 0 : index
    %201 = vector.load %arg5[%c256_166, %c0_167] : memref<576x143xbf16, #tpu.memory_space<vmem>>, vector<32x143xbf16>
    tpu.vector_store %arg5[%c256_166, %c0_167], %200 {strides = array<i32>} : memref<576x143xbf16, #tpu.memory_space<vmem>>, vector<32x143xbf16>,
    %c0_168 = arith.constant 0 : index
    %c0_169 = arith.constant 0 : index
    %202 = vector.load %arg5[%c0_168, %c0_169] : memref<576x143xbf16, #tpu.memory_space<vmem>>, vector<288x143xbf16>
    %cst_170 = arith.constant dense<0.000000e+00> : vector<64x143xf32>
    %203 = tpu.matmul %0, %202, %cst_170 {dimension_numbers = #tpu.dot_dimension_numbers<[1], [0], [0], [1], [0, 0, 1, 1], [], []>} : vector<64x288xbf16>, vector<288x143xbf16>, vector<64x143xf32> -> vector<64x143xf32>
    %204 = vector.broadcast %1 : vector<64x1xf32> to vector<64x143xf32>
    %205 = arith.addf %203, %204 : vector<64x143xf32>
    %cst_171 = arith.constant 0.000000e+00 : f32
    %206 = vector.broadcast %cst_171 : f32 to vector<64x143xf32>
    %207 = arith.maximumf %205, %206 : vector<64x143xf32>
    %208 = arith.truncf %207 : vector<64x143xf32> to vector<64x143xbf16>
    %c6_172 = arith.constant 6 : index
    %c0_173 = arith.constant 0 : index
    %c0_174 = arith.constant 0 : index
    %209 = vector.load %arg4[%c6_172, %c0_173, %c0_174] : memref<8x64x143xbf16, #tpu.memory_space<vmem>>, vector<1x64x143xbf16>
    %210 = vector.shape_cast %209 : vector<1x64x143xbf16> to vector<64x143xbf16>
    %211 = vector.shape_cast %208 : vector<64x143xbf16> to vector<1x64x143xbf16>
    tpu.vector_store %arg4[%c6_172, %c0_173, %c0_174], %211 {strides = array<i32>} : memref<8x64x143xbf16, #tpu.memory_space<vmem>>, vector<1x64x143xbf16>,
    %c7 = arith.constant 7 : index
    %c0_175 = arith.constant 0 : index
    %c0_176 = arith.constant 0 : index
    %212 = vector.load %arg1[%c7, %c0_175, %c0_176] : memref<8x32x171xbf16, #tpu.memory_space<vmem>>, vector<1x32x171xbf16>
    %213 = vector.shape_cast %212 : vector<1x32x171xbf16> to vector<32x171xbf16>
    %214 = vector.extract_strided_slice %213 {offsets = [0, 0], sizes = [32, 143], strides = [1, 1]} : vector<32x171xbf16> to vector<32x143xbf16>
    %c288_177 = arith.constant 288 : index
    %c0_178 = arith.constant 0 : index
    %215 = vector.load %arg5[%c288_177, %c0_178] : memref<576x143xbf16, #tpu.memory_space<vmem>>, vector<32x143xbf16>
    tpu.vector_store %arg5[%c288_177, %c0_178], %214 {strides = array<i32>} : memref<576x143xbf16, #tpu.memory_space<vmem>>, vector<32x143xbf16>,
    %216 = vector.extract_strided_slice %213 {offsets = [0, 1], sizes = [32, 143], strides = [1, 1]} : vector<32x171xbf16> to vector<32x143xbf16>
    %c320_179 = arith.constant 320 : index
    %c0_180 = arith.constant 0 : index
    %217 = vector.load %arg5[%c320_179, %c0_180] : memref<576x143xbf16, #tpu.memory_space<vmem>>, vector<32x143xbf16>
    tpu.vector_store %arg5[%c320_179, %c0_180], %216 {strides = array<i32>} : memref<576x143xbf16, #tpu.memory_space<vmem>>, vector<32x143xbf16>,
    %218 = vector.extract_strided_slice %213 {offsets = [0, 2], sizes = [32, 143], strides = [1, 1]} : vector<32x171xbf16> to vector<32x143xbf16>
    %c352_181 = arith.constant 352 : index
    %c0_182 = arith.constant 0 : index
    %219 = vector.load %arg5[%c352_181, %c0_182] : memref<576x143xbf16, #tpu.memory_space<vmem>>, vector<32x143xbf16>
    tpu.vector_store %arg5[%c352_181, %c0_182], %218 {strides = array<i32>} : memref<576x143xbf16, #tpu.memory_space<vmem>>, vector<32x143xbf16>,
    %220 = vector.extract_strided_slice %213 {offsets = [0, 13], sizes = [32, 143], strides = [1, 1]} : vector<32x171xbf16> to vector<32x143xbf16>
    %c384_183 = arith.constant 384 : index
    %c0_184 = arith.constant 0 : index
    %221 = vector.load %arg5[%c384_183, %c0_184] : memref<576x143xbf16, #tpu.memory_space<vmem>>, vector<32x143xbf16>
    tpu.vector_store %arg5[%c384_183, %c0_184], %220 {strides = array<i32>} : memref<576x143xbf16, #tpu.memory_space<vmem>>, vector<32x143xbf16>,
    %222 = vector.extract_strided_slice %213 {offsets = [0, 14], sizes = [32, 143], strides = [1, 1]} : vector<32x171xbf16> to vector<32x143xbf16>
    %c416_185 = arith.constant 416 : index
    %c0_186 = arith.constant 0 : index
    %223 = vector.load %arg5[%c416_185, %c0_186] : memref<576x143xbf16, #tpu.memory_space<vmem>>, vector<32x143xbf16>
    tpu.vector_store %arg5[%c416_185, %c0_186], %222 {strides = array<i32>} : memref<576x143xbf16, #tpu.memory_space<vmem>>, vector<32x143xbf16>,
    %224 = vector.extract_strided_slice %213 {offsets = [0, 15], sizes = [32, 143], strides = [1, 1]} : vector<32x171xbf16> to vector<32x143xbf16>
    %c448_187 = arith.constant 448 : index
    %c0_188 = arith.constant 0 : index
    %225 = vector.load %arg5[%c448_187, %c0_188] : memref<576x143xbf16, #tpu.memory_space<vmem>>, vector<32x143xbf16>
    tpu.vector_store %arg5[%c448_187, %c0_188], %224 {strides = array<i32>} : memref<576x143xbf16, #tpu.memory_space<vmem>>, vector<32x143xbf16>,
    %226 = vector.extract_strided_slice %213 {offsets = [0, 26], sizes = [32, 143], strides = [1, 1]} : vector<32x171xbf16> to vector<32x143xbf16>
    %c480_189 = arith.constant 480 : index
    %c0_190 = arith.constant 0 : index
    %227 = vector.load %arg5[%c480_189, %c0_190] : memref<576x143xbf16, #tpu.memory_space<vmem>>, vector<32x143xbf16>
    tpu.vector_store %arg5[%c480_189, %c0_190], %226 {strides = array<i32>} : memref<576x143xbf16, #tpu.memory_space<vmem>>, vector<32x143xbf16>,
    %228 = vector.extract_strided_slice %213 {offsets = [0, 27], sizes = [32, 143], strides = [1, 1]} : vector<32x171xbf16> to vector<32x143xbf16>
    %c512_191 = arith.constant 512 : index
    %c0_192 = arith.constant 0 : index
    %229 = vector.load %arg5[%c512_191, %c0_192] : memref<576x143xbf16, #tpu.memory_space<vmem>>, vector<32x143xbf16>
    tpu.vector_store %arg5[%c512_191, %c0_192], %228 {strides = array<i32>} : memref<576x143xbf16, #tpu.memory_space<vmem>>, vector<32x143xbf16>,
    %230 = vector.extract_strided_slice %213 {offsets = [0, 28], sizes = [32, 143], strides = [1, 1]} : vector<32x171xbf16> to vector<32x143xbf16>
    %c544_193 = arith.constant 544 : index
    %c0_194 = arith.constant 0 : index
    %231 = vector.load %arg5[%c544_193, %c0_194] : memref<576x143xbf16, #tpu.memory_space<vmem>>, vector<32x143xbf16>
    tpu.vector_store %arg5[%c544_193, %c0_194], %230 {strides = array<i32>} : memref<576x143xbf16, #tpu.memory_space<vmem>>, vector<32x143xbf16>,
    %c288_195 = arith.constant 288 : index
    %c0_196 = arith.constant 0 : index
    %232 = vector.load %arg5[%c288_195, %c0_196] : memref<576x143xbf16, #tpu.memory_space<vmem>>, vector<288x143xbf16>
    %cst_197 = arith.constant dense<0.000000e+00> : vector<64x143xf32>
    %233 = tpu.matmul %0, %232, %cst_197 {dimension_numbers = #tpu.dot_dimension_numbers<[1], [0], [0], [1], [0, 0, 1, 1], [], []>} : vector<64x288xbf16>, vector<288x143xbf16>, vector<64x143xf32> -> vector<64x143xf32>
    %234 = vector.broadcast %1 : vector<64x1xf32> to vector<64x143xf32>
    %235 = arith.addf %233, %234 : vector<64x143xf32>
    %cst_198 = arith.constant 0.000000e+00 : f32
    %236 = vector.broadcast %cst_198 : f32 to vector<64x143xf32>
    %237 = arith.maximumf %235, %236 : vector<64x143xf32>
    %238 = arith.truncf %237 : vector<64x143xf32> to vector<64x143xbf16>
    %c7_199 = arith.constant 7 : index
    %c0_200 = arith.constant 0 : index
    %c0_201 = arith.constant 0 : index
    %239 = vector.load %arg4[%c7_199, %c0_200, %c0_201] : memref<8x64x143xbf16, #tpu.memory_space<vmem>>, vector<1x64x143xbf16>
    %240 = vector.shape_cast %239 : vector<1x64x143xbf16> to vector<64x143xbf16>
    %241 = vector.shape_cast %238 : vector<64x143xbf16> to vector<1x64x143xbf16>
    tpu.vector_store %arg4[%c7_199, %c0_200, %c0_201], %241 {strides = array<i32>} : memref<8x64x143xbf16, #tpu.memory_space<vmem>>, vector<1x64x143xbf16>,
    return
  }
  func.func @transform_0(%arg0: i32) -> (i32, i32, i32) {
    %c0_i32 = arith.constant 0 : i32
    %c0_i32_0 = arith.constant 0 : i32
    %c0_i32_1 = arith.constant 0 : i32
    return %arg0, %c0_i32, %c0_i32_0 : i32, i32, i32
  }
  func.func @transform_1(%arg0: i32) -> (i32, i32) {
    %c0_i32 = arith.constant 0 : i32
    %c0_i32_0 = arith.constant 0 : i32
    %c0_i32_1 = arith.constant 0 : i32
    return %c0_i32, %c0_i32_0 : i32, i32
  }
  func.func @transform_2(%arg0: i32) -> (i32, i32) {
    %c0_i32 = arith.constant 0 : i32
    %c0_i32_0 = arith.constant 0 : i32
    %c0_i32_1 = arith.constant 0 : i32
    return %c0_i32, %c0_i32_0 : i32, i32
  }
  func.func @transform_3(%arg0: i32) -> (i32, i32, i32) {
    %c0_i32 = arith.constant 0 : i32
    %c0_i32_0 = arith.constant 0 : i32
    %c0_i32_1 = arith.constant 0 : i32
    return %arg0, %c0_i32, %c0_i32_0 : i32, i32, i32
  }
}

module attributes {stable_mosaic.version = 11 : i64} {
  func.func @fc_fused_kernel(%arg0: i32, %arg1: memref<8x1600xbf16, #tpu.memory_space<vmem>>, %arg2: memref<1600x128xbf16, #tpu.memory_space<vmem>>, %arg3: memref<1x128xf32, #tpu.memory_space<vmem>>, %arg4: memref<128x128xbf16, #tpu.memory_space<vmem>>, %arg5: memref<1x128xf32, #tpu.memory_space<vmem>>, %arg6: memref<8x128xf32, #tpu.memory_space<vmem>>) attributes {dimension_semantics = [#tpu.dimension_semantics<parallel>], iteration_bounds = array<i64: 1>, scalar_prefetch = 0 : i64, scratch_operands = 0 : i64, tpu.core_type = #tpu.core_type<tc>, window_params = [{transform_indices = @transform_0, window_bounds = array<i64: 8, 1600>}, {pipeline_mode = #tpu.pipeline_mode<synchronous>, transform_indices = @transform_1, window_bounds = array<i64: 1600, 128>}, {pipeline_mode = #tpu.pipeline_mode<synchronous>, transform_indices = @transform_2, window_bounds = array<i64: 1, 128>}, {pipeline_mode = #tpu.pipeline_mode<synchronous>, transform_indices = @transform_3, window_bounds = array<i64: 128, 128>}, {pipeline_mode = #tpu.pipeline_mode<synchronous>, transform_indices = @transform_4, window_bounds = array<i64: 1, 128>}, {transform_indices = @transform_5, window_bounds = array<i64: 8, 128>}]} {
    %c0 = arith.constant 0 : index
    %c0_0 = arith.constant 0 : index
    %0 = vector.load %arg1[%c0, %c0_0] : memref<8x1600xbf16, #tpu.memory_space<vmem>>, vector<8x1600xbf16>
    %c0_1 = arith.constant 0 : index
    %c0_2 = arith.constant 0 : index
    %1 = vector.load %arg2[%c0_1, %c0_2] : memref<1600x128xbf16, #tpu.memory_space<vmem>>, vector<1600x128xbf16>
    %cst = arith.constant dense<0.000000e+00> : vector<8x128xf32>
    %2 = tpu.matmul %0, %1, %cst {dimension_numbers = #tpu.dot_dimension_numbers<[1], [0], [0], [1], [0, 0, 1, 1], [], []>} : vector<8x1600xbf16>, vector<1600x128xbf16>, vector<8x128xf32> -> vector<8x128xf32>
    %c0_3 = arith.constant 0 : index
    %c0_4 = arith.constant 0 : index
    %3 = vector.load %arg3[%c0_3, %c0_4] : memref<1x128xf32, #tpu.memory_space<vmem>>, vector<1x128xf32>
    %4 = vector.broadcast %3 : vector<1x128xf32> to vector<8x128xf32>
    %5 = arith.addf %2, %4 : vector<8x128xf32>
    %cst_5 = arith.constant 0.000000e+00 : f32
    %6 = vector.broadcast %cst_5 : f32 to vector<8x128xf32>
    %7 = arith.maximumf %5, %6 : vector<8x128xf32>
    %8 = arith.truncf %7 : vector<8x128xf32> to vector<8x128xbf16>
    %c0_6 = arith.constant 0 : index
    %c0_7 = arith.constant 0 : index
    %9 = vector.load %arg4[%c0_6, %c0_7] : memref<128x128xbf16, #tpu.memory_space<vmem>>, vector<128x128xbf16>
    %cst_8 = arith.constant dense<0.000000e+00> : vector<8x128xf32>
    %10 = tpu.matmul %8, %9, %cst_8 {dimension_numbers = #tpu.dot_dimension_numbers<[1], [0], [0], [1], [0, 0, 1, 1], [], []>} : vector<8x128xbf16>, vector<128x128xbf16>, vector<8x128xf32> -> vector<8x128xf32>
    %c0_9 = arith.constant 0 : index
    %c0_10 = arith.constant 0 : index
    %11 = vector.load %arg5[%c0_9, %c0_10] : memref<1x128xf32, #tpu.memory_space<vmem>>, vector<1x128xf32>
    %12 = vector.broadcast %11 : vector<1x128xf32> to vector<8x128xf32>
    %13 = arith.addf %10, %12 : vector<8x128xf32>
    %c0_11 = arith.constant 0 : index
    %c0_12 = arith.constant 0 : index
    %14 = vector.load %arg6[%c0_11, %c0_12] : memref<8x128xf32, #tpu.memory_space<vmem>>, vector<8x128xf32>
    tpu.vector_store %arg6[%c0_11, %c0_12], %13 {strides = array<i32>} : memref<8x128xf32, #tpu.memory_space<vmem>>, vector<8x128xf32>,
    return
  }
  func.func @transform_0(%arg0: i32) -> (i32, i32) {
    %c0_i32 = arith.constant 0 : i32
    %c0_i32_0 = arith.constant 0 : i32
    return %arg0, %c0_i32 : i32, i32
  }
  func.func @transform_1(%arg0: i32) -> (i32, i32) {
    %c0_i32 = arith.constant 0 : i32
    %c0_i32_0 = arith.constant 0 : i32
    %c0_i32_1 = arith.constant 0 : i32
    return %c0_i32, %c0_i32_0 : i32, i32
  }
  func.func @transform_2(%arg0: i32) -> (i32, i32) {
    %c0_i32 = arith.constant 0 : i32
    %c0_i32_0 = arith.constant 0 : i32
    %c0_i32_1 = arith.constant 0 : i32
    return %c0_i32, %c0_i32_0 : i32, i32
  }
  func.func @transform_3(%arg0: i32) -> (i32, i32) {
    %c0_i32 = arith.constant 0 : i32
    %c0_i32_0 = arith.constant 0 : i32
    %c0_i32_1 = arith.constant 0 : i32
    return %c0_i32, %c0_i32_0 : i32, i32
  }
  func.func @transform_4(%arg0: i32) -> (i32, i32) {
    %c0_i32 = arith.constant 0 : i32
    %c0_i32_0 = arith.constant 0 : i32
    %c0_i32_1 = arith.constant 0 : i32
    return %c0_i32, %c0_i32_0 : i32, i32
  }
  func.func @transform_5(%arg0: i32) -> (i32, i32) {
    %c0_i32 = arith.constant 0 : i32
    %c0_i32_0 = arith.constant 0 : i32
    return %arg0, %c0_i32 : i32, i32
  }
}

</mosaic_0001>

<bundles_post_ra>
// kernel: forward.3
= control target key start
LH: loop header
LB: loop body
LE: loop exit
PB: predicated region body
PF: predicated region fallthrough
CT: control target
= control target key end

     0   :  { %vm19_vm0 = vcmask 719872   ;;  %v50_v0 = vlaneseq  ;;  %v4220_v3 = vmov 0.0   ;;  %s4221_s20 = smov 100   ;;  %s4222_s21 = smov 127   ;;  %v4229_v24 = vmov 0   ;;  %s5745_s0 = inlined_call_operand.vmem [shape: f32[8,786], index: 0, kind: input, shape index: {}]   ;;  %s5746_s2 = inlined_call_operand.vmem [shape: f32[32,1], index: 2, kind: input, shape index: {}]   ;;  %s5747_s1 = inlined_call_operand.vmem [shape: f32[32,16], index: 1, kind: input, shape index: {}]   ;;  %s5748_s3 = inlined_call_operand.vmem [shape: bf16[8,32,728], index: 3, kind: output, shape index: {}]  }
   0x1   :  { %v47_v1 = vld [vmem:[%s5745_s0] ss:$8 sm:$0xf]  ;;  %14 = vst [vmem:[#allocation2] sm:$0xff] %v4220_v3  ;;  %15 = vst [vmem:[#allocation2 + $0x8] sm:$0xff] %v4220_v3  ;;  %238 = vmatprep.mubr.f32.mxu0 %v4220_v3  ;;  %327 = vmatprep.mubr.f32.mxu1 %v4220_v3  ;;  %s4223_s22 = smov 99  }
   0x2   :  { %v48_v2 = vld [vmem:[%s5745_s0] ss:$8 sm:$0x70]  ;;  %16 = vst [vmem:[#allocation2 + $0x10] sm:$0xff] %v4220_v3  ;;  %17 = vst [vmem:[#allocation2 + $0x18] sm:$0xff] %v4220_v3  ;;  %vm4292_vm1 = vcmp.lt.s32.totalorder %v50_v0, 728  ;;  %4214 = vset.pattern.permute.xlu0 %v4229_v24  ;;  %4215 = vset.pattern.permute.xlu1 %v4229_v24 }
   0x3   :  { %18 = vst [vmem:[#allocation2 + $0x20] sm:$0xff] %v4220_v3  ;;  %20 = vst.msk [vmem:[#allocation2 + $0x28] sm:$0xff] %vm19_vm0, %v4220_v3  ;;  %v49_v4 = vor.u32 %v48_v2, %v47_v1  ;;  %v3746_v5 = vld [vmem:[%s5745_s0 + $0x1] ss:$8 sm:$0xf]  ;;  %s4224_s23 = smov 126  }
   0x4   :  { %21 = vst [vmem:[#allocation2 + $0x30] sm:$0xff] %v4220_v3  ;;  %22 = vst [vmem:[#allocation2 + $0x38] sm:$0xff] %v4220_v3  ;;  %v3747_v6 = vld [vmem:[%s5745_s0 + $0x1] ss:$8 sm:$0x70]  ;;  %s4225_s24 = smov 72  }
   0x5   :  { %23 = vst [vmem:[#allocation2 + $0x40] sm:$0xff] %v4220_v3  ;;  %24 = vst [vmem:[#allocation2 + $0x48] sm:$0xff] %v4220_v3  ;;  %75 = vrot.lane.b32.xlu1 %v49_v4, %s4221_s20  ;;  %57 = vrot.lane.b32.xlu0 %v49_v4, %s4222_s21  ;;  %v555_v8 = vor.u32 %v3747_v6, %v3746_v5  ;;  %s4226_s25 = smov 98   ;;  %s4227_s26 = smov 70   ;;  %vm78_vm2 = vcmask 818176   ;;  %vm60_vm3 = vcmask 1039360  }
   0x6   :  { %25 = vst [vmem:[#allocation2 + $0x50] sm:$0xff] %v4220_v3  ;;  %26 = vst.msk [vmem:[#allocation2 + $0x58] sm:$0xff] %vm19_vm0, %v4220_v3  ;;  %s4228_s27 = smov 71   ;;  %v3784_v9 = vld [vmem:[%s5745_s0 + $0x2] ss:$8 sm:$0xf] }
   0x7   :  { %27 = vst [vmem:[#allocation2 + $0x60] sm:$0xff] %v4220_v3  ;;  %28 = vst [vmem:[#allocation2 + $0x68] sm:$0xff] %v4220_v3  ;;  %v3785_v10 = vld [vmem:[%s5745_s0 + $0x2] ss:$8 sm:$0x70]  ;;  %vm87_vm4 = vcmask 809984  }
   0x8   :  { %29 = vst [vmem:[#allocation2 + $0x70] sm:$0xff] %v4220_v3  ;;  %30 = vst [vmem:[#allocation2 + $0x78] sm:$0xff] %v4220_v3  ;;  %v4326_v11 = vor.u32 %v3785_v10, %v3784_v9  ;;  %v3822_v12 = vld [vmem:[%s5745_s0 + $0x3] ss:$8 sm:$0xf]  ;;  %vm69_vm5 = vcmask 1031168  }
   0x9   :  { %31 = vst [vmem:[#allocation2 + $0x80] sm:$0xff] %v4220_v3  ;;  %32 = vst.msk [vmem:[#allocation2 + $0x88] sm:$0xff] %vm19_vm0, %v4220_v3  ;;  %84 = vrot.lane.b32.xlu1 %v49_v4, %s4223_s22  ;;  %66 = vrot.lane.b32.xlu0 %v49_v4, %s4224_s23  ;;  %v3823_v13 = vld [vmem:[%s5745_s0 + $0x3] ss:$8 sm:$0x70]  ;;  %vm105_vm6 = vcmask 588800  }
   0xa   :  { %33 = vst [vmem:[#allocation2 + $0x90] sm:$0xff] %v4220_v3  ;;  %34 = vst [vmem:[#allocation2 + $0x98] sm:$0xff] %v4220_v3  ;;  %v4350_v14 = vor.u32 %v3823_v13, %v3822_v12  ;;  %v3860_v15 = vld [vmem:[%s5745_s0 + $0x4] ss:$8 sm:$0xf]  ;;  %vm96_vm7 = vcmask 801792  }
   0xb   :  { %35 = vst [vmem:[#allocation2 + $0xa0] sm:$0xff] %v4220_v3  ;;  %36 = vst [vmem:[#allocation2 + $0xa8] sm:$0xff] %v4220_v3  ;;  %v3861_v16 = vld [vmem:[%s5745_s0 + $0x4] ss:$8 sm:$0x70]  ;;  %vm123_vm8 = vcmask 572416  }
   0xc   :  { %37 = vst [vmem:[#allocation2 + $0xb0] sm:$0xff] %v4220_v3  ;;  %38 = vst.msk [vmem:[#allocation2 + $0xb8] sm:$0xff] %vm19_vm0, %v4220_v3  ;;  %v4374_v17 = vor.u32 %v3861_v16, %v3860_v15  ;;  %v3898_v18 = vld [vmem:[%s5745_s0 + $0x5] ss:$8 sm:$0xf]  ;;  %vm114_vm9 = vcmask 580608  }
   0xd   :  { %54 = vst.msk [vmem:[#allocation2] ss:$8 sm:$0xf] %vm4292_vm1, %v49_v4  ;;  %55 = vst.msk [vmem:[#allocation2] ss:$8 sm:$0x30] %vm4292_vm1, %v49_v4  ;;  %102 = vrot.lane.b32.xlu1 %v49_v4, %s4225_s24  ;;  %93 = vrot.lane.b32.xlu0 %v49_v4, %s4226_s25 }
   0xe   :  { %557 = vst.msk [vmem:[#allocation2 + $0x60] ss:$8 sm:$0xf] %vm4292_vm1, %v555_v8  ;;  %558 = vst.msk [vmem:[#allocation2 + $0x60] ss:$8 sm:$0x30] %vm4292_vm1, %v555_v8 }
   0xf   :  { %v3899_v19 = vld [vmem:[%s5745_s0 + $0x5] ss:$8 sm:$0x70]  ;;  %v3936_v21 = vld [vmem:[%s5745_s0 + $0x6] ss:$8 sm:$0xf] }
  0x10   :  { %v4398_v20 = vor.u32 %v3899_v19, %v3898_v18  ;;  %v3937_v22 = vld [vmem:[%s5745_s0 + $0x6] ss:$8 sm:$0x70]  ;;  %v3974_v25 = vld [vmem:[%s5745_s0 + $0x7] ss:$8 sm:$0xf] }
  0x11   :  { %120 = vrot.lane.b32.xlu1 %v49_v4, %s4227_s26  ;;  %111 = vrot.lane.b32.xlu0 %v49_v4, %s4228_s27  ;;  %v4422_v23 = vor.u32 %v3937_v22, %v3936_v21  ;;  %v3975_v26 = vld [vmem:[%s5745_s0 + $0x7] ss:$8 sm:$0x70]  ;;  %v46_v55 = vld [vmem:[%s5746_s2 + $0x18] sm:$0xff]  ;;  %vm161_vm10 = vcmask 130048   ;;  %vm539_vm11 = vcmask 1043456  }
  0x12   :  { %v4446_v27 = vor.u32 %v3975_v26, %v3974_v25  ;;  %v43_v46 = vld [vmem:[%s5746_s2] sm:$0xff]  ;;  %v44_v47 = vld [vmem:[%s5746_s2 + $0x8] sm:$0xff]  ;;  %v45_v54 = vld [vmem:[%s5746_s2 + $0x10] sm:$0xff]  ;;  %vm540_vm12 = vcmask 719876  }
  0x13   :  { %vm5241_vm13 = vmor %vm540_vm12, %vm539_vm11 }
  0x15   :  { %568 = vrot.lane.b32.xlu1 %v555_v8, %s4224_s23  ;;  %560 = vrot.lane.b32.xlu0 %v555_v8, %s4222_s21 }
  0x19   :  { %584 = vrot.lane.b32.xlu1 %v555_v8, %s4223_s22  ;;  %576 = vrot.lane.b32.xlu0 %v555_v8, %s4221_s20 }
  0x1d   :  { %600 = vrot.lane.b32.xlu1 %v555_v8, %s4225_s24  ;;  %592 = vrot.lane.b32.xlu0 %v555_v8, %s4226_s25 }
  0x21   :  { %616 = vrot.lane.b32.xlu1 %v555_v8, %s4227_s26  ;;  %608 = vrot.lane.b32.xlu0 %v555_v8, %s4228_s27 }
  0x25   :  { %1026 = vrot.lane.b32.xlu1 %v4326_v11, %s4224_s23  ;;  %1019 = vrot.lane.b32.xlu0 %v4326_v11, %s4222_s21 }
  0x29   :  { %1040 = vrot.lane.b32.xlu1 %v4326_v11, %s4223_s22  ;;  %1033 = vrot.lane.b32.xlu0 %v4326_v11, %s4221_s20 }
  0x2d   :  { %1054 = vrot.lane.b32.xlu1 %v4326_v11, %s4225_s24  ;;  %1047 = vrot.lane.b32.xlu0 %v4326_v11, %s4226_s25 }
  0x31   :  { %1068 = vrot.lane.b32.xlu1 %v4326_v11, %s4227_s26  ;;  %1061 = vrot.lane.b32.xlu0 %v4326_v11, %s4228_s27 }
  0x35   :  { %1477 = vrot.lane.b32.xlu1 %v4350_v14, %s4224_s23  ;;  %1470 = vrot.lane.b32.xlu0 %v4350_v14, %s4222_s21 }
  0x39   :  { %1491 = vrot.lane.b32.xlu1 %v4350_v14, %s4223_s22  ;;  %1484 = vrot.lane.b32.xlu0 %v4350_v14, %s4221_s20 }
  0x3d   :  { %1505 = vrot.lane.b32.xlu1 %v4350_v14, %s4225_s24  ;;  %1498 = vrot.lane.b32.xlu0 %v4350_v14, %s4226_s25 }
  0x41   :  { %1519 = vrot.lane.b32.xlu1 %v4350_v14, %s4227_s26  ;;  %1512 = vrot.lane.b32.xlu0 %v4350_v14, %s4228_s27 }
  0x45   :  { %1928 = vrot.lane.b32.xlu1 %v4374_v17, %s4224_s23  ;;  %1921 = vrot.lane.b32.xlu0 %v4374_v17, %s4222_s21 }
  0x49   :  { %1942 = vrot.lane.b32.xlu1 %v4374_v17, %s4223_s22  ;;  %1935 = vrot.lane.b32.xlu0 %v4374_v17, %s4221_s20 }
  0x4d   :  { %1956 = vrot.lane.b32.xlu1 %v4374_v17, %s4225_s24  ;;  %1949 = vrot.lane.b32.xlu0 %v4374_v17, %s4226_s25 }
  0x51   :  { %1970 = vrot.lane.b32.xlu1 %v4374_v17, %s4227_s26  ;;  %1963 = vrot.lane.b32.xlu0 %v4374_v17, %s4228_s27 }
  0x55   :  { %2379 = vrot.lane.b32.xlu1 %v4398_v20, %s4224_s23  ;;  %2372 = vrot.lane.b32.xlu0 %v4398_v20, %s4222_s21 }
  0x59   :  { %2393 = vrot.lane.b32.xlu1 %v4398_v20, %s4223_s22  ;;  %2386 = vrot.lane.b32.xlu0 %v4398_v20, %s4221_s20 }
  0x5d   :  { %2407 = vrot.lane.b32.xlu1 %v4398_v20, %s4225_s24  ;;  %2400 = vrot.lane.b32.xlu0 %v4398_v20, %s4226_s25 }
  0x61   :  { %2421 = vrot.lane.b32.xlu1 %v4398_v20, %s4227_s26  ;;  %2414 = vrot.lane.b32.xlu0 %v4398_v20, %s4228_s27 }
  0x65   :  { %2830 = vrot.lane.b32.xlu1 %v4422_v23, %s4224_s23  ;;  %2823 = vrot.lane.b32.xlu0 %v4422_v23, %s4222_s21 }
  0x69   :  { %2844 = vrot.lane.b32.xlu1 %v4422_v23, %s4223_s22  ;;  %2837 = vrot.lane.b32.xlu0 %v4422_v23, %s4221_s20 }
  0x6d   :  { %2858 = vrot.lane.b32.xlu1 %v4422_v23, %s4225_s24  ;;  %2851 = vrot.lane.b32.xlu0 %v4422_v23, %s4226_s25 }
  0x71   :  { %2872 = vrot.lane.b32.xlu1 %v4422_v23, %s4227_s26  ;;  %2865 = vrot.lane.b32.xlu0 %v4422_v23, %s4228_s27 }
  0x75   :  { %3281 = vrot.lane.b32.xlu1 %v4446_v27, %s4224_s23  ;;  %3274 = vrot.lane.b32.xlu0 %v4446_v27, %s4222_s21 }
  0x77   :  { %v76_v28 = vpop.permute.xlu1 %75  ;;  %v58_v29 = vpop.permute.xlu0 %57 }
  0x78   :  { %v77_v30 = vrot.slane %v76_v28, 1  ;;  %v59_v31 = vrot.slane %v58_v29, 1 }
  0x79   :  { %3295 = vrot.lane.b32.xlu1 %v4446_v27, %s4223_s22  ;;  %3288 = vrot.lane.b32.xlu0 %v4446_v27, %s4221_s20 }
  0x7a   :  { %v79_v32 = vsel %vm78_vm2, %v76_v28, %v77_v30  ;;  %v61_v33 = vsel %vm60_vm3, %v58_v29, %v59_v31 }
  0x7b   :  { %82 = vst.msk [vmem:[#allocation2 + $0x3] ss:$8 sm:$0xf] %vm4292_vm1, %v79_v32  ;;  %83 = vst.msk [vmem:[#allocation2 + $0x3] ss:$8 sm:$0x30] %vm4292_vm1, %v79_v32  ;;  %v85_v34 = vpop.permute.xlu1 %84  ;;  %v67_v35 = vpop.permute.xlu0 %66 }
  0x7c   :  { %64 = vst.msk [vmem:[#allocation2 + $0x1] ss:$8 sm:$0xf] %vm4292_vm1, %v61_v33  ;;  %65 = vst.msk [vmem:[#allocation2 + $0x1] ss:$8 sm:$0x30] %vm4292_vm1, %v61_v33 }
  0x7d   :  { %v86_v36 = vrot.slane %v85_v34, 1  ;;  %v68_v37 = vrot.slane %v67_v35, 1  ;;  %3309 = vrot.lane.b32.xlu1 %v4446_v27, %s4225_s24  ;;  %3302 = vrot.lane.b32.xlu0 %v4446_v27, %s4226_s25 }
  0x7f   :  { %v88_v38 = vsel %vm87_vm4, %v85_v34, %v86_v36  ;;  %v70_v39 = vsel %vm69_vm5, %v67_v35, %v68_v37  ;;  %v103_v40 = vpop.permute.xlu1 %102  ;;  %v94_v41 = vpop.permute.xlu0 %93 }
  0x80   :  { %91 = vst.msk [vmem:[#allocation2 + $0x4] ss:$8 sm:$0xf] %vm4292_vm1, %v88_v38  ;;  %92 = vst.msk [vmem:[#allocation2 + $0x4] ss:$8 sm:$0x30] %vm4292_vm1, %v88_v38 }
  0x81   :  { %73 = vst.msk [vmem:[#allocation2 + $0x2] ss:$8 sm:$0xf] %vm4292_vm1, %v70_v39  ;;  %74 = vst.msk [vmem:[#allocation2 + $0x2] ss:$8 sm:$0x30] %vm4292_vm1, %v70_v39  ;;  %3323 = vrot.lane.b32.xlu1 %v4446_v27, %s4227_s26  ;;  %3316 = vrot.lane.b32.xlu0 %v4446_v27, %s4228_s27 }
  0x82   :  { %v104_v42 = vrot.slane %v103_v40, 1  ;;  %v95_v43 = vrot.slane %v94_v41, 1  ;;  %v4555_v38 = vld [vmem:[%s5747_s1] sm:$0xff] }
  0x83   :  { %v121_v48 = vpop.permute.xlu1 %120  ;;  %v112_v49 = vpop.permute.xlu0 %111 }
  0x84   :  { %v106_v44 = vsel %vm105_vm6, %v103_v40, %v104_v42  ;;  %v97_v45 = vsel %vm96_vm7, %v94_v41, %v95_v43  ;;  %v122_v50 = vrot.slane %v121_v48, 1  ;;  %v113_v51 = vrot.slane %v112_v49, 1 }
  0x85   :  { %109 = vst.msk [vmem:[#allocation2 + $0x6] ss:$8 sm:$0xf] %vm4292_vm1, %v106_v44  ;;  %110 = vst.msk [vmem:[#allocation2 + $0x6] ss:$8 sm:$0x30] %vm4292_vm1, %v106_v44  ;;  %143 = vperm.xlu0 %4214, %v43_v46   ;;  %148 = vperm.xlu1 %4215, %v44_v47  }
  0x86   :  { %100 = vst.msk [vmem:[#allocation2 + $0x5] ss:$8 sm:$0xf] %vm4292_vm1, %v97_v45  ;;  %101 = vst.msk [vmem:[#allocation2 + $0x5] ss:$8 sm:$0x30] %vm4292_vm1, %v97_v45  ;;  %v124_v52 = vsel %vm123_vm8, %v121_v48, %v122_v50  ;;  %v115_v53 = vsel %vm114_vm9, %v112_v49, %v113_v51 }
  0x87   :  { %127 = vst.msk [vmem:[#allocation2 + $0x30] ss:$8 sm:$0xf] %vm4292_vm1, %v124_v52  ;;  %128 = vst.msk [vmem:[#allocation2 + $0x30] ss:$8 sm:$0x30] %vm4292_vm1, %v124_v52  ;;  %v569_v56 = vpop.permute.xlu1 %568  ;;  %v561_v57 = vpop.permute.xlu0 %560 }
  0x88   :  { %118 = vst.msk [vmem:[#allocation2 + $0x7] ss:$8 sm:$0xf] %vm4292_vm1, %v115_v53  ;;  %119 = vst.msk [vmem:[#allocation2 + $0x7] ss:$8 sm:$0x30] %vm4292_vm1, %v115_v53 }
  0x89   :  { %v570_v58 = vrot.slane %v569_v56, 1  ;;  %v562_v59 = vrot.slane %v561_v57, 1  ;;  %153 = vperm.xlu1 %4215, %v45_v54   ;;  %158 = vperm.xlu0 %4214, %v46_v55   ;;  %v4575_v46 = vld [vmem:[%s5747_s1 + $0x8] sm:$0xff]  ;;  %v4597_v53 = vld [vmem:[%s5747_s1 + $0x10] sm:$0xff] }
  0x8b   :  { %v571_v60 = vsel %vm69_vm5, %v569_v56, %v570_v58  ;;  %v563_v61 = vsel %vm60_vm3, %v561_v57, %v562_v59  ;;  %v585_v62 = vpop.permute.xlu1 %584  ;;  %v577_v63 = vpop.permute.xlu0 %576  ;;  %v4604_v59 = vld [vmem:[%s5747_s1 + $0x18] sm:$0xff] }
  0x8c   :  { %574 = vst.msk [vmem:[#allocation2 + $0x62] ss:$8 sm:$0xf] %vm4292_vm1, %v571_v60  ;;  %575 = vst.msk [vmem:[#allocation2 + $0x62] ss:$8 sm:$0x30] %vm4292_vm1, %v571_v60 }
  0x8d   :  { %566 = vst.msk [vmem:[#allocation2 + $0x61] ss:$8 sm:$0xf] %vm4292_vm1, %v563_v61  ;;  %567 = vst.msk [vmem:[#allocation2 + $0x61] ss:$8 sm:$0x30] %vm4292_vm1, %v563_v61 }
  0x8e   :  { %v586_v0 = vrot.slane %v585_v62, 1  ;;  %v578_v1 = vrot.slane %v577_v63, 1  ;;  %v136_v19 = vld [vmem:[#allocation2 + $0x38] sm:$0xff]  ;;  %v138_v21 = vld [vmem:[#allocation2 + $0x48] sm:$0xff]  ;;  %v135_v22 = vld [vmem:[#allocation2 + $0x30] sm:$0xff] }
  0x8f   :  { %v129_v2 = vld [vmem:[#allocation2] sm:$0xff]  ;;  %v130_v4 = vld [vmem:[#allocation2 + $0x8] sm:$0xff]  ;;  %v131_v5 = vld [vmem:[#allocation2 + $0x10] sm:$0xff]  ;;  %v601_v13 = vpop.permute.xlu1 %600  ;;  %v593_v15 = vpop.permute.xlu0 %592 }
  0x90   :  { %v587_v6 = vsel %vm87_vm4, %v585_v62, %v586_v0  ;;  %v579_v8 = vsel %vm78_vm2, %v577_v63, %v578_v1  ;;  %v132_v9 = vld [vmem:[#allocation2 + $0x18] sm:$0xff]  ;;  %v133_v10 = vld [vmem:[#allocation2 + $0x20] sm:$0xff]  ;;  %v134_v12 = vld [vmem:[#allocation2 + $0x28] sm:$0xff]  ;;  %v602_v16 = vrot.slane %v601_v13, 1  ;;  %v594_v18 = vrot.slane %v593_v15, 1 }
  0x91   :  { %590 = vst.msk [vmem:[#allocation2 + $0x64] ss:$8 sm:$0xf] %vm4292_vm1, %v587_v6  ;;  %591 = vst.msk [vmem:[#allocation2 + $0x64] ss:$8 sm:$0x30] %vm4292_vm1, %v587_v6  ;;  %v4108_v24 = vpack.c.bf16 %v136_v19, %v130_v4  ;;  %v4112_v25 = vpack.c.bf16 %v138_v21, %v132_v9  ;;  %v4110_v26 = vpack.c.bf16 %v135_v22, %v129_v2 }
  0x92   :  { %582 = vst.msk [vmem:[#allocation2 + $0x63] ss:$8 sm:$0xf] %vm4292_vm1, %v579_v8  ;;  %583 = vst.msk [vmem:[#allocation2 + $0x63] ss:$8 sm:$0x30] %vm4292_vm1, %v579_v8  ;;  %v603_v30 = vsel %vm105_vm6, %v601_v13, %v602_v16  ;;  %v595_v31 = vsel %vm96_vm7, %v593_v15, %v594_v18 }
  0x93   :  { %1016 = vst.msk [vmem:[#allocation2] ss:$8 sm:$0xf] %vm4292_vm1, %v4326_v11  ;;  %1017 = vst.msk [vmem:[#allocation2] ss:$8 sm:$0x30] %vm4292_vm1, %v4326_v11  ;;  %4109 = vmatprep.subr.bf16.mxu0 %v4108_v24  ;;  %4113 = vmatprep.subr.bf16.mxu1 %v4112_v25  ;;  %v617_v11 = vpop.permute.xlu1 %616  ;;  %v609_v33 = vpop.permute.xlu0 %608 }
  0x94   :  { %v137_v28 = vld [vmem:[#allocation2 + $0x40] sm:$0xff]  ;;  %v140_v29 = vld [vmem:[#allocation2 + $0x58] sm:$0xff]  ;;  %606 = vst.msk [vmem:[#allocation2 + $0x66] ss:$8 sm:$0xf] %vm4292_vm1, %v603_v30  ;;  %v139_v35 = vld [vmem:[#allocation2 + $0x50] sm:$0xff]  ;;  %4111 = vmatpush1.bf16.msra.mxu0 %v4110_v26 }
  0x95   :  { %v4114_v32 = vpack.c.bf16 %v137_v28, %v131_v5  ;;  %607 = vst.msk [vmem:[#allocation2 + $0x66] ss:$8 sm:$0x30] %vm4292_vm1, %v603_v30  ;;  %598 = vst.msk [vmem:[#allocation2 + $0x65] ss:$8 sm:$0xf] %vm4292_vm1, %v595_v31  ;;  %v4116_v34 = vpack.c.bf16 %v140_v29, %v134_v12  ;;  %v4118_v41 = vpack.c.bf16 %v139_v35, %v133_v10 }
  0x96   :  { %599 = vst.msk [vmem:[#allocation2 + $0x65] ss:$8 sm:$0x30] %vm4292_vm1, %v595_v31  ;;  %v618_v36 = vrot.slane %v617_v11, 1  ;;  %v610_v37 = vrot.slane %v609_v33, 1 }
  0x97   :  { %4115 = vmatpush1.bf16.msra.mxu1 %v4114_v32  ;;  %4117 = vmatprep.subr.bf16.mxu0 %v4116_v34  ;;  %v1027_v42 = vpop.permute.xlu1 %1026  ;;  %v1020_v43 = vpop.permute.xlu0 %1019 }
  0x98   :  { %v619_v39 = vsel %vm123_vm8, %v617_v11, %v618_v36  ;;  %v611_v40 = vsel %vm114_vm9, %v609_v33, %v610_v37  ;;  %3722 = vmatmul.mubr.msk.f32.vlgmr.msra.gmra.mrb[0].mxu0 %vm161_vm10, %v4555_v38  ;;  %v1028_v44 = vrot.slane %v1027_v42, 1  ;;  %v1021_v45 = vrot.slane %v1020_v43, 1 }
  0x99   :  { %622 = vst.msk [vmem:[#allocation2 + $0x90] ss:$8 sm:$0xf] %vm4292_vm1, %v619_v39  ;;  %623 = vst.msk [vmem:[#allocation2 + $0x90] ss:$8 sm:$0x30] %vm4292_vm1, %v619_v39  ;;  %4119 = vmatpush1.bf16.msra.mxu0 %v4118_v41  ;;  %244 = vmatprep.mubr.f32.mxu0 %v4220_v3 }
  0x9a   :  { %614 = vst.msk [vmem:[#allocation2 + $0x67] ss:$8 sm:$0xf] %vm4292_vm1, %v611_v40  ;;  %615 = vst.msk [vmem:[#allocation2 + $0x67] ss:$8 sm:$0x30] %vm4292_vm1, %v611_v40  ;;  %3726 = vmatmul.mubr.msk.f32.vlgmr.msra.gmra.mrb[0].mxu1 %vm161_vm10, %v4555_v38  ;;  %v1029_v47 = vsel %vm69_vm5, %v1027_v42, %v1028_v44  ;;  %v1022_v48 = vsel %vm60_vm3, %v1020_v43, %v1021_v45 }
  0x9b   :  { %333 = vmatprep.mubr.f32.mxu1 %v4220_v3  ;;  %1031 = vst.msk [vmem:[#allocation2 + $0x2] ss:$8 sm:$0xf] %vm4292_vm1, %v1029_v47  ;;  %1032 = vst.msk [vmem:[#allocation2 + $0x2] ss:$8 sm:$0x30] %vm4292_vm1, %v1029_v47  ;;  %v1041_v49 = vpop.permute.xlu1 %1040  ;;  %v1034_v50 = vpop.permute.xlu0 %1033 }
  0x9c   :  { %1024 = vst.msk [vmem:[#allocation2 + $0x1] ss:$8 sm:$0xf] %vm4292_vm1, %v1022_v48  ;;  %1025 = vst.msk [vmem:[#allocation2 + $0x1] ss:$8 sm:$0x30] %vm4292_vm1, %v1022_v48  ;;  %3723 = vmatmul.mubr.msk.f32.gmra.mrb[2].mxu0 %vm161_vm10, %v4575_v46 }
  0x9d   :  { %250 = vmatprep.mubr.f32.mxu0 %v4220_v3  ;;  %v1042_v51 = vrot.slane %v1041_v49, 1  ;;  %v1035_v52 = vrot.slane %v1034_v50, 1 }
  0x9e   :  { %3727 = vmatmul.mubr.msk.f32.gmra.mrb[2].mxu1 %vm161_vm10, %v4575_v46 }
  0x9f   :  { %339 = vmatprep.mubr.f32.mxu1 %v4220_v3  ;;  %v1043_v57 = vsel %vm87_vm4, %v1041_v49, %v1042_v51  ;;  %v1036_v58 = vsel %vm78_vm2, %v1034_v50, %v1035_v52  ;;  %v1055_v63 = vpop.permute.xlu1 %1054  ;;  %v1048_v0 = vpop.permute.xlu0 %1047 }
  0xa0   :  { %1045 = vst.msk [vmem:[#allocation2 + $0x4] ss:$8 sm:$0xf] %vm4292_vm1, %v1043_v57  ;;  %1046 = vst.msk [vmem:[#allocation2 + $0x4] ss:$8 sm:$0x30] %vm4292_vm1, %v1043_v57  ;;  %3724 = vmatmul.mubr.msk.f32.gmra.mrb[4].mxu0 %vm161_vm10, %v4597_v53 }
  0xa1   :  { %v624_v54 = vld [vmem:[#allocation2 + $0x60] sm:$0xff]  ;;  %v625_v55 = vld [vmem:[#allocation2 + $0x68] sm:$0xff]  ;;  %v626_v56 = vld [vmem:[#allocation2 + $0x70] sm:$0xff]  ;;  %1038 = vst.msk [vmem:[#allocation2 + $0x3] ss:$8 sm:$0xf] %vm4292_vm1, %v1036_v58  ;;  %256 = vmatprep.mubr.f32.mxu0 %v4220_v3 }
  0xa2   :  { %v627_v60 = vld [vmem:[#allocation2 + $0x78] sm:$0xff]  ;;  %v628_v61 = vld [vmem:[#allocation2 + $0x80] sm:$0xff]  ;;  %v629_v62 = vld [vmem:[#allocation2 + $0x88] sm:$0xff]  ;;  %1039 = vst.msk [vmem:[#allocation2 + $0x3] ss:$8 sm:$0x30] %vm4292_vm1, %v1036_v58  ;;  %3728 = vmatmul.mubr.msk.f32.gmra.mrb[4].mxu1 %vm161_vm10, %v4597_v53 }
  0xa3   :  { %1467 = vst.msk [vmem:[#allocation2 + $0x60] ss:$8 sm:$0xf] %vm4292_vm1, %v4350_v14  ;;  %1468 = vst.msk [vmem:[#allocation2 + $0x60] ss:$8 sm:$0x30] %vm4292_vm1, %v4350_v14  ;;  %345 = vmatprep.mubr.f32.mxu1 %v4220_v3  ;;  %v1069_v14 = vpop.permute.xlu1 %1068  ;;  %v1062_v16 = vpop.permute.xlu0 %1061 }
  0xa4   :  { %v1056_v1 = vrot.slane %v1055_v63, 1  ;;  %v1049_v2 = vrot.slane %v1048_v0, 1  ;;  %v631_v4 = vld [vmem:[#allocation2 + $0x98] sm:$0xff]  ;;  %v633_v5 = vld [vmem:[#allocation2 + $0xa8] sm:$0xff]  ;;  %v630_v6 = vld [vmem:[#allocation2 + $0x90] sm:$0xff]  ;;  %3725 = vmatmul.mubr.msk.f32.gmra.mrb[6].mxu0 %vm161_vm10, %v4604_v59  ;;  %v1070_v21 = vrot.slane %v1069_v14, 1 }
  0xa5   :  { %v4120_v8 = vpack.c.bf16 %v631_v4, %v625_v55  ;;  %v4124_v9 = vpack.c.bf16 %v633_v5, %v627_v60  ;;  %v4122_v10 = vpack.c.bf16 %v630_v6, %v624_v54  ;;  %v635_v12 = vld [vmem:[#allocation2 + $0xb8] sm:$0xff]  ;;  %v632_v18 = vld [vmem:[#allocation2 + $0xa0] sm:$0xff]  ;;  %v1063_v22 = vrot.slane %v1062_v16, 1  ;;  %v634_v24 = vld [vmem:[#allocation2 + $0xb0] sm:$0xff]  ;;  %416 = vmatprep.mubr.f32.mxu0 %v4220_v3 }
  0xa6   :  { %v1057_v13 = vsel %vm105_vm6, %v1055_v63, %v1056_v1  ;;  %v1050_v15 = vsel %vm96_vm7, %v1048_v0, %v1049_v2  ;;  %3729 = vmatmul.mubr.msk.f32.gmra.mrb[6].mxu1 %vm161_vm10, %v4604_v59  ;;  %v4128_v19 = vpack.c.bf16 %v635_v12, %v629_v62  ;;  %v1071_v25 = vsel %vm123_vm8, %v1069_v14, %v1070_v21 }
  0xa7   :  { %1059 = vst.msk [vmem:[#allocation2 + $0x6] ss:$8 sm:$0xf] %vm4292_vm1, %v1057_v13  ;;  %1060 = vst.msk [vmem:[#allocation2 + $0x6] ss:$8 sm:$0x30] %vm4292_vm1, %v1057_v13  ;;  %4121 = vmatprep.subr.bf16.mxu1 %v4120_v8  ;;  %4125 = vmatprep.subr.bf16.mxu0 %v4124_v9  ;;  %v1064_v26 = vsel %vm114_vm9, %v1062_v16, %v1063_v22  ;;  %v4126_v28 = vpack.c.bf16 %v632_v18, %v626_v56  ;;  %v1478_v30 = vpop.permute.xlu1 %1477  ;;  %v1471_v31 = vpop.permute.xlu0 %1470 }
  0xa8   :  { %1052 = vst.msk [vmem:[#allocation2 + $0x5] ss:$8 sm:$0xf] %vm4292_vm1, %v1050_v15  ;;  %1053 = vst.msk [vmem:[#allocation2 + $0x5] ss:$8 sm:$0x30] %vm4292_vm1, %v1050_v15  ;;  %4123 = vmatpush1.bf16.msra.mxu1 %v4122_v10  ;;  %700 = vmatprep.mubr.f32.mxu1 %v4220_v3  ;;  %v4130_v29 = vpack.c.bf16 %v634_v24, %v628_v61 }
  0xa9   :  { %4129 = vmatprep.subr.bf16.mxu1 %v4128_v19  ;;  %1073 = vst.msk [vmem:[#allocation2 + $0x30] ss:$8 sm:$0xf] %vm4292_vm1, %v1071_v25  ;;  %1074 = vst.msk [vmem:[#allocation2 + $0x30] ss:$8 sm:$0x30] %vm4292_vm1, %v1071_v25  ;;  %3730 = vmatmul.mubr.msk.f32.vlgmr.msra.gmra.mrb[8].mxu0 %vm161_vm10, %v4555_v38 }
  0xaa   :  { %1066 = vst.msk [vmem:[#allocation2 + $0x7] ss:$8 sm:$0xf] %vm4292_vm1, %v1064_v26  ;;  %1067 = vst.msk [vmem:[#allocation2 + $0x7] ss:$8 sm:$0x30] %vm4292_vm1, %v1064_v26  ;;  %4127 = vmatpush1.bf16.msra.mxu0 %v4126_v28  ;;  %422 = vmatprep.mubr.f32.mxu0 %v4220_v3 }
  0xab   :  { %3748 = vmatmul.mubr.msk.f32.vlgmr.msra.gmra.mrb[8].mxu1 %vm161_vm10, %v4555_v38  ;;  %v1479_v32 = vrot.slane %v1478_v30, 1  ;;  %v1472_v11 = vrot.slane %v1471_v31, 1  ;;  %v1492_v35 = vpop.permute.xlu1 %1491  ;;  %v1485_v36 = vpop.permute.xlu0 %1484 }
  0xac   :  { %4131 = vmatpush1.bf16.msra.mxu1 %v4130_v29  ;;  %706 = vmatprep.mubr.f32.mxu1 %v4220_v3  ;;  %v1493_v37 = vrot.slane %v1492_v35, 1  ;;  %v1486_v39 = vrot.slane %v1485_v36, 1 }
  0xad   :  { %v1480_v33 = vsel %vm69_vm5, %v1478_v30, %v1479_v32  ;;  %v1473_v34 = vsel %vm60_vm3, %v1471_v31, %v1472_v11  ;;  %3731 = vmatmul.mubr.msk.f32.gmra.mrb[10].mxu0 %vm161_vm10, %v4575_v46 }
  0xae   :  { %1482 = vst.msk [vmem:[#allocation2 + $0x62] ss:$8 sm:$0xf] %vm4292_vm1, %v1480_v33  ;;  %1483 = vst.msk [vmem:[#allocation2 + $0x62] ss:$8 sm:$0x30] %vm4292_vm1, %v1480_v33  ;;  %428 = vmatprep.mubr.f32.mxu0 %v4220_v3  ;;  %v1494_v43 = vsel %vm87_vm4, %v1492_v35, %v1493_v37  ;;  %v1487_v44 = vsel %vm78_vm2, %v1485_v36, %v1486_v39 }
  0xaf   :  { %1475 = vst.msk [vmem:[#allocation2 + $0x61] ss:$8 sm:$0xf] %vm4292_vm1, %v1473_v34  ;;  %1476 = vst.msk [vmem:[#allocation2 + $0x61] ss:$8 sm:$0x30] %vm4292_vm1, %v1473_v34  ;;  %3749 = vmatmul.mubr.msk.f32.gmra.mrb[10].mxu1 %vm161_vm10, %v4575_v46  ;;  %v1506_v49 = vpop.permute.xlu1 %1505  ;;  %v1499_v50 = vpop.permute.xlu0 %1498 }
  0xb0   :  { %712 = vmatprep.mubr.f32.mxu1 %v4220_v3  ;;  %1496 = vst.msk [vmem:[#allocation2 + $0x64] ss:$8 sm:$0xf] %vm4292_vm1, %v1494_v43  ;;  %1497 = vst.msk [vmem:[#allocation2 + $0x64] ss:$8 sm:$0x30] %vm4292_vm1, %v1494_v43 }
  0xb1   :  { %v1075_v40 = vld [vmem:[#allocation2] sm:$0xff]  ;;  %v1076_v41 = vld [vmem:[#allocation2 + $0x8] sm:$0xff]  ;;  %v1077_v42 = vld [vmem:[#allocation2 + $0x10] sm:$0xff]  ;;  %1489 = vst.msk [vmem:[#allocation2 + $0x63] ss:$8 sm:$0xf] %vm4292_vm1, %v1487_v44  ;;  %3732 = vmatmul.mubr.msk.f32.gmra.mrb[12].mxu0 %vm161_vm10, %v4597_v53 }
  0xb2   :  { %v1078_v45 = vld [vmem:[#allocation2 + $0x18] sm:$0xff]  ;;  %v4676_v47 = vld [vmem:[#allocation2 + $0x20] sm:$0xff]  ;;  %v1080_v48 = vld [vmem:[#allocation2 + $0x28] sm:$0xff]  ;;  %1490 = vst.msk [vmem:[#allocation2 + $0x63] ss:$8 sm:$0x30] %vm4292_vm1, %v1487_v44  ;;  %434 = vmatprep.mubr.f32.mxu0 %v4220_v3 }
  0xb3   :  { %1918 = vst.msk [vmem:[#allocation2] ss:$8 sm:$0xf] %vm4292_vm1, %v4374_v17  ;;  %1919 = vst.msk [vmem:[#allocation2] ss:$8 sm:$0x30] %vm4292_vm1, %v4374_v17  ;;  %3750 = vmatmul.mubr.msk.f32.gmra.mrb[12].mxu1 %vm161_vm10, %v4597_v53  ;;  %v1520_v17 = vpop.permute.xlu1 %1519  ;;  %v1513_v61 = vpop.permute.xlu0 %1512 }
  0xb4   :  { %v1507_v51 = vrot.slane %v1506_v49, 1  ;;  %v1500_v52 = vrot.slane %v1499_v50, 1  ;;  %v1082_v54 = vld [vmem:[#allocation2 + $0x38] sm:$0xff]  ;;  %v1084_v55 = vld [vmem:[#allocation2 + $0x48] sm:$0xff]  ;;  %718 = vmatprep.mubr.f32.mxu1 %v4220_v3  ;;  %v1081_v62 = vld [vmem:[#allocation2 + $0x30] sm:$0xff]  ;;  %v1521_v63 = vrot.slane %v1520_v17, 1 }
  0xb5   :  { %v4132_v56 = vpack.c.bf16 %v1082_v54, %v1076_v41  ;;  %v4136_v57 = vpack.c.bf16 %v1084_v55, %v1078_v45  ;;  %3733 = vmatmul.mubr.msk.f32.gmra.mrb[14].mxu0 %vm161_vm10, %v4604_v59  ;;  %v1514_v0 = vrot.slane %v1513_v61, 1  ;;  %v1083_v1 = vld [vmem:[#allocation2 + $0x40] sm:$0xff]  ;;  %v1086_v2 = vld [vmem:[#allocation2 + $0x58] sm:$0xff]  ;;  %v4134_v6 = vpack.c.bf16 %v1081_v62, %v1075_v40 }
  0xb6   :  { %v1508_v58 = vsel %vm105_vm6, %v1506_v49, %v1507_v51  ;;  %v1501_v60 = vsel %vm96_vm7, %v1499_v50, %v1500_v52  ;;  %789 = vmatprep.mubr.f32.mxu0 %v4220_v3  ;;  %v1522_v4 = vsel %vm123_vm8, %v1520_v17, %v1521_v63  ;;  %v4138_v8 = vpack.c.bf16 %v1083_v1, %v1077_v42 }
  0xb7   :  { %1510 = vst.msk [vmem:[#allocation2 + $0x66] ss:$8 sm:$0xf] %vm4292_vm1, %v1508_v58  ;;  %1511 = vst.msk [vmem:[#allocation2 + $0x66] ss:$8 sm:$0x30] %vm4292_vm1, %v1508_v58  ;;  %4133 = vmatprep.subr.bf16.mxu0 %v4132_v56  ;;  %3751 = vmatmul.mubr.msk.f32.gmra.mrb[14].mxu1 %vm161_vm10, %v4604_v59  ;;  %v1515_v5 = vsel %vm114_vm9, %v1513_v61, %v1514_v0  ;;  %v4140_v9 = vpack.c.bf16 %v1086_v2, %v1080_v48  ;;  %v1929_v10 = vpop.permute.xlu1 %1928  ;;  %v1922_v12 = vpop.permute.xlu0 %1921 }
  0xb8   :  { %1503 = vst.msk [vmem:[#allocation2 + $0x65] ss:$8 sm:$0xf] %vm4292_vm1, %v1501_v60  ;;  %1504 = vst.msk [vmem:[#allocation2 + $0x65] ss:$8 sm:$0x30] %vm4292_vm1, %v1501_v60  ;;  %4137 = vmatprep.subr.bf16.mxu1 %v4136_v57  ;;  %878 = vmatprep.mubr.f32.mxu1 %v4220_v3 }
  0xb9   :  { %1524 = vst.msk [vmem:[#allocation2 + $0x90] ss:$8 sm:$0xf] %vm4292_vm1, %v1522_v4  ;;  %1525 = vst.msk [vmem:[#allocation2 + $0x90] ss:$8 sm:$0x30] %vm4292_vm1, %v1522_v4  ;;  %3752 = vmatmul.mubr.msk.f32.vlgmr.msra.gmra.mrb[16].mxu0 %vm161_vm10, %v4555_v38 }
  0xba   :  { %1517 = vst.msk [vmem:[#allocation2 + $0x67] ss:$8 sm:$0xf] %vm4292_vm1, %v1515_v5  ;;  %1518 = vst.msk [vmem:[#allocation2 + $0x67] ss:$8 sm:$0x30] %vm4292_vm1, %v1515_v5  ;;  %4135 = vmatpush1.bf16.msra.mxu0 %v4134_v6  ;;  %795 = vmatprep.mubr.f32.mxu0 %v4220_v3 }
  0xbb   :  { %3756 = vmatmul.mubr.msk.f32.vlgmr.msra.gmra.mrb[16].mxu1 %vm161_vm10, %v4555_v38  ;;  %v1930_v13 = vrot.slane %v1929_v10, 1  ;;  %v1923_v15 = vrot.slane %v1922_v12, 1  ;;  %4141 = vmatprep.subr.bf16.mxu0 %v4140_v9  ;;  %v1943_v18 = vpop.permute.xlu1 %1942  ;;  %v1936_v19 = vpop.permute.xlu0 %1935 }
  0xbc   :  { %4139 = vmatpush1.bf16.msra.mxu1 %v4138_v8  ;;  %884 = vmatprep.mubr.f32.mxu1 %v4220_v3  ;;  %v1944_v21 = vrot.slane %v1943_v18, 1  ;;  %v1937_v22 = vrot.slane %v1936_v19, 1 }
  0xbd   :  { %v1931_v14 = vsel %vm69_vm5, %v1929_v10, %v1930_v13  ;;  %v1924_v16 = vsel %vm60_vm3, %v1922_v12, %v1923_v15  ;;  %3753 = vmatmul.mubr.msk.f32.gmra.mrb[18].mxu0 %vm161_vm10, %v4575_v46 }
  0xbe   :  { %1933 = vst.msk [vmem:[#allocation2 + $0x2] ss:$8 sm:$0xf] %vm4292_vm1, %v1931_v14  ;;  %1934 = vst.msk [vmem:[#allocation2 + $0x2] ss:$8 sm:$0x30] %vm4292_vm1, %v1931_v14  ;;  %801 = vmatprep.mubr.f32.mxu0 %v4220_v3  ;;  %v1945_v28 = vsel %vm87_vm4, %v1943_v18, %v1944_v21  ;;  %v1938_v29 = vsel %vm78_vm2, %v1936_v19, %v1937_v22 }
  0xbf   :  { %1926 = vst.msk [vmem:[#allocation2 + $0x1] ss:$8 sm:$0xf] %vm4292_vm1, %v1924_v16  ;;  %1927 = vst.msk [vmem:[#allocation2 + $0x1] ss:$8 sm:$0x30] %vm4292_vm1, %v1924_v16  ;;  %3757 = vmatmul.mubr.msk.f32.gmra.mrb[18].mxu1 %vm161_vm10, %v4575_v46  ;;  %v1957_v11 = vpop.permute.xlu1 %1956  ;;  %v1950_v33 = vpop.permute.xlu0 %1949 }
  0xc0   :  { %890 = vmatprep.mubr.f32.mxu1 %v4220_v3  ;;  %1947 = vst.msk [vmem:[#allocation2 + $0x4] ss:$8 sm:$0xf] %vm4292_vm1, %v1945_v28  ;;  %1948 = vst.msk [vmem:[#allocation2 + $0x4] ss:$8 sm:$0x30] %vm4292_vm1, %v1945_v28 }
  0xc1   :  { %v1526_v24 = vld [vmem:[#allocation2 + $0x60] sm:$0xff]  ;;  %v1527_v25 = vld [vmem:[#allocation2 + $0x68] sm:$0xff]  ;;  %v4746_v26 = vld [vmem:[#allocation2 + $0x70] sm:$0xff]  ;;  %3754 = vmatmul.mubr.msk.f32.gmra.mrb[20].mxu0 %vm161_vm10, %v4597_v53  ;;  %1940 = vst.msk [vmem:[#allocation2 + $0x3] ss:$8 sm:$0xf] %vm4292_vm1, %v1938_v29 }
  0xc2   :  { %v1529_v30 = vld [vmem:[#allocation2 + $0x78] sm:$0xff]  ;;  %v4750_v31 = vld [vmem:[#allocation2 + $0x80] sm:$0xff]  ;;  %v1531_v32 = vld [vmem:[#allocation2 + $0x88] sm:$0xff]  ;;  %1941 = vst.msk [vmem:[#allocation2 + $0x3] ss:$8 sm:$0x30] %vm4292_vm1, %v1938_v29  ;;  %807 = vmatprep.mubr.f32.mxu0 %v4220_v3 }
  0xc3   :  { %2369 = vst.msk [vmem:[#allocation2 + $0x60] ss:$8 sm:$0xf] %vm4292_vm1, %v4398_v20  ;;  %2370 = vst.msk [vmem:[#allocation2 + $0x60] ss:$8 sm:$0x30] %vm4292_vm1, %v4398_v20  ;;  %3758 = vmatmul.mubr.msk.f32.gmra.mrb[20].mxu1 %vm161_vm10, %v4597_v53  ;;  %v1971_v41 = vpop.permute.xlu1 %1970  ;;  %v1964_v42 = vpop.permute.xlu0 %1963 }
  0xc4   :  { %v1533_v34 = vld [vmem:[#allocation2 + $0x98] sm:$0xff]  ;;  %v1958_v35 = vrot.slane %v1957_v11, 1  ;;  %v1951_v36 = vrot.slane %v1950_v33, 1  ;;  %896 = vmatprep.mubr.f32.mxu1 %v4220_v3  ;;  %v1085_v20 = vld [vmem:[#allocation2 + $0x50] sm:$0xff]  ;;  %v1535_v44 = vld [vmem:[#allocation2 + $0xa8] sm:$0xff]  ;;  %v1972_v45 = vrot.slane %v1971_v41, 1 }
  0xc5   :  { %v4144_v37 = vpack.c.bf16 %v1533_v34, %v1527_v25  ;;  %3755 = vmatmul.mubr.msk.f32.gmra.mrb[22].mxu0 %vm161_vm10, %v4604_v59  ;;  %v1532_v43 = vld [vmem:[#allocation2 + $0x90] sm:$0xff]  ;;  %v1965_v48 = vrot.slane %v1964_v42, 1  ;;  %v1537_v49 = vld [vmem:[#allocation2 + $0xb8] sm:$0xff]  ;;  %v4142_v50 = vpack.c.bf16 %v1085_v20, %v4676_v47  ;;  %v4148_v55 = vpack.c.bf16 %v1535_v44, %v1529_v30  ;;  %v1534_v21 = vld [vmem:[#allocation2 + $0xa0] sm:$0xff] }
  0xc6   :  { %v1959_v39 = vsel %vm105_vm6, %v1957_v11, %v1958_v35  ;;  %v1952_v40 = vsel %vm96_vm7, %v1950_v33, %v1951_v36  ;;  %1151 = vmatprep.mubr.f32.mxu0 %v4220_v3  ;;  %v1973_v51 = vsel %vm123_vm8, %v1971_v41, %v1972_v45  ;;  %v4146_v54 = vpack.c.bf16 %v1532_v43, %v1526_v24 }
  0xc7   :  { %4145 = vmatprep.subr.bf16.mxu1 %v4144_v37  ;;  %1961 = vst.msk [vmem:[#allocation2 + $0x6] ss:$8 sm:$0xf] %vm4292_vm1, %v1959_v39  ;;  %1962 = vst.msk [vmem:[#allocation2 + $0x6] ss:$8 sm:$0x30] %vm4292_vm1, %v1959_v39  ;;  %3759 = vmatmul.mubr.msk.f32.gmra.mrb[22].mxu1 %vm161_vm10, %v4604_v59  ;;  %v1966_v52 = vsel %vm114_vm9, %v1964_v42, %v1965_v48  ;;  %v2380_v47 = vpop.permute.xlu1 %2379  ;;  %v2373_v56 = vpop.permute.xlu0 %2372  ;;  %v4152_v57 = vpack.c.bf16 %v1537_v49, %v1531_v32 }
  0xc8   :  { %1954 = vst.msk [vmem:[#allocation2 + $0x5] ss:$8 sm:$0xf] %vm4292_vm1, %v1952_v40  ;;  %1955 = vst.msk [vmem:[#allocation2 + $0x5] ss:$8 sm:$0x30] %vm4292_vm1, %v1952_v40  ;;  %1240 = vmatprep.mubr.f32.mxu1 %v4220_v3  ;;  %v4150_v32 = vpack.c.bf16 %v1534_v21, %v4746_v26 }
  0xc9   :  { %3786 = vmatmul.mubr.msk.f32.vlgmr.msra.gmra.mrb[24].mxu0 %vm161_vm10, %v4555_v38  ;;  %1975 = vst.msk [vmem:[#allocation2 + $0x30] ss:$8 sm:$0xf] %vm4292_vm1, %v1973_v51  ;;  %1976 = vst.msk [vmem:[#allocation2 + $0x30] ss:$8 sm:$0x30] %vm4292_vm1, %v1973_v51 }
  0xca   :  { %1968 = vst.msk [vmem:[#allocation2 + $0x7] ss:$8 sm:$0xf] %vm4292_vm1, %v1966_v52  ;;  %1969 = vst.msk [vmem:[#allocation2 + $0x7] ss:$8 sm:$0x30] %vm4292_vm1, %v1966_v52  ;;  %4143 = vmatpush1.bf16.msra.mxu0 %v4142_v50  ;;  %1157 = vmatprep.mubr.f32.mxu0 %v4220_v3 }
  0xcb   :  { %3790 = vmatmul.mubr.msk.f32.vlgmr.msra.gmra.mrb[24].mxu1 %vm161_vm10, %v4555_v38  ;;  %v2381_v58 = vrot.slane %v2380_v47, 1  ;;  %v2374_v60 = vrot.slane %v2373_v56, 1  ;;  %4149 = vmatprep.subr.bf16.mxu0 %v4148_v55  ;;  %v2394_v62 = vpop.permute.xlu1 %2393  ;;  %v2387_v63 = vpop.permute.xlu0 %2386 }
  0xcc   :  { %4147 = vmatpush1.bf16.msra.mxu1 %v4146_v54  ;;  %1246 = vmatprep.mubr.f32.mxu1 %v4220_v3  ;;  %v2395_v0 = vrot.slane %v2394_v62, 1  ;;  %v2388_v1 = vrot.slane %v2387_v63, 1 }
  0xcd   :  { %4153 = vmatprep.subr.bf16.mxu1 %v4152_v57  ;;  %v2382_v17 = vsel %vm69_vm5, %v2380_v47, %v2381_v58  ;;  %v2375_v61 = vsel %vm60_vm3, %v2373_v56, %v2374_v60  ;;  %3787 = vmatmul.mubr.msk.f32.gmra.mrb[26].mxu0 %vm161_vm10, %v4575_v46 }
  0xce   :  { %2384 = vst.msk [vmem:[#allocation2 + $0x62] ss:$8 sm:$0xf] %vm4292_vm1, %v2382_v17  ;;  %2385 = vst.msk [vmem:[#allocation2 + $0x62] ss:$8 sm:$0x30] %vm4292_vm1, %v2382_v17  ;;  %1163 = vmatprep.mubr.f32.mxu0 %v4220_v3  ;;  %v2396_v2 = vsel %vm87_vm4, %v2394_v62, %v2395_v0  ;;  %v2389_v4 = vsel %vm78_vm2, %v2387_v63, %v2388_v1 }
  0xcf   :  { %2377 = vst.msk [vmem:[#allocation2 + $0x61] ss:$8 sm:$0xf] %vm4292_vm1, %v2375_v61  ;;  %2378 = vst.msk [vmem:[#allocation2 + $0x61] ss:$8 sm:$0x30] %vm4292_vm1, %v2375_v61  ;;  %3791 = vmatmul.mubr.msk.f32.gmra.mrb[26].mxu1 %vm161_vm10, %v4575_v46  ;;  %v2408_v5 = vpop.permute.xlu1 %2407  ;;  %v2401_v6 = vpop.permute.xlu0 %2400 }
  0xd0   :  { %1252 = vmatprep.mubr.f32.mxu1 %v4220_v3  ;;  %2398 = vst.msk [vmem:[#allocation2 + $0x64] ss:$8 sm:$0xf] %vm4292_vm1, %v2396_v2  ;;  %2399 = vst.msk [vmem:[#allocation2 + $0x64] ss:$8 sm:$0x30] %vm4292_vm1, %v2396_v2 }
  0xd1   :  { %3788 = vmatmul.mubr.msk.f32.gmra.mrb[28].mxu0 %vm161_vm10, %v4597_v53  ;;  %2391 = vst.msk [vmem:[#allocation2 + $0x63] ss:$8 sm:$0xf] %vm4292_vm1, %v2389_v4  ;;  %2392 = vst.msk [vmem:[#allocation2 + $0x63] ss:$8 sm:$0x30] %vm4292_vm1, %v2389_v4 }
  0xd2   :  { %v1978_v8 = vld [vmem:[#allocation2 + $0x8] sm:$0xff]  ;;  %1169 = vmatprep.mubr.f32.mxu0 %v4220_v3  ;;  %v2409_v9 = vrot.slane %v2408_v5, 1  ;;  %v2402_v10 = vrot.slane %v2401_v6, 1  ;;  %v1980_v12 = vld [vmem:[#allocation2 + $0x18] sm:$0xff]  ;;  %v4836_v13 = vld [vmem:[#allocation2] sm:$0xff] }
  0xd3   :  { %3792 = vmatmul.mubr.msk.f32.gmra.mrb[28].mxu1 %vm161_vm10, %v4597_v53  ;;  %v4838_v15 = vld [vmem:[#allocation2 + $0x10] sm:$0xff]  ;;  %v4844_v14 = vld [vmem:[#allocation2 + $0x28] sm:$0xff]  ;;  %v4846_v16 = vld [vmem:[#allocation2 + $0x20] sm:$0xff]  ;;  %v2422_v24 = vpop.permute.xlu1 %2421  ;;  %v2415_v25 = vpop.permute.xlu0 %2414 }
  0xd4   :  { %1258 = vmatprep.mubr.f32.mxu1 %v4220_v3  ;;  %2820 = vst.msk [vmem:[#allocation2] ss:$8 sm:$0xf] %vm4292_vm1, %v4422_v23  ;;  %v2410_v18 = vsel %vm105_vm6, %v2408_v5, %v2409_v9  ;;  %v2403_v19 = vsel %vm96_vm7, %v2401_v6, %v2402_v10  ;;  %2821 = vst.msk [vmem:[#allocation2] ss:$8 sm:$0x30] %vm4292_vm1, %v4422_v23 }
  0xd5   :  { %3789 = vmatmul.mubr.msk.f32.gmra.mrb[30].mxu0 %vm161_vm10, %v4604_v59  ;;  %2412 = vst.msk [vmem:[#allocation2 + $0x66] ss:$8 sm:$0xf] %vm4292_vm1, %v2410_v18  ;;  %2413 = vst.msk [vmem:[#allocation2 + $0x66] ss:$8 sm:$0x30] %vm4292_vm1, %v2410_v18 }
  0xd6   :  { %2405 = vst.msk [vmem:[#allocation2 + $0x65] ss:$8 sm:$0xf] %vm4292_vm1, %v2403_v19  ;;  %2406 = vst.msk [vmem:[#allocation2 + $0x65] ss:$8 sm:$0x30] %vm4292_vm1, %v2403_v19  ;;  %1329 = vmatprep.mubr.f32.mxu0 %v4220_v3 }
  0xd7   :  { %v1984_v22 = vld [vmem:[#allocation2 + $0x38] sm:$0xff]  ;;  %3793 = vmatmul.mubr.msk.f32.gmra.mrb[30].mxu1 %vm161_vm10, %v4604_v59  ;;  %v1536_v23 = vld [vmem:[#allocation2 + $0xb0] sm:$0xff]  ;;  %v1986_v28 = vld [vmem:[#allocation2 + $0x48] sm:$0xff]  ;;  %v2423_v29 = vrot.slane %v2422_v24, 1  ;;  %v2416_v30 = vrot.slane %v2415_v25, 1  ;;  %v2831_v26 = vpop.permute.xlu1 %2830  ;;  %v2824_v37 = vpop.permute.xlu0 %2823 }
  0xd8   :  { %1602 = vmatprep.mubr.f32.mxu1 %v4220_v3  ;;  %v4156_v11 = vpack.c.bf16 %v1984_v22, %v1978_v8  ;;  %v4154_v35 = vpack.c.bf16 %v1536_v23, %v4750_v31  ;;  %v4160_v36 = vpack.c.bf16 %v1986_v28, %v1980_v12  ;;  %v2832_v31 = vrot.slane %v2831_v26, 1  ;;  %v1983_v61 = vld [vmem:[#allocation2 + $0x30] sm:$0xff]  ;;  %v1988_v0 = vld [vmem:[#allocation2 + $0x58] sm:$0xff] }
  0xd9   :  { %v2424_v33 = vsel %vm123_vm8, %v2422_v24, %v2423_v29  ;;  %v2417_v34 = vsel %vm114_vm9, %v2415_v25, %v2416_v30  ;;  %3794 = vmatmul.mubr.msk.f32.vlgmr.msra.gmra.mrb[32].mxu0 %vm161_vm10, %v4555_v38  ;;  %v2825_v39 = vrot.slane %v2824_v37, 1  ;;  %v4158_v5 = vpack.c.bf16 %v1983_v61, %v4836_v13  ;;  %v4950_v6 = vld [vmem:[#allocation2 + $0x50] sm:$0xff] }
  0xda   :  { %2426 = vst.msk [vmem:[#allocation2 + $0x90] ss:$8 sm:$0xf] %vm4292_vm1, %v2424_v33  ;;  %2427 = vst.msk [vmem:[#allocation2 + $0x90] ss:$8 sm:$0x30] %vm4292_vm1, %v2424_v33  ;;  %4151 = vmatpush1.bf16.msra.mxu0 %v4150_v32  ;;  %1335 = vmatprep.mubr.f32.mxu0 %v4220_v3  ;;  %v2833_v40 = vsel %vm69_vm5, %v2831_v26, %v2832_v31  ;;  %v4164_v12 = vpack.c.bf16 %v1988_v0, %v4844_v14 }
  0xdb   :  { %2419 = vst.msk [vmem:[#allocation2 + $0x67] ss:$8 sm:$0xf] %vm4292_vm1, %v2417_v34  ;;  %2420 = vst.msk [vmem:[#allocation2 + $0x67] ss:$8 sm:$0x30] %vm4292_vm1, %v2417_v34  ;;  %3824 = vmatmul.mubr.msk.f32.vlgmr.msra.gmra.mrb[32].mxu1 %vm161_vm10, %v4555_v38  ;;  %4157 = vmatprep.subr.bf16.mxu0 %v4156_v11  ;;  %v2826_v20 = vsel %vm60_vm3, %v2824_v37, %v2825_v39  ;;  %v2845_v41 = vpop.permute.xlu1 %2844  ;;  %v2838_v42 = vpop.permute.xlu0 %2837 }
  0xdc   :  { %4155 = vmatpush1.bf16.msra.mxu1 %v4154_v35  ;;  %1608 = vmatprep.mubr.f32.mxu1 %v4220_v3  ;;  %2836 = vst.msk [vmem:[#allocation2 + $0x2] ss:$8 sm:$0x30] %vm4292_vm1, %v2833_v40  ;;  %2835 = vst.msk [vmem:[#allocation2 + $0x2] ss:$8 sm:$0xf] %vm4292_vm1, %v2833_v40 }
  0xdd   :  { %3795 = vmatmul.mubr.msk.f32.gmra.mrb[34].mxu0 %vm161_vm10, %v4575_v46  ;;  %4161 = vmatprep.subr.bf16.mxu1 %v4160_v36  ;;  %2829 = vst.msk [vmem:[#allocation2 + $0x1] ss:$8 sm:$0x30] %vm4292_vm1, %v2826_v20  ;;  %2828 = vst.msk [vmem:[#allocation2 + $0x1] ss:$8 sm:$0xf] %vm4292_vm1, %v2826_v20 }
  0xde   :  { %1341 = vmatprep.mubr.f32.mxu0 %v4220_v3  ;;  %v2846_v43 = vrot.slane %v2845_v41, 1  ;;  %v2839_v44 = vrot.slane %v2838_v42, 1  ;;  %v5086_v0 = vld [vmem:[%s5747_s1] sm:$0xff] }
  0xdf   :  { %3825 = vmatmul.mubr.msk.f32.gmra.mrb[34].mxu1 %vm161_vm10, %v4575_v46  ;;  %v2859_v50 = vpop.permute.xlu1 %2858  ;;  %v2852_v51 = vpop.permute.xlu0 %2851 }
  0xe0   :  { %1614 = vmatprep.mubr.f32.mxu1 %v4220_v3  ;;  %v2847_v45 = vsel %vm87_vm4, %v2845_v41, %v2846_v43  ;;  %v2840_v48 = vsel %vm78_vm2, %v2838_v42, %v2839_v44  ;;  %v2860_v55 = vrot.slane %v2859_v50, 1  ;;  %v2853_v47 = vrot.slane %v2852_v51, 1 }
  0xe1   :  { %3796 = vmatmul.mubr.msk.f32.gmra.mrb[36].mxu0 %vm161_vm10, %v4597_v53  ;;  %2850 = vst.msk [vmem:[#allocation2 + $0x4] ss:$8 sm:$0x30] %vm4292_vm1, %v2847_v45  ;;  %2849 = vst.msk [vmem:[#allocation2 + $0x4] ss:$8 sm:$0xf] %vm4292_vm1, %v2847_v45  ;;  %v4166_v42 = vpack.c.bf16 %v4950_v6, %v4846_v16 }
  0xe2   :  { %v2429_v49 = vld [vmem:[#allocation2 + $0x68] sm:$0xff]  ;;  %2843 = vst.msk [vmem:[#allocation2 + $0x3] ss:$8 sm:$0x30] %vm4292_vm1, %v2840_v48  ;;  %1347 = vmatprep.mubr.f32.mxu0 %v4220_v3  ;;  %v4916_v52 = vld [vmem:[#allocation2 + $0x60] sm:$0xff]  ;;  %v4918_v54 = vld [vmem:[#allocation2 + $0x78] sm:$0xff]  ;;  %v2861_v60 = vsel %vm105_vm6, %v2859_v50, %v2860_v55  ;;  %v2854_v17 = vsel %vm96_vm7, %v2852_v51, %v2853_v47 }
  0xe3   :  { %2842 = vst.msk [vmem:[#allocation2 + $0x3] ss:$8 sm:$0xf] %vm4292_vm1, %v2840_v48  ;;  %3826 = vmatmul.mubr.msk.f32.gmra.mrb[36].mxu1 %vm161_vm10, %v4597_v53  ;;  %v4920_v56 = vld [vmem:[#allocation2 + $0x70] sm:$0xff]  ;;  %v4923_v57 = vld [vmem:[#allocation2 + $0x88] sm:$0xff]  ;;  %v4928_v58 = vld [vmem:[#allocation2 + $0x80] sm:$0xff]  ;;  %v2873_v62 = vpop.permute.xlu1 %2872  ;;  %v2866_v63 = vpop.permute.xlu0 %2865 }
  0xe4   :  { %1620 = vmatprep.mubr.f32.mxu1 %v4220_v3  ;;  %3271 = vst.msk [vmem:[#allocation2 + $0x60] ss:$8 sm:$0xf] %vm4292_vm1, %v4446_v27  ;;  %3272 = vst.msk [vmem:[#allocation2 + $0x60] ss:$8 sm:$0x30] %vm4292_vm1, %v4446_v27 }
  0xe5   :  { %3797 = vmatmul.mubr.msk.f32.gmra.mrb[38].mxu0 %vm161_vm10, %v4604_v59  ;;  %2864 = vst.msk [vmem:[#allocation2 + $0x6] ss:$8 sm:$0x30] %vm4292_vm1, %v2861_v60  ;;  %2863 = vst.msk [vmem:[#allocation2 + $0x6] ss:$8 sm:$0xf] %vm4292_vm1, %v2861_v60 }
  0xe6   :  { %2857 = vst.msk [vmem:[#allocation2 + $0x5] ss:$8 sm:$0x30] %vm4292_vm1, %v2854_v17  ;;  %2856 = vst.msk [vmem:[#allocation2 + $0x5] ss:$8 sm:$0xf] %vm4292_vm1, %v2854_v17  ;;  %1691 = vmatprep.mubr.f32.mxu0 %v4220_v3 }
  0xe7   :  { %3827 = vmatmul.mubr.msk.f32.gmra.mrb[38].mxu1 %vm161_vm10, %v4604_v59  ;;  %v1985_v27 = vld [vmem:[#allocation2 + $0x40] sm:$0xff]  ;;  %v2435_v1 = vld [vmem:[#allocation2 + $0x98] sm:$0xff]  ;;  %v2874_v2 = vrot.slane %v2873_v62, 1  ;;  %v2867_v4 = vrot.slane %v2866_v63, 1  ;;  %v3282_v13 = vpop.permute.xlu1 %3281  ;;  %v3275_v19 = vpop.permute.xlu0 %3274  ;;  %v2434_v31 = vld [vmem:[#allocation2 + $0x90] sm:$0xff] }
  0xe8   :  { %1780 = vmatprep.mubr.f32.mxu1 %v4220_v3  ;;  %v4162_v10 = vpack.c.bf16 %v1985_v27, %v4838_v15  ;;  %v4168_v18 = vpack.c.bf16 %v2435_v1, %v2429_v49  ;;  %v3283_v15 = vrot.slane %v3282_v13, 1  ;;  %v3276_v14 = vrot.slane %v3275_v19, 1  ;;  %v2437_v39 = vld [vmem:[#allocation2 + $0xa8] sm:$0xff]  ;;  %v2439_v41 = vld [vmem:[#allocation2 + $0xb8] sm:$0xff]  ;;  %v2436_v43 = vld [vmem:[#allocation2 + $0xa0] sm:$0xff] }
  0xe9   :  { %v2875_v8 = vsel %vm123_vm8, %v2873_v62, %v2874_v2  ;;  %v2868_v9 = vsel %vm114_vm9, %v2866_v63, %v2867_v4  ;;  %3828 = vmatmul.mubr.msk.f32.vlgmr.msra.gmra.mrb[40].mxu0 %vm161_vm10, %v4555_v38  ;;  %v2438_v44 = vld [vmem:[#allocation2 + $0xb0] sm:$0xff]  ;;  %v4170_v49 = vpack.c.bf16 %v2434_v31, %v4916_v52  ;;  %v4172_v50 = vpack.c.bf16 %v2437_v39, %v4918_v54 }
  0xea   :  { %2878 = vst.msk [vmem:[#allocation2 + $0x30] ss:$8 sm:$0x30] %vm4292_vm1, %v2875_v8  ;;  %2877 = vst.msk [vmem:[#allocation2 + $0x30] ss:$8 sm:$0xf] %vm4292_vm1, %v2875_v8  ;;  %4159 = vmatpush1.bf16.msra.mxu0 %v4158_v5  ;;  %1697 = vmatprep.mubr.f32.mxu0 %v4220_v3  ;;  %v3284_v21 = vsel %vm69_vm5, %v3282_v13, %v3283_v15  ;;  %v3277_v22 = vsel %vm60_vm3, %v3275_v19, %v3276_v14 }
  0xeb   :  { %2871 = vst.msk [vmem:[#allocation2 + $0x7] ss:$8 sm:$0x30] %vm4292_vm1, %v2868_v9  ;;  %2870 = vst.msk [vmem:[#allocation2 + $0x7] ss:$8 sm:$0xf] %vm4292_vm1, %v2868_v9  ;;  %3832 = vmatmul.mubr.msk.f32.vlgmr.msra.gmra.mrb[40].mxu1 %vm161_vm10, %v4555_v38  ;;  %4165 = vmatprep.subr.bf16.mxu0 %v4164_v12  ;;  %v3296_v24 = vpop.permute.xlu1 %3295  ;;  %v3289_v25 = vpop.permute.xlu0 %3288  ;;  %v4176_v16 = vpack.c.bf16 %v2439_v41, %v4923_v57  ;;  %v4174_v55 = vpack.c.bf16 %v2436_v43, %v4920_v56 }
  0xec   :  { %4163 = vmatpush1.bf16.msra.mxu1 %v4162_v10  ;;  %1786 = vmatprep.mubr.f32.mxu1 %v4220_v3  ;;  %3287 = vst.msk [vmem:[#allocation2 + $0x62] ss:$8 sm:$0x30] %vm4292_vm1, %v3284_v21  ;;  %3286 = vst.msk [vmem:[#allocation2 + $0x62] ss:$8 sm:$0xf] %vm4292_vm1, %v3284_v21  ;;  %v4178_v57 = vpack.c.bf16 %v2438_v44, %v4928_v58 }
  0xed   :  { %3829 = vmatmul.mubr.msk.f32.gmra.mrb[42].mxu0 %vm161_vm10, %v4575_v46  ;;  %4169 = vmatprep.subr.bf16.mxu1 %v4168_v18  ;;  %3280 = vst.msk [vmem:[#allocation2 + $0x61] ss:$8 sm:$0x30] %vm4292_vm1, %v3277_v22  ;;  %3279 = vst.msk [vmem:[#allocation2 + $0x61] ss:$8 sm:$0xf] %vm4292_vm1, %v3277_v22 }
  0xee   :  { %1703 = vmatprep.mubr.f32.mxu0 %v4220_v3  ;;  %v3297_v23 = vrot.slane %v3296_v24, 1  ;;  %v3290_v28 = vrot.slane %v3289_v25, 1  ;;  %v5097_v5 = vld [vmem:[%s5747_s1 + $0x8] sm:$0xff]  ;;  %v5116_v10 = vld [vmem:[%s5747_s1 + $0x18] sm:$0xff]  ;;  %v4219_v22 = vld [vmem:[%s5747_s1 + $0x10] sm:$0xff] }
  0xef   :  { %3833 = vmatmul.mubr.msk.f32.gmra.mrb[42].mxu1 %vm161_vm10, %v4575_v46  ;;  %v3310_v32 = vpop.permute.xlu1 %3309  ;;  %v3303_v11 = vpop.permute.xlu0 %3302 }
  0xf0   :  { %1792 = vmatprep.mubr.f32.mxu1 %v4220_v3  ;;  %v3298_v29 = vsel %vm87_vm4, %v3296_v24, %v3297_v23  ;;  %v3291_v30 = vsel %vm78_vm2, %v3289_v25, %v3290_v28  ;;  %v3311_v33 = vrot.slane %v3310_v32, 1  ;;  %v3304_v34 = vrot.slane %v3303_v11, 1 }
  0xf1   :  { %3830 = vmatmul.mubr.msk.f32.gmra.mrb[44].mxu0 %vm161_vm10, %v4597_v53  ;;  %3301 = vst.msk [vmem:[#allocation2 + $0x64] ss:$8 sm:$0x30] %vm4292_vm1, %v3298_v29  ;;  %3300 = vst.msk [vmem:[#allocation2 + $0x64] ss:$8 sm:$0xf] %vm4292_vm1, %v3298_v29 }
  0xf2   :  { %3294 = vst.msk [vmem:[#allocation2 + $0x63] ss:$8 sm:$0x30] %vm4292_vm1, %v3291_v30  ;;  %3293 = vst.msk [vmem:[#allocation2 + $0x63] ss:$8 sm:$0xf] %vm4292_vm1, %v3291_v30  ;;  %1709 = vmatprep.mubr.f32.mxu0 %v4220_v3  ;;  %v3312_v35 = vsel %vm105_vm6, %v3310_v32, %v3311_v33  ;;  %v3305_v36 = vsel %vm96_vm7, %v3303_v11, %v3304_v34 }
  0xf3   :  { %3834 = vmatmul.mubr.msk.f32.gmra.mrb[44].mxu1 %vm161_vm10, %v4597_v53  ;;  %3315 = vst.msk [vmem:[#allocation2 + $0x66] ss:$8 sm:$0x30] %vm4292_vm1, %v3312_v35  ;;  %3314 = vst.msk [vmem:[#allocation2 + $0x66] ss:$8 sm:$0xf] %vm4292_vm1, %v3312_v35  ;;  %v3324_v26 = vpop.permute.xlu1 %3323  ;;  %v3317_v37 = vpop.permute.xlu0 %3316 }
  0xf4   :  { %1798 = vmatprep.mubr.f32.mxu1 %v4220_v3  ;;  %3308 = vst.msk [vmem:[#allocation2 + $0x65] ss:$8 sm:$0x30] %vm4292_vm1, %v3305_v36  ;;  %3307 = vst.msk [vmem:[#allocation2 + $0x65] ss:$8 sm:$0xf] %vm4292_vm1, %v3305_v36 }
  0xf5   :  { %3831 = vmatmul.mubr.msk.f32.gmra.mrb[46].mxu0 %vm161_vm10, %v4604_v59  ;;  %v3325_v40 = vrot.slane %v3324_v26, 1  ;;  %v3318_v20 = vrot.slane %v3317_v37, 1  ;;  %v2880_v7 = vld [vmem:[#allocation2 + $0x8] sm:$0xff]  ;;  %v2886_v51 = vld [vmem:[#allocation2 + $0x38] sm:$0xff]  ;;  %v2885_v56 = vld [vmem:[#allocation2 + $0x30] sm:$0xff] }
  0xf6   :  { %2053 = vmatprep.mubr.f32.mxu0 %v4220_v3  ;;  %v2882_v52 = vld [vmem:[#allocation2 + $0x18] sm:$0xff]  ;;  %v2888_v54 = vld [vmem:[#allocation2 + $0x48] sm:$0xff]  ;;  %v4180_v47 = vpack.c.bf16 %v2886_v51, %v2880_v7  ;;  %v2887_v58 = vld [vmem:[#allocation2 + $0x40] sm:$0xff] }
  0xf7   :  { %3835 = vmatmul.mubr.msk.f32.gmra.mrb[46].mxu1 %vm161_vm10, %v4604_v59  ;;  %v3326_v45 = vsel %vm123_vm8, %v3324_v26, %v3325_v40  ;;  %v3319_v48 = vsel %vm114_vm9, %v3317_v37, %v3318_v20  ;;  %v4184_v60 = vpack.c.bf16 %v2888_v54, %v2882_v52  ;;  %v2884_v17 = vld [vmem:[#allocation2 + $0x28] sm:$0xff]  ;;  %v2890_v61 = vld [vmem:[#allocation2 + $0x58] sm:$0xff]  ;;  %v2883_v6 = vld [vmem:[#allocation2 + $0x20] sm:$0xff] }
  0xf8   :  { %2142 = vmatprep.mubr.f32.mxu1 %v4220_v3  ;;  %3329 = vst.msk [vmem:[#allocation2 + $0x90] ss:$8 sm:$0x30] %vm4292_vm1, %v3326_v45  ;;  %3328 = vst.msk [vmem:[#allocation2 + $0x90] ss:$8 sm:$0xf] %vm4292_vm1, %v3326_v45  ;;  %v4188_v2 = vpack.c.bf16 %v2890_v61, %v2884_v17 }
  0xf9   :  { %3862 = vmatmul.mubr.msk.f32.vlgmr.msra.gmra.mrb[48].mxu0 %vm161_vm10, %v4555_v38  ;;  %3322 = vst.msk [vmem:[#allocation2 + $0x67] ss:$8 sm:$0x30] %vm4292_vm1, %v3319_v48  ;;  %3321 = vst.msk [vmem:[#allocation2 + $0x67] ss:$8 sm:$0xf] %vm4292_vm1, %v3319_v48 }
  0xfa   :  { %4167 = vmatpush1.bf16.msra.mxu0 %v4166_v42  ;;  %2059 = vmatprep.mubr.f32.mxu0 %v4220_v3  ;;  %v2889_v8 = vld [vmem:[#allocation2 + $0x50] sm:$0xff] }
  0xfb   :  { %3866 = vmatmul.mubr.msk.f32.vlgmr.msra.gmra.mrb[48].mxu1 %vm161_vm10, %v4555_v38  ;;  %4173 = vmatprep.subr.bf16.mxu0 %v4172_v50  ;;  %v4190_v19 = vpack.c.bf16 %v2889_v8, %v2883_v6 }
  0xfc   :  { %4171 = vmatpush1.bf16.msra.mxu1 %v4170_v49  ;;  %2148 = vmatprep.mubr.f32.mxu1 %v4220_v3 }
  0xfd   :  { %4177 = vmatprep.subr.bf16.mxu1 %v4176_v16  ;;  %3863 = vmatmul.mubr.msk.f32.gmra.mrb[50].mxu0 %vm161_vm10, %v4575_v46 }
  0xfe   :  { %2065 = vmatprep.mubr.f32.mxu0 %v4220_v3 }
  0xff   :  { %3867 = vmatmul.mubr.msk.f32.gmra.mrb[50].mxu1 %vm161_vm10, %v4575_v46  ;;  %v3337_v63 = vld [vmem:[#allocation2 + $0x98] sm:$0xff]  ;;  %v3339_v18 = vld [vmem:[#allocation2 + $0xa8] sm:$0xff]  ;;  %v3338_v25 = vld [vmem:[#allocation2 + $0xa0] sm:$0xff] }
 0x100   :  { %2154 = vmatprep.mubr.f32.mxu1 %v4220_v3  ;;  %v3331_v62 = vld [vmem:[#allocation2 + $0x68] sm:$0xff]  ;;  %v3330_v9 = vld [vmem:[#allocation2 + $0x60] sm:$0xff]  ;;  %v3333_v12 = vld [vmem:[#allocation2 + $0x78] sm:$0xff] }
 0x101   :  { %3864 = vmatmul.mubr.msk.f32.gmra.mrb[52].mxu0 %vm161_vm10, %v4597_v53  ;;  %v4192_v4 = vpack.c.bf16 %v3337_v63, %v3331_v62  ;;  %v3335_v13 = vld [vmem:[#allocation2 + $0x88] sm:$0xff]  ;;  %v4196_v14 = vpack.c.bf16 %v3339_v18, %v3333_v12  ;;  %v3332_v24 = vld [vmem:[#allocation2 + $0x70] sm:$0xff]  ;;  %v3334_v23 = vld [vmem:[#allocation2 + $0x80] sm:$0xff] }
 0x102   :  { %2071 = vmatprep.mubr.f32.mxu0 %v4220_v3  ;;  %v3340_v28 = vld [vmem:[#allocation2 + $0xb0] sm:$0xff]  ;;  %v4198_v29 = vpack.c.bf16 %v3338_v25, %v3332_v24 }
 0x103   :  { %3868 = vmatmul.mubr.msk.f32.gmra.mrb[52].mxu1 %vm161_vm10, %v4597_v53  ;;  %v4202_v30 = vpack.c.bf16 %v3340_v28, %v3334_v23 }
 0x104   :  { %2160 = vmatprep.mubr.f32.mxu1 %v4220_v3  ;;  %v5189_v32 = vpop.permute.xlu0 %143  ;;  %v5191_v11 = vpop.permute.xlu1 %148 }
 0x105   :  { %3865 = vmatmul.mubr.msk.f32.gmra.mrb[54].mxu0 %vm161_vm10, %v4604_v59 }
 0x106   :  { %2231 = vmatprep.mubr.f32.mxu0 %v4220_v3 }
 0x107   :  { %3869 = vmatmul.mubr.msk.f32.gmra.mrb[54].mxu1 %vm161_vm10, %v4604_v59 }
 0x108   :  { %2504 = vmatprep.mubr.f32.mxu1 %v4220_v3  ;;  %v5201_v52 = vpop.permute.xlu1 %153 }
 0x109   :  { %3870 = vmatmul.mubr.msk.f32.vlgmr.msra.gmra.mrb[56].mxu0 %vm161_vm10, %v4555_v38 }
 0x10a   :  { %4175 = vmatpush1.bf16.msra.mxu0 %v4174_v55  ;;  %2237 = vmatprep.mubr.f32.mxu0 %v4220_v3 }
 0x10b   :  { %3900 = vmatmul.mubr.msk.f32.vlgmr.msra.gmra.mrb[56].mxu1 %vm161_vm10, %v4555_v38  ;;  %4181 = vmatprep.subr.bf16.mxu0 %v4180_v47  ;;  %v2879_v38 = vld [vmem:[#allocation2] sm:$0xff] }
 0x10c   :  { %4179 = vmatpush1.bf16.msra.mxu1 %v4178_v57  ;;  %2510 = vmatprep.mubr.f32.mxu1 %v4220_v3  ;;  %v4182_v27 = vpack.c.bf16 %v2885_v56, %v2879_v38 }
 0x10d   :  { %3871 = vmatmul.mubr.msk.f32.gmra.mrb[58].mxu0 %vm161_vm10, %v4575_v46  ;;  %4185 = vmatprep.subr.bf16.mxu1 %v4184_v60 }
 0x10e   :  { %2243 = vmatprep.mubr.f32.mxu0 %v4220_v3 }
 0x10f   :  { %3901 = vmatmul.mubr.msk.f32.gmra.mrb[58].mxu1 %vm161_vm10, %v4575_v46  ;;  %v2881_v46 = vld [vmem:[#allocation2 + $0x10] sm:$0xff] }
 0x110   :  { %2516 = vmatprep.mubr.f32.mxu1 %v4220_v3  ;;  %v4186_v1 = vpack.c.bf16 %v2887_v58, %v2881_v46 }
 0x111   :  { %3872 = vmatmul.mubr.msk.f32.gmra.mrb[60].mxu0 %vm161_vm10, %v4597_v53 }
 0x112   :  { %2249 = vmatprep.mubr.f32.mxu0 %v4220_v3 }
 0x113   :  { %3902 = vmatmul.mubr.msk.f32.gmra.mrb[60].mxu1 %vm161_vm10, %v4597_v53 }
 0x114   :  { %2522 = vmatprep.mubr.f32.mxu1 %v4220_v3 }
 0x115   :  { %3873 = vmatmul.mubr.msk.f32.gmra.mrb[62].mxu0 %vm161_vm10, %v4604_v59 }
 0x116   :  { %2593 = vmatprep.mubr.f32.mxu0 %v4220_v3 }
 0x117   :  { %3903 = vmatmul.mubr.msk.f32.gmra.mrb[62].mxu1 %vm161_vm10, %v4604_v59 }
 0x118   :  { %2682 = vmatprep.mubr.f32.mxu1 %v4220_v3 }
 0x119   :  { %3904 = vmatmul.mubr.msk.f32.vlgmr.msra.gmra.mrb[64].mxu0 %vm161_vm10, %v5086_v0 }
 0x11a   :  { %4183 = vmatpush1.bf16.msra.mxu0 %v4182_v27  ;;  %2599 = vmatprep.mubr.f32.mxu0 %v4220_v3 }
 0x11b   :  { %3908 = vmatmul.mubr.msk.f32.vlgmr.msra.gmra.mrb[64].mxu1 %vm161_vm10, %v5086_v0  ;;  %4189 = vmatprep.subr.bf16.mxu0 %v4188_v2 }
 0x11c   :  { %4187 = vmatpush1.bf16.msra.mxu1 %v4186_v1  ;;  %2688 = vmatprep.mubr.f32.mxu1 %v4220_v3 }
 0x11d   :  { %3905 = vmatmul.mubr.msk.f32.gmra.mrb[66].mxu0 %vm161_vm10, %v5097_v5  ;;  %4193 = vmatprep.subr.bf16.mxu1 %v4192_v4 }
 0x11e   :  { %2605 = vmatprep.mubr.f32.mxu0 %v4220_v3 }
 0x11f   :  { %3909 = vmatmul.mubr.msk.f32.gmra.mrb[66].mxu1 %vm161_vm10, %v5097_v5 }
 0x120   :  { %2694 = vmatprep.mubr.f32.mxu1 %v4220_v3 }
 0x121   :  { %3906 = vmatmul.mubr.msk.f32.gmra.mrb[68].mxu0 %vm161_vm10, %v4597_v53 }
 0x122   :  { %2611 = vmatprep.mubr.f32.mxu0 %v4220_v3 }
 0x123   :  { %3910 = vmatmul.mubr.msk.f32.gmra.mrb[68].mxu1 %vm161_vm10, %v4597_v53  ;;  %v3336_v53 = vld [vmem:[#allocation2 + $0x90] sm:$0xff] }
 0x124   :  { %2700 = vmatprep.mubr.f32.mxu1 %v4220_v3  ;;  %v4194_v15 = vpack.c.bf16 %v3336_v53, %v3330_v9 }
 0x125   :  { %3907 = vmatmul.mubr.msk.f32.gmra.mrb[70].mxu0 %vm161_vm10, %v4604_v59  ;;  %v3341_v59 = vld [vmem:[#allocation2 + $0xb8] sm:$0xff] }
 0x126   :  { %2955 = vmatprep.mubr.f32.mxu0 %v4220_v3  ;;  %v4200_v21 = vpack.c.bf16 %v3341_v59, %v3335_v13 }
 0x127   :  { %3911 = vmatmul.mubr.msk.f32.gmra.mrb[70].mxu1 %vm161_vm10, %v5116_v10 }
 0x128   :  { %3044 = vmatprep.mubr.f32.mxu1 %v4220_v3 }
 0x129   :  { %3938 = vmatmul.mubr.msk.f32.vlgmr.msra.gmra.mrb[72].mxu0 %vm161_vm10, %v5086_v0 }
 0x12a   :  { %4191 = vmatpush1.bf16.msra.mxu0 %v4190_v19  ;;  %2961 = vmatprep.mubr.f32.mxu0 %v4220_v3 }
 0x12b   :  { %3942 = vmatmul.mubr.msk.f32.vlgmr.msra.gmra.mrb[72].mxu1 %vm161_vm10, %v5086_v0  ;;  %4197 = vmatprep.subr.bf16.mxu0 %v4196_v14 }
 0x12c   :  { %4195 = vmatpush1.bf16.msra.mxu1 %v4194_v15  ;;  %3050 = vmatprep.mubr.f32.mxu1 %v4220_v3 }
 0x12d   :  { %4201 = vmatprep.subr.bf16.mxu1 %v4200_v21  ;;  %3939 = vmatmul.mubr.msk.f32.gmra.mrb[74].mxu0 %vm161_vm10, %v5097_v5 }
 0x12e   :  { %2967 = vmatprep.mubr.f32.mxu0 %v4220_v3 }
 0x12f   :  { %3943 = vmatmul.mubr.msk.f32.gmra.mrb[74].mxu1 %vm161_vm10, %v5097_v5 }
 0x130   :  { %3056 = vmatprep.mubr.f32.mxu1 %v4220_v3 }
 0x131   :  { %3940 = vmatmul.mubr.msk.f32.gmra.mrb[76].mxu0 %vm161_vm10, %v4219_v22 }
 0x132   :  { %2973 = vmatprep.mubr.f32.mxu0 %v4220_v3 }
 0x133   :  { %3944 = vmatmul.mubr.msk.f32.gmra.mrb[76].mxu1 %vm161_vm10, %v4219_v22 }
 0x134   :  { %3062 = vmatprep.mubr.f32.mxu1 %v4220_v3 }
 0x135   :  { %3941 = vmatmul.mubr.msk.f32.gmra.mrb[78].mxu0 %vm161_vm10, %v5116_v10 }
 0x136   :  { %3133 = vmatprep.mubr.f32.mxu0 %v4220_v3 }
 0x137   :  { %3945 = vmatmul.mubr.msk.f32.gmra.mrb[78].mxu1 %vm161_vm10, %v5116_v10 }
 0x138   :  { %3406 = vmatprep.mubr.f32.mxu1 %v4220_v3 }
 0x139   :  { %3946 = vmatmul.mubr.msk.f32.vlgmr.msra.gmra.mrb[80].mxu0 %vm161_vm10, %v5086_v0 }
 0x13a   :  { %4199 = vmatpush1.bf16.msra.mxu0 %v4198_v29  ;;  %3139 = vmatprep.mubr.f32.mxu0 %v4220_v3 }
 0x13b   :  { %3976 = vmatmul.mubr.msk.f32.vlgmr.msra.gmra.mrb[80].mxu1 %vm161_vm10, %v5086_v0 }
 0x13c   :  { %4203 = vmatpush1.bf16.msra.mxu1 %v4202_v30  ;;  %3412 = vmatprep.mubr.f32.mxu1 %v4220_v3 }
 0x13d   :  { %3947 = vmatmul.mubr.msk.f32.gmra.mrb[82].mxu0 %vm161_vm10, %v5097_v5 }
 0x13e   :  { %3145 = vmatprep.mubr.f32.mxu0 %v4220_v3 }
 0x13f   :  { %3977 = vmatmul.mubr.msk.f32.gmra.mrb[82].mxu1 %vm161_vm10, %v5097_v5 }
 0x140   :  { %3418 = vmatprep.mubr.f32.mxu1 %v4220_v3 }
 0x141   :  { %3948 = vmatmul.mubr.msk.f32.gmra.mrb[84].mxu0 %vm161_vm10, %v4219_v22 }
 0x142   :  { %3151 = vmatprep.mubr.f32.mxu0 %v4220_v3 }
 0x143   :  { %3978 = vmatmul.mubr.msk.f32.gmra.mrb[84].mxu1 %vm161_vm10, %v4219_v22 }
 0x144   :  { %3424 = vmatprep.mubr.f32.mxu1 %v4220_v3 }
 0x145   :  { %3949 = vmatmul.mubr.msk.f32.gmra.mrb[86].mxu0 %vm161_vm10, %v5116_v10 }
 0x146   :  { %3495 = vmatprep.mubr.f32.mxu0 %v4220_v3 }
 0x147   :  { %3979 = vmatmul.mubr.msk.f32.gmra.mrb[86].mxu1 %vm161_vm10, %v5116_v10 }
 0x148   :  { %3584 = vmatprep.mubr.f32.mxu1 %v4220_v3 }
 0x149   :  { %3980 = vmatmul.mubr.msk.f32.vlgmr.msra.gmra.mrb[88].mxu0 %vm161_vm10, %v5086_v0 }
 0x14a   :  { %3501 = vmatprep.mubr.f32.mxu0 %v4220_v3 }
 0x14b   :  { %3984 = vmatmul.mubr.msk.f32.vlgmr.msra.gmra.mrb[88].mxu1 %vm161_vm10, %v5086_v0  ;;  %v5213_v0 = vpop.permute.xlu0 %158 }
 0x14c   :  { %3590 = vmatprep.mubr.f32.mxu1 %v4220_v3 }
 0x14d   :  { %3981 = vmatmul.mubr.msk.f32.gmra.mrb[90].mxu0 %vm161_vm10, %v5097_v5 }
 0x14e   :  { %3507 = vmatprep.mubr.f32.mxu0 %v4220_v3 }
 0x14f   :  { %3985 = vmatmul.mubr.msk.f32.gmra.mrb[90].mxu1 %vm161_vm10, %v5097_v5 }
 0x150   :  { %3596 = vmatprep.mubr.f32.mxu1 %v4220_v3 }
 0x151   :  { %3982 = vmatmul.mubr.msk.f32.gmra.mrb[92].mxu0 %vm161_vm10, %v4219_v22 }
 0x152   :  { %3513 = vmatprep.mubr.f32.mxu0 %v4220_v3 }
 0x153   :  { %3986 = vmatmul.mubr.msk.f32.gmra.mrb[92].mxu1 %vm161_vm10, %v4219_v22 }
 0x154   :  { %3602 = vmatprep.mubr.f32.mxu1 %v4220_v3 }
 0x155   :  { %3983 = vmatmul.mubr.msk.f32.gmra.mrb[94].mxu0 %vm161_vm10, %v5116_v10 }
 0x157   :  { %3987 = vmatmul.mubr.msk.f32.gmra.mrb[94].mxu1 %vm161_vm10, %v5116_v10 }
 0x16b   :  { %v240_v33 = vpop.f32.mrb[0].mxu0 }
 0x16c   :  { %v241_v35 = vadd.f32 %v240_v33, %v5189_v32  ;;  %v242_v36 = vpop.f32.mrb[1].mxu0 }
 0x16d   :  { %v329_v34 = vpop.f32.mrb[0].mxu1  ;;  %v243_v3 = vadd.f32 %v242_v36, %v5189_v32 }
 0x16e   :  { %v330_v26 = vadd.f32 %v329_v34, %v5189_v32  ;;  %v331_v37 = vpop.f32.mrb[1].mxu1  ;;  %v441_v39 = vmax.f32 %v241_v35, 0.0 }
 0x16f   :  { %v332_v31 = vadd.f32 %v331_v37, %v5189_v32  ;;  %v442_v20 = vmax.f32 %v243_v3, 0.0  ;;  %v246_v42 = vpop.f32.mrb[2].mxu0 }
 0x170   :  { %v443_v40 = vmax.f32 %v330_v26, 0.0  ;;  %v247_v44 = vadd.f32 %v246_v42, %v5191_v11  ;;  %v248_v45 = vpop.f32.mrb[3].mxu0 }
 0x171   :  { %v444_v41 = vmax.f32 %v332_v31, 0.0  ;;  %v335_v43 = vpop.f32.mrb[2].mxu1  ;;  %v4012_v50 = vpack.c.bf16 %v442_v20, %v441_v39  ;;  %v249_v7 = vadd.f32 %v248_v45, %v5191_v11 }
 0x172   :  { %v336_v48 = vadd.f32 %v335_v43, %v5191_v11  ;;  %v337_v49 = vpop.f32.mrb[3].mxu1  ;;  %v447_v54 = vmax.f32 %v247_v44, 0.0 }
 0x173   :  { %v4013_v16 = vpack.c.bf16 %v444_v41, %v443_v40  ;;  %v338_v51 = vadd.f32 %v337_v49, %v5191_v11  ;;  %537 = vst [vmem:[%s5748_s3] sm:$0xff] %v4012_v50  ;;  %v448_v47 = vmax.f32 %v249_v7, 0.0  ;;  %v252_v60 = vpop.f32.mrb[4].mxu0 }
 0x174   :  { %v449_v55 = vmax.f32 %v336_v48, 0.0  ;;  %v253_v56 = vadd.f32 %v252_v60, %v5201_v52  ;;  %v254_v46 = vpop.f32.mrb[5].mxu0 }
 0x175   :  { %538 = vst [vmem:[%s5748_s3 + $0x8] sm:$0xff] %v4013_v16  ;;  %v450_v57 = vmax.f32 %v338_v51, 0.0  ;;  %v341_v38 = vpop.f32.mrb[4].mxu1  ;;  %v4015_v61 = vpack.c.bf16 %v448_v47, %v447_v54  ;;  %v255_v63 = vadd.f32 %v254_v46, %v5201_v52 }
 0x176   :  { %v342_v58 = vadd.f32 %v341_v38, %v5201_v52  ;;  %v343_v17 = vpop.f32.mrb[5].mxu1  ;;  %v453_v1 = vmax.f32 %v253_v56, 0.0 }
 0x177   :  { %v4016_v62 = vpack.c.bf16 %v450_v57, %v449_v55  ;;  %v344_v27 = vadd.f32 %v343_v17, %v5201_v52  ;;  %543 = vst [vmem:[%s5748_s3 + $0x18] sm:$0xff] %v4015_v61  ;;  %v454_v4 = vmax.f32 %v255_v63, 0.0  ;;  %v258_v6 = vpop.f32.mrb[6].mxu0 }
 0x178   :  { %v455_v2 = vmax.f32 %v342_v58, 0.0  ;;  %v259_v9 = vadd.f32 %v258_v6, %v5213_v0  ;;  %v260_v10 = vpop.f32.mrb[7].mxu0 }
 0x179   :  { %544 = vst [vmem:[%s5748_s3 + $0x20] sm:$0xff] %v4016_v62  ;;  %v456_v5 = vmax.f32 %v344_v27, 0.0  ;;  %v347_v8 = vpop.f32.mrb[6].mxu1  ;;  %v4018_v18 = vpack.c.bf16 %v454_v4, %v453_v1  ;;  %v261_v59 = vadd.f32 %v260_v10, %v5213_v0 }
 0x17a   :  { %v348_v53 = vadd.f32 %v347_v8, %v5213_v0  ;;  %v349_v12 = vpop.f32.mrb[7].mxu1  ;;  %v459_v15 = vmax.f32 %v259_v9, 0.0 }
 0x17b   :  { %v4019_v13 = vpack.c.bf16 %v456_v5, %v455_v2  ;;  %v350_v19 = vadd.f32 %v349_v12, %v5213_v0  ;;  %546 = vst [vmem:[%s5748_s3 + $0x30] sm:$0xff] %v4018_v18  ;;  %v460_v21 = vmax.f32 %v261_v59, 0.0 }
 0x17c   :  { %v461_v14 = vmax.f32 %v348_v53, 0.0  ;;  %v418_v24 = vpop.f32.mrb[8].mxu0 }
 0x17d   :  { %547 = vst [vmem:[%s5748_s3 + $0x38] sm:$0xff] %v4019_v13  ;;  %v462_v22 = vmax.f32 %v350_v19, 0.0  ;;  %v419_v25 = vadd.f32 %v418_v24, %v5189_v32  ;;  %v420_v28 = vpop.f32.mrb[9].mxu0  ;;  %v4021_v29 = vpack.c.bf16 %v460_v21, %v459_v15 }
 0x17e   :  { %v702_v23 = vpop.f32.mrb[8].mxu1  ;;  %v421_v34 = vadd.f32 %v420_v28, %v5189_v32 }
 0x17f   :  { %v4022_v30 = vpack.c.bf16 %v462_v22, %v461_v14  ;;  %v703_v33 = vadd.f32 %v702_v23, %v5189_v32  ;;  %v704_v35 = vpop.f32.mrb[9].mxu1  ;;  %v445_v36 = vmax.f32 %v419_v25, 0.0  ;;  %549 = vst [vmem:[%s5748_s3 + $0x48] sm:$0xff] %v4021_v29 }
 0x180   :  { %v705_v26 = vadd.f32 %v704_v35, %v5189_v32  ;;  %v446_v3 = vmax.f32 %v421_v34, 0.0  ;;  %v424_v31 = vpop.f32.mrb[10].mxu0 }
 0x181   :  { %550 = vst [vmem:[%s5748_s3 + $0x50] sm:$0xff] %v4022_v30  ;;  %v903_v37 = vmax.f32 %v703_v33, 0.0  ;;  %v425_v20 = vadd.f32 %v424_v31, %v5191_v11  ;;  %v426_v42 = vpop.f32.mrb[11].mxu0 }
 0x182   :  { %v904_v40 = vmax.f32 %v705_v26, 0.0  ;;  %v708_v41 = vpop.f32.mrb[10].mxu1  ;;  %v4014_v43 = vpack.c.bf16 %v446_v3, %v445_v36  ;;  %v427_v45 = vadd.f32 %v426_v42, %v5191_v11 }
 0x183   :  { %v709_v44 = vadd.f32 %v708_v41, %v5191_v11  ;;  %v710_v48 = vpop.f32.mrb[11].mxu1  ;;  %v451_v50 = vmax.f32 %v425_v20, 0.0 }
 0x184   :  { %v4024_v49 = vpack.c.bf16 %v904_v40, %v903_v37  ;;  %v711_v16 = vadd.f32 %v710_v48, %v5191_v11  ;;  %542 = vst.msk [vmem:[%s5748_s3 + $0x10] sm:$0xff] %vm5241_vm13, %v4014_v43  ;;  %v452_v51 = vmax.f32 %v427_v45, 0.0  ;;  %v430_v54 = vpop.f32.mrb[12].mxu0 }
 0x185   :  { %v909_v7 = vmax.f32 %v709_v44, 0.0  ;;  %v431_v47 = vadd.f32 %v430_v54, %v5201_v52  ;;  %v432_v60 = vpop.f32.mrb[13].mxu0 }
 0x186   :  { %3772 = vst [vmem:[%s5748_s3 + $0x60] sm:$0xff] %v4024_v49  ;;  %v910_v55 = vmax.f32 %v711_v16, 0.0  ;;  %v714_v57 = vpop.f32.mrb[12].mxu1  ;;  %v4017_v38 = vpack.c.bf16 %v452_v51, %v451_v50  ;;  %v433_v46 = vadd.f32 %v432_v60, %v5201_v52 }
 0x187   :  { %v715_v56 = vadd.f32 %v714_v57, %v5201_v52  ;;  %v716_v58 = vpop.f32.mrb[13].mxu1  ;;  %v457_v61 = vmax.f32 %v431_v47, 0.0 }
 0x188   :  { %v4027_v17 = vpack.c.bf16 %v910_v55, %v909_v7  ;;  %v717_v62 = vadd.f32 %v716_v58, %v5201_v52  ;;  %545 = vst.msk [vmem:[%s5748_s3 + $0x28] sm:$0xff] %vm5241_vm13, %v4017_v38  ;;  %v458_v27 = vmax.f32 %v433_v46, 0.0  ;;  %v436_v1 = vpop.f32.mrb[14].mxu0 }
 0x189   :  { %v915_v63 = vmax.f32 %v715_v56, 0.0  ;;  %v437_v4 = vadd.f32 %v436_v1, %v5213_v0  ;;  %v438_v6 = vpop.f32.mrb[15].mxu0 }
 0x18a   :  { %3775 = vst [vmem:[%s5748_s3 + $0x78] sm:$0xff] %v4027_v17  ;;  %v916_v2 = vmax.f32 %v717_v62, 0.0  ;;  %v720_v5 = vpop.f32.mrb[14].mxu1  ;;  %v4020_v8 = vpack.c.bf16 %v458_v27, %v457_v61  ;;  %v439_v10 = vadd.f32 %v438_v6, %v5213_v0 }
 0x18b   :  { %v721_v9 = vadd.f32 %v720_v5, %v5213_v0  ;;  %v722_v53 = vpop.f32.mrb[15].mxu1  ;;  %v463_v18 = vmax.f32 %v437_v4, 0.0 }
 0x18c   :  { %v4030_v12 = vpack.c.bf16 %v916_v2, %v915_v63  ;;  %v723_v13 = vadd.f32 %v722_v53, %v5213_v0  ;;  %548 = vst.msk [vmem:[%s5748_s3 + $0x40] sm:$0xff] %vm5241_vm13, %v4020_v8  ;;  %v464_v19 = vmax.f32 %v439_v10, 0.0  ;;  %v791_v15 = vpop.f32.mrb[16].mxu0 }
 0x18d   :  { %v921_v59 = vmax.f32 %v721_v9, 0.0  ;;  %v792_v21 = vadd.f32 %v791_v15, %v5189_v32  ;;  %v793_v24 = vpop.f32.mrb[17].mxu0 }
 0x18e   :  { %3778 = vst [vmem:[%s5748_s3 + $0x90] sm:$0xff] %v4030_v12  ;;  %v922_v14 = vmax.f32 %v723_v13, 0.0  ;;  %v880_v22 = vpop.f32.mrb[16].mxu1  ;;  %v4023_v25 = vpack.c.bf16 %v464_v19, %v463_v18  ;;  %v794_v28 = vadd.f32 %v793_v24, %v5189_v32 }
 0x18f   :  { %v881_v23 = vadd.f32 %v880_v22, %v5189_v32  ;;  %v882_v29 = vpop.f32.mrb[17].mxu1  ;;  %v905_v33 = vmax.f32 %v792_v21, 0.0 }
 0x190   :  { %v4033_v30 = vpack.c.bf16 %v922_v14, %v921_v59  ;;  %v883_v34 = vadd.f32 %v882_v29, %v5189_v32  ;;  %551 = vst.msk [vmem:[%s5748_s3 + $0x58] sm:$0xff] %vm5241_vm13, %v4023_v25  ;;  %v906_v36 = vmax.f32 %v794_v28, 0.0  ;;  %v797_v26 = vpop.f32.mrb[18].mxu0 }
 0x191   :  { %v907_v35 = vmax.f32 %v881_v23, 0.0  ;;  %v798_v3 = vadd.f32 %v797_v26, %v5191_v11  ;;  %v799_v40 = vpop.f32.mrb[19].mxu0 }
 0x192   :  { %3781 = vst [vmem:[%s5748_s3 + $0xa8] sm:$0xff] %v4033_v30  ;;  %v908_v37 = vmax.f32 %v883_v34, 0.0  ;;  %v886_v31 = vpop.f32.mrb[18].mxu1  ;;  %v4025_v20 = vpack.c.bf16 %v906_v36, %v905_v33  ;;  %v800_v42 = vadd.f32 %v799_v40, %v5191_v11 }
 0x193   :  { %v887_v41 = vadd.f32 %v886_v31, %v5191_v11  ;;  %v888_v43 = vpop.f32.mrb[19].mxu1  ;;  %v911_v45 = vmax.f32 %v798_v3, 0.0 }
 0x194   :  { %v4026_v44 = vpack.c.bf16 %v908_v37, %v907_v35  ;;  %v889_v48 = vadd.f32 %v888_v43, %v5191_v11  ;;  %3773 = vst [vmem:[%s5748_s3 + $0x68] sm:$0xff] %v4025_v20  ;;  %v912_v50 = vmax.f32 %v800_v42, 0.0  ;;  %v803_v16 = vpop.f32.mrb[20].mxu0 }
 0x195   :  { %v913_v49 = vmax.f32 %v887_v41, 0.0  ;;  %v804_v51 = vadd.f32 %v803_v16, %v5201_v52  ;;  %v805_v55 = vpop.f32.mrb[21].mxu0 }
 0x196   :  { %3774 = vst.msk [vmem:[%s5748_s3 + $0x70] sm:$0xff] %vm5241_vm13, %v4026_v44  ;;  %v914_v7 = vmax.f32 %v889_v48, 0.0  ;;  %v892_v54 = vpop.f32.mrb[20].mxu1  ;;  %v4028_v47 = vpack.c.bf16 %v912_v50, %v911_v45  ;;  %v806_v60 = vadd.f32 %v805_v55, %v5201_v52 }
 0x197   :  { %v893_v57 = vadd.f32 %v892_v54, %v5201_v52  ;;  %v894_v38 = vpop.f32.mrb[21].mxu1  ;;  %v917_v46 = vmax.f32 %v804_v51, 0.0 }
 0x198   :  { %v4029_v56 = vpack.c.bf16 %v914_v7, %v913_v49  ;;  %v895_v58 = vadd.f32 %v894_v38, %v5201_v52  ;;  %3776 = vst [vmem:[%s5748_s3 + $0x80] sm:$0xff] %v4028_v47  ;;  %v918_v61 = vmax.f32 %v806_v60, 0.0  ;;  %v809_v62 = vpop.f32.mrb[22].mxu0 }
 0x199   :  { %v919_v17 = vmax.f32 %v893_v57, 0.0  ;;  %v810_v27 = vadd.f32 %v809_v62, %v5213_v0  ;;  %v811_v2 = vpop.f32.mrb[23].mxu0 }
 0x19a   :  { %3777 = vst.msk [vmem:[%s5748_s3 + $0x88] sm:$0xff] %vm5241_vm13, %v4029_v56  ;;  %v920_v63 = vmax.f32 %v895_v58, 0.0  ;;  %v898_v1 = vpop.f32.mrb[22].mxu1  ;;  %v4031_v4 = vpack.c.bf16 %v918_v61, %v917_v46  ;;  %v812_v6 = vadd.f32 %v811_v2, %v5213_v0 }
 0x19b   :  { %v899_v5 = vadd.f32 %v898_v1, %v5213_v0  ;;  %v900_v8 = vpop.f32.mrb[23].mxu1  ;;  %v923_v10 = vmax.f32 %v810_v27, 0.0 }
 0x19c   :  { %v4032_v9 = vpack.c.bf16 %v920_v63, %v919_v17  ;;  %v901_v53 = vadd.f32 %v900_v8, %v5213_v0  ;;  %3779 = vst [vmem:[%s5748_s3 + $0x98] sm:$0xff] %v4031_v4  ;;  %v924_v18 = vmax.f32 %v812_v6, 0.0  ;;  %v1153_v13 = vpop.f32.mrb[24].mxu0 }
 0x19d   :  { %v925_v12 = vmax.f32 %v899_v5, 0.0  ;;  %v1154_v19 = vadd.f32 %v1153_v13, %v5189_v32  ;;  %v1155_v14 = vpop.f32.mrb[25].mxu0 }
 0x19e   :  { %3780 = vst.msk [vmem:[%s5748_s3 + $0xa0] sm:$0xff] %vm5241_vm13, %v4032_v9  ;;  %v926_v59 = vmax.f32 %v901_v53, 0.0  ;;  %v1242_v15 = vpop.f32.mrb[24].mxu1  ;;  %v4034_v21 = vpack.c.bf16 %v924_v18, %v923_v10  ;;  %v1156_v24 = vadd.f32 %v1155_v14, %v5189_v32 }
 0x19f   :  { %v1243_v22 = vadd.f32 %v1242_v15, %v5189_v32  ;;  %v1244_v25 = vpop.f32.mrb[25].mxu1  ;;  %v1354_v28 = vmax.f32 %v1154_v19, 0.0 }
 0x1a0   :  { %v4035_v23 = vpack.c.bf16 %v926_v59, %v925_v12  ;;  %v1245_v29 = vadd.f32 %v1244_v25, %v5189_v32  ;;  %3782 = vst [vmem:[%s5748_s3 + $0xb0] sm:$0xff] %v4034_v21  ;;  %v1355_v33 = vmax.f32 %v1156_v24, 0.0  ;;  %v1159_v34 = vpop.f32.mrb[26].mxu0 }
 0x1a1   :  { %v1356_v30 = vmax.f32 %v1243_v22, 0.0  ;;  %v1160_v36 = vadd.f32 %v1159_v34, %v5191_v11  ;;  %v1161_v37 = vpop.f32.mrb[27].mxu0 }
 0x1a2   :  { %3783 = vst.msk [vmem:[%s5748_s3 + $0xb8] sm:$0xff] %vm5241_vm13, %v4035_v23  ;;  %v1357_v35 = vmax.f32 %v1245_v29, 0.0  ;;  %v1248_v26 = vpop.f32.mrb[26].mxu1  ;;  %v4036_v3 = vpack.c.bf16 %v1355_v33, %v1354_v28  ;;  %v1162_v40 = vadd.f32 %v1161_v37, %v5191_v11 }
 0x1a3   :  { %v1249_v31 = vadd.f32 %v1248_v26, %v5191_v11  ;;  %v1250_v20 = vpop.f32.mrb[27].mxu1  ;;  %v1360_v42 = vmax.f32 %v1160_v36, 0.0 }
 0x1a4   :  { %v4037_v41 = vpack.c.bf16 %v1357_v35, %v1356_v30  ;;  %v1251_v43 = vadd.f32 %v1250_v20, %v5191_v11  ;;  %3810 = vst [vmem:[%s5748_s3 + $0xc0] sm:$0xff] %v4036_v3  ;;  %v1361_v45 = vmax.f32 %v1162_v40, 0.0  ;;  %v1165_v48 = vpop.f32.mrb[28].mxu0 }
 0x1a5   :  { %v1362_v44 = vmax.f32 %v1249_v31, 0.0  ;;  %v1166_v50 = vadd.f32 %v1165_v48, %v5201_v52  ;;  %v1167_v7 = vpop.f32.mrb[29].mxu0 }
 0x1a6   :  { %3811 = vst [vmem:[%s5748_s3 + $0xc8] sm:$0xff] %v4037_v41  ;;  %v1363_v49 = vmax.f32 %v1251_v43, 0.0  ;;  %v1254_v16 = vpop.f32.mrb[28].mxu1  ;;  %v4039_v51 = vpack.c.bf16 %v1361_v45, %v1360_v42  ;;  %v1168_v55 = vadd.f32 %v1167_v7, %v5201_v52 }
 0x1a7   :  { %v1255_v54 = vadd.f32 %v1254_v16, %v5201_v52  ;;  %v1256_v47 = vpop.f32.mrb[29].mxu1  ;;  %v1366_v60 = vmax.f32 %v1166_v50, 0.0 }
 0x1a8   :  { %v4040_v57 = vpack.c.bf16 %v1363_v49, %v1362_v44  ;;  %v1257_v38 = vadd.f32 %v1256_v47, %v5201_v52  ;;  %3813 = vst [vmem:[%s5748_s3 + $0xd8] sm:$0xff] %v4039_v51  ;;  %v1367_v46 = vmax.f32 %v1168_v55, 0.0  ;;  %v1171_v58 = vpop.f32.mrb[30].mxu0 }
 0x1a9   :  { %v1368_v56 = vmax.f32 %v1255_v54, 0.0  ;;  %v1172_v61 = vadd.f32 %v1171_v58, %v5213_v0  ;;  %v1173_v63 = vpop.f32.mrb[31].mxu0 }
 0x1aa   :  { %3814 = vst [vmem:[%s5748_s3 + $0xe0] sm:$0xff] %v4040_v57  ;;  %v1369_v17 = vmax.f32 %v1257_v38, 0.0  ;;  %v1260_v62 = vpop.f32.mrb[30].mxu1  ;;  %v4042_v27 = vpack.c.bf16 %v1367_v46, %v1366_v60  ;;  %v1174_v2 = vadd.f32 %v1173_v63, %v5213_v0 }
 0x1ab   :  { %v1261_v1 = vadd.f32 %v1260_v62, %v5213_v0  ;;  %v1262_v4 = vpop.f32.mrb[31].mxu1  ;;  %v1372_v6 = vmax.f32 %v1172_v61, 0.0 }
 0x1ac   :  { %v4043_v5 = vpack.c.bf16 %v1369_v17, %v1368_v56  ;;  %v1263_v8 = vadd.f32 %v1262_v4, %v5213_v0  ;;  %3816 = vst [vmem:[%s5748_s3 + $0xf0] sm:$0xff] %v4042_v27  ;;  %v1373_v10 = vmax.f32 %v1174_v2, 0.0  ;;  %v1331_v53 = vpop.f32.mrb[32].mxu0 }
 0x1ad   :  { %v1374_v9 = vmax.f32 %v1261_v1, 0.0  ;;  %v1332_v18 = vadd.f32 %v1331_v53, %v5189_v32  ;;  %v1333_v59 = vpop.f32.mrb[33].mxu0 }
 0x1ae   :  { %3817 = vst [vmem:[%s5748_s3 + $0xf8] sm:$0xff] %v4043_v5  ;;  %v1375_v12 = vmax.f32 %v1263_v8, 0.0  ;;  %v1604_v13 = vpop.f32.mrb[32].mxu1  ;;  %v4045_v19 = vpack.c.bf16 %v1373_v10, %v1372_v6  ;;  %v1334_v14 = vadd.f32 %v1333_v59, %v5189_v32 }
 0x1af   :  { %v1605_v15 = vadd.f32 %v1604_v13, %v5189_v32  ;;  %v1606_v21 = vpop.f32.mrb[33].mxu1  ;;  %v1358_v24 = vmax.f32 %v1332_v18, 0.0 }
 0x1b0   :  { %v4046_v22 = vpack.c.bf16 %v1375_v12, %v1374_v9  ;;  %v1607_v25 = vadd.f32 %v1606_v21, %v5189_v32  ;;  %3819 = vst [vmem:[%s5748_s3 + $0x108] sm:$0xff] %v4045_v19  ;;  %v1359_v28 = vmax.f32 %v1334_v14, 0.0  ;;  %v1337_v29 = vpop.f32.mrb[34].mxu0 }
 0x1b1   :  { %v1805_v23 = vmax.f32 %v1605_v15, 0.0  ;;  %v1338_v33 = vadd.f32 %v1337_v29, %v5191_v11  ;;  %v1339_v35 = vpop.f32.mrb[35].mxu0 }
 0x1b2   :  { %3820 = vst [vmem:[%s5748_s3 + $0x110] sm:$0xff] %v4046_v22  ;;  %v1806_v30 = vmax.f32 %v1607_v25, 0.0  ;;  %v1610_v34 = vpop.f32.mrb[34].mxu1  ;;  %v4038_v36 = vpack.c.bf16 %v1359_v28, %v1358_v24  ;;  %v1340_v37 = vadd.f32 %v1339_v35, %v5191_v11 }
 0x1b3   :  { %v1611_v26 = vadd.f32 %v1610_v34, %v5191_v11  ;;  %v1612_v3 = vpop.f32.mrb[35].mxu1  ;;  %v1364_v40 = vmax.f32 %v1338_v33, 0.0 }
 0x1b4   :  { %v4048_v31 = vpack.c.bf16 %v1806_v30, %v1805_v23  ;;  %v1613_v20 = vadd.f32 %v1612_v3, %v5191_v11  ;;  %3812 = vst.msk [vmem:[%s5748_s3 + $0xd0] sm:$0xff] %vm5241_vm13, %v4038_v36  ;;  %v1365_v42 = vmax.f32 %v1340_v37, 0.0  ;;  %v1343_v43 = vpop.f32.mrb[36].mxu0 }
 0x1b5   :  { %v1811_v41 = vmax.f32 %v1611_v26, 0.0  ;;  %v1344_v45 = vadd.f32 %v1343_v43, %v5201_v52  ;;  %v1345_v49 = vpop.f32.mrb[37].mxu0 }
 0x1b6   :  { %3848 = vst [vmem:[%s5748_s3 + $0x120] sm:$0xff] %v4048_v31  ;;  %v1812_v44 = vmax.f32 %v1613_v20, 0.0  ;;  %v1616_v48 = vpop.f32.mrb[36].mxu1  ;;  %v4041_v50 = vpack.c.bf16 %v1365_v42, %v1364_v40  ;;  %v1346_v7 = vadd.f32 %v1345_v49, %v5201_v52 }
 0x1b7   :  { %v1617_v16 = vadd.f32 %v1616_v48, %v5201_v52  ;;  %v1618_v51 = vpop.f32.mrb[37].mxu1  ;;  %v1370_v55 = vmax.f32 %v1344_v45, 0.0 }
 0x1b8   :  { %v4051_v54 = vpack.c.bf16 %v1812_v44, %v1811_v41  ;;  %v1619_v47 = vadd.f32 %v1618_v51, %v5201_v52  ;;  %3815 = vst.msk [vmem:[%s5748_s3 + $0xe8] sm:$0xff] %vm5241_vm13, %v4041_v50  ;;  %v1371_v60 = vmax.f32 %v1346_v7, 0.0  ;;  %v1349_v38 = vpop.f32.mrb[38].mxu0 }
 0x1b9   :  { %v1817_v57 = vmax.f32 %v1617_v16, 0.0  ;;  %v1350_v46 = vadd.f32 %v1349_v38, %v5213_v0  ;;  %v1351_v17 = vpop.f32.mrb[39].mxu0 }
 0x1ba   :  { %3851 = vst [vmem:[%s5748_s3 + $0x138] sm:$0xff] %v4051_v54  ;;  %v1818_v56 = vmax.f32 %v1619_v47, 0.0  ;;  %v1622_v58 = vpop.f32.mrb[38].mxu1  ;;  %v4044_v61 = vpack.c.bf16 %v1371_v60, %v1370_v55  ;;  %v1352_v63 = vadd.f32 %v1351_v17, %v5213_v0 }
 0x1bb   :  { %v1623_v62 = vadd.f32 %v1622_v58, %v5213_v0  ;;  %v1624_v27 = vpop.f32.mrb[39].mxu1  ;;  %v1376_v2 = vmax.f32 %v1350_v46, 0.0 }
 0x1bc   :  { %v4054_v1 = vpack.c.bf16 %v1818_v56, %v1817_v57  ;;  %v1625_v4 = vadd.f32 %v1624_v27, %v5213_v0  ;;  %3818 = vst.msk [vmem:[%s5748_s3 + $0x100] sm:$0xff] %vm5241_vm13, %v4044_v61  ;;  %v1377_v6 = vmax.f32 %v1352_v63, 0.0  ;;  %v1693_v8 = vpop.f32.mrb[40].mxu0 }
 0x1bd   :  { %v1823_v5 = vmax.f32 %v1623_v62, 0.0  ;;  %v1694_v10 = vadd.f32 %v1693_v8, %v5189_v32  ;;  %v1695_v12 = vpop.f32.mrb[41].mxu0 }
 0x1be   :  { %3854 = vst [vmem:[%s5748_s3 + $0x150] sm:$0xff] %v4054_v1  ;;  %v1824_v9 = vmax.f32 %v1625_v4, 0.0  ;;  %v1782_v53 = vpop.f32.mrb[40].mxu1  ;;  %v4047_v18 = vpack.c.bf16 %v1377_v6, %v1376_v2  ;;  %v1696_v59 = vadd.f32 %v1695_v12, %v5189_v32 }
 0x1bf   :  { %v1783_v13 = vadd.f32 %v1782_v53, %v5189_v32  ;;  %v1784_v19 = vpop.f32.mrb[41].mxu1  ;;  %v1807_v14 = vmax.f32 %v1694_v10, 0.0 }
 0x1c0   :  { %v4057_v15 = vpack.c.bf16 %v1824_v9, %v1823_v5  ;;  %v1785_v21 = vadd.f32 %v1784_v19, %v5189_v32  ;;  %3821 = vst.msk [vmem:[%s5748_s3 + $0x118] sm:$0xff] %vm5241_vm13, %v4047_v18  ;;  %v1808_v24 = vmax.f32 %v1696_v59, 0.0  ;;  %v1699_v25 = vpop.f32.mrb[42].mxu0 }
 0x1c1   :  { %v1809_v22 = vmax.f32 %v1783_v13, 0.0  ;;  %v1700_v28 = vadd.f32 %v1699_v25, %v5191_v11  ;;  %v1701_v30 = vpop.f32.mrb[43].mxu0 }
 0x1c2   :  { %3857 = vst [vmem:[%s5748_s3 + $0x168] sm:$0xff] %v4057_v15  ;;  %v1810_v23 = vmax.f32 %v1785_v21, 0.0  ;;  %v1788_v29 = vpop.f32.mrb[42].mxu1  ;;  %v4049_v33 = vpack.c.bf16 %v1808_v24, %v1807_v14  ;;  %v1702_v35 = vadd.f32 %v1701_v30, %v5191_v11 }
 0x1c3   :  { %v1789_v34 = vadd.f32 %v1788_v29, %v5191_v11  ;;  %v1790_v36 = vpop.f32.mrb[43].mxu1  ;;  %v1813_v37 = vmax.f32 %v1700_v28, 0.0 }
 0x1c4   :  { %v4050_v26 = vpack.c.bf16 %v1810_v23, %v1809_v22  ;;  %v1791_v3 = vadd.f32 %v1790_v36, %v5191_v11  ;;  %3849 = vst [vmem:[%s5748_s3 + $0x128] sm:$0xff] %v4049_v33  ;;  %v1814_v40 = vmax.f32 %v1702_v35, 0.0  ;;  %v1705_v20 = vpop.f32.mrb[44].mxu0 }
 0x1c5   :  { %v1815_v31 = vmax.f32 %v1789_v34, 0.0  ;;  %v1706_v42 = vadd.f32 %v1705_v20, %v5201_v52  ;;  %v1707_v44 = vpop.f32.mrb[45].mxu0 }
 0x1c6   :  { %3850 = vst.msk [vmem:[%s5748_s3 + $0x130] sm:$0xff] %vm5241_vm13, %v4050_v26  ;;  %v1816_v41 = vmax.f32 %v1791_v3, 0.0  ;;  %v1794_v43 = vpop.f32.mrb[44].mxu1  ;;  %v4052_v45 = vpack.c.bf16 %v1814_v40, %v1813_v37  ;;  %v1708_v49 = vadd.f32 %v1707_v44, %v5201_v52 }
 0x1c7   :  { %v1795_v48 = vadd.f32 %v1794_v43, %v5201_v52  ;;  %v1796_v50 = vpop.f32.mrb[45].mxu1  ;;  %v1819_v7 = vmax.f32 %v1706_v42, 0.0 }
 0x1c8   :  { %v4053_v16 = vpack.c.bf16 %v1816_v41, %v1815_v31  ;;  %v1797_v51 = vadd.f32 %v1796_v50, %v5201_v52  ;;  %3852 = vst [vmem:[%s5748_s3 + $0x140] sm:$0xff] %v4052_v45  ;;  %v1820_v55 = vmax.f32 %v1708_v49, 0.0  ;;  %v1711_v47 = vpop.f32.mrb[46].mxu0 }
 0x1c9   :  { %v1821_v54 = vmax.f32 %v1795_v48, 0.0  ;;  %v1712_v60 = vadd.f32 %v1711_v47, %v5213_v0  ;;  %v1713_v56 = vpop.f32.mrb[47].mxu0 }
 0x1ca   :  { %3853 = vst.msk [vmem:[%s5748_s3 + $0x148] sm:$0xff] %vm5241_vm13, %v4053_v16  ;;  %v1822_v57 = vmax.f32 %v1797_v51, 0.0  ;;  %v1800_v38 = vpop.f32.mrb[46].mxu1  ;;  %v4055_v46 = vpack.c.bf16 %v1820_v55, %v1819_v7  ;;  %v1714_v17 = vadd.f32 %v1713_v56, %v5213_v0 }
 0x1cb   :  { %v1801_v58 = vadd.f32 %v1800_v38, %v5213_v0  ;;  %v1802_v61 = vpop.f32.mrb[47].mxu1  ;;  %v1825_v63 = vmax.f32 %v1712_v60, 0.0 }
 0x1cc   :  { %v4056_v62 = vpack.c.bf16 %v1822_v57, %v1821_v54  ;;  %v1803_v27 = vadd.f32 %v1802_v61, %v5213_v0  ;;  %3855 = vst [vmem:[%s5748_s3 + $0x158] sm:$0xff] %v4055_v46  ;;  %v1826_v2 = vmax.f32 %v1714_v17, 0.0  ;;  %v2055_v4 = vpop.f32.mrb[48].mxu0 }
 0x1cd   :  { %v1827_v1 = vmax.f32 %v1801_v58, 0.0  ;;  %v2056_v6 = vadd.f32 %v2055_v4, %v5189_v32  ;;  %v2057_v9 = vpop.f32.mrb[49].mxu0 }
 0x1ce   :  { %3856 = vst.msk [vmem:[%s5748_s3 + $0x160] sm:$0xff] %vm5241_vm13, %v4056_v62  ;;  %v1828_v5 = vmax.f32 %v1803_v27, 0.0  ;;  %v2144_v8 = vpop.f32.mrb[48].mxu1  ;;  %v4058_v10 = vpack.c.bf16 %v1826_v2, %v1825_v63  ;;  %v2058_v12 = vadd.f32 %v2057_v9, %v5189_v32 }
 0x1cf   :  { %v2145_v53 = vadd.f32 %v2144_v8, %v5189_v32  ;;  %v2146_v18 = vpop.f32.mrb[49].mxu1  ;;  %v2256_v59 = vmax.f32 %v2056_v6, 0.0 }
 0x1d0   :  { %v4059_v13 = vpack.c.bf16 %v1828_v5, %v1827_v1  ;;  %v2147_v19 = vadd.f32 %v2146_v18, %v5189_v32  ;;  %3858 = vst [vmem:[%s5748_s3 + $0x170] sm:$0xff] %v4058_v10  ;;  %v2257_v14 = vmax.f32 %v2058_v12, 0.0  ;;  %v2061_v21 = vpop.f32.mrb[50].mxu0 }
 0x1d1   :  { %v2258_v15 = vmax.f32 %v2145_v53, 0.0  ;;  %v2062_v24 = vadd.f32 %v2061_v21, %v5191_v11  ;;  %v2063_v23 = vpop.f32.mrb[51].mxu0 }
 0x1d2   :  { %3859 = vst.msk [vmem:[%s5748_s3 + $0x178] sm:$0xff] %vm5241_vm13, %v4059_v13  ;;  %v2259_v22 = vmax.f32 %v2147_v19, 0.0  ;;  %v2150_v25 = vpop.f32.mrb[50].mxu1  ;;  %v4060_v28 = vpack.c.bf16 %v2257_v14, %v2256_v59  ;;  %v2064_v30 = vadd.f32 %v2063_v23, %v5191_v11 }
 0x1d3   :  { %v2151_v29 = vadd.f32 %v2150_v25, %v5191_v11  ;;  %v2152_v33 = vpop.f32.mrb[51].mxu1  ;;  %v2262_v35 = vmax.f32 %v2062_v24, 0.0 }
 0x1d4   :  { %v4061_v34 = vpack.c.bf16 %v2259_v22, %v2258_v15  ;;  %v2153_v36 = vadd.f32 %v2152_v33, %v5191_v11  ;;  %3886 = vst [vmem:[%s5748_s3 + $0x180] sm:$0xff] %v4060_v28  ;;  %v2263_v37 = vmax.f32 %v2064_v30, 0.0  ;;  %v2067_v3 = vpop.f32.mrb[52].mxu0 }
 0x1d5   :  { %v2264_v26 = vmax.f32 %v2151_v29, 0.0  ;;  %v2068_v40 = vadd.f32 %v2067_v3, %v5201_v52  ;;  %v2069_v41 = vpop.f32.mrb[53].mxu0 }
 0x1d6   :  { %3887 = vst [vmem:[%s5748_s3 + $0x188] sm:$0xff] %v4061_v34  ;;  %v2265_v31 = vmax.f32 %v2153_v36, 0.0  ;;  %v2156_v20 = vpop.f32.mrb[52].mxu1  ;;  %v4063_v42 = vpack.c.bf16 %v2263_v37, %v2262_v35  ;;  %v2070_v44 = vadd.f32 %v2069_v41, %v5201_v52 }
 0x1d7   :  { %v2157_v43 = vadd.f32 %v2156_v20, %v5201_v52  ;;  %v2158_v45 = vpop.f32.mrb[53].mxu1  ;;  %v2268_v49 = vmax.f32 %v2068_v40, 0.0 }
 0x1d8   :  { %v4064_v48 = vpack.c.bf16 %v2265_v31, %v2264_v26  ;;  %v2159_v50 = vadd.f32 %v2158_v45, %v5201_v52  ;;  %3889 = vst [vmem:[%s5748_s3 + $0x198] sm:$0xff] %v4063_v42  ;;  %v2269_v7 = vmax.f32 %v2070_v44, 0.0  ;;  %v2073_v51 = vpop.f32.mrb[54].mxu0 }
 0x1d9   :  { %v2270_v16 = vmax.f32 %v2157_v43, 0.0  ;;  %v2074_v55 = vadd.f32 %v2073_v51, %v5213_v0  ;;  %v2075_v57 = vpop.f32.mrb[55].mxu0 }
 0x1da   :  { %3890 = vst [vmem:[%s5748_s3 + $0x1a0] sm:$0xff] %v4064_v48  ;;  %v2271_v54 = vmax.f32 %v2159_v50, 0.0  ;;  %v2162_v47 = vpop.f32.mrb[54].mxu1  ;;  %v4066_v60 = vpack.c.bf16 %v2269_v7, %v2268_v49  ;;  %v2076_v56 = vadd.f32 %v2075_v57, %v5213_v0 }
 0x1db   :  { %v2163_v38 = vadd.f32 %v2162_v47, %v5213_v0  ;;  %v2164_v46 = vpop.f32.mrb[55].mxu1  ;;  %v2274_v17 = vmax.f32 %v2074_v55, 0.0 }
 0x1dc   :  { %v4067_v58 = vpack.c.bf16 %v2271_v54, %v2270_v16  ;;  %v2165_v61 = vadd.f32 %v2164_v46, %v5213_v0  ;;  %3892 = vst [vmem:[%s5748_s3 + $0x1b0] sm:$0xff] %v4066_v60  ;;  %v2275_v63 = vmax.f32 %v2076_v56, 0.0  ;;  %v2233_v27 = vpop.f32.mrb[56].mxu0 }
 0x1dd   :  { %v2276_v62 = vmax.f32 %v2163_v38, 0.0  ;;  %v2234_v2 = vadd.f32 %v2233_v27, %v5189_v32  ;;  %v2235_v5 = vpop.f32.mrb[57].mxu0 }
 0x1de   :  { %3893 = vst [vmem:[%s5748_s3 + $0x1b8] sm:$0xff] %v4067_v58  ;;  %v2277_v1 = vmax.f32 %v2165_v61, 0.0  ;;  %v2506_v4 = vpop.f32.mrb[56].mxu1  ;;  %v4069_v6 = vpack.c.bf16 %v2275_v63, %v2274_v17  ;;  %v2236_v9 = vadd.f32 %v2235_v5, %v5189_v32 }
 0x1df   :  { %v2507_v8 = vadd.f32 %v2506_v4, %v5189_v32  ;;  %v2508_v10 = vpop.f32.mrb[57].mxu1  ;;  %v2260_v12 = vmax.f32 %v2234_v2, 0.0 }
 0x1e0   :  { %v4070_v53 = vpack.c.bf16 %v2277_v1, %v2276_v62  ;;  %v2509_v18 = vadd.f32 %v2508_v10, %v5189_v32  ;;  %3895 = vst [vmem:[%s5748_s3 + $0x1c8] sm:$0xff] %v4069_v6  ;;  %v2261_v59 = vmax.f32 %v2236_v9, 0.0  ;;  %v2239_v19 = vpop.f32.mrb[58].mxu0 }
 0x1e1   :  { %v2707_v13 = vmax.f32 %v2507_v8, 0.0  ;;  %v2240_v14 = vadd.f32 %v2239_v19, %v5191_v11  ;;  %v2241_v22 = vpop.f32.mrb[59].mxu0 }
 0x1e2   :  { %3896 = vst [vmem:[%s5748_s3 + $0x1d0] sm:$0xff] %v4070_v53  ;;  %v2708_v15 = vmax.f32 %v2509_v18, 0.0  ;;  %v2512_v21 = vpop.f32.mrb[58].mxu1  ;;  %v4062_v24 = vpack.c.bf16 %v2261_v59, %v2260_v12  ;;  %v2242_v23 = vadd.f32 %v2241_v22, %v5191_v11 }
 0x1e3   :  { %v2513_v25 = vadd.f32 %v2512_v21, %v5191_v11  ;;  %v2514_v28 = vpop.f32.mrb[59].mxu1  ;;  %v2266_v30 = vmax.f32 %v2240_v14, 0.0 }
 0x1e4   :  { %v4072_v29 = vpack.c.bf16 %v2708_v15, %v2707_v13  ;;  %v2515_v33 = vadd.f32 %v2514_v28, %v5191_v11  ;;  %3888 = vst.msk [vmem:[%s5748_s3 + $0x190] sm:$0xff] %vm5241_vm13, %v4062_v24  ;;  %v2267_v35 = vmax.f32 %v2242_v23, 0.0  ;;  %v2245_v36 = vpop.f32.mrb[60].mxu0 }
 0x1e5   :  { %v2713_v34 = vmax.f32 %v2513_v25, 0.0  ;;  %v2246_v37 = vadd.f32 %v2245_v36, %v5201_v52  ;;  %v2247_v31 = vpop.f32.mrb[61].mxu0 }
 0x1e6   :  { %3924 = vst [vmem:[%s5748_s3 + $0x1e0] sm:$0xff] %v4072_v29  ;;  %v2714_v26 = vmax.f32 %v2515_v33, 0.0  ;;  %v2518_v3 = vpop.f32.mrb[60].mxu1  ;;  %v4065_v40 = vpack.c.bf16 %v2267_v35, %v2266_v30  ;;  %v2248_v41 = vadd.f32 %v2247_v31, %v5201_v52 }
 0x1e7   :  { %v2519_v20 = vadd.f32 %v2518_v3, %v5201_v52  ;;  %v2520_v42 = vpop.f32.mrb[61].mxu1  ;;  %v2272_v44 = vmax.f32 %v2246_v37, 0.0 }
 0x1e8   :  { %v4075_v43 = vpack.c.bf16 %v2714_v26, %v2713_v34  ;;  %v2521_v45 = vadd.f32 %v2520_v42, %v5201_v52  ;;  %3891 = vst.msk [vmem:[%s5748_s3 + $0x1a8] sm:$0xff] %vm5241_vm13, %v4065_v40  ;;  %v2273_v49 = vmax.f32 %v2248_v41, 0.0  ;;  %v2251_v50 = vpop.f32.mrb[62].mxu0 }
 0x1e9   :  { %v2719_v48 = vmax.f32 %v2519_v20, 0.0  ;;  %v2252_v7 = vadd.f32 %v2251_v50, %v5213_v0  ;;  %v2253_v54 = vpop.f32.mrb[63].mxu0 }
 0x1ea   :  { %3927 = vst [vmem:[%s5748_s3 + $0x1f8] sm:$0xff] %v4075_v43  ;;  %v2720_v16 = vmax.f32 %v2521_v45, 0.0  ;;  %v2524_v51 = vpop.f32.mrb[62].mxu1  ;;  %v4068_v55 = vpack.c.bf16 %v2273_v49, %v2272_v44  ;;  %v2254_v57 = vadd.f32 %v2253_v54, %v5213_v0 }
 0x1eb   :  { %v2525_v47 = vadd.f32 %v2524_v51, %v5213_v0  ;;  %v2526_v60 = vpop.f32.mrb[63].mxu1  ;;  %v2278_v56 = vmax.f32 %v2252_v7, 0.0 }
 0x1ec   :  { %v4078_v38 = vpack.c.bf16 %v2720_v16, %v2719_v48  ;;  %v2527_v46 = vadd.f32 %v2526_v60, %v5213_v0  ;;  %3894 = vst.msk [vmem:[%s5748_s3 + $0x1c0] sm:$0xff] %vm5241_vm13, %v4068_v55  ;;  %v2279_v17 = vmax.f32 %v2254_v57, 0.0  ;;  %v2595_v61 = vpop.f32.mrb[64].mxu0 }
 0x1ed   :  { %v2725_v58 = vmax.f32 %v2525_v47, 0.0  ;;  %v2596_v63 = vadd.f32 %v2595_v61, %v5189_v32  ;;  %v2597_v1 = vpop.f32.mrb[65].mxu0 }
 0x1ee   :  { %3930 = vst [vmem:[%s5748_s3 + $0x210] sm:$0xff] %v4078_v38  ;;  %v2726_v62 = vmax.f32 %v2527_v46, 0.0  ;;  %v2684_v27 = vpop.f32.mrb[64].mxu1  ;;  %v4071_v2 = vpack.c.bf16 %v2279_v17, %v2278_v56  ;;  %v2598_v5 = vadd.f32 %v2597_v1, %v5189_v32 }
 0x1ef   :  { %v2685_v4 = vadd.f32 %v2684_v27, %v5189_v32  ;;  %v2686_v6 = vpop.f32.mrb[65].mxu1  ;;  %v2709_v9 = vmax.f32 %v2596_v63, 0.0 }
 0x1f0   :  { %v4081_v8 = vpack.c.bf16 %v2726_v62, %v2725_v58  ;;  %v2687_v10 = vadd.f32 %v2686_v6, %v5189_v32  ;;  %3897 = vst.msk [vmem:[%s5748_s3 + $0x1d8] sm:$0xff] %vm5241_vm13, %v4071_v2  ;;  %v2710_v12 = vmax.f32 %v2598_v5, 0.0  ;;  %v2601_v18 = vpop.f32.mrb[66].mxu0 }
 0x1f1   :  { %v2711_v53 = vmax.f32 %v2685_v4, 0.0  ;;  %v2602_v59 = vadd.f32 %v2601_v18, %v5191_v11  ;;  %v2603_v15 = vpop.f32.mrb[67].mxu0 }
 0x1f2   :  { %3933 = vst [vmem:[%s5748_s3 + $0x228] sm:$0xff] %v4081_v8  ;;  %v2712_v13 = vmax.f32 %v2687_v10, 0.0  ;;  %v2690_v19 = vpop.f32.mrb[66].mxu1  ;;  %v4073_v14 = vpack.c.bf16 %v2710_v12, %v2709_v9  ;;  %v2604_v22 = vadd.f32 %v2603_v15, %v5191_v11 }
 0x1f3   :  { %v2691_v21 = vadd.f32 %v2690_v19, %v5191_v11  ;;  %v2692_v24 = vpop.f32.mrb[67].mxu1  ;;  %v2715_v23 = vmax.f32 %v2602_v59, 0.0 }
 0x1f4   :  { %v4074_v25 = vpack.c.bf16 %v2712_v13, %v2711_v53  ;;  %v2693_v28 = vadd.f32 %v2692_v24, %v5191_v11  ;;  %3925 = vst [vmem:[%s5748_s3 + $0x1e8] sm:$0xff] %v4073_v14  ;;  %v2716_v30 = vmax.f32 %v2604_v22, 0.0  ;;  %v2607_v33 = vpop.f32.mrb[68].mxu0 }
 0x1f5   :  { %v2717_v29 = vmax.f32 %v2691_v21, 0.0  ;;  %v2608_v35 = vadd.f32 %v2607_v33, %v5201_v52  ;;  %v2609_v26 = vpop.f32.mrb[69].mxu0 }
 0x1f6   :  { %3926 = vst.msk [vmem:[%s5748_s3 + $0x1f0] sm:$0xff] %vm5241_vm13, %v4074_v25  ;;  %v2718_v34 = vmax.f32 %v2693_v28, 0.0  ;;  %v2696_v36 = vpop.f32.mrb[68].mxu1  ;;  %v4076_v37 = vpack.c.bf16 %v2716_v30, %v2715_v23  ;;  %v2610_v31 = vadd.f32 %v2609_v26, %v5201_v52 }
 0x1f7   :  { %v2697_v3 = vadd.f32 %v2696_v36, %v5201_v52  ;;  %v2698_v40 = vpop.f32.mrb[69].mxu1  ;;  %v2721_v41 = vmax.f32 %v2608_v35, 0.0 }
 0x1f8   :  { %v4077_v20 = vpack.c.bf16 %v2718_v34, %v2717_v29  ;;  %v2699_v42 = vadd.f32 %v2698_v40, %v5201_v52  ;;  %3928 = vst [vmem:[%s5748_s3 + $0x200] sm:$0xff] %v4076_v37  ;;  %v2722_v44 = vmax.f32 %v2610_v31, 0.0  ;;  %v2613_v45 = vpop.f32.mrb[70].mxu0 }
 0x1f9   :  { %v2723_v43 = vmax.f32 %v2697_v3, 0.0  ;;  %v2614_v49 = vadd.f32 %v2613_v45, %v5213_v0  ;;  %v2615_v16 = vpop.f32.mrb[71].mxu0 }
 0x1fa   :  { %3929 = vst.msk [vmem:[%s5748_s3 + $0x208] sm:$0xff] %vm5241_vm13, %v4077_v20  ;;  %v2724_v48 = vmax.f32 %v2699_v42, 0.0  ;;  %v2702_v50 = vpop.f32.mrb[70].mxu1  ;;  %v4079_v7 = vpack.c.bf16 %v2722_v44, %v2721_v41  ;;  %v2616_v54 = vadd.f32 %v2615_v16, %v5213_v0 }
 0x1fb   :  { %v2703_v51 = vadd.f32 %v2702_v50, %v5213_v0  ;;  %v2704_v55 = vpop.f32.mrb[71].mxu1  ;;  %v2727_v57 = vmax.f32 %v2614_v49, 0.0 }
 0x1fc   :  { %v4080_v47 = vpack.c.bf16 %v2724_v48, %v2723_v43  ;;  %v2705_v60 = vadd.f32 %v2704_v55, %v5213_v0  ;;  %3931 = vst [vmem:[%s5748_s3 + $0x218] sm:$0xff] %v4079_v7  ;;  %v2728_v56 = vmax.f32 %v2616_v54, 0.0  ;;  %v2957_v46 = vpop.f32.mrb[72].mxu0 }
 0x1fd   :  { %v2729_v38 = vmax.f32 %v2703_v51, 0.0  ;;  %v2958_v17 = vadd.f32 %v2957_v46, %v5189_v32  ;;  %v2959_v62 = vpop.f32.mrb[73].mxu0 }
 0x1fe   :  { %3932 = vst.msk [vmem:[%s5748_s3 + $0x220] sm:$0xff] %vm5241_vm13, %v4080_v47  ;;  %v2730_v58 = vmax.f32 %v2705_v60, 0.0  ;;  %v3046_v61 = vpop.f32.mrb[72].mxu1  ;;  %v4082_v63 = vpack.c.bf16 %v2728_v56, %v2727_v57  ;;  %v2960_v1 = vadd.f32 %v2959_v62, %v5189_v32 }
 0x1ff   :  { %v3047_v27 = vadd.f32 %v3046_v61, %v5189_v32  ;;  %v3048_v2 = vpop.f32.mrb[73].mxu1  ;;  %v3158_v5 = vmax.f32 %v2958_v17, 0.0 }
 0x200   :  { %v4083_v4 = vpack.c.bf16 %v2730_v58, %v2729_v38  ;;  %v3049_v6 = vadd.f32 %v3048_v2, %v5189_v32  ;;  %3934 = vst [vmem:[%s5748_s3 + $0x230] sm:$0xff] %v4082_v63  ;;  %v3159_v9 = vmax.f32 %v2960_v1, 0.0  ;;  %v2963_v10 = vpop.f32.mrb[74].mxu0 }
 0x201   :  { %v3160_v8 = vmax.f32 %v3047_v27, 0.0  ;;  %v2964_v12 = vadd.f32 %v2963_v10, %v5191_v11  ;;  %v2965_v13 = vpop.f32.mrb[75].mxu0 }
 0x202   :  { %3935 = vst.msk [vmem:[%s5748_s3 + $0x238] sm:$0xff] %vm5241_vm13, %v4083_v4  ;;  %v3161_v53 = vmax.f32 %v3049_v6, 0.0  ;;  %v3052_v18 = vpop.f32.mrb[74].mxu1  ;;  %v4084_v59 = vpack.c.bf16 %v3159_v9, %v3158_v5  ;;  %v2966_v15 = vadd.f32 %v2965_v13, %v5191_v11 }
 0x203   :  { %v3053_v19 = vadd.f32 %v3052_v18, %v5191_v11  ;;  %v3054_v14 = vpop.f32.mrb[75].mxu1  ;;  %v3164_v22 = vmax.f32 %v2964_v12, 0.0 }
 0x204   :  { %v4085_v21 = vpack.c.bf16 %v3161_v53, %v3160_v8  ;;  %v3055_v24 = vadd.f32 %v3054_v14, %v5191_v11  ;;  %3962 = vst [vmem:[%s5748_s3 + $0x240] sm:$0xff] %v4084_v59  ;;  %v3165_v23 = vmax.f32 %v2966_v15, 0.0  ;;  %v2969_v28 = vpop.f32.mrb[76].mxu0 }
 0x205   :  { %v3166_v25 = vmax.f32 %v3053_v19, 0.0  ;;  %v2970_v30 = vadd.f32 %v2969_v28, %v5201_v52  ;;  %v2971_v34 = vpop.f32.mrb[77].mxu0 }
 0x206   :  { %3963 = vst [vmem:[%s5748_s3 + $0x248] sm:$0xff] %v4085_v21  ;;  %v3167_v29 = vmax.f32 %v3055_v24, 0.0  ;;  %v3058_v33 = vpop.f32.mrb[76].mxu1  ;;  %v4087_v35 = vpack.c.bf16 %v3165_v23, %v3164_v22  ;;  %v2972_v26 = vadd.f32 %v2971_v34, %v5201_v52 }
 0x207   :  { %v3059_v36 = vadd.f32 %v3058_v33, %v5201_v52  ;;  %v3060_v37 = vpop.f32.mrb[77].mxu1  ;;  %v3170_v31 = vmax.f32 %v2970_v30, 0.0 }
 0x208   :  { %v4088_v3 = vpack.c.bf16 %v3167_v29, %v3166_v25  ;;  %v3061_v40 = vadd.f32 %v3060_v37, %v5201_v52  ;;  %3965 = vst [vmem:[%s5748_s3 + $0x258] sm:$0xff] %v4087_v35  ;;  %v3171_v41 = vmax.f32 %v2972_v26, 0.0  ;;  %v2975_v42 = vpop.f32.mrb[78].mxu0 }
 0x209   :  { %v3172_v20 = vmax.f32 %v3059_v36, 0.0  ;;  %v2976_v44 = vadd.f32 %v2975_v42, %v5213_v0  ;;  %v2977_v48 = vpop.f32.mrb[79].mxu0 }
 0x20a   :  { %3966 = vst [vmem:[%s5748_s3 + $0x260] sm:$0xff] %v4088_v3  ;;  %v3173_v43 = vmax.f32 %v3061_v40, 0.0  ;;  %v3064_v45 = vpop.f32.mrb[78].mxu1  ;;  %v4090_v49 = vpack.c.bf16 %v3171_v41, %v3170_v31  ;;  %v2978_v16 = vadd.f32 %v2977_v48, %v5213_v0 }
 0x20b   :  { %v3065_v50 = vadd.f32 %v3064_v45, %v5213_v0  ;;  %v3066_v7 = vpop.f32.mrb[79].mxu1  ;;  %v3176_v54 = vmax.f32 %v2976_v44, 0.0 }
 0x20c   :  { %v4091_v51 = vpack.c.bf16 %v3173_v43, %v3172_v20  ;;  %v3067_v55 = vadd.f32 %v3066_v7, %v5213_v0  ;;  %3968 = vst [vmem:[%s5748_s3 + $0x270] sm:$0xff] %v4090_v49  ;;  %v3177_v57 = vmax.f32 %v2978_v16, 0.0  ;;  %v3135_v60 = vpop.f32.mrb[80].mxu0 }
 0x20d   :  { %v3178_v47 = vmax.f32 %v3065_v50, 0.0  ;;  %v3136_v56 = vadd.f32 %v3135_v60, %v5189_v32  ;;  %v3137_v58 = vpop.f32.mrb[81].mxu0 }
 0x20e   :  { %3969 = vst [vmem:[%s5748_s3 + $0x278] sm:$0xff] %v4091_v51  ;;  %v3179_v38 = vmax.f32 %v3067_v55, 0.0  ;;  %v3408_v46 = vpop.f32.mrb[80].mxu1  ;;  %v4093_v17 = vpack.c.bf16 %v3177_v57, %v3176_v54  ;;  %v3138_v62 = vadd.f32 %v3137_v58, %v5189_v32 }
 0x20f   :  { %v3409_v61 = vadd.f32 %v3408_v46, %v5189_v32  ;;  %v3410_v63 = vpop.f32.mrb[81].mxu1  ;;  %v3162_v1 = vmax.f32 %v3136_v56, 0.0 }
 0x210   :  { %v4094_v27 = vpack.c.bf16 %v3179_v38, %v3178_v47  ;;  %v3411_v2 = vadd.f32 %v3410_v63, %v5189_v32  ;;  %3971 = vst [vmem:[%s5748_s3 + $0x288] sm:$0xff] %v4093_v17  ;;  %v3163_v5 = vmax.f32 %v3138_v62, 0.0  ;;  %v3141_v6 = vpop.f32.mrb[82].mxu0 }
 0x211   :  { %v3609_v4 = vmax.f32 %v3409_v61, 0.0  ;;  %v3142_v9 = vadd.f32 %v3141_v6, %v5191_v11  ;;  %v3143_v53 = vpop.f32.mrb[83].mxu0 }
 0x212   :  { %3972 = vst [vmem:[%s5748_s3 + $0x290] sm:$0xff] %v4094_v27  ;;  %v3610_v8 = vmax.f32 %v3411_v2, 0.0  ;;  %v3414_v10 = vpop.f32.mrb[82].mxu1  ;;  %v4086_v12 = vpack.c.bf16 %v3163_v5, %v3162_v1  ;;  %v3144_v13 = vadd.f32 %v3143_v53, %v5191_v11 }
 0x213   :  { %v3415_v18 = vadd.f32 %v3414_v10, %v5191_v11  ;;  %v3416_v59 = vpop.f32.mrb[83].mxu1  ;;  %v3168_v15 = vmax.f32 %v3142_v9, 0.0 }
 0x214   :  { %v4096_v19 = vpack.c.bf16 %v3610_v8, %v3609_v4  ;;  %v3417_v14 = vadd.f32 %v3416_v59, %v5191_v11  ;;  %3964 = vst.msk [vmem:[%s5748_s3 + $0x250] sm:$0xff] %vm5241_vm13, %v4086_v12  ;;  %v3169_v22 = vmax.f32 %v3144_v13, 0.0  ;;  %v3147_v24 = vpop.f32.mrb[84].mxu0 }
 0x215   :  { %v3615_v21 = vmax.f32 %v3415_v18, 0.0  ;;  %v3148_v23 = vadd.f32 %v3147_v24, %v5201_v52  ;;  %v3149_v29 = vpop.f32.mrb[85].mxu0 }
 0x216   :  { %4000 = vst [vmem:[%s5748_s3 + $0x2a0] sm:$0xff] %v4096_v19  ;;  %v3616_v25 = vmax.f32 %v3417_v14, 0.0  ;;  %v3420_v28 = vpop.f32.mrb[84].mxu1  ;;  %v4089_v30 = vpack.c.bf16 %v3169_v22, %v3168_v15  ;;  %v3150_v34 = vadd.f32 %v3149_v29, %v5201_v52 }
 0x217   :  { %v3421_v33 = vadd.f32 %v3420_v28, %v5201_v52  ;;  %v3422_v35 = vpop.f32.mrb[85].mxu1  ;;  %v3174_v26 = vmax.f32 %v3148_v23, 0.0 }
 0x218   :  { %v4099_v36 = vpack.c.bf16 %v3616_v25, %v3615_v21  ;;  %v3423_v37 = vadd.f32 %v3422_v35, %v5201_v52  ;;  %3967 = vst.msk [vmem:[%s5748_s3 + $0x268] sm:$0xff] %vm5241_vm13, %v4089_v30  ;;  %v3175_v31 = vmax.f32 %v3150_v34, 0.0  ;;  %v3153_v40 = vpop.f32.mrb[86].mxu0 }
 0x219   :  { %v3621_v3 = vmax.f32 %v3421_v33, 0.0  ;;  %v3154_v41 = vadd.f32 %v3153_v40, %v5213_v0  ;;  %v3155_v43 = vpop.f32.mrb[87].mxu0 }
 0x21a   :  { %4003 = vst [vmem:[%s5748_s3 + $0x2b8] sm:$0xff] %v4099_v36  ;;  %v3622_v20 = vmax.f32 %v3423_v37, 0.0  ;;  %v3426_v42 = vpop.f32.mrb[86].mxu1  ;;  %v4092_v44 = vpack.c.bf16 %v3175_v31, %v3174_v26  ;;  %v3156_v48 = vadd.f32 %v3155_v43, %v5213_v0 }
 0x21b   :  { %v3427_v45 = vadd.f32 %v3426_v42, %v5213_v0  ;;  %v3428_v49 = vpop.f32.mrb[87].mxu1  ;;  %v3180_v16 = vmax.f32 %v3154_v41, 0.0 }
 0x21c   :  { %v4102_v50 = vpack.c.bf16 %v3622_v20, %v3621_v3  ;;  %v3429_v7 = vadd.f32 %v3428_v49, %v5213_v0  ;;  %3970 = vst.msk [vmem:[%s5748_s3 + $0x280] sm:$0xff] %vm5241_vm13, %v4092_v44  ;;  %v3181_v54 = vmax.f32 %v3156_v48, 0.0  ;;  %v3497_v55 = vpop.f32.mrb[88].mxu0 }
 0x21d   :  { %v3627_v51 = vmax.f32 %v3427_v45, 0.0  ;;  %v3498_v57 = vadd.f32 %v3497_v55, %v5189_v32  ;;  %v3499_v38 = vpop.f32.mrb[89].mxu0 }
 0x21e   :  { %4006 = vst [vmem:[%s5748_s3 + $0x2d0] sm:$0xff] %v4102_v50  ;;  %v3628_v47 = vmax.f32 %v3429_v7, 0.0  ;;  %v3586_v60 = vpop.f32.mrb[88].mxu1  ;;  %v4095_v56 = vpack.c.bf16 %v3181_v54, %v3180_v16  ;;  %v3500_v58 = vadd.f32 %v3499_v38, %v5189_v32 }
 0x21f   :  { %v3587_v46 = vadd.f32 %v3586_v60, %v5189_v32  ;;  %v3588_v17 = vpop.f32.mrb[89].mxu1  ;;  %v3611_v62 = vmax.f32 %v3498_v57, 0.0 }
 0x220   :  { %v4105_v61 = vpack.c.bf16 %v3628_v47, %v3627_v51  ;;  %v3589_v63 = vadd.f32 %v3588_v17, %v5189_v32  ;;  %3973 = vst.msk [vmem:[%s5748_s3 + $0x298] sm:$0xff] %vm5241_vm13, %v4095_v56  ;;  %v3612_v1 = vmax.f32 %v3500_v58, 0.0  ;;  %v3503_v2 = vpop.f32.mrb[90].mxu0 }
 0x221   :  { %v3613_v27 = vmax.f32 %v3587_v46, 0.0  ;;  %v3504_v5 = vadd.f32 %v3503_v2, %v5191_v11  ;;  %v3505_v8 = vpop.f32.mrb[91].mxu0 }
 0x222   :  { %4009 = vst [vmem:[%s5748_s3 + $0x2e8] sm:$0xff] %v4105_v61  ;;  %v3614_v4 = vmax.f32 %v3589_v63, 0.0  ;;  %v3592_v6 = vpop.f32.mrb[90].mxu1  ;;  %v4097_v9 = vpack.c.bf16 %v3612_v1, %v3611_v62  ;;  %v3506_v10 = vadd.f32 %v3505_v8, %v5191_v11 }
 0x223   :  { %v3593_v32 = vadd.f32 %v3592_v6, %v5191_v11  ;;  %v3594_v53 = vpop.f32.mrb[91].mxu1  ;;  %v3617_v18 = vmax.f32 %v3504_v5, 0.0 }
 0x224   :  { %v4098_v12 = vpack.c.bf16 %v3614_v4, %v3613_v27  ;;  %v3595_v13 = vadd.f32 %v3594_v53, %v5191_v11  ;;  %4001 = vst [vmem:[%s5748_s3 + $0x2a8] sm:$0xff] %v4097_v9  ;;  %v3618_v19 = vmax.f32 %v3506_v10, 0.0  ;;  %v3509_v15 = vpop.f32.mrb[92].mxu0 }
 0x225   :  { %v3619_v59 = vmax.f32 %v3593_v32, 0.0  ;;  %v3510_v21 = vadd.f32 %v3509_v15, %v5201_v52  ;;  %v3511_v24 = vpop.f32.mrb[93].mxu0 }
 0x226   :  { %4002 = vst.msk [vmem:[%s5748_s3 + $0x2b0] sm:$0xff] %vm5241_vm13, %v4098_v12  ;;  %v3620_v14 = vmax.f32 %v3595_v13, 0.0  ;;  %v3598_v22 = vpop.f32.mrb[92].mxu1  ;;  %v4100_v25 = vpack.c.bf16 %v3618_v19, %v3617_v18  ;;  %v3512_v23 = vadd.f32 %v3511_v24, %v5201_v52 }
 0x227   :  { %v3599_v11 = vadd.f32 %v3598_v22, %v5201_v52  ;;  %v3600_v28 = vpop.f32.mrb[93].mxu1  ;;  %v3623_v30 = vmax.f32 %v3510_v21, 0.0 }
 0x228   :  { %v4101_v29 = vpack.c.bf16 %v3620_v14, %v3619_v59  ;;  %v3601_v33 = vadd.f32 %v3600_v28, %v5201_v52  ;;  %4004 = vst [vmem:[%s5748_s3 + $0x2c0] sm:$0xff] %v4100_v25  ;;  %v3624_v35 = vmax.f32 %v3512_v23, 0.0  ;;  %v3515_v36 = vpop.f32.mrb[94].mxu0 }
 0x229   :  { %v3625_v34 = vmax.f32 %v3599_v11, 0.0  ;;  %v3516_v37 = vadd.f32 %v3515_v36, %v5213_v0  ;;  %v3517_v31 = vpop.f32.mrb[95].mxu0 }
 0x22a   :  { %4005 = vst.msk [vmem:[%s5748_s3 + $0x2c8] sm:$0xff] %vm5241_vm13, %v4101_v29  ;;  %v3626_v26 = vmax.f32 %v3601_v33, 0.0  ;;  %v3604_v3 = vpop.f32.mrb[94].mxu1  ;;  %v4103_v40 = vpack.c.bf16 %v3624_v35, %v3623_v30  ;;  %v3518_v20 = vadd.f32 %v3517_v31, %v5213_v0 }
 0x22b   :  { %v3605_v52 = vadd.f32 %v3604_v3, %v5213_v0  ;;  %v3606_v41 = vpop.f32.mrb[95].mxu1  ;;  %v3629_v43 = vmax.f32 %v3516_v37, 0.0 }
 0x22c   :  { %v4104_v42 = vpack.c.bf16 %v3626_v26, %v3625_v34  ;;  %v3607_v44 = vadd.f32 %v3606_v41, %v5213_v0  ;;  %4007 = vst [vmem:[%s5748_s3 + $0x2d8] sm:$0xff] %v4103_v40  ;;  %v3630_v48 = vmax.f32 %v3518_v20, 0.0 }
 0x22d   :  { %v3631_v45 = vmax.f32 %v3605_v52, 0.0 }
 0x22e   :  { %4008 = vst.msk [vmem:[%s5748_s3 + $0x2e0] sm:$0xff] %vm5241_vm13, %v4104_v42  ;;  %v3632_v49 = vmax.f32 %v3607_v44, 0.0  ;;  %v4106_v50 = vpack.c.bf16 %v3630_v48, %v3629_v43 }
 0x230   :  { %v4107_v16 = vpack.c.bf16 %v3632_v49, %v3631_v45  ;;  %4010 = vst [vmem:[%s5748_s3 + $0x2f0] sm:$0xff] %v4106_v50 }
 0x232   :  { %4011 = vst.msk [vmem:[%s5748_s3 + $0x2f8] sm:$0xff] %vm5241_vm13, %v4107_v16 }

// kernel: forward.4
= control target key start
LH: loop header
LB: loop body
LE: loop exit
PB: predicated region body
PF: predicated region fallthrough
CT: control target
= control target key end

     0   :  { %vm64_vm0 = vcmask 121856   ;;  %s4220_s16 = smov 127   ;;  %s4221_s10 = smov 126   ;;  %vm76_vm1 = vcmask 1039360   ;;  %vm95_vm2 = vcmask 1031168   ;;  %v6369_v50 = vmov 0   ;;  %s6365_s0 = inlined_call_operand.vmem [shape: bf16[8,32,171], index: 0, kind: input, shape index: {}]   ;;  %s6366_s1 = inlined_call_operand.vmem [shape: bf16[64,288], index: 1, kind: input, shape index: {}]   ;;  %s6367_s2 = inlined_call_operand.vmem [shape: f32[64,1], index: 2, kind: input, shape index: {}]   ;;  %s6368_s3 = inlined_call_operand.vmem [shape: bf16[8,64,143], index: 3, kind: output, shape index: {}]  }
   0x1   :  { %v4252_v0 = vld [vmem:[%s6365_s0 + $0x20] ss:$8 sps:$4 sm:$0xff]   ;;  %v4264_v2 = vld [vmem:[%s6365_s0 + $0x24] ss:$8 sps:$4 sm:$0xff]   ;;  %v4276_v4 = vld [vmem:[%s6365_s0 + $0x14] ss:$8 sps:$4 sm:$0xff]   ;;  %4144 = vset.pattern.permute.xlu1 %v6369_v50  ;;  %4143 = vset.pattern.permute.xlu0 %v6369_v50 }
   0x2   :  { %v4257_v1 = vld [vmem:[%s6365_s0] ss:$8 sps:$4 sm:$0xff]   ;;  %619 = vrot.lane.b32.xlu1 %v4252_v0, %s4220_s16  ;;  %v4269_v3 = vld [vmem:[%s6365_s0 + $0x4] ss:$8 sps:$4 sm:$0xff]   ;;  %v4281_v5 = vld [vmem:[%s6365_s0 + $0x34] ss:$8 sps:$4 sm:$0xff]  }
   0x3   :  { %68 = vrot.lane.b32.xlu0 %v4257_v1, %s4220_s16  ;;  %65 = vst.msk [vmem:[#allocation2 + $0x8] sm:$0xff] %vm64_vm0, %v4269_v3  ;;  %616 = vst.msk [vmem:[#allocation2 + $0x128] sm:$0xff] %vm64_vm0, %v4264_v2  ;;  %v4298_v6 = vld [vmem:[%s6365_s0 + $0x10] ss:$8 sps:$4 sm:$0xff]   ;;  %v4303_v7 = vld [vmem:[%s6365_s0 + $0x44] ss:$8 sps:$4 sm:$0xff]  }
   0x4   :  { %67 = vst.msk [vmem:[#allocation2 + $0x18] sm:$0xff] %vm64_vm0, %v4276_v4  ;;  %618 = vst.msk [vmem:[#allocation2 + $0x138] sm:$0xff] %vm64_vm0, %v4281_v5  ;;  %v4308_v8 = vld [vmem:[%s6365_s0 + $0x64] ss:$8 sps:$4 sm:$0xff]   ;;  %v4313_v9 = vld [vmem:[%s6365_s0 + $0x30] ss:$8 sps:$4 sm:$0xff]  }
   0x5   :  { %v4318_v10 = vld [vmem:[%s6365_s0 + $0x54] ss:$8 sps:$4 sm:$0xff]   ;;  %s4222_s11 = smov 115   ;;  %s4223_s12 = smov 114   ;;  %v4165_v16 = vld [vmem:[%s6366_s1 + $0x4] ss:$12 sps:$4 sm:$0xff]  }
   0x6   :  { %621 = vrot.lane.b32.xlu1 %v4264_v2, %s4220_s16  ;;  %v4325_v11 = vld [vmem:[%s6365_s0 + $0x74] ss:$8 sps:$4 sm:$0xff]   ;;  %s4224_s13 = smov 113   ;;  %s4225_s14 = smov 102   ;;  %401 = vmatprep.mubr.bf16.mxu0 %v4165_v16  ;;  %v3646_v21 = vld [vmem:[%s6365_s0 + $0x40] sm:$0xff]  ;;  %v3647_v22 = vld [vmem:[%s6365_s0 + $0x48] sm:$0xff] }
   0x7   :  { %70 = vrot.lane.b32.xlu0 %v4269_v3, %s4220_s16  ;;  %s4226_s15 = smov 101   ;;  %831 = vmatprep.mubr.bf16.mxu1 %v4165_v16  ;;  %s4227_s19 = smov 100   ;;  %v4467_v25 = vcombine.low %v3646_v21, %v3647_v22  ;;  %v3674_v26 = vld [vmem:[%s6365_s0 + $0x60] sm:$0xff]  ;;  %v3675_v27 = vld [vmem:[%s6365_s0 + $0x68] sm:$0xff]  ;;  %v3648_v35 = vld [vmem:[%s6365_s0 + $0x50] sm:$0xff]  ;;  %vm114_vm3 = vcmask 941056  }
   0x8   :  { %v4480_v34 = vcombine.low %v3674_v26, %v3675_v27  ;;  %v3649_v36 = vld [vmem:[%s6365_s0 + $0x58] sm:$0xff]  ;;  %v3676_v41 = vld [vmem:[%s6365_s0 + $0x70] sm:$0xff]  ;;  %v4509_v46 = vld [vmem:[%s6365_s0 + $0x84] ss:$8 sps:$4 sm:$0xff]   ;;  %vm133_vm4 = vcmask 932864   ;;  %vm152_vm5 = vcmask 924672  }
   0x9   :  { %v4497_v42 = vcombine.low %v3648_v35, %v3649_v36  ;;  %v3677_v43 = vld [vmem:[%s6365_s0 + $0x78] sm:$0xff]  ;;  %v4527_v54 = vld [vmem:[%s6365_s0 + $0xa4] ss:$8 sps:$4 sm:$0xff]   ;;  %vm171_vm6 = vcmask 834560   ;;  %vm190_vm7 = vcmask 826368   ;;  %vm209_vm8 = vcmask 818176  }
   0xa   :  { %74 = vrot.lane.b32.xlu1 %v4276_v4, %s4220_s16  ;;  %v221_v12 = vld [vmem:[#allocation2 + $0x8] sm:$0xff]  ;;  %v4518_v51 = vcombine.low %v3676_v41, %v3677_v43  ;;  %v4532_v55 = vld [vmem:[%s6365_s0 + $0x94] ss:$8 sps:$4 sm:$0xff]   ;;  %vm356_vm9 = vcmask 261120   ;;  %vm579_vm10 = vcmask 1043456   ;;  %vm580_vm11 = vcmask 121860  }
   0xb   :  { %72 = vrot.lane.b32.xlu0 %v4298_v6, %s4220_s16  ;;  %v764_v13 = vld [vmem:[#allocation2 + $0x128] sm:$0xff]  ;;  %369 = vmatprep.subr.bf16.mxu0 %v221_v12  ;;  %1044 = vst.msk [vmem:[#allocation2 + $0x8] sm:$0xff] %vm64_vm0, %v4303_v7  ;;  %v223_v14 = vld [vmem:[#allocation2 + $0x18] sm:$0xff]  ;;  %vm5825_vm12 = vmor %vm580_vm11, %vm579_vm10 }
   0xc   :  { %799 = vmatprep.subr.bf16.mxu1 %v764_v13  ;;  %1472 = vst.msk [vmem:[#allocation2 + $0x128] sm:$0xff] %vm64_vm0, %v4308_v8  ;;  %370 = vmatpush1.bf16.msra.mxu0 %v4257_v1  ;;  %1046 = vst.msk [vmem:[#allocation2 + $0x18] sm:$0xff] %vm64_vm0, %v4318_v10  ;;  %v766_v15 = vld [vmem:[#allocation2 + $0x138] sm:$0xff] }
   0xd   :  { %800 = vmatpush1.bf16.msra.mxu1 %v4252_v0  ;;  %371 = vmatprep.subr.bf16.mxu0 %v223_v14  ;;  %1474 = vst.msk [vmem:[#allocation2 + $0x138] sm:$0xff] %vm64_vm0, %v4325_v11  ;;  %v4552_v62 = vld [vmem:[%s6365_s0 + $0xb4] ss:$8 sps:$4 sm:$0xff]  }
   0xe   :  { %625 = vrot.lane.b32.xlu1 %v4281_v5, %s4220_s16  ;;  %801 = vmatprep.subr.bf16.mxu1 %v766_v15 }
   0xf   :  { %623 = vrot.lane.b32.xlu0 %v4313_v9, %s4220_s16 }
  0x10   :  { %372 = vmatpush1.bf16.msra.mxu0 %v4298_v6 }
  0x11   :  { %802 = vmatpush1.bf16.msra.mxu1 %v4313_v9 }
  0x12   :  { %89 = vrot.lane.b32.xlu1 %v4269_v3, %s4221_s10  ;;  %v4513_v49 = vld [vmem:[#allocation2 + $0x8] sm:$0xff] }
  0x13   :  { %87 = vrot.lane.b32.xlu0 %v4257_v1, %s4221_s10  ;;  %1900 = vst.msk [vmem:[#allocation2 + $0x8] sm:$0xff] %vm64_vm0, %v4509_v46  ;;  %v4537_v58 = vld [vmem:[#allocation2 + $0x128] sm:$0xff]  ;;  %v4539_v59 = vld [vmem:[#allocation2 + $0x18] sm:$0xff] }
  0x14   :  { %2328 = vst.msk [vmem:[#allocation2 + $0x128] sm:$0xff] %vm64_vm0, %v4527_v54  ;;  %1902 = vst.msk [vmem:[#allocation2 + $0x18] sm:$0xff] %vm64_vm0, %v4532_v55 }
  0x16   :  { %639 = vrot.lane.b32.xlu1 %v4264_v2, %s4221_s10 }
  0x17   :  { %637 = vrot.lane.b32.xlu0 %v4252_v0, %s4221_s10 }
  0x1a   :  { %93 = vrot.lane.b32.xlu1 %v4276_v4, %s4221_s10 }
  0x1b   :  { %91 = vrot.lane.b32.xlu0 %v4298_v6, %s4221_s10 }
  0x1e   :  { %643 = vrot.lane.b32.xlu1 %v4281_v5, %s4221_s10 }
  0x1f   :  { %641 = vrot.lane.b32.xlu0 %v4313_v9, %s4221_s10 }
  0x22   :  { %108 = vrot.lane.b32.xlu1 %v4269_v3, %s4222_s11 }
  0x23   :  { %106 = vrot.lane.b32.xlu0 %v4257_v1, %s4222_s11 }
  0x26   :  { %657 = vrot.lane.b32.xlu1 %v4264_v2, %s4222_s11 }
  0x27   :  { %655 = vrot.lane.b32.xlu0 %v4252_v0, %s4222_s11 }
  0x2a   :  { %112 = vrot.lane.b32.xlu1 %v4276_v4, %s4222_s11 }
  0x2b   :  { %110 = vrot.lane.b32.xlu0 %v4298_v6, %s4222_s11 }
  0x2e   :  { %661 = vrot.lane.b32.xlu1 %v4281_v5, %s4222_s11 }
  0x2f   :  { %659 = vrot.lane.b32.xlu0 %v4313_v9, %s4222_s11 }
  0x32   :  { %127 = vrot.lane.b32.xlu1 %v4269_v3, %s4223_s12 }
  0x33   :  { %125 = vrot.lane.b32.xlu0 %v4257_v1, %s4223_s12 }
  0x36   :  { %675 = vrot.lane.b32.xlu1 %v4264_v2, %s4223_s12 }
  0x37   :  { %673 = vrot.lane.b32.xlu0 %v4252_v0, %s4223_s12 }
  0x3a   :  { %131 = vrot.lane.b32.xlu1 %v4276_v4, %s4223_s12 }
  0x3b   :  { %129 = vrot.lane.b32.xlu0 %v4298_v6, %s4223_s12 }
  0x3e   :  { %679 = vrot.lane.b32.xlu1 %v4281_v5, %s4223_s12 }
  0x3f   :  { %677 = vrot.lane.b32.xlu0 %v4313_v9, %s4223_s12 }
  0x42   :  { %146 = vrot.lane.b32.xlu1 %v4269_v3, %s4224_s13 }
  0x43   :  { %144 = vrot.lane.b32.xlu0 %v4257_v1, %s4224_s13 }
  0x46   :  { %693 = vrot.lane.b32.xlu1 %v4264_v2, %s4224_s13 }
  0x47   :  { %691 = vrot.lane.b32.xlu0 %v4252_v0, %s4224_s13 }
  0x4a   :  { %150 = vrot.lane.b32.xlu1 %v4276_v4, %s4224_s13 }
  0x4b   :  { %148 = vrot.lane.b32.xlu0 %v4298_v6, %s4224_s13 }
  0x4e   :  { %697 = vrot.lane.b32.xlu1 %v4281_v5, %s4224_s13 }
  0x4f   :  { %695 = vrot.lane.b32.xlu0 %v4313_v9, %s4224_s13 }
  0x52   :  { %165 = vrot.lane.b32.xlu1 %v4269_v3, %s4225_s14 }
  0x53   :  { %163 = vrot.lane.b32.xlu0 %v4257_v1, %s4225_s14 }
  0x56   :  { %711 = vrot.lane.b32.xlu1 %v4264_v2, %s4225_s14 }
  0x57   :  { %709 = vrot.lane.b32.xlu0 %v4252_v0, %s4225_s14 }
  0x5a   :  { %169 = vrot.lane.b32.xlu1 %v4276_v4, %s4225_s14 }
  0x5b   :  { %167 = vrot.lane.b32.xlu0 %v4298_v6, %s4225_s14 }
  0x5e   :  { %715 = vrot.lane.b32.xlu1 %v4281_v5, %s4225_s14 }
  0x5f   :  { %713 = vrot.lane.b32.xlu0 %v4313_v9, %s4225_s14 }
  0x62   :  { %184 = vrot.lane.b32.xlu1 %v4269_v3, %s4226_s15 }
  0x63   :  { %182 = vrot.lane.b32.xlu0 %v4257_v1, %s4226_s15 }
  0x66   :  { %729 = vrot.lane.b32.xlu1 %v4264_v2, %s4226_s15 }
  0x67   :  { %727 = vrot.lane.b32.xlu0 %v4252_v0, %s4226_s15 }
  0x6a   :  { %188 = vrot.lane.b32.xlu1 %v4276_v4, %s4226_s15 }
  0x6b   :  { %186 = vrot.lane.b32.xlu0 %v4298_v6, %s4226_s15 }
  0x6e   :  { %733 = vrot.lane.b32.xlu1 %v4281_v5, %s4226_s15 }
  0x6f   :  { %731 = vrot.lane.b32.xlu0 %v4313_v9, %s4226_s15 }
  0x72   :  { %203 = vrot.lane.b32.xlu1 %v4269_v3, %s4227_s19 }
  0x73   :  { %201 = vrot.lane.b32.xlu0 %v4257_v1, %s4227_s19  ;;  %v4556_v1 = vld [vmem:[#allocation2 + $0x138] sm:$0xff] }
  0x74   :  { %v620_v17 = vpop.permute.xlu1 %619  ;;  %2330 = vst.msk [vmem:[#allocation2 + $0x138] sm:$0xff] %vm64_vm0, %v4552_v62 }
  0x75   :  { %v69_v18 = vpop.permute.xlu0 %68 }
  0x76   :  { %747 = vrot.lane.b32.xlu1 %v4264_v2, %s4227_s19 }
  0x77   :  { %745 = vrot.lane.b32.xlu0 %v4252_v0, %s4227_s19 }
  0x78   :  { %v622_v19 = vpop.permute.xlu1 %621 }
  0x79   :  { %634 = vst.msk [vmem:[#allocation2 + $0x148] sm:$0xff] %vm64_vm0, %v622_v19  ;;  %v71_v20 = vpop.permute.xlu0 %70  ;;  %v627_v30 = vsel %vm76_vm1, %v620_v17, %v622_v19 }
  0x7a   :  { %84 = vst.msk [vmem:[#allocation2 + $0x28] sm:$0xff] %vm64_vm0, %v71_v20  ;;  %207 = vrot.lane.b32.xlu1 %v4276_v4, %s4227_s19  ;;  %v77_v33 = vsel %vm76_vm1, %v69_v18, %v71_v20 }
  0x7b   :  { %205 = vrot.lane.b32.xlu0 %v4298_v6, %s4227_s19 }
  0x7c   :  { %v75_v23 = vpop.permute.xlu1 %74 }
  0x7d   :  { %86 = vst.msk [vmem:[#allocation2 + $0x38] sm:$0xff] %vm64_vm0, %v75_v23  ;;  %v73_v24 = vpop.permute.xlu0 %72 }
  0x7e   :  { %751 = vrot.lane.b32.xlu1 %v4281_v5, %s4227_s19  ;;  %v78_v40 = vsel %vm76_vm1, %v73_v24, %v75_v23 }
  0x7f   :  { %749 = vrot.lane.b32.xlu0 %v4313_v9, %s4227_s19 }
  0x80   :  { %v626_v28 = vpop.permute.xlu1 %625  ;;  %v768_v29 = vld [vmem:[#allocation2 + $0x148] sm:$0xff] }
  0x81   :  { %636 = vst.msk [vmem:[#allocation2 + $0x158] sm:$0xff] %vm64_vm0, %v626_v28  ;;  %v624_v31 = vpop.permute.xlu0 %623  ;;  %v225_v32 = vld [vmem:[#allocation2 + $0x28] sm:$0xff]  ;;  %803 = vmatprep.subr.bf16.mxu1 %v768_v29 }
  0x82   :  { %373 = vmatprep.subr.bf16.mxu0 %v225_v32  ;;  %804 = vmatpush1.bf16.msra.mxu1 %v627_v30  ;;  %v628_v47 = vsel %vm76_vm1, %v624_v31, %v626_v28 }
  0x83   :  { %1049 = vrot.lane.b32.xlu1 %v4303_v7, %s4220_s16  ;;  %1047 = vrot.lane.b32.xlu0 %v4467_v25, %s4220_s16 }
  0x84   :  { %374 = vmatpush1.bf16.msra.mxu0 %v77_v33  ;;  %v90_v37 = vpop.permute.xlu1 %89  ;;  %v227_v38 = vld [vmem:[#allocation2 + $0x38] sm:$0xff] }
  0x85   :  { %103 = vst.msk [vmem:[#allocation2 + $0x48] sm:$0xff] %vm64_vm0, %v90_v37  ;;  %v88_v39 = vpop.permute.xlu0 %87  ;;  %375 = vmatprep.subr.bf16.mxu0 %v227_v38 }
  0x86   :  { %v96_v56 = vsel %vm95_vm2, %v88_v39, %v90_v37 }
  0x87   :  { %1477 = vrot.lane.b32.xlu1 %v4308_v8, %s4220_s16  ;;  %1475 = vrot.lane.b32.xlu0 %v4480_v34, %s4220_s16 }
  0x88   :  { %376 = vmatpush1.bf16.msra.mxu0 %v78_v40  ;;  %v640_v44 = vpop.permute.xlu1 %639  ;;  %v770_v45 = vld [vmem:[#allocation2 + $0x158] sm:$0xff] }
  0x89   :  { %652 = vst.msk [vmem:[#allocation2 + $0x168] sm:$0xff] %vm64_vm0, %v640_v44  ;;  %v638_v48 = vpop.permute.xlu0 %637  ;;  %805 = vmatprep.subr.bf16.mxu1 %v770_v45 }
  0x8a   :  { %806 = vmatpush1.bf16.msra.mxu1 %v628_v47  ;;  %v645_v63 = vsel %vm95_vm2, %v638_v48, %v640_v44 }
  0x8b   :  { %1053 = vrot.lane.b32.xlu1 %v4318_v10, %s4220_s16  ;;  %1051 = vrot.lane.b32.xlu0 %v4497_v42, %s4220_s16 }
  0x8c   :  { %v94_v52 = vpop.permute.xlu1 %93  ;;  %v229_v53 = vld [vmem:[#allocation2 + $0x48] sm:$0xff] }
  0x8d   :  { %105 = vst.msk [vmem:[#allocation2 + $0x58] sm:$0xff] %vm64_vm0, %v94_v52  ;;  %v92_v57 = vpop.permute.xlu0 %91  ;;  %377 = vmatprep.subr.bf16.mxu0 %v229_v53 }
  0x8e   :  { %378 = vmatpush1.bf16.msra.mxu0 %v96_v56  ;;  %v97_v4 = vsel %vm95_vm2, %v92_v57, %v94_v52 }
  0x8f   :  { %1481 = vrot.lane.b32.xlu1 %v4325_v11, %s4220_s16  ;;  %1479 = vrot.lane.b32.xlu0 %v4518_v51, %s4220_s16 }
  0x90   :  { %v644_v60 = vpop.permute.xlu1 %643  ;;  %v772_v61 = vld [vmem:[#allocation2 + $0x168] sm:$0xff] }
  0x91   :  { %654 = vst.msk [vmem:[#allocation2 + $0x178] sm:$0xff] %vm64_vm0, %v644_v60  ;;  %v642_v0 = vpop.permute.xlu0 %641  ;;  %807 = vmatprep.subr.bf16.mxu1 %v772_v61 }
  0x92   :  { %808 = vmatpush1.bf16.msra.mxu1 %v645_v63  ;;  %v646_v12 = vsel %vm95_vm2, %v642_v0, %v644_v60 }
  0x93   :  { %1067 = vrot.lane.b32.xlu1 %v4303_v7, %s4221_s10  ;;  %1065 = vrot.lane.b32.xlu0 %v4467_v25, %s4221_s10 }
  0x94   :  { %v109_v2 = vpop.permute.xlu1 %108  ;;  %v231_v3 = vld [vmem:[#allocation2 + $0x58] sm:$0xff] }
  0x95   :  { %122 = vst.msk [vmem:[#allocation2 + $0x68] sm:$0xff] %vm64_vm0, %v109_v2  ;;  %v107_v5 = vpop.permute.xlu0 %106  ;;  %379 = vmatprep.subr.bf16.mxu0 %v231_v3 }
  0x96   :  { %380 = vmatpush1.bf16.msra.mxu0 %v97_v4  ;;  %v115_v16 = vsel %vm114_vm3, %v107_v5, %v109_v2 }
  0x97   :  { %1495 = vrot.lane.b32.xlu1 %v4308_v8, %s4221_s10  ;;  %1493 = vrot.lane.b32.xlu0 %v4480_v34, %s4221_s10 }
  0x98   :  { %v658_v6 = vpop.permute.xlu1 %657  ;;  %v774_v9 = vld [vmem:[#allocation2 + $0x178] sm:$0xff] }
  0x99   :  { %670 = vst.msk [vmem:[#allocation2 + $0x188] sm:$0xff] %vm64_vm0, %v658_v6  ;;  %v656_v13 = vpop.permute.xlu0 %655  ;;  %809 = vmatprep.subr.bf16.mxu1 %v774_v9 }
  0x9a   :  { %810 = vmatpush1.bf16.msra.mxu1 %v646_v12  ;;  %v663_v20 = vsel %vm114_vm3, %v656_v13, %v658_v6 }
  0x9b   :  { %1071 = vrot.lane.b32.xlu1 %v4318_v10, %s4221_s10  ;;  %1069 = vrot.lane.b32.xlu0 %v4497_v42, %s4221_s10 }
  0x9c   :  { %v113_v14 = vpop.permute.xlu1 %112  ;;  %v233_v15 = vld [vmem:[#allocation2 + $0x68] sm:$0xff] }
  0x9d   :  { %124 = vst.msk [vmem:[#allocation2 + $0x78] sm:$0xff] %vm64_vm0, %v113_v14  ;;  %v111_v17 = vpop.permute.xlu0 %110  ;;  %381 = vmatprep.subr.bf16.mxu0 %v233_v15 }
  0x9e   :  { %382 = vmatpush1.bf16.msra.mxu0 %v115_v16  ;;  %v116_v24 = vsel %vm114_vm3, %v111_v17, %v113_v14 }
  0x9f   :  { %1499 = vrot.lane.b32.xlu1 %v4325_v11, %s4221_s10  ;;  %1497 = vrot.lane.b32.xlu0 %v4518_v51, %s4221_s10 }
  0xa0   :  { %v662_v18 = vpop.permute.xlu1 %661  ;;  %v776_v19 = vld [vmem:[#allocation2 + $0x188] sm:$0xff] }
  0xa1   :  { %672 = vst.msk [vmem:[#allocation2 + $0x198] sm:$0xff] %vm64_vm0, %v662_v18  ;;  %v660_v21 = vpop.permute.xlu0 %659  ;;  %811 = vmatprep.subr.bf16.mxu1 %v776_v19 }
  0xa2   :  { %812 = vmatpush1.bf16.msra.mxu1 %v663_v20  ;;  %v664_v29 = vsel %vm114_vm3, %v660_v21, %v662_v18 }
  0xa3   :  { %1085 = vrot.lane.b32.xlu1 %v4303_v7, %s4222_s11  ;;  %1083 = vrot.lane.b32.xlu0 %v4467_v25, %s4222_s11 }
  0xa4   :  { %v128_v22 = vpop.permute.xlu1 %127  ;;  %v235_v23 = vld [vmem:[#allocation2 + $0x78] sm:$0xff] }
  0xa5   :  { %141 = vst.msk [vmem:[#allocation2 + $0x88] sm:$0xff] %vm64_vm0, %v128_v22  ;;  %v126_v26 = vpop.permute.xlu0 %125  ;;  %383 = vmatprep.subr.bf16.mxu0 %v235_v23 }
  0xa6   :  { %384 = vmatpush1.bf16.msra.mxu0 %v116_v24  ;;  %v134_v33 = vsel %vm133_vm4, %v126_v26, %v128_v22 }
  0xa7   :  { %1513 = vrot.lane.b32.xlu1 %v4308_v8, %s4222_s11  ;;  %1511 = vrot.lane.b32.xlu0 %v4480_v34, %s4222_s11 }
  0xa8   :  { %v676_v27 = vpop.permute.xlu1 %675  ;;  %v778_v28 = vld [vmem:[#allocation2 + $0x198] sm:$0xff] }
  0xa9   :  { %688 = vst.msk [vmem:[#allocation2 + $0x1a8] sm:$0xff] %vm64_vm0, %v676_v27  ;;  %v674_v30 = vpop.permute.xlu0 %673  ;;  %813 = vmatprep.subr.bf16.mxu1 %v778_v28 }
  0xaa   :  { %814 = vmatpush1.bf16.msra.mxu1 %v664_v29  ;;  %v681_v38 = vsel %vm133_vm4, %v674_v30, %v676_v27 }
  0xab   :  { %1089 = vrot.lane.b32.xlu1 %v4318_v10, %s4222_s11  ;;  %1087 = vrot.lane.b32.xlu0 %v4497_v42, %s4222_s11 }
  0xac   :  { %v132_v31 = vpop.permute.xlu1 %131  ;;  %v237_v32 = vld [vmem:[#allocation2 + $0x88] sm:$0xff] }
  0xad   :  { %143 = vst.msk [vmem:[#allocation2 + $0x98] sm:$0xff] %vm64_vm0, %v132_v31  ;;  %v130_v35 = vpop.permute.xlu0 %129  ;;  %385 = vmatprep.subr.bf16.mxu0 %v237_v32 }
  0xae   :  { %386 = vmatpush1.bf16.msra.mxu0 %v134_v33  ;;  %v135_v43 = vsel %vm133_vm4, %v130_v35, %v132_v31 }
  0xaf   :  { %1517 = vrot.lane.b32.xlu1 %v4325_v11, %s4222_s11  ;;  %1515 = vrot.lane.b32.xlu0 %v4518_v51, %s4222_s11 }
  0xb0   :  { %v680_v36 = vpop.permute.xlu1 %679  ;;  %v780_v37 = vld [vmem:[#allocation2 + $0x1a8] sm:$0xff] }
  0xb1   :  { %690 = vst.msk [vmem:[#allocation2 + $0x1b8] sm:$0xff] %vm64_vm0, %v680_v36  ;;  %v678_v39 = vpop.permute.xlu0 %677  ;;  %815 = vmatprep.subr.bf16.mxu1 %v780_v37 }
  0xb2   :  { %816 = vmatpush1.bf16.msra.mxu1 %v681_v38  ;;  %v682_v48 = vsel %vm133_vm4, %v678_v39, %v680_v36 }
  0xb3   :  { %1103 = vrot.lane.b32.xlu1 %v4303_v7, %s4223_s12  ;;  %1101 = vrot.lane.b32.xlu0 %v4467_v25, %s4223_s12 }
  0xb4   :  { %v147_v40 = vpop.permute.xlu1 %146  ;;  %v239_v41 = vld [vmem:[#allocation2 + $0x98] sm:$0xff] }
  0xb5   :  { %160 = vst.msk [vmem:[#allocation2 + $0xa8] sm:$0xff] %vm64_vm0, %v147_v40  ;;  %v145_v44 = vpop.permute.xlu0 %144  ;;  %387 = vmatprep.subr.bf16.mxu0 %v239_v41  ;;  %v15_v41 = vld [vmem:[%s6366_s1] sm:$0xff] }
  0xb6   :  { %388 = vmatpush1.bf16.msra.mxu0 %v135_v43  ;;  %v153_v57 = vsel %vm152_vm5, %v145_v44, %v147_v40  ;;  %v17_v43 = vld [vmem:[%s6366_s1 + $0xc] sm:$0xff] }
  0xb7   :  { %1531 = vrot.lane.b32.xlu1 %v4308_v8, %s4223_s12  ;;  %1529 = vrot.lane.b32.xlu0 %v4480_v34, %s4223_s12 }
  0xb8   :  { %v694_v45 = vpop.permute.xlu1 %693  ;;  %v782_v47 = vld [vmem:[#allocation2 + $0x1b8] sm:$0xff] }
  0xb9   :  { %706 = vst.msk [vmem:[#allocation2 + $0x1c8] sm:$0xff] %vm64_vm0, %v694_v45  ;;  %v692_v52 = vpop.permute.xlu0 %691  ;;  %817 = vmatprep.subr.bf16.mxu1 %v782_v47 }
  0xba   :  { %818 = vmatpush1.bf16.msra.mxu1 %v682_v48  ;;  %v699_v0 = vsel %vm152_vm5, %v692_v52, %v694_v45  ;;  %v4692_v52 = vcombine.low %v15_v41, %v17_v43  ;;  %v4896_v41 = vld [vmem:[%s6365_s0 + $0xe4] ss:$8 sps:$4 sm:$0xff]  }
  0xbb   :  { %1107 = vrot.lane.b32.xlu1 %v4318_v10, %s4223_s12  ;;  %1105 = vrot.lane.b32.xlu0 %v4497_v42, %s4223_s12  ;;  %v4908_v43 = vld [vmem:[#allocation2 + $0x128] sm:$0xff] }
  0xbc   :  { %v151_v53 = vpop.permute.xlu1 %150  ;;  %v241_v56 = vld [vmem:[#allocation2 + $0xa8] sm:$0xff]  ;;  %3184 = vst.msk [vmem:[#allocation2 + $0x128] sm:$0xff] %vm64_vm0, %v4896_v41 }
  0xbd   :  { %162 = vst.msk [vmem:[#allocation2 + $0xb8] sm:$0xff] %vm64_vm0, %v151_v53  ;;  %v149_v60 = vpop.permute.xlu0 %148  ;;  %389 = vmatprep.subr.bf16.mxu0 %v241_v56 }
  0xbe   :  { %390 = vmatpush1.bf16.msra.mxu0 %v153_v57  ;;  %v154_v5 = vsel %vm152_vm5, %v149_v60, %v151_v53  ;;  %v4697_v53 = vld [vmem:[%s6366_s1 + $0x1c] ss:$12 sps:$4 sm:$0xff]  }
  0xbf   :  { %1535 = vrot.lane.b32.xlu1 %v4325_v11, %s4223_s12  ;;  %1533 = vrot.lane.b32.xlu0 %v4518_v51, %s4223_s12 }
  0xc0   :  { %v698_v61 = vpop.permute.xlu1 %697  ;;  %v784_v63 = vld [vmem:[#allocation2 + $0x1c8] sm:$0xff] }
  0xc1   :  { %708 = vst.msk [vmem:[#allocation2 + $0x1d8] sm:$0xff] %vm64_vm0, %v698_v61  ;;  %v696_v2 = vpop.permute.xlu0 %695  ;;  %819 = vmatprep.subr.bf16.mxu1 %v784_v63 }
  0xc2   :  { %820 = vmatpush1.bf16.msra.mxu1 %v699_v0  ;;  %v700_v13 = vsel %vm152_vm5, %v696_v2, %v698_v61 }
  0xc3   :  { %1121 = vrot.lane.b32.xlu1 %v4303_v7, %s4224_s13  ;;  %1119 = vrot.lane.b32.xlu0 %v4467_v25, %s4224_s13 }
  0xc4   :  { %v166_v3 = vpop.permute.xlu1 %165  ;;  %v243_v4 = vld [vmem:[#allocation2 + $0xb8] sm:$0xff] }
  0xc5   :  { %179 = vst.msk [vmem:[#allocation2 + $0xc8] sm:$0xff] %vm64_vm0, %v166_v3  ;;  %v164_v6 = vpop.permute.xlu0 %163  ;;  %391 = vmatprep.subr.bf16.mxu0 %v243_v4  ;;  %v4717_v4 = vld [vmem:[%s6366_s1 + $0x18] ss:$12 sps:$4 sm:$0xff]  }
  0xc6   :  { %392 = vmatpush1.bf16.msra.mxu0 %v154_v5  ;;  %v172_v17 = vsel %vm171_vm6, %v164_v6, %v166_v3  ;;  %v4723_v5 = vld [vmem:[%s6366_s1 + $0x34] ss:$12 sps:$4 sm:$0xff]  }
  0xc7   :  { %1549 = vrot.lane.b32.xlu1 %v4308_v8, %s4224_s13  ;;  %1547 = vrot.lane.b32.xlu0 %v4480_v34, %s4224_s13 }
  0xc8   :  { %v712_v9 = vpop.permute.xlu1 %711  ;;  %v786_v12 = vld [vmem:[#allocation2 + $0x1d8] sm:$0xff] }
  0xc9   :  { %724 = vst.msk [vmem:[#allocation2 + $0x1e8] sm:$0xff] %vm64_vm0, %v712_v9  ;;  %v710_v14 = vpop.permute.xlu0 %709  ;;  %821 = vmatprep.subr.bf16.mxu1 %v786_v12 }
  0xca   :  { %822 = vmatpush1.bf16.msra.mxu1 %v700_v13  ;;  %v717_v21 = vsel %vm171_vm6, %v710_v14, %v712_v9 }
  0xcb   :  { %1125 = vrot.lane.b32.xlu1 %v4318_v10, %s4224_s13  ;;  %1123 = vrot.lane.b32.xlu0 %v4497_v42, %s4224_s13 }
  0xcc   :  { %v170_v15 = vpop.permute.xlu1 %169  ;;  %v245_v16 = vld [vmem:[#allocation2 + $0xc8] sm:$0xff] }
  0xcd   :  { %181 = vst.msk [vmem:[#allocation2 + $0xd8] sm:$0xff] %vm64_vm0, %v170_v15  ;;  %v168_v18 = vpop.permute.xlu0 %167  ;;  %393 = vmatprep.subr.bf16.mxu0 %v245_v16 }
  0xce   :  { %394 = vmatpush1.bf16.msra.mxu0 %v172_v17  ;;  %v173_v26 = vsel %vm171_vm6, %v168_v18, %v170_v15  ;;  %v4746_v18 = vld [vmem:[%s6366_s1 + $0x30] ss:$12 sps:$4 sm:$0xff]  }
  0xcf   :  { %1553 = vrot.lane.b32.xlu1 %v4325_v11, %s4224_s13  ;;  %1551 = vrot.lane.b32.xlu0 %v4518_v51, %s4224_s13 }
  0xd0   :  { %v716_v19 = vpop.permute.xlu1 %715  ;;  %v788_v20 = vld [vmem:[#allocation2 + $0x1e8] sm:$0xff] }
  0xd1   :  { %726 = vst.msk [vmem:[#allocation2 + $0x1f8] sm:$0xff] %vm64_vm0, %v716_v19  ;;  %v714_v22 = vpop.permute.xlu0 %713  ;;  %823 = vmatprep.subr.bf16.mxu1 %v788_v20 }
  0xd2   :  { %824 = vmatpush1.bf16.msra.mxu1 %v717_v21  ;;  %v718_v30 = vsel %vm171_vm6, %v714_v22, %v716_v19 }
  0xd3   :  { %1139 = vrot.lane.b32.xlu1 %v4303_v7, %s4225_s14  ;;  %1137 = vrot.lane.b32.xlu0 %v4467_v25, %s4225_s14 }
  0xd4   :  { %v185_v23 = vpop.permute.xlu1 %184  ;;  %v247_v24 = vld [vmem:[#allocation2 + $0xd8] sm:$0xff] }
  0xd5   :  { %198 = vst.msk [vmem:[#allocation2 + $0xe8] sm:$0xff] %vm64_vm0, %v185_v23  ;;  %v183_v27 = vpop.permute.xlu0 %182  ;;  %395 = vmatprep.subr.bf16.mxu0 %v247_v24 }
  0xd6   :  { %396 = vmatpush1.bf16.msra.mxu0 %v173_v26  ;;  %v191_v35 = vsel %vm190_vm7, %v183_v27, %v185_v23  ;;  %v4783_v23 = vld [vmem:[%s6366_s1 + $0x48] ss:$12 sps:$4 sm:$0xff]  }
  0xd7   :  { %1567 = vrot.lane.b32.xlu1 %v4308_v8, %s4225_s14  ;;  %1565 = vrot.lane.b32.xlu0 %v4480_v34, %s4225_s14  ;;  %v4817_v26 = vld [vmem:[%s6365_s0 + $0xa0] ss:$8 sps:$4 sm:$0xff]  }
  0xd8   :  { %v730_v28 = vpop.permute.xlu1 %729  ;;  %v790_v29 = vld [vmem:[#allocation2 + $0x1f8] sm:$0xff] }
  0xd9   :  { %742 = vst.msk [vmem:[#allocation2 + $0x208] sm:$0xff] %vm64_vm0, %v730_v28  ;;  %v728_v31 = vpop.permute.xlu0 %727  ;;  %825 = vmatprep.subr.bf16.mxu1 %v790_v29  ;;  %v4828_v29 = vld [vmem:[%s6366_s1 + $0x8] ss:$12 sps:$4 sm:$0xff]  }
  0xda   :  { %826 = vmatpush1.bf16.msra.mxu1 %v718_v30  ;;  %v735_v39 = vsel %vm190_vm7, %v728_v31, %v730_v28  ;;  %v4836_v30 = vld [vmem:[%s6365_s0 + $0xe0] ss:$8 sps:$4 sm:$0xff]   ;;  %v4845_v31 = vld [vmem:[%s6365_s0 + $0x90] ss:$8 sps:$4 sm:$0xff]  }
  0xdb   :  { %1143 = vrot.lane.b32.xlu1 %v4318_v10, %s4225_s14  ;;  %1141 = vrot.lane.b32.xlu0 %v4497_v42, %s4225_s14  ;;  %3183 = vst [vmem:[#allocation2 + $0x120] sm:$0xff] %v4836_v30 }
  0xdc   :  { %v189_v32 = vpop.permute.xlu1 %188  ;;  %v249_v33 = vld [vmem:[#allocation2 + $0xe8] sm:$0xff] }
  0xdd   :  { %200 = vst.msk [vmem:[#allocation2 + $0xf8] sm:$0xff] %vm64_vm0, %v189_v32  ;;  %v187_v36 = vpop.permute.xlu0 %186  ;;  %397 = vmatprep.subr.bf16.mxu0 %v249_v33 }
  0xde   :  { %398 = vmatpush1.bf16.msra.mxu0 %v191_v35  ;;  %v192_v47 = vsel %vm190_vm7, %v187_v36, %v189_v32  ;;  %v4850_v32 = vld [vmem:[%s6365_s0 + $0xc4] ss:$8 sps:$4 sm:$0xff]  }
  0xdf   :  { %1571 = vrot.lane.b32.xlu1 %v4325_v11, %s4225_s14  ;;  %1569 = vrot.lane.b32.xlu0 %v4518_v51, %s4225_s14  ;;  %v4859_v36 = vld [vmem:[#allocation2 + $0x8] sm:$0xff] }
  0xe0   :  { %v734_v37 = vpop.permute.xlu1 %733  ;;  %v792_v38 = vld [vmem:[#allocation2 + $0x208] sm:$0xff]  ;;  %2756 = vst.msk [vmem:[#allocation2 + $0x8] sm:$0xff] %vm64_vm0, %v4850_v32 }
  0xe1   :  { %744 = vst.msk [vmem:[#allocation2 + $0x218] sm:$0xff] %vm64_vm0, %v734_v37  ;;  %v732_v40 = vpop.permute.xlu0 %731  ;;  %827 = vmatprep.subr.bf16.mxu1 %v792_v38 }
  0xe2   :  { %828 = vmatpush1.bf16.msra.mxu1 %v735_v39  ;;  %v736_v60 = vsel %vm190_vm7, %v732_v40, %v734_v37  ;;  %v4874_v37 = vld [vmem:[%s6365_s0 + $0xb0] ss:$8 sps:$4 sm:$0xff]   ;;  %v4891_v40 = vld [vmem:[%s6366_s1 + $0x20] ss:$12 sps:$4 sm:$0xff]  }
  0xe3   :  { %1157 = vrot.lane.b32.xlu1 %v4303_v7, %s4226_s15  ;;  %1155 = vrot.lane.b32.xlu0 %v4467_v25, %s4226_s15 }
  0xe4   :  { %v204_v44 = vpop.permute.xlu1 %203  ;;  %v251_v45 = vld [vmem:[#allocation2 + $0xf8] sm:$0xff] }
  0xe5   :  { %217 = vst.msk [vmem:[#allocation2 + $0x108] sm:$0xff] %vm64_vm0, %v204_v44  ;;  %v202_v48 = vpop.permute.xlu0 %201  ;;  %399 = vmatprep.subr.bf16.mxu0 %v251_v45 }
  0xe6   :  { %400 = vmatpush1.bf16.msra.mxu0 %v192_v47  ;;  %v210_v2 = vsel %vm209_vm8, %v202_v48, %v204_v44  ;;  %v4910_v44 = vld [vmem:[#allocation2 + $0x18] sm:$0xff] }
  0xe7   :  { %1585 = vrot.lane.b32.xlu1 %v4308_v8, %s4226_s15  ;;  %1583 = vrot.lane.b32.xlu0 %v4480_v34, %s4226_s15 }
  0xe8   :  { %v748_v56 = vpop.permute.xlu1 %747  ;;  %v794_v57 = vld [vmem:[#allocation2 + $0x218] sm:$0xff] }
  0xe9   :  { %760 = vst.msk [vmem:[#allocation2 + $0x228] sm:$0xff] %vm64_vm0, %v748_v56  ;;  %v746_v61 = vpop.permute.xlu0 %745  ;;  %402 = vmatmul.mubr.bf16.vlgmr.msra.gmra.mrb[0].mxu0 %v4692_v52  ;;  %829 = vmatprep.subr.bf16.mxu1 %v794_v57 }
  0xea   :  { %830 = vmatpush1.bf16.msra.mxu1 %v736_v60  ;;  %411 = vmatprep.mubr.bf16.mxu0 %v4697_v53  ;;  %v753_v12 = vsel %vm209_vm8, %v746_v61, %v748_v56  ;;  %v4939_v56 = vld [vmem:[%s6365_s0 + $0xf4] ss:$8 sps:$4 sm:$0xff]  }
  0xeb   :  { %1161 = vrot.lane.b32.xlu1 %v4318_v10, %s4226_s15  ;;  %1159 = vrot.lane.b32.xlu0 %v4497_v42, %s4226_s15 }
  0xec   :  { %v208_v63 = vpop.permute.xlu1 %207  ;;  %v253_v0 = vld [vmem:[#allocation2 + $0x108] sm:$0xff] }
  0xed   :  { %219 = vst.msk [vmem:[#allocation2 + $0x118] sm:$0xff] %vm64_vm0, %v208_v63  ;;  %v206_v3 = vpop.permute.xlu0 %205  ;;  %442 = vmatprep.subr.bf16.mxu0 %v253_v0  ;;  %832 = vmatmul.mubr.bf16.vlgmr.msra.gmra.mrb[0].mxu1 %v4692_v52 }
  0xee   :  { %443 = vmatpush1.bf16.msra.mxu0 %v210_v2  ;;  %841 = vmatprep.mubr.bf16.mxu1 %v4697_v53  ;;  %v211_v15 = vsel %vm209_vm8, %v206_v3, %v208_v63  ;;  %v4965_v2 = vld [vmem:[%s6366_s1 + $0x38] ss:$12 sps:$4 sm:$0xff]  }
  0xef   :  { %1589 = vrot.lane.b32.xlu1 %v4325_v11, %s4226_s15  ;;  %1587 = vrot.lane.b32.xlu0 %v4518_v51, %s4226_s15 }
  0xf0   :  { %v752_v6 = vpop.permute.xlu1 %751  ;;  %v796_v9 = vld [vmem:[#allocation2 + $0x228] sm:$0xff] }
  0xf1   :  { %762 = vst.msk [vmem:[#allocation2 + $0x238] sm:$0xff] %vm64_vm0, %v752_v6  ;;  %v750_v13 = vpop.permute.xlu0 %749  ;;  %412 = vmatmul.mubr.bf16.gmra.mrb[4].mxu0 %v4717_v4  ;;  %872 = vmatprep.subr.bf16.mxu1 %v796_v9 }
  0xf2   :  { %873 = vmatpush1.bf16.msra.mxu1 %v753_v12  ;;  %421 = vmatprep.mubr.bf16.mxu0 %v4723_v5  ;;  %v754_v20 = vsel %vm209_vm8, %v750_v13, %v752_v6 }
  0xf3   :  { %1175 = vrot.lane.b32.xlu1 %v4303_v7, %s4227_s19  ;;  %1173 = vrot.lane.b32.xlu0 %v4467_v25, %s4227_s19  ;;  %v4754_v7 = vld [vmem:[%s6366_s1 + $0x4c] ss:$12 sps:$4 sm:$0xff]  }
  0xf4   :  { %v255_v14 = vld [vmem:[#allocation2 + $0x118] sm:$0xff] }
  0xf5   :  { %v4738_v16 = vpop.permute.xlu1 %1049  ;;  %v4740_v17 = vpop.permute.xlu0 %1047  ;;  %444 = vmatprep.subr.bf16.mxu0 %v255_v14  ;;  %842 = vmatmul.mubr.bf16.gmra.mrb[4].mxu1 %v4717_v4 }
  0xf6   :  { %1062 = vst.msk [vmem:[#allocation2 + $0x28] sm:$0xff] %vm64_vm0, %v4738_v16  ;;  %445 = vmatpush1.bf16.msra.mxu0 %v211_v15  ;;  %851 = vmatprep.mubr.bf16.mxu1 %v4723_v5 }
  0xf7   :  { %1603 = vrot.lane.b32.xlu1 %v4308_v8, %s4227_s19  ;;  %1601 = vrot.lane.b32.xlu0 %v4480_v34, %s4227_s19 }
  0xf8   :  { %v798_v19 = vld [vmem:[#allocation2 + $0x238] sm:$0xff]  ;;  %1227 = vmatprep.subr.bf16.mxu0 %v4513_v49 }
  0xf9   :  { %v4762_v21 = vpop.permute.xlu1 %1477  ;;  %v4764_v22 = vpop.permute.xlu0 %1475  ;;  %422 = vmatmul.mubr.bf16.gmra.mrb[8].mxu0 %v4746_v18  ;;  %874 = vmatprep.subr.bf16.mxu1 %v798_v19 }
  0xfa   :  { %1490 = vst.msk [vmem:[#allocation2 + $0x148] sm:$0xff] %vm64_vm0, %v4762_v21  ;;  %875 = vmatpush1.bf16.msra.mxu1 %v754_v20  ;;  %431 = vmatprep.mubr.bf16.mxu0 %v4754_v7  ;;  %v1483_v61 = vsel %vm76_vm1, %v4764_v22, %v4762_v21 }
  0xfb   :  { %1179 = vrot.lane.b32.xlu1 %v4318_v10, %s4227_s19  ;;  %1177 = vrot.lane.b32.xlu0 %v4497_v42, %s4227_s19  ;;  %v4795_v10 = vld [vmem:[%s6365_s0 + $0x80] ss:$8 sps:$4 sm:$0xff]  }
  0xfc   :  { %1655 = vmatprep.subr.bf16.mxu1 %v4537_v58 }
  0xfd   :  { %v4775_v8 = vpop.permute.xlu1 %1053  ;;  %v4777_v49 = vpop.permute.xlu0 %1051  ;;  %852 = vmatmul.mubr.bf16.gmra.mrb[8].mxu1 %v4746_v18  ;;  %v1196_v45 = vld [vmem:[#allocation2 + $0x28] sm:$0xff] }
  0xfe   :  { %1064 = vst.msk [vmem:[#allocation2 + $0x38] sm:$0xff] %vm64_vm0, %v4775_v8  ;;  %861 = vmatprep.mubr.bf16.mxu1 %v4754_v7 }
  0xff   :  { %1607 = vrot.lane.b32.xlu1 %v4325_v11, %s4227_s19  ;;  %1605 = vrot.lane.b32.xlu0 %v4518_v51, %s4227_s19  ;;  %v4808_v11 = vld [vmem:[%s6365_s0 + $0xc0] ss:$8 sps:$4 sm:$0xff]  }
 0x100   :  { %2755 = vst [vmem:[#allocation2] sm:$0xff] %v4808_v11 }
 0x101   :  { %v4797_v58 = vpop.permute.xlu1 %1481  ;;  %v4799_v24 = vpop.permute.xlu0 %1479  ;;  %432 = vmatmul.mubr.bf16.gmra.mrb[12].mxu0 %v4783_v23  ;;  %v1624_v60 = vld [vmem:[#allocation2 + $0x148] sm:$0xff] }
 0x102   :  { %1492 = vst.msk [vmem:[#allocation2 + $0x158] sm:$0xff] %vm64_vm0, %v4797_v58  ;;  %474 = vmatprep.mubr.bf16.mxu0 %v6369_v50  ;;  %v1484_v9 = vsel %vm76_vm1, %v4799_v24, %v4797_v58 }
 0x103   :  { %1905 = vrot.lane.b32.xlu1 %v4509_v46, %s4220_s16  ;;  %1903 = vrot.lane.b32.xlu0 %v4795_v10, %s4220_s16 }
 0x105   :  { %v4820_v27 = vpop.permute.xlu1 %1067  ;;  %v4822_v28 = vpop.permute.xlu0 %1065  ;;  %862 = vmatmul.mubr.bf16.gmra.mrb[12].mxu1 %v4783_v23  ;;  %v1198_v57 = vld [vmem:[#allocation2 + $0x38] sm:$0xff] }
 0x106   :  { %1080 = vst.msk [vmem:[#allocation2 + $0x48] sm:$0xff] %vm64_vm0, %v4820_v27  ;;  %904 = vmatprep.mubr.bf16.mxu1 %v6369_v50  ;;  %v1073_v12 = vsel %vm95_vm2, %v4822_v28, %v4820_v27 }
 0x107   :  { %2333 = vrot.lane.b32.xlu1 %v4527_v54, %s4220_s16  ;;  %2331 = vrot.lane.b32.xlu0 %v4817_v26, %s4220_s16 }
 0x109   :  { %v4853_v33 = vpop.permute.xlu1 %1495  ;;  %v4855_v35 = vpop.permute.xlu0 %1493  ;;  %3606 = vmatmul.mubr.msk.bf16.vlgmr.msra.gmra.mrb[0].mxu0 %vm356_vm9, %v4828_v29  ;;  %v1626_v6 = vld [vmem:[#allocation2 + $0x158] sm:$0xff] }
 0x10a   :  { %1508 = vst.msk [vmem:[#allocation2 + $0x168] sm:$0xff] %vm64_vm0, %v4853_v33  ;;  %1228 = vmatpush1.bf16.msra.mxu0 %v4467_v25  ;;  %484 = vmatprep.mubr.bf16.mxu0 %v6369_v50  ;;  %v4879_v25 = vld [vmem:[%s6365_s0 + $0xd0] ss:$8 sps:$4 sm:$0xff]  }
 0x10b   :  { %1909 = vrot.lane.b32.xlu1 %v4532_v55, %s4220_s16  ;;  %1907 = vrot.lane.b32.xlu0 %v4845_v31, %s4220_s16  ;;  %2757 = vst [vmem:[#allocation2 + $0x10] sm:$0xff] %v4879_v25 }
 0x10c   :  { %1229 = vmatprep.subr.bf16.mxu0 %v4539_v59  ;;  %v4901_v59 = vld [vmem:[%s6365_s0 + $0xd4] ss:$8 sps:$4 sm:$0xff]  }
 0x10d   :  { %v4882_v38 = vpop.permute.xlu1 %1071  ;;  %v4884_v39 = vpop.permute.xlu0 %1069  ;;  %3626 = vmatmul.mubr.msk.bf16.vlgmr.msra.gmra.mrb[0].mxu1 %vm356_vm9, %v4828_v29  ;;  %2758 = vst.msk [vmem:[#allocation2 + $0x18] sm:$0xff] %vm64_vm0, %v4901_v59  ;;  %v1200_v3 = vld [vmem:[#allocation2 + $0x48] sm:$0xff] }
 0x10e   :  { %1082 = vst.msk [vmem:[#allocation2 + $0x58] sm:$0xff] %vm64_vm0, %v4882_v38  ;;  %1230 = vmatpush1.bf16.msra.mxu0 %v4497_v42  ;;  %1656 = vmatpush1.bf16.msra.mxu1 %v4480_v34  ;;  %v4923_v34 = vld [vmem:[%s6365_s0 + $0xf0] ss:$8 sps:$4 sm:$0xff]   ;;  %v1055_v42 = vsel %vm76_vm1, %v4740_v17, %v4738_v16  ;;  %v1501_v17 = vsel %vm95_vm2, %v4855_v35, %v4853_v33 }
 0x10f   :  { %2337 = vrot.lane.b32.xlu1 %v4552_v62, %s4220_s16  ;;  %2335 = vrot.lane.b32.xlu0 %v4874_v37, %s4220_s16  ;;  %3185 = vst [vmem:[#allocation2 + $0x130] sm:$0xff] %v4923_v34  ;;  %v1074_v19 = vsel %vm95_vm2, %v4884_v39, %v4882_v38  ;;  %v5020_v35 = vld [vmem:[%s6366_s1 + $0x4] ss:$12 sps:$4 sm:$0xff]  }
 0x110   :  { %1231 = vmatprep.subr.bf16.mxu0 %v1196_v45  ;;  %1657 = vmatprep.subr.bf16.mxu1 %v4556_v1  ;;  %v4945_v1 = vld [vmem:[#allocation2 + $0x138] sm:$0xff] }
 0x111   :  { %v4929_v47 = vpop.permute.xlu1 %1499  ;;  %v4931_v48 = vpop.permute.xlu0 %1497  ;;  %3607 = vmatmul.mubr.msk.bf16.gmra.mrb[4].mxu0 %vm356_vm9, %v4891_v40  ;;  %914 = vmatprep.mubr.bf16.mxu1 %v6369_v50  ;;  %3186 = vst.msk [vmem:[#allocation2 + $0x138] sm:$0xff] %vm64_vm0, %v4939_v56  ;;  %v1628_v16 = vld [vmem:[#allocation2 + $0x168] sm:$0xff] }
 0x112   :  { %1510 = vst.msk [vmem:[#allocation2 + $0x178] sm:$0xff] %vm64_vm0, %v4929_v47  ;;  %1232 = vmatpush1.bf16.msra.mxu0 %v1055_v42  ;;  %1658 = vmatpush1.bf16.msra.mxu1 %v4518_v51  ;;  %v1056_v51 = vsel %vm76_vm1, %v4777_v49, %v4775_v8  ;;  %v4998_v8 = vld [vmem:[%s6366_s1 + $0x50] ss:$12 sps:$4 sm:$0xff]   ;;  %v1502_v58 = vsel %vm95_vm2, %v4931_v48, %v4929_v47 }
 0x113   :  { %1923 = vrot.lane.b32.xlu1 %v4509_v46, %s4221_s10  ;;  %1921 = vrot.lane.b32.xlu0 %v4795_v10, %s4221_s10 }
 0x114   :  { %1233 = vmatprep.subr.bf16.mxu0 %v1198_v57  ;;  %1659 = vmatprep.subr.bf16.mxu1 %v1624_v60 }
 0x115   :  { %v1086_v63 = vpop.permute.xlu1 %1085  ;;  %v1084_v0 = vpop.permute.xlu0 %1083  ;;  %3627 = vmatmul.mubr.msk.bf16.gmra.mrb[4].mxu1 %vm356_vm9, %v4891_v40  ;;  %494 = vmatprep.mubr.bf16.mxu0 %v6369_v50  ;;  %v1202_v15 = vld [vmem:[#allocation2 + $0x58] sm:$0xff] }
 0x116   :  { %1098 = vst.msk [vmem:[#allocation2 + $0x68] sm:$0xff] %vm64_vm0, %v1086_v63  ;;  %1234 = vmatpush1.bf16.msra.mxu0 %v1056_v51  ;;  %1660 = vmatpush1.bf16.msra.mxu1 %v1483_v61  ;;  %v1091_v24 = vsel %vm114_vm3, %v1084_v0, %v1086_v63 }
 0x117   :  { %2351 = vrot.lane.b32.xlu1 %v4527_v54, %s4221_s10  ;;  %2349 = vrot.lane.b32.xlu0 %v4817_v26, %s4221_s10 }
 0x118   :  { %1235 = vmatprep.subr.bf16.mxu0 %v1200_v3  ;;  %1661 = vmatprep.subr.bf16.mxu1 %v1626_v6 }
 0x119   :  { %v1514_v13 = vpop.permute.xlu1 %1513  ;;  %v1512_v14 = vpop.permute.xlu0 %1511  ;;  %3608 = vmatmul.mubr.msk.bf16.gmra.mrb[8].mxu0 %vm356_vm9, %v4965_v2  ;;  %924 = vmatprep.mubr.bf16.mxu1 %v6369_v50  ;;  %v1630_v49 = vld [vmem:[#allocation2 + $0x178] sm:$0xff] }
 0x11a   :  { %1526 = vst.msk [vmem:[#allocation2 + $0x188] sm:$0xff] %vm64_vm0, %v1514_v13  ;;  %1236 = vmatpush1.bf16.msra.mxu0 %v1073_v12  ;;  %1662 = vmatpush1.bf16.msra.mxu1 %v1484_v9  ;;  %v1519_v38 = vsel %vm114_vm3, %v1512_v14, %v1514_v13 }
 0x11b   :  { %1927 = vrot.lane.b32.xlu1 %v4532_v55, %s4221_s10  ;;  %1925 = vrot.lane.b32.xlu0 %v4845_v31, %s4221_s10 }
 0x11c   :  { %1237 = vmatprep.subr.bf16.mxu0 %v1202_v15  ;;  %1663 = vmatprep.subr.bf16.mxu1 %v1628_v16 }
 0x11d   :  { %v1090_v20 = vpop.permute.xlu1 %1089  ;;  %v1088_v21 = vpop.permute.xlu0 %1087  ;;  %v1204_v22 = vld [vmem:[#allocation2 + $0x68] sm:$0xff]  ;;  %3628 = vmatmul.mubr.msk.bf16.gmra.mrb[8].mxu1 %vm356_vm9, %v4965_v2  ;;  %504 = vmatprep.mubr.bf16.mxu0 %v6369_v50 }
 0x11e   :  { %1100 = vst.msk [vmem:[#allocation2 + $0x78] sm:$0xff] %vm64_vm0, %v1090_v20  ;;  %1238 = vmatpush1.bf16.msra.mxu0 %v1074_v19  ;;  %1664 = vmatpush1.bf16.msra.mxu1 %v1501_v17  ;;  %v1092_v47 = vsel %vm114_vm3, %v1088_v21, %v1090_v20 }
 0x11f   :  { %2355 = vrot.lane.b32.xlu1 %v4552_v62, %s4221_s10  ;;  %2353 = vrot.lane.b32.xlu0 %v4874_v37, %s4221_s10 }
 0x120   :  { %1239 = vmatprep.subr.bf16.mxu0 %v1204_v22  ;;  %1665 = vmatprep.subr.bf16.mxu1 %v1630_v49 }
 0x121   :  { %v1518_v27 = vpop.permute.xlu1 %1517  ;;  %v1516_v28 = vpop.permute.xlu0 %1515  ;;  %v1632_v33 = vld [vmem:[#allocation2 + $0x188] sm:$0xff]  ;;  %3609 = vmatmul.mubr.msk.bf16.gmra.mrb[12].mxu0 %vm356_vm9, %v4998_v8  ;;  %934 = vmatprep.mubr.bf16.mxu1 %v6369_v50 }
 0x122   :  { %1528 = vst.msk [vmem:[#allocation2 + $0x198] sm:$0xff] %vm64_vm0, %v1518_v27  ;;  %1240 = vmatpush1.bf16.msra.mxu0 %v1091_v24  ;;  %1666 = vmatpush1.bf16.msra.mxu1 %v1502_v58  ;;  %v1520_v61 = vsel %vm114_vm3, %v1516_v28, %v1518_v27 }
 0x123   :  { %1941 = vrot.lane.b32.xlu1 %v4509_v46, %s4222_s11  ;;  %1939 = vrot.lane.b32.xlu0 %v4795_v10, %s4222_s11 }
 0x124   :  { %1667 = vmatprep.subr.bf16.mxu1 %v1632_v33  ;;  %1259 = vmatprep.mubr.bf16.mxu0 %v5020_v35 }
 0x125   :  { %v1104_v39 = vpop.permute.xlu1 %1103  ;;  %v1102_v45 = vpop.permute.xlu0 %1101  ;;  %v1206_v42 = vld [vmem:[#allocation2 + $0x78] sm:$0xff]  ;;  %3629 = vmatmul.mubr.msk.bf16.gmra.mrb[12].mxu1 %vm356_vm9, %v4998_v8 }
 0x126   :  { %1116 = vst.msk [vmem:[#allocation2 + $0x88] sm:$0xff] %vm64_vm0, %v1104_v39  ;;  %1241 = vmatprep.subr.bf16.mxu0 %v1206_v42  ;;  %1668 = vmatpush1.bf16.msra.mxu1 %v1519_v38  ;;  %v1109_v3 = vsel %vm133_vm4, %v1102_v45, %v1104_v39 }
 0x127   :  { %2369 = vrot.lane.b32.xlu1 %v4527_v54, %s4222_s11  ;;  %2367 = vrot.lane.b32.xlu0 %v4817_v26, %s4222_s11 }
 0x128   :  { %1242 = vmatpush1.bf16.msra.mxu0 %v1092_v47  ;;  %1687 = vmatprep.mubr.bf16.mxu1 %v5020_v35 }
 0x129   :  { %v1532_v48 = vpop.permute.xlu1 %1531  ;;  %v1530_v57 = vpop.permute.xlu0 %1529  ;;  %v1634_v60 = vld [vmem:[#allocation2 + $0x198] sm:$0xff] }
 0x12a   :  { %1544 = vst.msk [vmem:[#allocation2 + $0x1a8] sm:$0xff] %vm64_vm0, %v1532_v48  ;;  %1669 = vmatprep.subr.bf16.mxu1 %v1634_v60  ;;  %v1537_v13 = vsel %vm133_vm4, %v1530_v57, %v1532_v48 }
 0x12b   :  { %1945 = vrot.lane.b32.xlu1 %v4532_v55, %s4222_s11  ;;  %1943 = vrot.lane.b32.xlu0 %v4845_v31, %s4222_s11 }
 0x12c   :  { %1670 = vmatpush1.bf16.msra.mxu1 %v1520_v61 }
 0x12d   :  { %v1108_v51 = vpop.permute.xlu1 %1107  ;;  %v1106_v63 = vpop.permute.xlu0 %1105  ;;  %v1208_v0 = vld [vmem:[#allocation2 + $0x88] sm:$0xff] }
 0x12e   :  { %1118 = vst.msk [vmem:[#allocation2 + $0x98] sm:$0xff] %vm64_vm0, %v1108_v51  ;;  %1243 = vmatprep.subr.bf16.mxu0 %v1208_v0  ;;  %v1110_v17 = vsel %vm133_vm4, %v1106_v63, %v1108_v51 }
 0x12f   :  { %2373 = vrot.lane.b32.xlu1 %v4552_v62, %s4222_s11  ;;  %2371 = vrot.lane.b32.xlu0 %v4874_v37, %s4222_s11 }
 0x130   :  { %1244 = vmatpush1.bf16.msra.mxu0 %v1109_v3 }
 0x131   :  { %v1536_v6 = vpop.permute.xlu1 %1535  ;;  %v1534_v9 = vpop.permute.xlu0 %1533  ;;  %v1636_v12 = vld [vmem:[#allocation2 + $0x1a8] sm:$0xff] }
 0x132   :  { %1546 = vst.msk [vmem:[#allocation2 + $0x1b8] sm:$0xff] %vm64_vm0, %v1536_v6  ;;  %1671 = vmatprep.subr.bf16.mxu1 %v1636_v12  ;;  %v1538_v22 = vsel %vm133_vm4, %v1534_v9, %v1536_v6 }
 0x133   :  { %1959 = vrot.lane.b32.xlu1 %v4509_v46, %s4223_s12  ;;  %1957 = vrot.lane.b32.xlu0 %v4795_v10, %s4223_s12 }
 0x134   :  { %1672 = vmatpush1.bf16.msra.mxu1 %v1537_v13 }
 0x135   :  { %v1122_v14 = vpop.permute.xlu1 %1121  ;;  %v1120_v15 = vpop.permute.xlu0 %1119  ;;  %v1210_v16 = vld [vmem:[#allocation2 + $0x98] sm:$0xff] }
 0x136   :  { %1134 = vst.msk [vmem:[#allocation2 + $0xa8] sm:$0xff] %vm64_vm0, %v1122_v14  ;;  %1245 = vmatprep.subr.bf16.mxu0 %v1210_v16  ;;  %v1127_v27 = vsel %vm152_vm5, %v1120_v15, %v1122_v14 }
 0x137   :  { %2387 = vrot.lane.b32.xlu1 %v4527_v54, %s4223_s12  ;;  %2385 = vrot.lane.b32.xlu0 %v4817_v26, %s4223_s12 }
 0x138   :  { %1246 = vmatpush1.bf16.msra.mxu0 %v1110_v17 }
 0x139   :  { %v1550_v19 = vpop.permute.xlu1 %1549  ;;  %v1548_v20 = vpop.permute.xlu0 %1547  ;;  %v1638_v21 = vld [vmem:[#allocation2 + $0x1b8] sm:$0xff] }
 0x13a   :  { %1562 = vst.msk [vmem:[#allocation2 + $0x1c8] sm:$0xff] %vm64_vm0, %v1550_v19  ;;  %1673 = vmatprep.subr.bf16.mxu1 %v1638_v21  ;;  %v1555_v39 = vsel %vm152_vm5, %v1548_v20, %v1550_v19 }
 0x13b   :  { %1963 = vrot.lane.b32.xlu1 %v4532_v55, %s4223_s12  ;;  %1961 = vrot.lane.b32.xlu0 %v4845_v31, %s4223_s12 }
 0x13c   :  { %1674 = vmatpush1.bf16.msra.mxu1 %v1538_v22 }
 0x13d   :  { %v1126_v49 = vpop.permute.xlu1 %1125  ;;  %v1124_v58 = vpop.permute.xlu0 %1123  ;;  %v1212_v24 = vld [vmem:[#allocation2 + $0xa8] sm:$0xff] }
 0x13e   :  { %1136 = vst.msk [vmem:[#allocation2 + $0xb8] sm:$0xff] %vm64_vm0, %v1126_v49  ;;  %1247 = vmatprep.subr.bf16.mxu0 %v1212_v24  ;;  %v1128_v48 = vsel %vm152_vm5, %v1124_v58, %v1126_v49 }
 0x13f   :  { %2391 = vrot.lane.b32.xlu1 %v4552_v62, %s4223_s12  ;;  %2389 = vrot.lane.b32.xlu0 %v4874_v37, %s4223_s12 }
 0x140   :  { %1248 = vmatpush1.bf16.msra.mxu0 %v1127_v27 }
 0x141   :  { %v1554_v28 = vpop.permute.xlu1 %1553  ;;  %v1552_v33 = vpop.permute.xlu0 %1551  ;;  %v1640_v38 = vld [vmem:[#allocation2 + $0x1c8] sm:$0xff] }
 0x142   :  { %1564 = vst.msk [vmem:[#allocation2 + $0x1d8] sm:$0xff] %vm64_vm0, %v1554_v28  ;;  %1675 = vmatprep.subr.bf16.mxu1 %v1640_v38  ;;  %v1556_v51 = vsel %vm152_vm5, %v1552_v33, %v1554_v28 }
 0x143   :  { %1977 = vrot.lane.b32.xlu1 %v4509_v46, %s4224_s13  ;;  %1975 = vrot.lane.b32.xlu0 %v4795_v10, %s4224_s13 }
 0x144   :  { %1676 = vmatpush1.bf16.msra.mxu1 %v1555_v39 }
 0x145   :  { %v1140_v45 = vpop.permute.xlu1 %1139  ;;  %v1138_v42 = vpop.permute.xlu0 %1137  ;;  %v1214_v47 = vld [vmem:[#allocation2 + $0xb8] sm:$0xff] }
 0x146   :  { %1152 = vst.msk [vmem:[#allocation2 + $0xc8] sm:$0xff] %vm64_vm0, %v1140_v45  ;;  %1249 = vmatprep.subr.bf16.mxu0 %v1214_v47  ;;  %v1145_v6 = vsel %vm171_vm6, %v1138_v42, %v1140_v45 }
 0x147   :  { %2405 = vrot.lane.b32.xlu1 %v4527_v54, %s4224_s13  ;;  %2403 = vrot.lane.b32.xlu0 %v4817_v26, %s4224_s13 }
 0x148   :  { %1250 = vmatpush1.bf16.msra.mxu0 %v1128_v48 }
 0x149   :  { %v1568_v57 = vpop.permute.xlu1 %1567  ;;  %v1566_v60 = vpop.permute.xlu0 %1565  ;;  %v1642_v61 = vld [vmem:[#allocation2 + $0x1d8] sm:$0xff] }
 0x14a   :  { %1580 = vst.msk [vmem:[#allocation2 + $0x1e8] sm:$0xff] %vm64_vm0, %v1568_v57  ;;  %1677 = vmatprep.subr.bf16.mxu1 %v1642_v61  ;;  %v1573_v14 = vsel %vm171_vm6, %v1566_v60, %v1568_v57 }
 0x14b   :  { %1981 = vrot.lane.b32.xlu1 %v4532_v55, %s4224_s13  ;;  %1979 = vrot.lane.b32.xlu0 %v4845_v31, %s4224_s13 }
 0x14c   :  { %1678 = vmatpush1.bf16.msra.mxu1 %v1556_v51 }
 0x14d   :  { %v1144_v63 = vpop.permute.xlu1 %1143  ;;  %v1142_v0 = vpop.permute.xlu0 %1141  ;;  %v1216_v3 = vld [vmem:[#allocation2 + $0xc8] sm:$0xff] }
 0x14e   :  { %1154 = vst.msk [vmem:[#allocation2 + $0xd8] sm:$0xff] %vm64_vm0, %v1144_v63  ;;  %1251 = vmatprep.subr.bf16.mxu0 %v1216_v3  ;;  %v1146_v19 = vsel %vm171_vm6, %v1142_v0, %v1144_v63 }
 0x14f   :  { %2409 = vrot.lane.b32.xlu1 %v4552_v62, %s4224_s13  ;;  %2407 = vrot.lane.b32.xlu0 %v4874_v37, %s4224_s13 }
 0x150   :  { %1252 = vmatpush1.bf16.msra.mxu0 %v1145_v6 }
 0x151   :  { %v1572_v9 = vpop.permute.xlu1 %1571  ;;  %v1570_v12 = vpop.permute.xlu0 %1569  ;;  %v1644_v13 = vld [vmem:[#allocation2 + $0x1e8] sm:$0xff] }
 0x152   :  { %1582 = vst.msk [vmem:[#allocation2 + $0x1f8] sm:$0xff] %vm64_vm0, %v1572_v9  ;;  %1679 = vmatprep.subr.bf16.mxu1 %v1644_v13  ;;  %v1574_v49 = vsel %vm171_vm6, %v1570_v12, %v1572_v9 }
 0x153   :  { %1995 = vrot.lane.b32.xlu1 %v4509_v46, %s4225_s14  ;;  %1993 = vrot.lane.b32.xlu0 %v4795_v10, %s4225_s14 }
 0x154   :  { %1680 = vmatpush1.bf16.msra.mxu1 %v1573_v14 }
 0x155   :  { %v1158_v15 = vpop.permute.xlu1 %1157  ;;  %v1156_v16 = vpop.permute.xlu0 %1155  ;;  %v1218_v17 = vld [vmem:[#allocation2 + $0xd8] sm:$0xff] }
 0x156   :  { %1170 = vst.msk [vmem:[#allocation2 + $0xe8] sm:$0xff] %vm64_vm0, %v1158_v15  ;;  %1253 = vmatprep.subr.bf16.mxu0 %v1218_v17  ;;  %v1163_v28 = vsel %vm190_vm7, %v1156_v16, %v1158_v15 }
 0x157   :  { %2423 = vrot.lane.b32.xlu1 %v4527_v54, %s4225_s14  ;;  %2421 = vrot.lane.b32.xlu0 %v4817_v26, %s4225_s14 }
 0x158   :  { %1254 = vmatpush1.bf16.msra.mxu0 %v1146_v19 }
 0x159   :  { %v1586_v20 = vpop.permute.xlu1 %1585  ;;  %v1584_v21 = vpop.permute.xlu0 %1583  ;;  %v1646_v22 = vld [vmem:[#allocation2 + $0x1f8] sm:$0xff] }
 0x15a   :  { %1598 = vst.msk [vmem:[#allocation2 + $0x208] sm:$0xff] %vm64_vm0, %v1586_v20  ;;  %1681 = vmatprep.subr.bf16.mxu1 %v1646_v22  ;;  %v1591_v45 = vsel %vm190_vm7, %v1584_v21, %v1586_v20 }
 0x15b   :  { %1999 = vrot.lane.b32.xlu1 %v4532_v55, %s4225_s14  ;;  %1997 = vrot.lane.b32.xlu0 %v4845_v31, %s4225_s14 }
 0x15c   :  { %1682 = vmatpush1.bf16.msra.mxu1 %v1574_v49 }
 0x15d   :  { %v1162_v58 = vpop.permute.xlu1 %1161  ;;  %v1160_v24 = vpop.permute.xlu0 %1159  ;;  %v1220_v27 = vld [vmem:[#allocation2 + $0xe8] sm:$0xff] }
 0x15e   :  { %1172 = vst.msk [vmem:[#allocation2 + $0xf8] sm:$0xff] %vm64_vm0, %v1162_v58  ;;  %1255 = vmatprep.subr.bf16.mxu0 %v1220_v27  ;;  %v1164_v57 = vsel %vm190_vm7, %v1160_v24, %v1162_v58 }
 0x15f   :  { %2427 = vrot.lane.b32.xlu1 %v4552_v62, %s4225_s14  ;;  %2425 = vrot.lane.b32.xlu0 %v4874_v37, %s4225_s14 }
 0x160   :  { %1256 = vmatpush1.bf16.msra.mxu0 %v1163_v28 }
 0x161   :  { %v1590_v33 = vpop.permute.xlu1 %1589  ;;  %v1588_v38 = vpop.permute.xlu0 %1587  ;;  %v1648_v39 = vld [vmem:[#allocation2 + $0x208] sm:$0xff] }
 0x162   :  { %1600 = vst.msk [vmem:[#allocation2 + $0x218] sm:$0xff] %vm64_vm0, %v1590_v33  ;;  %1683 = vmatprep.subr.bf16.mxu1 %v1648_v39  ;;  %v1592_v63 = vsel %vm190_vm7, %v1588_v38, %v1590_v33 }
 0x163   :  { %2013 = vrot.lane.b32.xlu1 %v4509_v46, %s4226_s15  ;;  %2011 = vrot.lane.b32.xlu0 %v4795_v10, %s4226_s15 }
 0x164   :  { %1684 = vmatpush1.bf16.msra.mxu1 %v1591_v45 }
 0x165   :  { %v1176_v42 = vpop.permute.xlu1 %1175  ;;  %v1174_v47 = vpop.permute.xlu0 %1173  ;;  %v1222_v48 = vld [vmem:[#allocation2 + $0xf8] sm:$0xff] }
 0x166   :  { %1188 = vst.msk [vmem:[#allocation2 + $0x108] sm:$0xff] %vm64_vm0, %v1176_v42  ;;  %1257 = vmatprep.subr.bf16.mxu0 %v1222_v48  ;;  %v1181_v9 = vsel %vm209_vm8, %v1174_v47, %v1176_v42 }
 0x167   :  { %2441 = vrot.lane.b32.xlu1 %v4527_v54, %s4226_s15  ;;  %2439 = vrot.lane.b32.xlu0 %v4817_v26, %s4226_s15 }
 0x168   :  { %1258 = vmatpush1.bf16.msra.mxu0 %v1164_v57 }
 0x169   :  { %v1604_v60 = vpop.permute.xlu1 %1603  ;;  %v1602_v61 = vpop.permute.xlu0 %1601  ;;  %v1650_v51 = vld [vmem:[#allocation2 + $0x218] sm:$0xff] }
 0x16a   :  { %1616 = vst.msk [vmem:[#allocation2 + $0x228] sm:$0xff] %vm64_vm0, %v1604_v60  ;;  %1685 = vmatprep.subr.bf16.mxu1 %v1650_v51  ;;  %v1609_v15 = vsel %vm209_vm8, %v1602_v61, %v1604_v60 }
 0x16b   :  { %1260 = vmatmul.mubr.bf16.vlgmr.msra.gmra.mrb[16].mxu0 %v4692_v52  ;;  %2017 = vrot.lane.b32.xlu1 %v4532_v55, %s4226_s15 }
 0x16c   :  { %2015 = vrot.lane.b32.xlu0 %v4845_v31, %s4226_s15  ;;  %1686 = vmatpush1.bf16.msra.mxu1 %v1592_v63 }
 0x16d   :  { %v1180_v0 = vpop.permute.xlu1 %1179  ;;  %v1178_v3 = vpop.permute.xlu0 %1177  ;;  %v1224_v6 = vld [vmem:[#allocation2 + $0x108] sm:$0xff]  ;;  %1269 = vmatprep.mubr.bf16.mxu0 %v4697_v53 }
 0x16e   :  { %1190 = vst.msk [vmem:[#allocation2 + $0x118] sm:$0xff] %vm64_vm0, %v1180_v0  ;;  %1300 = vmatprep.subr.bf16.mxu0 %v1224_v6 }
 0x16f   :  { %1688 = vmatmul.mubr.bf16.vlgmr.msra.gmra.mrb[16].mxu1 %v4692_v52  ;;  %2445 = vrot.lane.b32.xlu1 %v4552_v62, %s4226_s15 }
 0x170   :  { %2443 = vrot.lane.b32.xlu0 %v4874_v37, %s4226_s15  ;;  %1301 = vmatpush1.bf16.msra.mxu0 %v1181_v9 }
 0x171   :  { %v1608_v12 = vpop.permute.xlu1 %1607  ;;  %v1606_v13 = vpop.permute.xlu0 %1605  ;;  %v1652_v14 = vld [vmem:[#allocation2 + $0x228] sm:$0xff]  ;;  %1697 = vmatprep.mubr.bf16.mxu1 %v4697_v53  ;;  %v1182_v53 = vsel %vm209_vm8, %v1178_v3, %v1180_v0 }
 0x172   :  { %1618 = vst.msk [vmem:[#allocation2 + $0x238] sm:$0xff] %vm64_vm0, %v1608_v12  ;;  %1728 = vmatprep.subr.bf16.mxu1 %v1652_v14 }
 0x173   :  { %1270 = vmatmul.mubr.bf16.gmra.mrb[20].mxu0 %v4717_v4  ;;  %2031 = vrot.lane.b32.xlu1 %v4509_v46, %s4227_s19 }
 0x174   :  { %2029 = vrot.lane.b32.xlu0 %v4795_v10, %s4227_s19  ;;  %1729 = vmatpush1.bf16.msra.mxu1 %v1609_v15 }
 0x175   :  { %v5152_v16 = vpop.permute.xlu1 %1905  ;;  %v5154_v17 = vpop.permute.xlu0 %1903  ;;  %v1226_v19 = vld [vmem:[#allocation2 + $0x118] sm:$0xff]  ;;  %1279 = vmatprep.mubr.bf16.mxu0 %v4723_v5 }
 0x176   :  { %1918 = vst.msk [vmem:[#allocation2 + $0x28] sm:$0xff] %vm64_vm0, %v5152_v16  ;;  %1302 = vmatprep.subr.bf16.mxu0 %v1226_v19 }
 0x177   :  { %1698 = vmatmul.mubr.bf16.gmra.mrb[20].mxu1 %v4717_v4  ;;  %2459 = vrot.lane.b32.xlu1 %v4527_v54, %s4227_s19  ;;  %v1610_v4 = vsel %vm209_vm8, %v1606_v13, %v1608_v12 }
 0x178   :  { %2457 = vrot.lane.b32.xlu0 %v4817_v26, %s4227_s19  ;;  %1303 = vmatpush1.bf16.msra.mxu0 %v1182_v53 }
 0x179   :  { %v5165_v46 = vpop.permute.xlu1 %2333  ;;  %v5167_v20 = vpop.permute.xlu0 %2331  ;;  %v1654_v21 = vld [vmem:[#allocation2 + $0x238] sm:$0xff]  ;;  %1707 = vmatprep.mubr.bf16.mxu1 %v4723_v5  ;;  %2083 = vmatprep.subr.bf16.mxu0 %v4859_v36 }
 0x17a   :  { %2346 = vst.msk [vmem:[#allocation2 + $0x148] sm:$0xff] %vm64_vm0, %v5165_v46  ;;  %1730 = vmatprep.subr.bf16.mxu1 %v1654_v21  ;;  %v2339_v24 = vsel %vm76_vm1, %v5167_v20, %v5165_v46 }
 0x17b   :  { %1280 = vmatmul.mubr.bf16.gmra.mrb[24].mxu0 %v4746_v18  ;;  %2035 = vrot.lane.b32.xlu1 %v4532_v55, %s4227_s19 }
 0x17c   :  { %2033 = vrot.lane.b32.xlu0 %v4845_v31, %s4227_s19  ;;  %1731 = vmatpush1.bf16.msra.mxu1 %v1610_v4 }
 0x17d   :  { %v5179_v54 = vpop.permute.xlu1 %1909  ;;  %v1908_v5 = vpop.permute.xlu0 %1907  ;;  %1289 = vmatprep.mubr.bf16.mxu0 %v4754_v7  ;;  %2511 = vmatprep.subr.bf16.mxu1 %v4908_v43 }
 0x17e   :  { %1920 = vst.msk [vmem:[#allocation2 + $0x38] sm:$0xff] %vm64_vm0, %v5179_v54 }
 0x17f   :  { %1708 = vmatmul.mubr.bf16.gmra.mrb[24].mxu1 %v4746_v18  ;;  %2463 = vrot.lane.b32.xlu1 %v4552_v62, %s4227_s19 }
 0x180   :  { %2461 = vrot.lane.b32.xlu0 %v4874_v37, %s4227_s19  ;;  %1717 = vmatprep.mubr.bf16.mxu1 %v4754_v7 }
 0x181   :  { %v5191_v55 = vpop.permute.xlu1 %2337  ;;  %v5193_v36 = vpop.permute.xlu0 %2335 }
 0x182   :  { %2348 = vst.msk [vmem:[#allocation2 + $0x158] sm:$0xff] %vm64_vm0, %v5191_v55  ;;  %v2340_v39 = vsel %vm76_vm1, %v5193_v36, %v5191_v55 }
 0x183   :  { %1290 = vmatmul.mubr.bf16.gmra.mrb[28].mxu0 %v4783_v23  ;;  %2761 = vrot.lane.b32.xlu1 %v4850_v32, %s4220_s16 }
 0x184   :  { %2759 = vrot.lane.b32.xlu0 %v4808_v11, %s4220_s16  ;;  %1332 = vmatprep.mubr.bf16.mxu0 %v6369_v50 }
 0x185   :  { %v1924_v62 = vpop.permute.xlu1 %1923  ;;  %v1922_v18 = vpop.permute.xlu0 %1921 }
 0x186   :  { %1936 = vst.msk [vmem:[#allocation2 + $0x48] sm:$0xff] %vm64_vm0, %v1924_v62 }
 0x187   :  { %1718 = vmatmul.mubr.bf16.gmra.mrb[28].mxu1 %v4783_v23  ;;  %3189 = vrot.lane.b32.xlu1 %v4896_v41, %s4220_s16 }
 0x188   :  { %3187 = vrot.lane.b32.xlu0 %v4836_v30, %s4220_s16  ;;  %1760 = vmatprep.mubr.bf16.mxu1 %v6369_v50 }
 0x189   :  { %v5210_v7 = vpop.permute.xlu1 %2351  ;;  %v5212_v43 = vpop.permute.xlu0 %2349  ;;  %v2482_v28 = vld [vmem:[#allocation2 + $0x158] sm:$0xff] }
 0x18a   :  { %2364 = vst.msk [vmem:[#allocation2 + $0x168] sm:$0xff] %vm64_vm0, %v5210_v7  ;;  %v2357_v60 = vsel %vm95_vm2, %v5212_v43, %v5210_v7 }
 0x18b   :  { %3654 = vmatmul.mubr.msk.bf16.vlgmr.msra.gmra.mrb[16].mxu0 %vm356_vm9, %v4828_v29  ;;  %2765 = vrot.lane.b32.xlu1 %v4901_v59, %s4220_s16 }
 0x18c   :  { %2084 = vmatpush1.bf16.msra.mxu0 %v4795_v10  ;;  %2763 = vrot.lane.b32.xlu0 %v4879_v25, %s4220_s16  ;;  %v2052_v10 = vld [vmem:[#allocation2 + $0x28] sm:$0xff] }
 0x18d   :  { %v5223_v23 = vpop.permute.xlu1 %1927  ;;  %v5225_v22 = vpop.permute.xlu0 %1925  ;;  %2085 = vmatprep.subr.bf16.mxu0 %v4910_v44  ;;  %1342 = vmatprep.mubr.bf16.mxu0 %v6369_v50  ;;  %v2056_v27 = vld [vmem:[#allocation2 + $0x48] sm:$0xff] }
 0x18e   :  { %1938 = vst.msk [vmem:[#allocation2 + $0x58] sm:$0xff] %vm64_vm0, %v5223_v23  ;;  %v1930_v61 = vsel %vm95_vm2, %v5225_v22, %v5223_v23 }
 0x18f   :  { %3682 = vmatmul.mubr.msk.bf16.vlgmr.msra.gmra.mrb[16].mxu1 %vm356_vm9, %v4828_v29  ;;  %3193 = vrot.lane.b32.xlu1 %v4939_v56, %s4220_s16  ;;  %v2054_v29 = vld [vmem:[#allocation2 + $0x38] sm:$0xff] }
 0x190   :  { %2086 = vmatpush1.bf16.msra.mxu0 %v4845_v31  ;;  %2512 = vmatpush1.bf16.msra.mxu1 %v4817_v26  ;;  %v1911_v26 = vsel %vm76_vm1, %v5154_v17, %v5152_v16  ;;  %v2480_v31 = vld [vmem:[#allocation2 + $0x148] sm:$0xff] }
 0x191   :  { %3191 = vrot.lane.b32.xlu0 %v4923_v34, %s4220_s16  ;;  %2087 = vmatprep.subr.bf16.mxu0 %v2052_v10  ;;  %v5239_v44 = vpop.permute.xlu1 %2355  ;;  %v5241_v49 = vpop.permute.xlu0 %2353  ;;  %v2484_v42 = vld [vmem:[#allocation2 + $0x168] sm:$0xff] }
 0x192   :  { %2366 = vst.msk [vmem:[#allocation2 + $0x178] sm:$0xff] %vm64_vm0, %v5239_v44  ;;  %2513 = vmatprep.subr.bf16.mxu1 %v4945_v1  ;;  %1770 = vmatprep.mubr.bf16.mxu1 %v6369_v50  ;;  %v2358_v6 = vsel %vm95_vm2, %v5241_v49, %v5239_v44 }
 0x193   :  { %2779 = vrot.lane.b32.xlu1 %v4850_v32, %s4221_s10  ;;  %3655 = vmatmul.mubr.msk.bf16.gmra.mrb[20].mxu0 %vm356_vm9, %v4891_v40 }
 0x194   :  { %2088 = vmatpush1.bf16.msra.mxu0 %v1911_v26  ;;  %2514 = vmatpush1.bf16.msra.mxu1 %v4874_v37  ;;  %v1912_v37 = vsel %vm76_vm1, %v1908_v5, %v5179_v54 }
 0x195   :  { %2777 = vrot.lane.b32.xlu0 %v4808_v11, %s4221_s10  ;;  %2089 = vmatprep.subr.bf16.mxu0 %v2054_v29  ;;  %v1942_v1 = vpop.permute.xlu1 %1941  ;;  %v1940_v58 = vpop.permute.xlu0 %1939  ;;  %v2058_v45 = vld [vmem:[#allocation2 + $0x58] sm:$0xff] }
 0x196   :  { %2515 = vmatprep.subr.bf16.mxu1 %v2480_v31  ;;  %1954 = vst.msk [vmem:[#allocation2 + $0x68] sm:$0xff] %vm64_vm0, %v1942_v1  ;;  %1352 = vmatprep.mubr.bf16.mxu0 %v6369_v50  ;;  %v5359_v31 = vld [vmem:[#allocation2] sm:$0xff] }
 0x197   :  { %3207 = vrot.lane.b32.xlu1 %v4896_v41, %s4221_s10  ;;  %3683 = vmatmul.mubr.msk.bf16.gmra.mrb[20].mxu1 %vm356_vm9, %v4891_v40  ;;  %v1929_v40 = vsel %vm95_vm2, %v1922_v18, %v1924_v62 }
 0x198   :  { %2090 = vmatpush1.bf16.msra.mxu0 %v1912_v37  ;;  %2516 = vmatpush1.bf16.msra.mxu1 %v2339_v24 }
 0x199   :  { %3205 = vrot.lane.b32.xlu0 %v4836_v30, %s4221_s10  ;;  %2091 = vmatprep.subr.bf16.mxu0 %v2056_v27  ;;  %v2370_v33 = vpop.permute.xlu1 %2369  ;;  %v2368_v38 = vpop.permute.xlu0 %2367  ;;  %v2486_v51 = vld [vmem:[#allocation2 + $0x178] sm:$0xff]  ;;  %v5367_v27 = vld [vmem:[#allocation2 + $0x120] sm:$0xff] }
 0x19a   :  { %2517 = vmatprep.subr.bf16.mxu1 %v2482_v28  ;;  %2382 = vst.msk [vmem:[#allocation2 + $0x188] sm:$0xff] %vm64_vm0, %v2370_v33  ;;  %1780 = vmatprep.mubr.bf16.mxu1 %v6369_v50  ;;  %v2375_v14 = vsel %vm114_vm3, %v2368_v38, %v2370_v33 }
 0x19b   :  { %2783 = vrot.lane.b32.xlu1 %v4901_v59, %s4221_s10  ;;  %3656 = vmatmul.mubr.msk.bf16.gmra.mrb[24].mxu0 %vm356_vm9, %v4965_v2 }
 0x19c   :  { %2092 = vmatpush1.bf16.msra.mxu0 %v1929_v40  ;;  %2518 = vmatpush1.bf16.msra.mxu1 %v2340_v39  ;;  %v5375_v40 = vld [vmem:[#allocation2 + $0x10] sm:$0xff] }
 0x19d   :  { %2781 = vrot.lane.b32.xlu0 %v4879_v25, %s4221_s10  ;;  %2093 = vmatprep.subr.bf16.mxu0 %v2058_v45  ;;  %v1946_v47 = vpop.permute.xlu1 %1945  ;;  %v1944_v48 = vpop.permute.xlu0 %1943  ;;  %v2060_v57 = vld [vmem:[#allocation2 + $0x68] sm:$0xff] }
 0x19e   :  { %2519 = vmatprep.subr.bf16.mxu1 %v2484_v42  ;;  %1956 = vst.msk [vmem:[#allocation2 + $0x78] sm:$0xff] %vm64_vm0, %v1946_v47  ;;  %1362 = vmatprep.mubr.bf16.mxu0 %v6369_v50  ;;  %v1948_v15 = vsel %vm114_vm3, %v1944_v48, %v1946_v47 }
 0x19f   :  { %3211 = vrot.lane.b32.xlu1 %v4939_v56, %s4221_s10  ;;  %3684 = vmatmul.mubr.msk.bf16.gmra.mrb[24].mxu1 %vm356_vm9, %v4965_v2  ;;  %v1947_v2 = vsel %vm114_vm3, %v1940_v58, %v1942_v1 }
 0x1a0   :  { %2094 = vmatpush1.bf16.msra.mxu0 %v1930_v61  ;;  %2520 = vmatpush1.bf16.msra.mxu1 %v2357_v60 }
 0x1a1   :  { %3209 = vrot.lane.b32.xlu0 %v4923_v34, %s4221_s10  ;;  %2095 = vmatprep.subr.bf16.mxu0 %v2060_v57  ;;  %v2374_v63 = vpop.permute.xlu1 %2373  ;;  %v2372_v0 = vpop.permute.xlu0 %2371  ;;  %v2488_v3 = vld [vmem:[#allocation2 + $0x188] sm:$0xff] }
 0x1a2   :  { %2521 = vmatprep.subr.bf16.mxu1 %v2486_v51  ;;  %2384 = vst.msk [vmem:[#allocation2 + $0x198] sm:$0xff] %vm64_vm0, %v2374_v63  ;;  %1790 = vmatprep.mubr.bf16.mxu1 %v6369_v50  ;;  %v2376_v53 = vsel %vm114_vm3, %v2372_v0, %v2374_v63 }
 0x1a3   :  { %2797 = vrot.lane.b32.xlu1 %v4850_v32, %s4222_s11  ;;  %3657 = vmatmul.mubr.msk.bf16.gmra.mrb[28].mxu0 %vm356_vm9, %v4998_v8 }
 0x1a4   :  { %2096 = vmatpush1.bf16.msra.mxu0 %v1947_v2  ;;  %2522 = vmatpush1.bf16.msra.mxu1 %v2358_v6 }
 0x1a5   :  { %2795 = vrot.lane.b32.xlu0 %v4808_v11, %s4222_s11  ;;  %2523 = vmatprep.subr.bf16.mxu1 %v2488_v3  ;;  %v1960_v9 = vpop.permute.xlu1 %1959  ;;  %v1958_v12 = vpop.permute.xlu0 %1957  ;;  %v2062_v13 = vld [vmem:[#allocation2 + $0x78] sm:$0xff] }
 0x1a6   :  { %1972 = vst.msk [vmem:[#allocation2 + $0x88] sm:$0xff] %vm64_vm0, %v1960_v9  ;;  %2097 = vmatprep.subr.bf16.mxu0 %v2062_v13  ;;  %2115 = vmatprep.mubr.bf16.mxu0 %v5020_v35  ;;  %v1965_v21 = vsel %vm133_vm4, %v1958_v12, %v1960_v9 }
 0x1a7   :  { %3225 = vrot.lane.b32.xlu1 %v4896_v41, %s4222_s11  ;;  %3685 = vmatmul.mubr.msk.bf16.gmra.mrb[28].mxu1 %vm356_vm9, %v4998_v8 }
 0x1a8   :  { %2524 = vmatpush1.bf16.msra.mxu1 %v2375_v14  ;;  %2098 = vmatpush1.bf16.msra.mxu0 %v1948_v15 }
 0x1a9   :  { %3223 = vrot.lane.b32.xlu0 %v4836_v30, %s4222_s11  ;;  %v2388_v16 = vpop.permute.xlu1 %2387  ;;  %v2386_v17 = vpop.permute.xlu0 %2385  ;;  %v2490_v19 = vld [vmem:[#allocation2 + $0x198] sm:$0xff]  ;;  %2543 = vmatprep.mubr.bf16.mxu1 %v5020_v35 }
 0x1aa   :  { %2400 = vst.msk [vmem:[#allocation2 + $0x1a8] sm:$0xff] %vm64_vm0, %v2388_v16  ;;  %2525 = vmatprep.subr.bf16.mxu1 %v2490_v19  ;;  %v2393_v5 = vsel %vm133_vm4, %v2386_v17, %v2388_v16 }
 0x1ab   :  { %2801 = vrot.lane.b32.xlu1 %v4901_v59, %s4222_s11 }
 0x1ac   :  { %2526 = vmatpush1.bf16.msra.mxu1 %v2376_v53 }
 0x1ad   :  { %2799 = vrot.lane.b32.xlu0 %v4879_v25, %s4222_s11  ;;  %v1964_v8 = vpop.permute.xlu1 %1963  ;;  %v1962_v46 = vpop.permute.xlu0 %1961  ;;  %v2064_v20 = vld [vmem:[#allocation2 + $0x88] sm:$0xff] }
 0x1ae   :  { %1974 = vst.msk [vmem:[#allocation2 + $0x98] sm:$0xff] %vm64_vm0, %v1964_v8  ;;  %2099 = vmatprep.subr.bf16.mxu0 %v2064_v20  ;;  %v1966_v18 = vsel %vm133_vm4, %v1962_v46, %v1964_v8  ;;  %v5417_v20 = vld [vmem:[#allocation2 + $0x130] sm:$0xff] }
 0x1af   :  { %3229 = vrot.lane.b32.xlu1 %v4939_v56, %s4222_s11  ;;  %2100 = vmatpush1.bf16.msra.mxu0 %v1965_v21 }
 0x1b1   :  { %3227 = vrot.lane.b32.xlu0 %v4923_v34, %s4222_s11  ;;  %v2392_v35 = vpop.permute.xlu1 %2391  ;;  %v2390_v4 = vpop.permute.xlu0 %2389  ;;  %v2492_v54 = vld [vmem:[#allocation2 + $0x1a8] sm:$0xff] }
 0x1b2   :  { %2402 = vst.msk [vmem:[#allocation2 + $0x1b8] sm:$0xff] %vm64_vm0, %v2392_v35  ;;  %2527 = vmatprep.subr.bf16.mxu1 %v2492_v54 }
 0x1b3   :  { %2815 = vrot.lane.b32.xlu1 %v4850_v32, %s4223_s12  ;;  %2528 = vmatpush1.bf16.msra.mxu1 %v2393_v5 }
 0x1b5   :  { %2813 = vrot.lane.b32.xlu0 %v4808_v11, %s4223_s12  ;;  %v1978_v55 = vpop.permute.xlu1 %1977  ;;  %v1976_v36 = vpop.permute.xlu0 %1975  ;;  %v2066_v62 = vld [vmem:[#allocation2 + $0x98] sm:$0xff]  ;;  %v2394_v11 = vsel %vm133_vm4, %v2390_v4, %v2392_v35 }
 0x1b6   :  { %1990 = vst.msk [vmem:[#allocation2 + $0xa8] sm:$0xff] %vm64_vm0, %v1978_v55  ;;  %2101 = vmatprep.subr.bf16.mxu0 %v2066_v62 }
 0x1b7   :  { %3243 = vrot.lane.b32.xlu1 %v4896_v41, %s4223_s12  ;;  %2102 = vmatpush1.bf16.msra.mxu0 %v1966_v18 }
 0x1b9   :  { %3241 = vrot.lane.b32.xlu0 %v4836_v30, %s4223_s12  ;;  %v2406_v7 = vpop.permute.xlu1 %2405  ;;  %v2404_v43 = vpop.permute.xlu0 %2403  ;;  %v2494_v23 = vld [vmem:[#allocation2 + $0x1b8] sm:$0xff]  ;;  %v1983_v30 = vsel %vm152_vm5, %v1976_v36, %v1978_v55 }
 0x1ba   :  { %2418 = vst.msk [vmem:[#allocation2 + $0x1c8] sm:$0xff] %vm64_vm0, %v2406_v7  ;;  %2529 = vmatprep.subr.bf16.mxu1 %v2494_v23 }
 0x1bb   :  { %2819 = vrot.lane.b32.xlu1 %v4901_v59, %s4223_s12  ;;  %2530 = vmatpush1.bf16.msra.mxu1 %v2394_v11 }
 0x1bd   :  { %2817 = vrot.lane.b32.xlu0 %v4879_v25, %s4223_s12  ;;  %v1982_v22 = vpop.permute.xlu1 %1981  ;;  %v1980_v10 = vpop.permute.xlu0 %1979  ;;  %v2068_v44 = vld [vmem:[#allocation2 + $0xa8] sm:$0xff]  ;;  %v2411_v25 = vsel %vm152_vm5, %v2404_v43, %v2406_v7 }
 0x1be   :  { %1992 = vst.msk [vmem:[#allocation2 + $0xb8] sm:$0xff] %vm64_vm0, %v1982_v22  ;;  %2103 = vmatprep.subr.bf16.mxu0 %v2068_v44  ;;  %v1984_v37 = vsel %vm152_vm5, %v1980_v10, %v1982_v22 }
 0x1bf   :  { %3247 = vrot.lane.b32.xlu1 %v4939_v56, %s4223_s12  ;;  %2104 = vmatpush1.bf16.msra.mxu0 %v1983_v30 }
 0x1c1   :  { %3245 = vrot.lane.b32.xlu0 %v4923_v34, %s4223_s12  ;;  %v2410_v49 = vpop.permute.xlu1 %2409  ;;  %v2408_v26 = vpop.permute.xlu0 %2407  ;;  %v2496_v29 = vld [vmem:[#allocation2 + $0x1c8] sm:$0xff] }
 0x1c2   :  { %2420 = vst.msk [vmem:[#allocation2 + $0x1d8] sm:$0xff] %vm64_vm0, %v2410_v49  ;;  %2531 = vmatprep.subr.bf16.mxu1 %v2496_v29  ;;  %v2412_v39 = vsel %vm152_vm5, %v2408_v26, %v2410_v49 }
 0x1c3   :  { %2833 = vrot.lane.b32.xlu1 %v4850_v32, %s4224_s13  ;;  %2532 = vmatpush1.bf16.msra.mxu1 %v2411_v25 }
 0x1c5   :  { %2831 = vrot.lane.b32.xlu0 %v5359_v31, %s4224_s13  ;;  %v1996_v1 = vpop.permute.xlu1 %1995  ;;  %v1994_v58 = vpop.permute.xlu0 %1993  ;;  %v2070_v24 = vld [vmem:[#allocation2 + $0xb8] sm:$0xff] }
 0x1c6   :  { %2008 = vst.msk [vmem:[#allocation2 + $0xc8] sm:$0xff] %vm64_vm0, %v1996_v1  ;;  %2105 = vmatprep.subr.bf16.mxu0 %v2070_v24  ;;  %v2001_v48 = vsel %vm171_vm6, %v1994_v58, %v1996_v1  ;;  %v5463_v24 = vld [vmem:[%s6366_s1 + $0x1c] ss:$12 sps:$4 sm:$0xff]  }
 0x1c7   :  { %3261 = vrot.lane.b32.xlu1 %v4896_v41, %s4224_s13  ;;  %2106 = vmatpush1.bf16.msra.mxu0 %v1984_v37 }
 0x1c9   :  { %3259 = vrot.lane.b32.xlu0 %v5367_v27, %s4224_s13  ;;  %v2424_v28 = vpop.permute.xlu1 %2423  ;;  %v2422_v33 = vpop.permute.xlu0 %2421  ;;  %v2498_v38 = vld [vmem:[#allocation2 + $0x1d8] sm:$0xff] }
 0x1ca   :  { %2436 = vst.msk [vmem:[#allocation2 + $0x1e8] sm:$0xff] %vm64_vm0, %v2424_v28  ;;  %2533 = vmatprep.subr.bf16.mxu1 %v2498_v38  ;;  %v2429_v51 = vsel %vm171_vm6, %v2422_v33, %v2424_v28 }
 0x1cb   :  { %2837 = vrot.lane.b32.xlu1 %v4901_v59, %s4224_s13  ;;  %2534 = vmatpush1.bf16.msra.mxu1 %v2412_v39 }
 0x1cd   :  { %2835 = vrot.lane.b32.xlu0 %v5375_v40, %s4224_s13  ;;  %v2000_v45 = vpop.permute.xlu1 %1999  ;;  %v1998_v42 = vpop.permute.xlu0 %1997  ;;  %v2072_v47 = vld [vmem:[#allocation2 + $0xc8] sm:$0xff] }
 0x1ce   :  { %2010 = vst.msk [vmem:[#allocation2 + $0xd8] sm:$0xff] %vm64_vm0, %v2000_v45  ;;  %2107 = vmatprep.subr.bf16.mxu0 %v2072_v47 }
 0x1cf   :  { %3265 = vrot.lane.b32.xlu1 %v4939_v56, %s4224_s13  ;;  %2108 = vmatpush1.bf16.msra.mxu0 %v2001_v48 }
 0x1d1   :  { %3263 = vrot.lane.b32.xlu0 %v4923_v34, %s4224_s13  ;;  %v2428_v57 = vpop.permute.xlu1 %2427  ;;  %v2426_v60 = vpop.permute.xlu0 %2425  ;;  %v2500_v61 = vld [vmem:[#allocation2 + $0x1e8] sm:$0xff]  ;;  %v2002_v34 = vsel %vm171_vm6, %v1998_v42, %v2000_v45 }
 0x1d2   :  { %2438 = vst.msk [vmem:[#allocation2 + $0x1f8] sm:$0xff] %vm64_vm0, %v2428_v57  ;;  %2535 = vmatprep.subr.bf16.mxu1 %v2500_v61  ;;  %v2430_v12 = vsel %vm171_vm6, %v2426_v60, %v2428_v57 }
 0x1d3   :  { %2851 = vrot.lane.b32.xlu1 %v4850_v32, %s4225_s14  ;;  %2536 = vmatpush1.bf16.msra.mxu1 %v2429_v51 }
 0x1d5   :  { %2849 = vrot.lane.b32.xlu0 %v5359_v31, %s4225_s14  ;;  %v2014_v63 = vpop.permute.xlu1 %2013  ;;  %v2012_v0 = vpop.permute.xlu0 %2011  ;;  %v2074_v3 = vld [vmem:[#allocation2 + $0xd8] sm:$0xff] }
 0x1d6   :  { %2026 = vst.msk [vmem:[#allocation2 + $0xe8] sm:$0xff] %vm64_vm0, %v2014_v63  ;;  %2109 = vmatprep.subr.bf16.mxu0 %v2074_v3  ;;  %v2019_v17 = vsel %vm190_vm7, %v2012_v0, %v2014_v63  ;;  %v5493_v0 = vld [vmem:[%s6366_s1 + $0x18] ss:$12 sps:$4 sm:$0xff]  }
 0x1d7   :  { %3279 = vrot.lane.b32.xlu1 %v4896_v41, %s4225_s14  ;;  %2110 = vmatpush1.bf16.msra.mxu0 %v2002_v34 }
 0x1d9   :  { %3277 = vrot.lane.b32.xlu0 %v5367_v27, %s4225_s14  ;;  %v2442_v6 = vpop.permute.xlu1 %2441  ;;  %v2440_v2 = vpop.permute.xlu0 %2439  ;;  %v2502_v9 = vld [vmem:[#allocation2 + $0x1f8] sm:$0xff] }
 0x1da   :  { %2454 = vst.msk [vmem:[#allocation2 + $0x208] sm:$0xff] %vm64_vm0, %v2442_v6  ;;  %2537 = vmatprep.subr.bf16.mxu1 %v2502_v9  ;;  %v2447_v54 = vsel %vm190_vm7, %v2440_v2, %v2442_v6  ;;  %v5505_v6 = vld [vmem:[%s6366_s1 + $0x34] ss:$12 sps:$4 sm:$0xff]  }
 0x1db   :  { %2855 = vrot.lane.b32.xlu1 %v4901_v59, %s4225_s14  ;;  %2538 = vmatpush1.bf16.msra.mxu1 %v2430_v12 }
 0x1dc   :  { %v5401_v13 = vpop.f32.mrb[0].mxu0 }
 0x1dd   :  { %2853 = vrot.lane.b32.xlu0 %v5375_v40, %s4225_s14  ;;  %v2018_v14 = vpop.permute.xlu1 %2017  ;;  %v2076_v15 = vld [vmem:[#allocation2 + $0xe8] sm:$0xff]  ;;  %v5405_v16 = vpop.f32.mrb[1].mxu0 }
 0x1de   :  { %2028 = vst.msk [vmem:[#allocation2 + $0xf8] sm:$0xff] %vm64_vm0, %v2018_v14  ;;  %v2016_v19 = vpop.permute.xlu0 %2015  ;;  %2111 = vmatprep.subr.bf16.mxu0 %v2076_v15  ;;  %v5409_v53 = vpop.f32.mrb[2].mxu0 }
 0x1df   :  { %3283 = vrot.lane.b32.xlu1 %v4939_v56, %s4225_s14  ;;  %2112 = vmatpush1.bf16.msra.mxu0 %v2019_v17  ;;  %v5413_v8 = vpop.f32.mrb[3].mxu0  ;;  %v2020_v23 = vsel %vm190_vm7, %v2016_v19, %v2018_v14  ;;  %v2904_v14 = vld [vmem:[#allocation2 + $0x8] sm:$0xff] }
 0x1e0   :  { %v5415_v46 = vpop.f32.mrb[0].mxu1 }
 0x1e1   :  { %3281 = vrot.lane.b32.xlu0 %v5417_v20, %s4225_s14  ;;  %v2446_v21 = vpop.permute.xlu1 %2445  ;;  %v2504_v35 = vld [vmem:[#allocation2 + $0x208] sm:$0xff]  ;;  %v5421_v4 = vpop.f32.mrb[1].mxu1 }
 0x1e2   :  { %2456 = vst.msk [vmem:[#allocation2 + $0x218] sm:$0xff] %vm64_vm0, %v2446_v21  ;;  %v2444_v5 = vpop.permute.xlu0 %2443  ;;  %2539 = vmatprep.subr.bf16.mxu1 %v2504_v35  ;;  %v5425_v55 = vpop.f32.mrb[2].mxu1 }
 0x1e3   :  { %2869 = vrot.lane.b32.xlu1 %v4850_v32, %s4226_s15  ;;  %2540 = vmatpush1.bf16.msra.mxu1 %v2447_v54  ;;  %v5429_v36 = vpop.f32.mrb[3].mxu1  ;;  %v2448_v29 = vsel %vm190_vm7, %v2444_v5, %v2446_v21 }
 0x1e4   :  { %v5431_v62 = vpop.f32.mrb[4].mxu0 }
 0x1e5   :  { %2867 = vrot.lane.b32.xlu0 %v5359_v31, %s4226_s15  ;;  %v2032_v18 = vpop.permute.xlu1 %2031  ;;  %v2078_v7 = vld [vmem:[#allocation2 + $0xf8] sm:$0xff]  ;;  %v5435_v43 = vpop.f32.mrb[5].mxu0 }
 0x1e6   :  { %2044 = vst.msk [vmem:[#allocation2 + $0x108] sm:$0xff] %vm64_vm0, %v2032_v18  ;;  %v2030_v11 = vpop.permute.xlu0 %2029  ;;  %2113 = vmatprep.subr.bf16.mxu0 %v2078_v7  ;;  %v5439_v22 = vpop.f32.mrb[6].mxu0  ;;  %v3332_v7 = vld [vmem:[#allocation2 + $0x128] sm:$0xff] }
 0x1e7   :  { %3297 = vrot.lane.b32.xlu1 %v4896_v41, %s4226_s15  ;;  %2114 = vmatpush1.bf16.msra.mxu0 %v2020_v23  ;;  %v5443_v10 = vpop.f32.mrb[7].mxu0  ;;  %v2037_v39 = vsel %vm209_vm8, %v2030_v11, %v2032_v18 }
 0x1e8   :  { %v5445_v44 = vpop.f32.mrb[4].mxu1 }
 0x1e9   :  { %3295 = vrot.lane.b32.xlu0 %v5367_v27, %s4226_s15  ;;  %v2460_v30 = vpop.permute.xlu1 %2459  ;;  %v2506_v49 = vld [vmem:[#allocation2 + $0x218] sm:$0xff]  ;;  %v5449_v26 = vpop.f32.mrb[5].mxu1 }
 0x1ea   :  { %2472 = vst.msk [vmem:[#allocation2 + $0x228] sm:$0xff] %vm64_vm0, %v2460_v30  ;;  %v2458_v25 = vpop.permute.xlu0 %2457  ;;  %2116 = vmatmul.mubr.bf16.vlgmr.msra.gmra.mrb[32].mxu0 %v4692_v52  ;;  %2541 = vmatprep.subr.bf16.mxu1 %v2506_v49  ;;  %v5454_v1 = vpop.f32.mrb[6].mxu1 }
 0x1eb   :  { %2873 = vrot.lane.b32.xlu1 %v4901_v59, %s4226_s15  ;;  %2542 = vmatpush1.bf16.msra.mxu1 %v2448_v29  ;;  %v5458_v58 = vpop.f32.mrb[7].mxu1  ;;  %v2465_v51 = vsel %vm209_vm8, %v2458_v25, %v2460_v30  ;;  %v5538_v30 = vld [vmem:[%s6366_s1 + $0x30] ss:$12 sps:$4 sm:$0xff]  }
 0x1ec   :  { %2125 = vmatprep.mubr.bf16.mxu0 %v5463_v24  ;;  %v5466_v37 = vpop.f32.mrb[8].mxu0 }
 0x1ed   :  { %2871 = vrot.lane.b32.xlu0 %v5375_v40, %s4226_s15  ;;  %v2036_v28 = vpop.permute.xlu1 %2035  ;;  %v2080_v33 = vld [vmem:[#allocation2 + $0x108] sm:$0xff]  ;;  %v5470_v38 = vpop.f32.mrb[9].mxu0 }
 0x1ee   :  { %2046 = vst.msk [vmem:[#allocation2 + $0x118] sm:$0xff] %vm64_vm0, %v2036_v28  ;;  %v2034_v45 = vpop.permute.xlu0 %2033  ;;  %2156 = vmatprep.subr.bf16.mxu0 %v2080_v33  ;;  %2544 = vmatmul.mubr.bf16.vlgmr.msra.gmra.mrb[32].mxu1 %v4692_v52  ;;  %v5475_v42 = vpop.f32.mrb[10].mxu0 }
 0x1ef   :  { %3301 = vrot.lane.b32.xlu1 %v4939_v56, %s4226_s15  ;;  %2157 = vmatpush1.bf16.msra.mxu0 %v2037_v39  ;;  %v5479_v47 = vpop.f32.mrb[11].mxu0 }
 0x1f0   :  { %2553 = vmatprep.mubr.bf16.mxu1 %v5463_v24  ;;  %v5482_v48 = vpop.f32.mrb[8].mxu1 }
 0x1f1   :  { %3299 = vrot.lane.b32.xlu0 %v5417_v20, %s4226_s15  ;;  %v2464_v57 = vpop.permute.xlu1 %2463  ;;  %v2508_v60 = vld [vmem:[#allocation2 + $0x228] sm:$0xff]  ;;  %v5486_v61 = vpop.f32.mrb[9].mxu1 }
 0x1f2   :  { %2474 = vst.msk [vmem:[#allocation2 + $0x238] sm:$0xff] %vm64_vm0, %v2464_v57  ;;  %v2462_v63 = vpop.permute.xlu0 %2461  ;;  %2126 = vmatmul.mubr.bf16.gmra.mrb[36].mxu0 %v5493_v0  ;;  %2584 = vmatprep.subr.bf16.mxu1 %v2508_v60  ;;  %v5496_v3 = vpop.f32.mrb[10].mxu1  ;;  %v5575_v60 = vld [vmem:[%s6366_s1 + $0x48] ss:$12 sps:$4 sm:$0xff]  }
 0x1f3   :  { %2887 = vrot.lane.b32.xlu1 %v4850_v32, %s4227_s19  ;;  %2585 = vmatpush1.bf16.msra.mxu1 %v2465_v51  ;;  %v5500_v34 = vpop.f32.mrb[11].mxu1  ;;  %v2038_v32 = vsel %vm209_vm8, %v2034_v45, %v2036_v28  ;;  %v2466_v11 = vsel %vm209_vm8, %v2462_v63, %v2464_v57  ;;  %v5553_v28 = vld [vmem:[%s6366_s1 + $0x4c] ss:$12 sps:$4 sm:$0xff]  }
 0x1f4   :  { %2135 = vmatprep.mubr.bf16.mxu0 %v5505_v6  ;;  %v5508_v2 = vpop.f32.mrb[12].mxu0  ;;  %v32_v45 = vld [vmem:[%s6367_s2 + $0x8] sm:$0xff] }
 0x1f5   :  { %2885 = vrot.lane.b32.xlu0 %v5359_v31, %s4227_s19  ;;  %v2762_v9 = vpop.permute.xlu1 %2761  ;;  %v2082_v12 = vld [vmem:[#allocation2 + $0x118] sm:$0xff]  ;;  %v5512_v15 = vpop.f32.mrb[13].mxu0 }
 0x1f6   :  { %2774 = vst.msk [vmem:[#allocation2 + $0x28] sm:$0xff] %vm64_vm0, %v2762_v9  ;;  %v2760_v17 = vpop.permute.xlu0 %2759  ;;  %2158 = vmatprep.subr.bf16.mxu0 %v2082_v12  ;;  %2554 = vmatmul.mubr.bf16.gmra.mrb[36].mxu1 %v5493_v0  ;;  %v5517_v19 = vpop.f32.mrb[14].mxu0 }
 0x1f7   :  { %v5520_v21 = vsel %vm76_vm1, %v2760_v17, %v2762_v9  ;;  %3315 = vrot.lane.b32.xlu1 %v4896_v41, %s4227_s19  ;;  %2159 = vmatpush1.bf16.msra.mxu0 %v2038_v32  ;;  %v5524_v35 = vpop.f32.mrb[15].mxu0  ;;  %v33_v9 = vld [vmem:[%s6367_s2 + $0x10] sm:$0xff] }
 0x1f8   :  { %6375 = vst [vmem:[#allocation3_spill] sm:$0xff] %v5524_v35  ;;  %2563 = vmatprep.mubr.bf16.mxu1 %v5505_v6  ;;  %2939 = vmatprep.subr.bf16.mxu0 %v2904_v14  ;;  %v5527_v54 = vpop.f32.mrb[12].mxu1  ;;  %v34_v14 = vld [vmem:[%s6367_s2 + $0x18] sm:$0xff] }
 0x1f9   :  { %3313 = vrot.lane.b32.xlu0 %v5367_v27, %s4227_s19  ;;  %v3190_v5 = vpop.permute.xlu1 %3189  ;;  %v2510_v18 = vld [vmem:[#allocation2 + $0x238] sm:$0xff]  ;;  %v5531_v23 = vpop.f32.mrb[13].mxu1 }
 0x1fa   :  { %3202 = vst.msk [vmem:[#allocation2 + $0x148] sm:$0xff] %vm64_vm0, %v3190_v5  ;;  %v3188_v41 = vpop.permute.xlu0 %3187  ;;  %2136 = vmatmul.mubr.bf16.gmra.mrb[40].mxu0 %v5538_v30  ;;  %2586 = vmatprep.subr.bf16.mxu1 %v2510_v18  ;;  %v5541_v49 = vpop.f32.mrb[14].mxu1 }
 0x1fb   :  { %6376 = vst [vmem:[#allocation4_spill] sm:$0xff] %v5541_v49  ;;  %v5544_v29 = vsel %vm76_vm1, %v3188_v41, %v3190_v5  ;;  %2891 = vrot.lane.b32.xlu1 %v4901_v59, %s4227_s19  ;;  %2587 = vmatpush1.bf16.msra.mxu1 %v2466_v11  ;;  %v5548_v25 = vpop.f32.mrb[15].mxu1  ;;  %v35_v5 = vld [vmem:[%s6367_s2 + $0x20] sm:$0xff]  ;;  %v5602_v11 = vld [vmem:[%s6366_s1 + $0x8] ss:$12 sps:$4 sm:$0xff]  }
 0x1fc   :  { %6377 = vst [vmem:[#allocation5_spill] sm:$0xff] %v5548_v25  ;;  %2145 = vmatprep.mubr.bf16.mxu0 %v5553_v28  ;;  %3367 = vmatprep.subr.bf16.mxu1 %v3332_v7  ;;  %v2906_v7 = vld [vmem:[#allocation2 + $0x18] sm:$0xff]  ;;  %v36_v41 = vld [vmem:[%s6367_s2 + $0x28] sm:$0xff] }
 0x1fd   :  { %2889 = vrot.lane.b32.xlu0 %v5375_v40, %s4227_s19  ;;  %v2766_v33 = vpop.permute.xlu1 %2765 }
 0x1fe   :  { %2776 = vst.msk [vmem:[#allocation2 + $0x38] sm:$0xff] %vm64_vm0, %v2766_v33  ;;  %v2764_v39 = vpop.permute.xlu0 %2763  ;;  %2564 = vmatmul.mubr.bf16.gmra.mrb[40].mxu1 %v5538_v30 }
 0x1ff   :  { %v5561_v59 = vsel %vm76_vm1, %v2764_v39, %v2766_v33  ;;  %3319 = vrot.lane.b32.xlu1 %v4939_v56, %s4227_s19  ;;  %2573 = vmatprep.mubr.bf16.mxu1 %v5553_v28  ;;  %v31_v56 = vld [vmem:[%s6367_s2] sm:$0xff] }
 0x201   :  { %3317 = vrot.lane.b32.xlu0 %v5417_v20, %s4227_s19  ;;  %v3194_v57 = vpop.permute.xlu1 %3193 }
 0x202   :  { %3204 = vst.msk [vmem:[#allocation2 + $0x158] sm:$0xff] %vm64_vm0, %v3194_v57  ;;  %2146 = vmatmul.mubr.bf16.gmra.mrb[44].mxu0 %v5575_v60 }
 0x203   :  { %v3192_v51 = vpop.permute.xlu0 %3191  ;;  %263 = vperm.xlu1 %4144, %v32_v45   ;;  %2188 = vmatprep.mubr.bf16.mxu0 %v6369_v50 }
 0x204   :  { %v5583_v63 = vsel %vm76_vm1, %v3192_v51, %v3194_v57  ;;  %v37_v57 = vld [vmem:[%s6367_s2 + $0x30] sm:$0xff] }
 0x205   :  { %258 = vperm.xlu0 %4143, %v31_v56   ;;  %v2780_v12 = vpop.permute.xlu1 %2779  ;;  %v3334_v56 = vld [vmem:[#allocation2 + $0x138] sm:$0xff] }
 0x206   :  { %2792 = vst.msk [vmem:[#allocation2 + $0x48] sm:$0xff] %vm64_vm0, %v2780_v12  ;;  %2574 = vmatmul.mubr.bf16.gmra.mrb[44].mxu1 %v5575_v60 }
 0x207   :  { %v2778_v32 = vpop.permute.xlu0 %2777  ;;  %268 = vperm.xlu1 %4144, %v33_v9   ;;  %2616 = vmatprep.mubr.bf16.mxu1 %v6369_v50  ;;  %v2908_v9 = vld [vmem:[#allocation2 + $0x28] sm:$0xff] }
 0x208   :  { %v2785_v17 = vsel %vm95_vm2, %v2778_v32, %v2780_v12  ;;  %v5631_v32 = vld [vmem:[%s6366_s1 + $0x20] ss:$12 sps:$4 sm:$0xff]  }
 0x209   :  { %273 = vperm.xlu0 %4143, %v34_v14   ;;  %v3208_v18 = vpop.permute.xlu1 %3207 }
 0x20a   :  { %3220 = vst.msk [vmem:[#allocation2 + $0x168] sm:$0xff] %vm64_vm0, %v3208_v18  ;;  %3710 = vmatmul.mubr.msk.bf16.vlgmr.msra.gmra.mrb[32].mxu0 %vm356_vm9, %v5602_v11 }
 0x20b   :  { %v3206_v33 = vpop.permute.xlu0 %3205  ;;  %2940 = vmatpush1.bf16.msra.mxu0 %v5359_v31  ;;  %278 = vperm.xlu1 %4144, %v35_v5   ;;  %v38_v31 = vld [vmem:[%s6367_s2 + $0x38] sm:$0xff]  ;;  %v3336_v5 = vld [vmem:[#allocation2 + $0x148] sm:$0xff] }
 0x20c   :  { %v5611_v39 = vsel %vm95_vm2, %v3206_v33, %v3208_v18  ;;  %2941 = vmatprep.subr.bf16.mxu0 %v2906_v7  ;;  %2198 = vmatprep.mubr.bf16.mxu0 %v6369_v50 }
 0x20d   :  { %283 = vperm.xlu0 %4143, %v36_v41   ;;  %v2784_v45 = vpop.permute.xlu1 %2783 }
 0x20e   :  { %2794 = vst.msk [vmem:[#allocation2 + $0x58] sm:$0xff] %vm64_vm0, %v2784_v45  ;;  %3738 = vmatmul.mubr.msk.bf16.vlgmr.msra.gmra.mrb[32].mxu1 %vm356_vm9, %v5602_v11 }
 0x20f   :  { %v2782_v51 = vpop.permute.xlu0 %2781  ;;  %2942 = vmatpush1.bf16.msra.mxu0 %v5375_v40  ;;  %3368 = vmatpush1.bf16.msra.mxu1 %v5367_v27  ;;  %v2910_v40 = vld [vmem:[#allocation2 + $0x38] sm:$0xff] }
 0x210   :  { %v2786_v12 = vsel %vm95_vm2, %v2782_v51, %v2784_v45  ;;  %288 = vperm.xlu1 %4144, %v37_v57   ;;  %2943 = vmatprep.subr.bf16.mxu0 %v2908_v9  ;;  %v5650_v57 = vld [vmem:[%s6366_s1 + $0x38] ss:$12 sps:$4 sm:$0xff]  }
 0x211   :  { %293 = vperm.xlu0 %4143, %v38_v31   ;;  %v3212_v14 = vpop.permute.xlu1 %3211  ;;  %3369 = vmatprep.subr.bf16.mxu1 %v3334_v56  ;;  %v3340_v31 = vld [vmem:[#allocation2 + $0x168] sm:$0xff] }
 0x212   :  { %3222 = vst.msk [vmem:[#allocation2 + $0x178] sm:$0xff] %vm64_vm0, %v3212_v14  ;;  %2626 = vmatprep.mubr.bf16.mxu1 %v6369_v50  ;;  %3711 = vmatmul.mubr.msk.bf16.gmra.mrb[36].mxu0 %vm356_vm9, %v5631_v32 }
 0x213   :  { %v3210_v27 = vpop.permute.xlu0 %3209  ;;  %2944 = vmatpush1.bf16.msra.mxu0 %v5520_v21  ;;  %3370 = vmatpush1.bf16.msra.mxu1 %v5417_v20  ;;  %v2912_v20 = vld [vmem:[#allocation2 + $0x48] sm:$0xff]  ;;  %v3338_v21 = vld [vmem:[#allocation2 + $0x158] sm:$0xff] }
 0x214   :  { %v3214_v18 = vsel %vm95_vm2, %v3210_v27, %v3212_v14  ;;  %2945 = vmatprep.subr.bf16.mxu0 %v2910_v40  ;;  %3371 = vmatprep.subr.bf16.mxu1 %v3336_v5  ;;  %v5667_v5 = vld [vmem:[%s6366_s1 + $0x50] ss:$12 sps:$4 sm:$0xff]  }
 0x215   :  { %v2798_v7 = vpop.permute.xlu1 %2797  ;;  %2208 = vmatprep.mubr.bf16.mxu0 %v6369_v50  ;;  %6378 = vst [vmem:[#allocation6_spill] sm:$0xff] %v5667_v5 }
 0x216   :  { %2810 = vst.msk [vmem:[#allocation2 + $0x68] sm:$0xff] %vm64_vm0, %v2798_v7  ;;  %3739 = vmatmul.mubr.msk.bf16.gmra.mrb[36].mxu1 %vm356_vm9, %v5631_v32 }
 0x217   :  { %v2796_v41 = vpop.permute.xlu0 %2795  ;;  %2946 = vmatpush1.bf16.msra.mxu0 %v5561_v59  ;;  %3372 = vmatpush1.bf16.msra.mxu1 %v5544_v29  ;;  %v2914_v59 = vld [vmem:[#allocation2 + $0x58] sm:$0xff] }
 0x218   :  { %v2803_v33 = vsel %vm114_vm3, %v2796_v41, %v2798_v7  ;;  %2947 = vmatprep.subr.bf16.mxu0 %v2912_v20  ;;  %3373 = vmatprep.subr.bf16.mxu1 %v3338_v21  ;;  %v4219_v7 = vld [vmem:[%s6366_s1 + $0x4] ss:$12 sps:$4 sm:$0xff]  }
 0x219   :  { %v3226_v45 = vpop.permute.xlu1 %3225  ;;  %2636 = vmatprep.mubr.bf16.mxu1 %v6369_v50 }
 0x21a   :  { %3238 = vst.msk [vmem:[#allocation2 + $0x188] sm:$0xff] %vm64_vm0, %v3226_v45  ;;  %3712 = vmatmul.mubr.msk.bf16.gmra.mrb[40].mxu0 %vm356_vm9, %v5650_v57 }
 0x21b   :  { %v3224_v29 = vpop.permute.xlu0 %3223  ;;  %2948 = vmatpush1.bf16.msra.mxu0 %v2785_v17  ;;  %3374 = vmatpush1.bf16.msra.mxu1 %v5583_v63  ;;  %v3342_v63 = vld [vmem:[#allocation2 + $0x178] sm:$0xff] }
 0x21c   :  { %v3231_v56 = vsel %vm114_vm3, %v3224_v29, %v3226_v45  ;;  %2949 = vmatprep.subr.bf16.mxu0 %v2914_v59  ;;  %3375 = vmatprep.subr.bf16.mxu1 %v3340_v31 }
 0x21d   :  { %v2802_v51 = vpop.permute.xlu1 %2801  ;;  %v2916_v9 = vld [vmem:[#allocation2 + $0x68] sm:$0xff]  ;;  %2218 = vmatprep.mubr.bf16.mxu0 %v6369_v50 }
 0x21e   :  { %2812 = vst.msk [vmem:[#allocation2 + $0x78] sm:$0xff] %vm64_vm0, %v2802_v51  ;;  %3740 = vmatmul.mubr.msk.bf16.gmra.mrb[40].mxu1 %vm356_vm9, %v5650_v57 }
 0x21f   :  { %v2800_v14 = vpop.permute.xlu0 %2799  ;;  %2950 = vmatpush1.bf16.msra.mxu0 %v2786_v12  ;;  %3376 = vmatpush1.bf16.msra.mxu1 %v5611_v39 }
 0x220   :  { %v2804_v17 = vsel %vm114_vm3, %v2800_v14, %v2802_v51  ;;  %2951 = vmatprep.subr.bf16.mxu0 %v2916_v9  ;;  %3377 = vmatprep.subr.bf16.mxu1 %v3342_v63 }
 0x221   :  { %v3230_v27 = vpop.permute.xlu1 %3229  ;;  %v3344_v40 = vld [vmem:[#allocation2 + $0x188] sm:$0xff]  ;;  %2646 = vmatprep.mubr.bf16.mxu1 %v6369_v50 }
 0x222   :  { %3240 = vst.msk [vmem:[#allocation2 + $0x198] sm:$0xff] %vm64_vm0, %v3230_v27  ;;  %3713 = vmatmul.mubr.msk.bf16.gmra.mrb[44].mxu0 %vm356_vm9, %v5667_v5 }
 0x223   :  { %v3228_v39 = vpop.permute.xlu0 %3227  ;;  %2952 = vmatpush1.bf16.msra.mxu0 %v2803_v33  ;;  %3378 = vmatpush1.bf16.msra.mxu1 %v3214_v18 }
 0x224   :  { %v3232_v12 = vsel %vm114_vm3, %v3228_v39, %v3230_v27  ;;  %3379 = vmatprep.subr.bf16.mxu1 %v3344_v40  ;;  %2971 = vmatprep.mubr.bf16.mxu0 %v4219_v7 }
 0x225   :  { %v2816_v41 = vpop.permute.xlu1 %2815  ;;  %v2918_v20 = vld [vmem:[#allocation2 + $0x78] sm:$0xff] }
 0x226   :  { %2828 = vst.msk [vmem:[#allocation2 + $0x88] sm:$0xff] %vm64_vm0, %v2816_v41  ;;  %2953 = vmatprep.subr.bf16.mxu0 %v2918_v20  ;;  %3741 = vmatmul.mubr.msk.bf16.gmra.mrb[44].mxu1 %vm356_vm9, %v5667_v5 }
 0x227   :  { %v2814_v21 = vpop.permute.xlu0 %2813  ;;  %3380 = vmatpush1.bf16.msra.mxu1 %v3231_v56  ;;  %2954 = vmatpush1.bf16.msra.mxu0 %v2804_v17 }
 0x228   :  { %v2821_v18 = vsel %vm133_vm4, %v2814_v21, %v2816_v41  ;;  %3399 = vmatprep.mubr.bf16.mxu1 %v4219_v7 }
 0x229   :  { %v3244_v33 = vpop.permute.xlu1 %3243  ;;  %v3346_v45 = vld [vmem:[#allocation2 + $0x198] sm:$0xff] }
 0x22a   :  { %3256 = vst.msk [vmem:[#allocation2 + $0x1a8] sm:$0xff] %vm64_vm0, %v3244_v33  ;;  %3381 = vmatprep.subr.bf16.mxu1 %v3346_v45 }
 0x22b   :  { %v3242_v29 = vpop.permute.xlu0 %3241  ;;  %3382 = vmatpush1.bf16.msra.mxu1 %v3232_v12 }
 0x22c   :  { %v3249_v59 = vsel %vm133_vm4, %v3242_v29, %v3244_v33 }
 0x22d   :  { %v2820_v31 = vpop.permute.xlu1 %2819  ;;  %v2920_v51 = vld [vmem:[#allocation2 + $0x88] sm:$0xff] }
 0x22e   :  { %2830 = vst.msk [vmem:[#allocation2 + $0x98] sm:$0xff] %vm64_vm0, %v2820_v31  ;;  %2955 = vmatprep.subr.bf16.mxu0 %v2920_v51 }
 0x22f   :  { %v2818_v9 = vpop.permute.xlu0 %2817  ;;  %2956 = vmatpush1.bf16.msra.mxu0 %v2821_v18 }
 0x230   :  { %v2822_v56 = vsel %vm133_vm4, %v2818_v9, %v2820_v31 }
 0x231   :  { %v3248_v14 = vpop.permute.xlu1 %3247  ;;  %v3348_v63 = vld [vmem:[#allocation2 + $0x1a8] sm:$0xff] }
 0x232   :  { %3258 = vst.msk [vmem:[#allocation2 + $0x1b8] sm:$0xff] %vm64_vm0, %v3248_v14  ;;  %3383 = vmatprep.subr.bf16.mxu1 %v3348_v63 }
 0x233   :  { %v3246_v17 = vpop.permute.xlu0 %3245  ;;  %3384 = vmatpush1.bf16.msra.mxu1 %v3249_v59 }
 0x234   :  { %v3250_v27 = vsel %vm133_vm4, %v3246_v17, %v3248_v14 }
 0x235   :  { %v2834_v40 = vpop.permute.xlu1 %2833  ;;  %v2922_v39 = vld [vmem:[#allocation2 + $0x98] sm:$0xff] }
 0x236   :  { %2846 = vst.msk [vmem:[#allocation2 + $0xa8] sm:$0xff] %vm64_vm0, %v2834_v40  ;;  %2957 = vmatprep.subr.bf16.mxu0 %v2922_v39 }
 0x237   :  { %v2832_v12 = vpop.permute.xlu0 %2831  ;;  %2958 = vmatpush1.bf16.msra.mxu0 %v2822_v56 }
 0x238   :  { %v2839_v7 = vsel %vm152_vm5, %v2832_v12, %v2834_v40 }
 0x239   :  { %v3262_v41 = vpop.permute.xlu1 %3261  ;;  %v3350_v20 = vld [vmem:[#allocation2 + $0x1b8] sm:$0xff] }
 0x23a   :  { %3274 = vst.msk [vmem:[#allocation2 + $0x1c8] sm:$0xff] %vm64_vm0, %v3262_v41  ;;  %3385 = vmatprep.subr.bf16.mxu1 %v3350_v20 }
 0x23b   :  { %v3260_v21 = vpop.permute.xlu0 %3259  ;;  %3386 = vmatpush1.bf16.msra.mxu1 %v3250_v27 }
 0x23c   :  { %v3267_v18 = vsel %vm152_vm5, %v3260_v21, %v3262_v41 }
 0x23d   :  { %v2838_v33 = vpop.permute.xlu1 %2837  ;;  %v2924_v45 = vld [vmem:[#allocation2 + $0xa8] sm:$0xff] }
 0x23e   :  { %2848 = vst.msk [vmem:[#allocation2 + $0xb8] sm:$0xff] %vm64_vm0, %v2838_v33  ;;  %2959 = vmatprep.subr.bf16.mxu0 %v2924_v45 }
 0x23f   :  { %v2836_v29 = vpop.permute.xlu0 %2835  ;;  %2960 = vmatpush1.bf16.msra.mxu0 %v2839_v7 }
 0x240   :  { %v2840_v59 = vsel %vm152_vm5, %v2836_v29, %v2838_v33 }
 0x241   :  { %v3266_v31 = vpop.permute.xlu1 %3265  ;;  %v3352_v51 = vld [vmem:[#allocation2 + $0x1c8] sm:$0xff] }
 0x242   :  { %3276 = vst.msk [vmem:[#allocation2 + $0x1d8] sm:$0xff] %vm64_vm0, %v3266_v31  ;;  %3387 = vmatprep.subr.bf16.mxu1 %v3352_v51 }
 0x243   :  { %v3264_v9 = vpop.permute.xlu0 %3263  ;;  %3388 = vmatpush1.bf16.msra.mxu1 %v3267_v18 }
 0x244   :  { %v3268_v56 = vsel %vm152_vm5, %v3264_v9, %v3266_v31 }
 0x245   :  { %v2852_v14 = vpop.permute.xlu1 %2851  ;;  %v2926_v63 = vld [vmem:[#allocation2 + $0xb8] sm:$0xff] }
 0x246   :  { %2864 = vst.msk [vmem:[#allocation2 + $0xc8] sm:$0xff] %vm64_vm0, %v2852_v14  ;;  %2961 = vmatprep.subr.bf16.mxu0 %v2926_v63 }
 0x247   :  { %v2850_v17 = vpop.permute.xlu0 %2849  ;;  %2962 = vmatpush1.bf16.msra.mxu0 %v2840_v59 }
 0x248   :  { %v2857_v27 = vsel %vm171_vm6, %v2850_v17, %v2852_v14 }
 0x249   :  { %v3280_v40 = vpop.permute.xlu1 %3279  ;;  %v3354_v39 = vld [vmem:[#allocation2 + $0x1d8] sm:$0xff] }
 0x24a   :  { %3292 = vst.msk [vmem:[#allocation2 + $0x1e8] sm:$0xff] %vm64_vm0, %v3280_v40  ;;  %3389 = vmatprep.subr.bf16.mxu1 %v3354_v39 }
 0x24b   :  { %v3278_v12 = vpop.permute.xlu0 %3277  ;;  %3390 = vmatpush1.bf16.msra.mxu1 %v3268_v56 }
 0x24c   :  { %v3285_v7 = vsel %vm171_vm6, %v3278_v12, %v3280_v40 }
 0x24d   :  { %v2856_v41 = vpop.permute.xlu1 %2855  ;;  %v2928_v20 = vld [vmem:[#allocation2 + $0xc8] sm:$0xff] }
 0x24e   :  { %2866 = vst.msk [vmem:[#allocation2 + $0xd8] sm:$0xff] %vm64_vm0, %v2856_v41  ;;  %2963 = vmatprep.subr.bf16.mxu0 %v2928_v20 }
 0x24f   :  { %v2854_v21 = vpop.permute.xlu0 %2853  ;;  %2964 = vmatpush1.bf16.msra.mxu0 %v2857_v27 }
 0x250   :  { %v2858_v18 = vsel %vm171_vm6, %v2854_v21, %v2856_v41 }
 0x251   :  { %v3284_v33 = vpop.permute.xlu1 %3283  ;;  %v3356_v45 = vld [vmem:[#allocation2 + $0x1e8] sm:$0xff] }
 0x252   :  { %3294 = vst.msk [vmem:[#allocation2 + $0x1f8] sm:$0xff] %vm64_vm0, %v3284_v33  ;;  %3391 = vmatprep.subr.bf16.mxu1 %v3356_v45 }
 0x253   :  { %v3282_v29 = vpop.permute.xlu0 %3281  ;;  %3392 = vmatpush1.bf16.msra.mxu1 %v3285_v7 }
 0x254   :  { %v3286_v59 = vsel %vm171_vm6, %v3282_v29, %v3284_v33 }
 0x255   :  { %v2870_v31 = vpop.permute.xlu1 %2869  ;;  %v2930_v51 = vld [vmem:[#allocation2 + $0xd8] sm:$0xff] }
 0x256   :  { %2882 = vst.msk [vmem:[#allocation2 + $0xe8] sm:$0xff] %vm64_vm0, %v2870_v31  ;;  %2965 = vmatprep.subr.bf16.mxu0 %v2930_v51 }
 0x257   :  { %v2868_v9 = vpop.permute.xlu0 %2867  ;;  %2966 = vmatpush1.bf16.msra.mxu0 %v2858_v18 }
 0x258   :  { %v2875_v56 = vsel %vm190_vm7, %v2868_v9, %v2870_v31 }
 0x259   :  { %v3298_v14 = vpop.permute.xlu1 %3297  ;;  %v3358_v63 = vld [vmem:[#allocation2 + $0x1f8] sm:$0xff] }
 0x25a   :  { %3310 = vst.msk [vmem:[#allocation2 + $0x208] sm:$0xff] %vm64_vm0, %v3298_v14  ;;  %3393 = vmatprep.subr.bf16.mxu1 %v3358_v63 }
 0x25b   :  { %v3296_v17 = vpop.permute.xlu0 %3295  ;;  %3394 = vmatpush1.bf16.msra.mxu1 %v3286_v59 }
 0x25c   :  { %v3303_v27 = vsel %vm190_vm7, %v3296_v17, %v3298_v14 }
 0x25d   :  { %v2874_v40 = vpop.permute.xlu1 %2873  ;;  %v2932_v39 = vld [vmem:[#allocation2 + $0xe8] sm:$0xff] }
 0x25e   :  { %2884 = vst.msk [vmem:[#allocation2 + $0xf8] sm:$0xff] %vm64_vm0, %v2874_v40  ;;  %2967 = vmatprep.subr.bf16.mxu0 %v2932_v39  ;;  %v5706_v12 = vpop.f32.mrb[16].mxu0 }
 0x25f   :  { %v2872_v7 = vpop.permute.xlu0 %2871  ;;  %2968 = vmatpush1.bf16.msra.mxu0 %v2875_v56  ;;  %v5708_v41 = vpop.f32.mrb[17].mxu0 }
 0x260   :  { %v2876_v20 = vsel %vm190_vm7, %v2872_v7, %v2874_v40  ;;  %v5711_v21 = vpop.f32.mrb[18].mxu0 }
 0x261   :  { %v3302_v18 = vpop.permute.xlu1 %3301  ;;  %v3360_v33 = vld [vmem:[#allocation2 + $0x208] sm:$0xff]  ;;  %v5713_v45 = vpop.f32.mrb[19].mxu0 }
 0x262   :  { %3312 = vst.msk [vmem:[#allocation2 + $0x218] sm:$0xff] %vm64_vm0, %v3302_v18  ;;  %3395 = vmatprep.subr.bf16.mxu1 %v3360_v33  ;;  %v5716_v29 = vpop.f32.mrb[16].mxu1 }
 0x263   :  { %v3300_v59 = vpop.permute.xlu0 %3299  ;;  %3396 = vmatpush1.bf16.msra.mxu1 %v3303_v27  ;;  %v5718_v31 = vpop.f32.mrb[17].mxu1 }
 0x264   :  { %v3304_v51 = vsel %vm190_vm7, %v3300_v59, %v3302_v18  ;;  %v5721_v9 = vpop.f32.mrb[18].mxu1 }
 0x265   :  { %v2888_v56 = vpop.permute.xlu1 %2887  ;;  %v2934_v14 = vld [vmem:[#allocation2 + $0xf8] sm:$0xff]  ;;  %v5723_v63 = vpop.f32.mrb[19].mxu1 }
 0x266   :  { %2900 = vst.msk [vmem:[#allocation2 + $0x108] sm:$0xff] %vm64_vm0, %v2888_v56  ;;  %2969 = vmatprep.subr.bf16.mxu0 %v2934_v14  ;;  %v5726_v17 = vpop.f32.mrb[20].mxu0 }
 0x267   :  { %v2886_v40 = vpop.permute.xlu0 %2885  ;;  %2970 = vmatpush1.bf16.msra.mxu0 %v2876_v20  ;;  %v5728_v39 = vpop.f32.mrb[21].mxu0 }
 0x268   :  { %v2893_v27 = vsel %vm209_vm8, %v2886_v40, %v2888_v56  ;;  %v5731_v7 = vpop.f32.mrb[22].mxu0 }
 0x269   :  { %6379 = vst [vmem:[#allocation7_spill] sm:$0xff] %v5731_v7  ;;  %v3316_v18 = vpop.permute.xlu1 %3315  ;;  %v3362_v33 = vld [vmem:[#allocation2 + $0x218] sm:$0xff]  ;;  %v5733_v59 = vpop.f32.mrb[23].mxu0 }
 0x26a   :  { %6380 = vst [vmem:[#allocation8_spill] sm:$0xff] %v5733_v59  ;;  %3328 = vst.msk [vmem:[#allocation2 + $0x228] sm:$0xff] %vm64_vm0, %v3316_v18  ;;  %2972 = vmatmul.mubr.bf16.vlgmr.msra.gmra.mrb[48].mxu0 %v4692_v52  ;;  %3397 = vmatprep.subr.bf16.mxu1 %v3362_v33  ;;  %v5737_v14 = vpop.f32.mrb[20].mxu1 }
 0x26b   :  { %v3314_v50 = vpop.permute.xlu0 %3313  ;;  %3398 = vmatpush1.bf16.msra.mxu1 %v3304_v51  ;;  %2981 = vmatprep.mubr.bf16.mxu0 %v5463_v24  ;;  %v5740_v20 = vpop.f32.mrb[21].mxu1 }
 0x26c   :  { %v3321_v56 = vsel %vm209_vm8, %v3314_v50, %v3316_v18  ;;  %v5743_v40 = vpop.f32.mrb[22].mxu1 }
 0x26d   :  { %v2936_v5 = vld [vmem:[#allocation2 + $0x108] sm:$0xff]  ;;  %v2892_v7 = vpop.permute.xlu1 %2891  ;;  %v5745_v59 = vpop.f32.mrb[23].mxu1 }
 0x26e   :  { %6381 = vst [vmem:[#allocation9_spill] sm:$0xff] %v5745_v59  ;;  %3012 = vmatprep.subr.bf16.mxu0 %v2936_v5  ;;  %3400 = vmatmul.mubr.bf16.vlgmr.msra.gmra.mrb[48].mxu1 %v4692_v52  ;;  %2902 = vst.msk [vmem:[#allocation2 + $0x118] sm:$0xff] %vm64_vm0, %v2892_v7  ;;  %v5749_v33 = vpop.f32.mrb[24].mxu0 }
 0x26f   :  { %3013 = vmatpush1.bf16.msra.mxu0 %v2893_v27  ;;  %3409 = vmatprep.mubr.bf16.mxu1 %v5463_v24  ;;  %v2890_v51 = vpop.permute.xlu0 %2889  ;;  %v5752_v25 = vpop.f32.mrb[25].mxu0 }
 0x270   :  { %6382 = vst [vmem:[#allocation10_spill] sm:$0xff] %v5752_v25  ;;  %v2894_v50 = vsel %vm209_vm8, %v2890_v51, %v2892_v7  ;;  %v5755_v18 = vpop.f32.mrb[26].mxu0 }
 0x271   :  { %6383 = vst [vmem:[#allocation11_spill] sm:$0xff] %v5755_v18  ;;  %v3364_v49 = vld [vmem:[#allocation2 + $0x228] sm:$0xff]  ;;  %v3320_v35 = vpop.permute.xlu1 %3319  ;;  %v5757_v59 = vpop.f32.mrb[27].mxu0 }
 0x272   :  { %6384 = vst [vmem:[#allocation12_spill] sm:$0xff] %v5757_v59  ;;  %2982 = vmatmul.mubr.bf16.gmra.mrb[52].mxu0 %v5493_v0  ;;  %3440 = vmatprep.subr.bf16.mxu1 %v3364_v49  ;;  %3330 = vst.msk [vmem:[#allocation2 + $0x238] sm:$0xff] %vm64_vm0, %v3320_v35  ;;  %v5761_v52 = vpop.f32.mrb[24].mxu1 }
 0x273   :  { %3441 = vmatpush1.bf16.msra.mxu1 %v3321_v56  ;;  %v3318_v24 = vpop.permute.xlu0 %3317  ;;  %2991 = vmatprep.mubr.bf16.mxu0 %v5505_v6  ;;  %v5764_v5 = vpop.f32.mrb[25].mxu1 }
 0x274   :  { %6385 = vst [vmem:[#allocation13_spill] sm:$0xff] %v5764_v5  ;;  %v3322_v27 = vsel %vm209_vm8, %v3318_v24, %v3320_v35  ;;  %v5767_v7 = vpop.f32.mrb[26].mxu1 }
 0x275   :  { %v2938_v51 = vld [vmem:[#allocation2 + $0x118] sm:$0xff]  ;;  %v5769_v18 = vpop.f32.mrb[27].mxu1 }
 0x276   :  { %3410 = vmatmul.mubr.bf16.gmra.mrb[52].mxu1 %v5493_v0  ;;  %3014 = vmatprep.subr.bf16.mxu0 %v2938_v51  ;;  %v5772_v49 = vpop.f32.mrb[28].mxu0 }
 0x277   :  { %3419 = vmatprep.mubr.bf16.mxu1 %v5505_v6  ;;  %3015 = vmatpush1.bf16.msra.mxu0 %v2894_v50  ;;  %v5775_v56 = vpop.f32.mrb[29].mxu0 }
 0x278   :  { %6386 = vst [vmem:[#allocation14_spill] sm:$0xff] %v5775_v56  ;;  %v5777_v59 = vpop.f32.mrb[30].mxu0 }
 0x279   :  { %6387 = vst [vmem:[#allocation15_spill] sm:$0xff] %v5777_v59  ;;  %v3366_v5 = vld [vmem:[#allocation2 + $0x238] sm:$0xff]  ;;  %v5779_v25 = vpop.f32.mrb[31].mxu0 }
 0x27a   :  { %6388 = vst [vmem:[#allocation16_spill] sm:$0xff] %v5779_v25  ;;  %2992 = vmatmul.mubr.bf16.gmra.mrb[56].mxu0 %v5538_v30  ;;  %3442 = vmatprep.subr.bf16.mxu1 %v3366_v5  ;;  %v5782_v35 = vpop.f32.mrb[28].mxu1 }
 0x27b   :  { %6389 = vst [vmem:[#allocation17_spill] sm:$0xff] %v5782_v35  ;;  %3001 = vmatprep.mubr.bf16.mxu0 %v5553_v28  ;;  %3443 = vmatpush1.bf16.msra.mxu1 %v3322_v27  ;;  %v5785_v0 = vpop.f32.mrb[29].mxu1 }
 0x27c   :  { %6390 = vst [vmem:[#allocation18_spill] sm:$0xff] %v5785_v0  ;;  %v5787_v24 = vpop.f32.mrb[30].mxu1 }
 0x27d   :  { %6391 = vst [vmem:[#allocation19_spill] sm:$0xff] %v5787_v24  ;;  %v5789_v6 = vpop.f32.mrb[31].mxu1 }
 0x27e   :  { %6392 = vst [vmem:[#allocation20_spill] sm:$0xff] %v5789_v6  ;;  %3420 = vmatmul.mubr.bf16.gmra.mrb[56].mxu1 %v5538_v30  ;;  %v6394_v6 = vmov 0  }
 0x27f   :  { %3429 = vmatprep.mubr.bf16.mxu1 %v5553_v28 }
 0x282   :  { %v5793_v50 = vpop.permute.xlu1 %263  ;;  %3002 = vmatmul.mubr.bf16.gmra.mrb[60].mxu0 %v5575_v60 }
 0x283   :  { %6393 = vst [vmem:[#allocation21_spill] sm:$0xff] %v5793_v50  ;;  %v3880_v5 = vadd.f32 %v5409_v53, %v5793_v50  ;;  %v3881_v27 = vadd.f32 %v5413_v8, %v5793_v50  ;;  %v3896_v51 = vadd.f32 %v5425_v55, %v5793_v50  ;;  %v3897_v30 = vadd.f32 %v5429_v36, %v5793_v50 }
 0x284   :  { %3044 = vmatprep.mubr.bf16.mxu0 %v6394_v6  ;;  %v5805_v28 = vpop.permute.xlu0 %258  ;;  %v5809_v25 = vadd.f32 %v5721_v9, %v5793_v50  ;;  %v5813_v53 = vadd.f32 %v5711_v21, %v5793_v50  ;;  %v5817_v8 = vadd.f32 %v5713_v45, %v5793_v50  ;;  %v5821_v55 = vadd.f32 %v5723_v63, %v5793_v50 }
 0x285   :  { %v517_v36 = vmax.f32 %v3880_v5, 0.0  ;;  %v518_v24 = vmax.f32 %v3881_v27, 0.0  ;;  %v947_v59 = vmax.f32 %v3896_v51, 0.0  ;;  %v948_v0 = vmax.f32 %v3897_v30, 0.0 }
 0x286   :  { %v3878_v21 = vadd.f32 %v5401_v13, %v5805_v28  ;;  %v3879_v45 = vadd.f32 %v5405_v16, %v5805_v28  ;;  %v3894_v63 = vadd.f32 %v5415_v46, %v5805_v28  ;;  %v3895_v5 = vadd.f32 %v5421_v4, %v5805_v28  ;;  %3430 = vmatmul.mubr.bf16.gmra.mrb[60].mxu1 %v5575_v60  ;;  %v5842_v13 = vpop.permute.xlu1 %268 }
 0x287   :  { %v3815_v27 = vpack.c.bf16 %v518_v24, %v517_v36  ;;  %v3823_v51 = vpack.c.bf16 %v948_v0, %v947_v59  ;;  %v3910_v30 = vadd.f32 %v5706_v12, %v5805_v28  ;;  %v3926_v50 = vadd.f32 %v5716_v29, %v5805_v28  ;;  %3472 = vmatprep.mubr.bf16.mxu1 %v6394_v6 }
 0x288   :  { %v515_v16 = vmax.f32 %v3878_v21, 0.0  ;;  %v516_v56 = vmax.f32 %v3879_v45, 0.0  ;;  %v945_v46 = vmax.f32 %v3894_v63, 0.0  ;;  %v946_v35 = vmax.f32 %v3895_v5, 0.0  ;;  %v5859_v59 = vpop.permute.xlu0 %273 }
 0x289   :  { %583 = vst.msk [vmem:[%s6368_s3 + $0x8] sm:$0xff] %vm5825_vm12, %v3815_v27  ;;  %3639 = vst.msk [vmem:[%s6368_s3 + $0x48] sm:$0xff] %vm5825_vm12, %v3823_v51  ;;  %v1373_v4 = vmax.f32 %v3910_v30, 0.0  ;;  %v1801_v60 = vmax.f32 %v3926_v50, 0.0  ;;  %v3911_v12 = vadd.f32 %v5708_v41, %v5805_v28  ;;  %v3927_v29 = vadd.f32 %v5718_v31, %v5805_v28 }
 0x28a   :  { %v3814_v0 = vpack.c.bf16 %v516_v56, %v515_v16  ;;  %v3822_v24 = vpack.c.bf16 %v946_v35, %v945_v46  ;;  %v3882_v36 = vadd.f32 %v5431_v62, %v5842_v13  ;;  %v3883_v21 = vadd.f32 %v5435_v43, %v5842_v13  ;;  %3766 = vmatmul.mubr.msk.bf16.vlgmr.msra.gmra.mrb[48].mxu0 %vm356_vm9, %v5602_v11  ;;  %v5885_v27 = vpop.permute.xlu1 %278 }
 0x28b   :  { %v1374_v50 = vmax.f32 %v3911_v12, 0.0  ;;  %v1802_v45 = vmax.f32 %v3927_v29, 0.0  ;;  %v3898_v41 = vadd.f32 %v5445_v44, %v5842_v13  ;;  %v3899_v31 = vadd.f32 %v5449_v26, %v5842_v13  ;;  %3054 = vmatprep.mubr.bf16.mxu0 %v6394_v6 }
 0x28c   :  { %582 = vst.msk [vmem:[%s6368_s3] sm:$0xff] %vm5825_vm12, %v3814_v0  ;;  %3638 = vst.msk [vmem:[%s6368_s3 + $0x40] sm:$0xff] %vm5825_vm12, %v3822_v24  ;;  %v519_v62 = vmax.f32 %v3882_v36, 0.0  ;;  %v520_v43 = vmax.f32 %v3883_v21, 0.0  ;;  %v1803_v44 = vmax.f32 %v5809_v25, 0.0  ;;  %v3884_v26 = vadd.f32 %v5439_v22, %v5859_v59 }
 0x28d   :  { %v3830_v56 = vpack.c.bf16 %v1374_v50, %v1373_v4  ;;  %v3838_v35 = vpack.c.bf16 %v1802_v45, %v1801_v60  ;;  %v949_v63 = vmax.f32 %v3898_v41, 0.0  ;;  %v950_v5 = vmax.f32 %v3899_v31, 0.0 }
 0x28e   :  { %v3816_v51 = vpack.c.bf16 %v520_v43, %v519_v62  ;;  %v3885_v30 = vadd.f32 %v5443_v10, %v5859_v59  ;;  %v521_v16 = vmax.f32 %v3884_v26, 0.0  ;;  %v3900_v46 = vadd.f32 %v5454_v1, %v5859_v59  ;;  %3794 = vmatmul.mubr.msk.bf16.vlgmr.msra.gmra.mrb[48].mxu1 %vm356_vm9, %v5602_v11 }
 0x28f   :  { %3666 = vst.msk [vmem:[%s6368_s3 + $0x80] sm:$0xff] %vm5825_vm12, %v3830_v56  ;;  %3694 = vst.msk [vmem:[%s6368_s3 + $0xc0] sm:$0xff] %vm5825_vm12, %v3838_v35  ;;  %v3824_v22 = vpack.c.bf16 %v950_v5, %v949_v63  ;;  %v3901_v10 = vadd.f32 %v5458_v58, %v5859_v59  ;;  %v1375_v1 = vmax.f32 %v5813_v53, 0.0  ;;  %v1376_v25 = vmax.f32 %v5817_v8, 0.0  ;;  %3482 = vmatprep.mubr.bf16.mxu1 %v6394_v6  ;;  %v5916_v58 = vpop.permute.xlu0 %283 }
 0x290   :  { %584 = vst.msk [vmem:[%s6368_s3 + $0x10] sm:$0xff] %vm5825_vm12, %v3816_v51  ;;  %v522_v11 = vmax.f32 %v3885_v30, 0.0  ;;  %v951_v4 = vmax.f32 %v3900_v46, 0.0  ;;  %v1804_v60 = vmax.f32 %v5821_v55, 0.0  ;;  %v3886_v12 = vadd.f32 %v5466_v37, %v5885_v27 }
 0x291   :  { %3640 = vst.msk [vmem:[%s6368_s3 + $0x50] sm:$0xff] %vm5825_vm12, %v3824_v22  ;;  %v952_v53 = vmax.f32 %v3901_v10, 0.0  ;;  %v3831_v8 = vpack.c.bf16 %v1376_v25, %v1375_v1  ;;  %v3887_v29 = vadd.f32 %v5470_v38, %v5885_v27  ;;  %v3902_v0 = vadd.f32 %v5482_v48, %v5885_v27 }
 0x292   :  { %v3817_v55 = vpack.c.bf16 %v522_v11, %v521_v16  ;;  %v3839_v24 = vpack.c.bf16 %v1804_v60, %v1803_v44  ;;  %v523_v36 = vmax.f32 %v3886_v12, 0.0  ;;  %v3903_v37 = vadd.f32 %v5486_v61, %v5885_v27  ;;  %3767 = vmatmul.mubr.msk.bf16.gmra.mrb[52].mxu0 %vm356_vm9, %v5631_v32  ;;  %v5964_v44 = vpop.permute.xlu1 %288  ;;  %v6397_v12 = vld [vmem:[#allocation3_spill] sm:$0xff] }
 0x293   :  { %v3825_v21 = vpack.c.bf16 %v952_v53, %v951_v4  ;;  %3667 = vst.msk [vmem:[%s6368_s3 + $0x88] sm:$0xff] %vm5825_vm12, %v3831_v8  ;;  %v524_v38 = vmax.f32 %v3887_v29, 0.0  ;;  %v953_v50 = vmax.f32 %v3902_v0, 0.0  ;;  %v3888_v48 = vadd.f32 %v5475_v42, %v5916_v58  ;;  %3064 = vmatprep.mubr.bf16.mxu0 %v6394_v6  ;;  %v5977_v5 = vpop.permute.xlu0 %293  ;;  %v6399_v0 = vld [vmem:[#allocation5_spill] sm:$0xff] }
 0x294   :  { %585 = vst.msk [vmem:[%s6368_s3 + $0x18] sm:$0xff] %vm5825_vm12, %v3817_v55  ;;  %3695 = vst.msk [vmem:[%s6368_s3 + $0xc8] sm:$0xff] %vm5825_vm12, %v3839_v24  ;;  %v954_v61 = vmax.f32 %v3903_v37, 0.0  ;;  %v3889_v45 = vadd.f32 %v5479_v47, %v5916_v58  ;;  %v3904_v42 = vadd.f32 %v5496_v3, %v5916_v58  ;;  %v3905_v41 = vadd.f32 %v5500_v34, %v5916_v58  ;;  %v6400_v24 = vld [vmem:[#allocation7_spill] sm:$0xff] }
 0x295   :  { %3641 = vst.msk [vmem:[%s6368_s3 + $0x58] sm:$0xff] %vm5825_vm12, %v3825_v21  ;;  %v3818_v31 = vpack.c.bf16 %v524_v38, %v523_v36  ;;  %v525_v62 = vmax.f32 %v3888_v48, 0.0  ;;  %v3914_v43 = vadd.f32 %v5726_v17, %v5842_v13  ;;  %v3930_v47 = vadd.f32 %v5737_v14, %v5842_v13  ;;  %v6401_v21 = vld [vmem:[#allocation8_spill] sm:$0xff] }
 0x296   :  { %v3826_v3 = vpack.c.bf16 %v954_v61, %v953_v50  ;;  %v526_v26 = vmax.f32 %v3889_v45, 0.0  ;;  %v955_v56 = vmax.f32 %v3904_v42, 0.0  ;;  %v956_v34 = vmax.f32 %v3905_v41, 0.0  ;;  %3795 = vmatmul.mubr.msk.bf16.gmra.mrb[52].mxu1 %vm356_vm9, %v5631_v32  ;;  %v6402_v50 = vld [vmem:[#allocation9_spill] sm:$0xff] }
 0x297   :  { %586 = vst.msk [vmem:[%s6368_s3 + $0x20] sm:$0xff] %vm5825_vm12, %v3818_v31  ;;  %v1377_v35 = vmax.f32 %v3914_v43, 0.0  ;;  %v1805_v17 = vmax.f32 %v3930_v47, 0.0  ;;  %v3915_v14 = vadd.f32 %v5728_v39, %v5842_v13  ;;  %v3931_v63 = vadd.f32 %v5740_v20, %v5842_v13  ;;  %3492 = vmatprep.mubr.bf16.mxu1 %v6394_v6 }
 0x298   :  { %3642 = vst.msk [vmem:[%s6368_s3 + $0x60] sm:$0xff] %vm5825_vm12, %v3826_v3  ;;  %v3819_v32 = vpack.c.bf16 %v526_v26, %v525_v62  ;;  %v3827_v51 = vpack.c.bf16 %v956_v34, %v955_v56  ;;  %v3890_v30 = vadd.f32 %v5508_v2, %v5964_v44  ;;  %v3891_v39 = vadd.f32 %v5512_v15, %v5964_v44  ;;  %v6403_v26 = vld [vmem:[#allocation10_spill] sm:$0xff]  ;;  %v6404_v34 = vld [vmem:[#allocation13_spill] sm:$0xff] }
 0x299   :  { %v1378_v16 = vmax.f32 %v3915_v14, 0.0  ;;  %v1806_v20 = vmax.f32 %v3931_v63, 0.0  ;;  %v3906_v46 = vadd.f32 %v5527_v54, %v5964_v44  ;;  %v3907_v22 = vadd.f32 %v5531_v23, %v5964_v44 }
 0x29a   :  { %587 = vst.msk [vmem:[%s6368_s3 + $0x28] sm:$0xff] %vm5825_vm12, %v3819_v32  ;;  %3643 = vst.msk [vmem:[%s6368_s3 + $0x68] sm:$0xff] %vm5825_vm12, %v3827_v51  ;;  %v527_v2 = vmax.f32 %v3890_v30, 0.0  ;;  %v528_v15 = vmax.f32 %v3891_v39, 0.0  ;;  %v3932_v54 = vadd.f32 %v5743_v40, %v5859_v59  ;;  %v3892_v23 = vadd.f32 %v5517_v19, %v5977_v5  ;;  %3768 = vmatmul.mubr.msk.bf16.gmra.mrb[56].mxu0 %vm356_vm9, %v5650_v57  ;;  %v6398_v40 = vld [vmem:[#allocation4_spill] sm:$0xff]  ;;  %v6406_v32 = vld [vmem:[#allocation6_spill] sm:$0xff] }
 0x29b   :  { %v3832_v10 = vpack.c.bf16 %v1378_v16, %v1377_v35  ;;  %v3840_v1 = vpack.c.bf16 %v1806_v20, %v1805_v17  ;;  %v957_v25 = vmax.f32 %v3906_v46, 0.0  ;;  %v958_v11 = vmax.f32 %v3907_v22, 0.0  ;;  %3074 = vmatprep.mubr.bf16.mxu0 %v6394_v6  ;;  %v6405_v17 = vld [vmem:[#allocation11_spill] sm:$0xff]  ;;  %v6407_v39 = vld [vmem:[#allocation12_spill] sm:$0xff] }
 0x29c   :  { %v3820_v4 = vpack.c.bf16 %v528_v15, %v527_v2  ;;  %v1807_v60 = vmax.f32 %v3932_v54, 0.0  ;;  %v3893_v53 = vadd.f32 %v6397_v12, %v5977_v5  ;;  %v529_v8 = vmax.f32 %v3892_v23, 0.0  ;;  %v6408_v2 = vld [vmem:[#allocation17_spill] sm:$0xff] }
 0x29d   :  { %3668 = vst.msk [vmem:[%s6368_s3 + $0x90] sm:$0xff] %vm5825_vm12, %v3832_v10  ;;  %3696 = vst.msk [vmem:[%s6368_s3 + $0xd0] sm:$0xff] %vm5825_vm12, %v3840_v1  ;;  %v3828_v19 = vpack.c.bf16 %v958_v11, %v957_v25  ;;  %v3908_v29 = vadd.f32 %v6398_v40, %v5977_v5  ;;  %v3909_v55 = vadd.f32 %v6399_v0, %v5977_v5  ;;  %v6409_v11 = vld [vmem:[#allocation14_spill] sm:$0xff]  ;;  %v6412_v40 = vld [vmem:[#allocation19_spill] sm:$0xff] }
 0x29e   :  { %v3916_v36 = vadd.f32 %v6400_v24, %v5859_v59  ;;  %588 = vst.msk [vmem:[%s6368_s3 + $0x30] sm:$0xff] %vm5825_vm12, %v3820_v4  ;;  %v530_v37 = vmax.f32 %v3893_v53, 0.0  ;;  %v3917_v38 = vadd.f32 %v6401_v21, %v5859_v59  ;;  %v3933_v48 = vadd.f32 %v6402_v50, %v5859_v59  ;;  %3796 = vmatmul.mubr.msk.bf16.gmra.mrb[56].mxu1 %vm356_vm9, %v5650_v57  ;;  %v6413_v24 = vld [vmem:[#allocation16_spill] sm:$0xff] }
 0x29f   :  { %v3918_v61 = vadd.f32 %v5749_v33, %v5885_v27  ;;  %3644 = vst.msk [vmem:[%s6368_s3 + $0x70] sm:$0xff] %vm5825_vm12, %v3828_v19  ;;  %v959_v45 = vmax.f32 %v3908_v29, 0.0  ;;  %v960_v42 = vmax.f32 %v3909_v55, 0.0  ;;  %v3934_v31 = vadd.f32 %v5761_v52, %v5885_v27  ;;  %3502 = vmatprep.mubr.bf16.mxu1 %v6394_v6 }
 0x2a0   :  { %v1379_v41 = vmax.f32 %v3916_v36, 0.0  ;;  %v3821_v62 = vpack.c.bf16 %v530_v37, %v529_v8  ;;  %v1380_v43 = vmax.f32 %v3917_v38, 0.0  ;;  %v1808_v33 = vmax.f32 %v3933_v48, 0.0  ;;  %v6411_v8 = vld [vmem:[#allocation15_spill] sm:$0xff]  ;;  %v6414_v37 = vld [vmem:[#allocation20_spill] sm:$0xff] }
 0x2a1   :  { %v1381_v47 = vmax.f32 %v3918_v61, 0.0  ;;  %v3829_v3 = vpack.c.bf16 %v960_v42, %v959_v45  ;;  %v1809_v57 = vmax.f32 %v3934_v31, 0.0  ;;  %v3919_v56 = vadd.f32 %v6403_v26, %v5885_v27  ;;  %v6415_v26 = vld [vmem:[#allocation21_spill] sm:$0xff] }
 0x2a2   :  { %v3935_v35 = vadd.f32 %v6404_v34, %v5885_v27  ;;  %589 = vst.msk [vmem:[%s6368_s3 + $0x38] sm:$0xff] %vm5825_vm12, %v3821_v62  ;;  %v3833_v52 = vpack.c.bf16 %v1380_v43, %v1379_v41  ;;  %v3841_v6 = vpack.c.bf16 %v1808_v33, %v1807_v60  ;;  %v3920_v14 = vadd.f32 %v6405_v17, %v5916_v58  ;;  %v6410_v60 = vld [vmem:[#allocation18_spill] sm:$0xff] }
 0x2a3   :  { %v3936_v63 = vadd.f32 %v5767_v7, %v5916_v58  ;;  %3769 = vmatmul.mubr.msk.bf16.gmra.mrb[60].mxu0 %vm356_vm9, %v6406_v32  ;;  %3645 = vst.msk [vmem:[%s6368_s3 + $0x78] sm:$0xff] %vm5825_vm12, %v3829_v3  ;;  %v1382_v51 = vmax.f32 %v3919_v56, 0.0  ;;  %v3921_v16 = vadd.f32 %v6407_v39, %v5916_v58  ;;  %v3937_v20 = vadd.f32 %v5769_v18, %v5916_v58 }
 0x2a4   :  { %v1810_v30 = vmax.f32 %v3935_v35, 0.0  ;;  %3669 = vst.msk [vmem:[%s6368_s3 + $0x98] sm:$0xff] %vm5825_vm12, %v3833_v52  ;;  %3697 = vst.msk [vmem:[%s6368_s3 + $0xd8] sm:$0xff] %vm5825_vm12, %v3841_v6  ;;  %v1383_v7 = vmax.f32 %v3920_v14, 0.0  ;;  %v3922_v22 = vadd.f32 %v5772_v49, %v5964_v44  ;;  %v3938_v18 = vadd.f32 %v6408_v2, %v5964_v44 }
 0x2a5   :  { %v1811_v46 = vmax.f32 %v3936_v63, 0.0  ;;  %v3834_v15 = vpack.c.bf16 %v1382_v51, %v1381_v47  ;;  %v1384_v23 = vmax.f32 %v3921_v16, 0.0  ;;  %v1812_v10 = vmax.f32 %v3937_v20, 0.0 }
 0x2a6   :  { %v3842_v54 = vpack.c.bf16 %v1810_v30, %v1809_v57  ;;  %v1385_v1 = vmax.f32 %v3922_v22, 0.0  ;;  %v1813_v25 = vmax.f32 %v3938_v18, 0.0  ;;  %v3923_v4 = vadd.f32 %v6409_v11, %v5964_v44  ;;  %3797 = vmatmul.mubr.msk.bf16.gmra.mrb[60].mxu1 %vm356_vm9, %v6406_v32 }
 0x2a7   :  { %v3939_v12 = vadd.f32 %v6410_v60, %v5964_v44  ;;  %3670 = vst.msk [vmem:[%s6368_s3 + $0xa0] sm:$0xff] %vm5825_vm12, %v3834_v15  ;;  %v3835_v49 = vpack.c.bf16 %v1384_v23, %v1383_v7  ;;  %v3843_v53 = vpack.c.bf16 %v1812_v10, %v1811_v46  ;;  %v3924_v19 = vadd.f32 %v6411_v8, %v5977_v5 }
 0x2a8   :  { %3698 = vst.msk [vmem:[%s6368_s3 + $0xe0] sm:$0xff] %vm5825_vm12, %v3842_v54  ;;  %v3940_v29 = vadd.f32 %v6412_v40, %v5977_v5  ;;  %v1386_v0 = vmax.f32 %v3923_v4, 0.0  ;;  %v3925_v36 = vadd.f32 %v6413_v24, %v5977_v5  ;;  %v3941_v21 = vadd.f32 %v6414_v37, %v5977_v5 }
 0x2a9   :  { %v1814_v55 = vmax.f32 %v3939_v12, 0.0  ;;  %3671 = vst.msk [vmem:[%s6368_s3 + $0xa8] sm:$0xff] %vm5825_vm12, %v3835_v49  ;;  %3699 = vst.msk [vmem:[%s6368_s3 + $0xe8] sm:$0xff] %vm5825_vm12, %v3843_v53  ;;  %v1387_v38 = vmax.f32 %v3924_v19, 0.0 }
 0x2aa   :  { %v1815_v50 = vmax.f32 %v3940_v29, 0.0  ;;  %v3836_v48 = vpack.c.bf16 %v1386_v0, %v1385_v1  ;;  %v1388_v45 = vmax.f32 %v3925_v36, 0.0  ;;  %v1816_v42 = vmax.f32 %v3941_v21, 0.0 }
 0x2ab   :  { %v3844_v61 = vpack.c.bf16 %v1814_v55, %v1813_v25 }
 0x2ac   :  { %3672 = vst.msk [vmem:[%s6368_s3 + $0xb0] sm:$0xff] %vm5825_vm12, %v3836_v48  ;;  %v3837_v41 = vpack.c.bf16 %v1388_v45, %v1387_v38  ;;  %v3845_v31 = vpack.c.bf16 %v1816_v42, %v1815_v50 }
 0x2ad   :  { %3700 = vst.msk [vmem:[%s6368_s3 + $0xf0] sm:$0xff] %vm5825_vm12, %v3844_v61 }
 0x2ae   :  { %3673 = vst.msk [vmem:[%s6368_s3 + $0xb8] sm:$0xff] %vm5825_vm12, %v3837_v41  ;;  %3701 = vst.msk [vmem:[%s6368_s3 + $0xf8] sm:$0xff] %vm5825_vm12, %v3845_v31 }
 0x2dd   :  { %v2190_v62 = vpop.f32.mrb[32].mxu0 }
 0x2de   :  { %v3942_v43 = vadd.f32 %v2190_v62, %v5805_v28  ;;  %v2192_v33 = vpop.f32.mrb[33].mxu0 }
 0x2df   :  { %v3943_v47 = vadd.f32 %v2192_v33, %v5805_v28  ;;  %v2194_v3 = vpop.f32.mrb[34].mxu0 }
 0x2e0   :  { %v2229_v57 = vmax.f32 %v3942_v43, 0.0  ;;  %v3944_v56 = vadd.f32 %v2194_v3, %v6415_v26  ;;  %v2196_v34 = vpop.f32.mrb[35].mxu0 }
 0x2e1   :  { %v2618_v35 = vpop.f32.mrb[32].mxu1  ;;  %v2230_v52 = vmax.f32 %v3943_v47, 0.0  ;;  %v3945_v6 = vadd.f32 %v2196_v34, %v6415_v26 }
 0x2e2   :  { %v3958_v17 = vadd.f32 %v2618_v35, %v5805_v28  ;;  %v2620_v14 = vpop.f32.mrb[33].mxu1  ;;  %v2231_v63 = vmax.f32 %v3944_v56, 0.0 }
 0x2e3   :  { %v3846_v32 = vpack.c.bf16 %v2230_v52, %v2229_v57  ;;  %v3959_v51 = vadd.f32 %v2620_v14, %v5805_v28  ;;  %v2622_v30 = vpop.f32.mrb[34].mxu1  ;;  %v2232_v39 = vmax.f32 %v3945_v6, 0.0 }
 0x2e4   :  { %v2657_v16 = vmax.f32 %v3958_v17, 0.0  ;;  %v3960_v20 = vadd.f32 %v2622_v30, %v6415_v26  ;;  %v2624_v7 = vpop.f32.mrb[35].mxu1 }
 0x2e5   :  { %3722 = vst.msk [vmem:[%s6368_s3 + $0x100] sm:$0xff] %vm5825_vm12, %v3846_v32  ;;  %v2658_v46 = vmax.f32 %v3959_v51, 0.0  ;;  %v3847_v22 = vpack.c.bf16 %v2232_v39, %v2231_v63  ;;  %v3961_v2 = vadd.f32 %v2624_v7, %v6415_v26  ;;  %v2200_v18 = vpop.f32.mrb[36].mxu0 }
 0x2e6   :  { %v2659_v15 = vmax.f32 %v3960_v20, 0.0  ;;  %v3946_v54 = vadd.f32 %v2200_v18, %v5842_v13  ;;  %v2202_v23 = vpop.f32.mrb[37].mxu0 }
 0x2e7   :  { %v3854_v10 = vpack.c.bf16 %v2658_v46, %v2657_v16  ;;  %3723 = vst.msk [vmem:[%s6368_s3 + $0x108] sm:$0xff] %vm5825_vm12, %v3847_v22  ;;  %v2660_v1 = vmax.f32 %v3961_v2, 0.0  ;;  %v3947_v25 = vadd.f32 %v2202_v23, %v5842_v13  ;;  %v2204_v11 = vpop.f32.mrb[38].mxu0 }
 0x2e8   :  { %v2233_v4 = vmax.f32 %v3946_v54, 0.0  ;;  %v3948_v60 = vadd.f32 %v2204_v11, %v5859_v59  ;;  %v2206_v12 = vpop.f32.mrb[39].mxu0 }
 0x2e9   :  { %3750 = vst.msk [vmem:[%s6368_s3 + $0x140] sm:$0xff] %vm5825_vm12, %v3854_v10  ;;  %v3855_v49 = vpack.c.bf16 %v2660_v1, %v2659_v15  ;;  %v2628_v53 = vpop.f32.mrb[36].mxu1  ;;  %v2234_v8 = vmax.f32 %v3947_v25, 0.0  ;;  %v3949_v19 = vadd.f32 %v2206_v12, %v5859_v59 }
 0x2ea   :  { %v3962_v40 = vadd.f32 %v2628_v53, %v5842_v13  ;;  %v2630_v29 = vpop.f32.mrb[37].mxu1  ;;  %v2235_v0 = vmax.f32 %v3948_v60, 0.0 }
 0x2eb   :  { %3751 = vst.msk [vmem:[%s6368_s3 + $0x148] sm:$0xff] %vm5825_vm12, %v3855_v49  ;;  %v3848_v55 = vpack.c.bf16 %v2234_v8, %v2233_v4  ;;  %v3963_v24 = vadd.f32 %v2630_v29, %v5842_v13  ;;  %v2632_v36 = vpop.f32.mrb[38].mxu1  ;;  %v2236_v37 = vmax.f32 %v3949_v19, 0.0 }
 0x2ec   :  { %v2661_v21 = vmax.f32 %v3962_v40, 0.0  ;;  %v3964_v38 = vadd.f32 %v2632_v36, %v5859_v59  ;;  %v2634_v50 = vpop.f32.mrb[39].mxu1 }
 0x2ed   :  { %3724 = vst.msk [vmem:[%s6368_s3 + $0x110] sm:$0xff] %vm5825_vm12, %v3848_v55  ;;  %v2662_v48 = vmax.f32 %v3963_v24, 0.0  ;;  %v3849_v61 = vpack.c.bf16 %v2236_v37, %v2235_v0  ;;  %v3965_v45 = vadd.f32 %v2634_v50, %v5859_v59  ;;  %v2210_v42 = vpop.f32.mrb[40].mxu0 }
 0x2ee   :  { %v2663_v41 = vmax.f32 %v3964_v38, 0.0  ;;  %v3950_v31 = vadd.f32 %v2210_v42, %v5885_v27  ;;  %v2212_v62 = vpop.f32.mrb[41].mxu0 }
 0x2ef   :  { %v3856_v43 = vpack.c.bf16 %v2662_v48, %v2661_v21  ;;  %3725 = vst.msk [vmem:[%s6368_s3 + $0x118] sm:$0xff] %vm5825_vm12, %v3849_v61  ;;  %v2664_v33 = vmax.f32 %v3965_v45, 0.0  ;;  %v3951_v47 = vadd.f32 %v2212_v62, %v5885_v27  ;;  %v2214_v3 = vpop.f32.mrb[42].mxu0 }
 0x2f0   :  { %v2237_v57 = vmax.f32 %v3950_v31, 0.0  ;;  %v3952_v56 = vadd.f32 %v2214_v3, %v5916_v58  ;;  %v2216_v34 = vpop.f32.mrb[43].mxu0 }
 0x2f1   :  { %3752 = vst.msk [vmem:[%s6368_s3 + $0x150] sm:$0xff] %vm5825_vm12, %v3856_v43  ;;  %v3857_v35 = vpack.c.bf16 %v2664_v33, %v2663_v41  ;;  %v2638_v52 = vpop.f32.mrb[40].mxu1  ;;  %v2238_v6 = vmax.f32 %v3951_v47, 0.0  ;;  %v3953_v17 = vadd.f32 %v2216_v34, %v5916_v58 }
 0x2f2   :  { %v3966_v14 = vadd.f32 %v2638_v52, %v5885_v27  ;;  %v2640_v63 = vpop.f32.mrb[41].mxu1  ;;  %v2239_v32 = vmax.f32 %v3952_v56, 0.0 }
 0x2f3   :  { %3753 = vst.msk [vmem:[%s6368_s3 + $0x158] sm:$0xff] %vm5825_vm12, %v3857_v35  ;;  %v3850_v51 = vpack.c.bf16 %v2238_v6, %v2237_v57  ;;  %v3967_v30 = vadd.f32 %v2640_v63, %v5885_v27  ;;  %v2642_v39 = vpop.f32.mrb[42].mxu1  ;;  %v2240_v16 = vmax.f32 %v3953_v17, 0.0 }
 0x2f4   :  { %v2665_v20 = vmax.f32 %v3966_v14, 0.0  ;;  %v3968_v7 = vadd.f32 %v2642_v39, %v5916_v58  ;;  %v2644_v46 = vpop.f32.mrb[43].mxu1 }
 0x2f5   :  { %3726 = vst.msk [vmem:[%s6368_s3 + $0x120] sm:$0xff] %vm5825_vm12, %v3850_v51  ;;  %v2666_v22 = vmax.f32 %v3967_v30, 0.0  ;;  %v3851_v2 = vpack.c.bf16 %v2240_v16, %v2239_v32  ;;  %v3969_v18 = vadd.f32 %v2644_v46, %v5916_v58  ;;  %v2220_v15 = vpop.f32.mrb[44].mxu0 }
 0x2f6   :  { %v2667_v54 = vmax.f32 %v3968_v7, 0.0  ;;  %v3954_v23 = vadd.f32 %v2220_v15, %v5964_v44  ;;  %v2222_v10 = vpop.f32.mrb[45].mxu0 }
 0x2f7   :  { %v3858_v1 = vpack.c.bf16 %v2666_v22, %v2665_v20  ;;  %3727 = vst.msk [vmem:[%s6368_s3 + $0x128] sm:$0xff] %vm5825_vm12, %v3851_v2  ;;  %v2668_v25 = vmax.f32 %v3969_v18, 0.0  ;;  %v3955_v11 = vadd.f32 %v2222_v10, %v5964_v44  ;;  %v2224_v4 = vpop.f32.mrb[46].mxu0 }
 0x2f8   :  { %v2241_v60 = vmax.f32 %v3954_v23, 0.0  ;;  %v3956_v12 = vadd.f32 %v2224_v4, %v5977_v5  ;;  %v2226_v49 = vpop.f32.mrb[47].mxu0 }
 0x2f9   :  { %3754 = vst.msk [vmem:[%s6368_s3 + $0x160] sm:$0xff] %vm5825_vm12, %v3858_v1  ;;  %v3859_v53 = vpack.c.bf16 %v2668_v25, %v2667_v54  ;;  %v2648_v8 = vpop.f32.mrb[44].mxu1  ;;  %v2242_v19 = vmax.f32 %v3955_v11, 0.0  ;;  %v3957_v40 = vadd.f32 %v2226_v49, %v5977_v5 }
 0x2fa   :  { %v3970_v29 = vadd.f32 %v2648_v8, %v5964_v44  ;;  %v2650_v0 = vpop.f32.mrb[45].mxu1  ;;  %v2243_v55 = vmax.f32 %v3956_v12, 0.0 }
 0x2fb   :  { %3755 = vst.msk [vmem:[%s6368_s3 + $0x168] sm:$0xff] %vm5825_vm12, %v3859_v53  ;;  %v3852_v24 = vpack.c.bf16 %v2242_v19, %v2241_v60  ;;  %v3971_v36 = vadd.f32 %v2650_v0, %v5964_v44  ;;  %v2652_v37 = vpop.f32.mrb[46].mxu1  ;;  %v2244_v21 = vmax.f32 %v3957_v40, 0.0 }
 0x2fc   :  { %v2669_v38 = vmax.f32 %v3970_v29, 0.0  ;;  %v3972_v50 = vadd.f32 %v2652_v37, %v5977_v5  ;;  %v2654_v48 = vpop.f32.mrb[47].mxu1 }
 0x2fd   :  { %3728 = vst.msk [vmem:[%s6368_s3 + $0x130] sm:$0xff] %vm5825_vm12, %v3852_v24  ;;  %v2670_v61 = vmax.f32 %v3971_v36, 0.0  ;;  %v3853_v45 = vpack.c.bf16 %v2244_v21, %v2243_v55  ;;  %v3973_v42 = vadd.f32 %v2654_v48, %v5977_v5 }
 0x2fe   :  { %v2671_v41 = vmax.f32 %v3972_v50, 0.0 }
 0x2ff   :  { %v3860_v31 = vpack.c.bf16 %v2670_v61, %v2669_v38  ;;  %3729 = vst.msk [vmem:[%s6368_s3 + $0x138] sm:$0xff] %vm5825_vm12, %v3853_v45  ;;  %v2672_v62 = vmax.f32 %v3973_v42, 0.0 }
 0x301   :  { %3756 = vst.msk [vmem:[%s6368_s3 + $0x170] sm:$0xff] %vm5825_vm12, %v3860_v31  ;;  %v3861_v43 = vpack.c.bf16 %v2672_v62, %v2671_v41 }
 0x303   :  { %3757 = vst.msk [vmem:[%s6368_s3 + $0x178] sm:$0xff] %vm5825_vm12, %v3861_v43 }
 0x35d   :  { %v3046_v33 = vpop.f32.mrb[48].mxu0 }
 0x35e   :  { %v3974_v47 = vadd.f32 %v3046_v33, %v5805_v28  ;;  %v3048_v3 = vpop.f32.mrb[49].mxu0 }
 0x35f   :  { %v3975_v57 = vadd.f32 %v3048_v3, %v5805_v28  ;;  %v3050_v56 = vpop.f32.mrb[50].mxu0 }
 0x360   :  { %v3085_v34 = vmax.f32 %v3974_v47, 0.0  ;;  %v3976_v35 = vadd.f32 %v3050_v56, %v6415_v26  ;;  %v3052_v52 = vpop.f32.mrb[51].mxu0 }
 0x361   :  { %v3086_v6 = vmax.f32 %v3975_v57, 0.0  ;;  %v3977_v17 = vadd.f32 %v3052_v52, %v6415_v26  ;;  %v3474_v14 = vpop.f32.mrb[48].mxu1 }
 0x362   :  { %v3087_v63 = vmax.f32 %v3976_v35, 0.0  ;;  %v3990_v32 = vadd.f32 %v3474_v14, %v5805_v28  ;;  %v3476_v51 = vpop.f32.mrb[49].mxu1 }
 0x363   :  { %v3862_v30 = vpack.c.bf16 %v3086_v6, %v3085_v34  ;;  %v3088_v39 = vmax.f32 %v3977_v17, 0.0  ;;  %v3991_v16 = vadd.f32 %v3476_v51, %v5805_v28  ;;  %v3478_v20 = vpop.f32.mrb[50].mxu1 }
 0x364   :  { %v3513_v7 = vmax.f32 %v3990_v32, 0.0  ;;  %v3992_v46 = vadd.f32 %v3478_v20, %v6415_v26  ;;  %v3480_v22 = vpop.f32.mrb[51].mxu1 }
 0x365   :  { %3778 = vst.msk [vmem:[%s6368_s3 + $0x180] sm:$0xff] %vm5825_vm12, %v3862_v30  ;;  %v3863_v2 = vpack.c.bf16 %v3088_v39, %v3087_v63  ;;  %v3514_v18 = vmax.f32 %v3991_v16, 0.0  ;;  %v3993_v15 = vadd.f32 %v3480_v22, %v6415_v26  ;;  %v3056_v54 = vpop.f32.mrb[52].mxu0 }
 0x366   :  { %v3515_v23 = vmax.f32 %v3992_v46, 0.0  ;;  %v3978_v10 = vadd.f32 %v3056_v54, %v5842_v13  ;;  %v3058_v28 = vpop.f32.mrb[53].mxu0 }
 0x367   :  { %3779 = vst.msk [vmem:[%s6368_s3 + $0x188] sm:$0xff] %vm5825_vm12, %v3863_v2  ;;  %v3870_v1 = vpack.c.bf16 %v3514_v18, %v3513_v7  ;;  %v3516_v25 = vmax.f32 %v3993_v15, 0.0  ;;  %v3979_v11 = vadd.f32 %v3058_v28, %v5842_v13  ;;  %v3060_v4 = vpop.f32.mrb[54].mxu0 }
 0x368   :  { %v3089_v60 = vmax.f32 %v3978_v10, 0.0  ;;  %v3980_v12 = vadd.f32 %v3060_v4, %v5859_v59  ;;  %v3062_v26 = vpop.f32.mrb[55].mxu0 }
 0x369   :  { %3806 = vst.msk [vmem:[%s6368_s3 + $0x1c0] sm:$0xff] %vm5825_vm12, %v3870_v1  ;;  %v3871_v49 = vpack.c.bf16 %v3516_v25, %v3515_v23  ;;  %v3090_v53 = vmax.f32 %v3979_v11, 0.0  ;;  %v3981_v8 = vadd.f32 %v3062_v26, %v5859_v59  ;;  %v3484_v19 = vpop.f32.mrb[52].mxu1 }
 0x36a   :  { %v3091_v40 = vmax.f32 %v3980_v12, 0.0  ;;  %v3994_v29 = vadd.f32 %v3484_v19, %v5842_v13  ;;  %v3486_v0 = vpop.f32.mrb[53].mxu1 }
 0x36b   :  { %3807 = vst.msk [vmem:[%s6368_s3 + $0x1c8] sm:$0xff] %vm5825_vm12, %v3871_v49  ;;  %v3864_v55 = vpack.c.bf16 %v3090_v53, %v3089_v60  ;;  %v3092_v24 = vmax.f32 %v3981_v8, 0.0  ;;  %v3995_v36 = vadd.f32 %v3486_v0, %v5842_v13  ;;  %v3488_v37 = vpop.f32.mrb[54].mxu1 }
 0x36c   :  { %v3517_v21 = vmax.f32 %v3994_v29, 0.0  ;;  %v3996_v38 = vadd.f32 %v3488_v37, %v5859_v59  ;;  %v3490_v50 = vpop.f32.mrb[55].mxu1 }
 0x36d   :  { %3780 = vst.msk [vmem:[%s6368_s3 + $0x190] sm:$0xff] %vm5825_vm12, %v3864_v55  ;;  %v3865_v48 = vpack.c.bf16 %v3092_v24, %v3091_v40  ;;  %v3518_v61 = vmax.f32 %v3995_v36, 0.0  ;;  %v3997_v45 = vadd.f32 %v3490_v50, %v5859_v59  ;;  %v3066_v42 = vpop.f32.mrb[56].mxu0 }
 0x36e   :  { %v3519_v41 = vmax.f32 %v3996_v38, 0.0  ;;  %v3982_v31 = vadd.f32 %v3066_v42, %v5885_v27  ;;  %v3068_v13 = vpop.f32.mrb[57].mxu0 }
 0x36f   :  { %3781 = vst.msk [vmem:[%s6368_s3 + $0x198] sm:$0xff] %vm5825_vm12, %v3865_v48  ;;  %v3872_v62 = vpack.c.bf16 %v3518_v61, %v3517_v21  ;;  %v3520_v43 = vmax.f32 %v3997_v45, 0.0  ;;  %v3983_v33 = vadd.f32 %v3068_v13, %v5885_v27  ;;  %v3070_v47 = vpop.f32.mrb[58].mxu0 }
 0x370   :  { %v3093_v3 = vmax.f32 %v3982_v31, 0.0  ;;  %v3984_v57 = vadd.f32 %v3070_v47, %v5916_v58  ;;  %v3072_v59 = vpop.f32.mrb[59].mxu0 }
 0x371   :  { %3808 = vst.msk [vmem:[%s6368_s3 + $0x1d0] sm:$0xff] %vm5825_vm12, %v3872_v62  ;;  %v3873_v56 = vpack.c.bf16 %v3520_v43, %v3519_v41  ;;  %v3094_v34 = vmax.f32 %v3983_v33, 0.0  ;;  %v3985_v35 = vadd.f32 %v3072_v59, %v5916_v58  ;;  %v3494_v52 = vpop.f32.mrb[56].mxu1 }
 0x372   :  { %v3095_v6 = vmax.f32 %v3984_v57, 0.0  ;;  %v3998_v17 = vadd.f32 %v3494_v52, %v5885_v27  ;;  %v3496_v14 = vpop.f32.mrb[57].mxu1 }
 0x373   :  { %3809 = vst.msk [vmem:[%s6368_s3 + $0x1d8] sm:$0xff] %vm5825_vm12, %v3873_v56  ;;  %v3866_v63 = vpack.c.bf16 %v3094_v34, %v3093_v3  ;;  %v3096_v32 = vmax.f32 %v3985_v35, 0.0  ;;  %v3999_v51 = vadd.f32 %v3496_v14, %v5885_v27  ;;  %v3498_v30 = vpop.f32.mrb[58].mxu1 }
 0x374   :  { %v3521_v39 = vmax.f32 %v3998_v17, 0.0  ;;  %v4000_v16 = vadd.f32 %v3498_v30, %v5916_v58  ;;  %v3500_v20 = vpop.f32.mrb[59].mxu1 }
 0x375   :  { %3782 = vst.msk [vmem:[%s6368_s3 + $0x1a0] sm:$0xff] %vm5825_vm12, %v3866_v63  ;;  %v3867_v7 = vpack.c.bf16 %v3096_v32, %v3095_v6  ;;  %v3522_v46 = vmax.f32 %v3999_v51, 0.0  ;;  %v4001_v22 = vadd.f32 %v3500_v20, %v5916_v58 }
 0x376   :  { %v3076_v2 = vpop.f32.mrb[60].mxu0  ;;  %v3523_v18 = vmax.f32 %v4000_v16, 0.0 }
 0x377   :  { %v3986_v15 = vadd.f32 %v3076_v2, %v5964_v44  ;;  %v3078_v27 = vpop.f32.mrb[61].mxu0  ;;  %3783 = vst.msk [vmem:[%s6368_s3 + $0x1a8] sm:$0xff] %vm5825_vm12, %v3867_v7  ;;  %v3874_v54 = vpack.c.bf16 %v3522_v46, %v3521_v39  ;;  %v3524_v23 = vmax.f32 %v4001_v22, 0.0 }
 0x378   :  { %v3987_v10 = vadd.f32 %v3078_v27, %v5964_v44  ;;  %v3080_v28 = vpop.f32.mrb[62].mxu0 }
 0x379   :  { %v3097_v1 = vmax.f32 %v3986_v15, 0.0  ;;  %v3988_v25 = vadd.f32 %v3080_v28, %v5977_v5  ;;  %v3082_v58 = vpop.f32.mrb[63].mxu0  ;;  %3810 = vst.msk [vmem:[%s6368_s3 + $0x1e0] sm:$0xff] %vm5825_vm12, %v3874_v54  ;;  %v3875_v11 = vpack.c.bf16 %v3524_v23, %v3523_v18  ;;  %v3504_v12 = vpop.f32.mrb[60].mxu1 }
 0x37a   :  { %v3098_v4 = vmax.f32 %v3987_v10, 0.0  ;;  %v3989_v60 = vadd.f32 %v3082_v58, %v5977_v5  ;;  %v4002_v49 = vadd.f32 %v3504_v12, %v5964_v44  ;;  %v3506_v53 = vpop.f32.mrb[61].mxu1 }
 0x37b   :  { %v3099_v26 = vmax.f32 %v3988_v25, 0.0  ;;  %3811 = vst.msk [vmem:[%s6368_s3 + $0x1e8] sm:$0xff] %vm5825_vm12, %v3875_v11  ;;  %v4003_v40 = vadd.f32 %v3506_v53, %v5964_v44  ;;  %v3508_v29 = vpop.f32.mrb[62].mxu1 }
 0x37c   :  { %v3868_v8 = vpack.c.bf16 %v3098_v4, %v3097_v1  ;;  %v3100_v19 = vmax.f32 %v3989_v60, 0.0  ;;  %v3525_v0 = vmax.f32 %v4002_v49, 0.0  ;;  %v4004_v55 = vadd.f32 %v3508_v29, %v5977_v5  ;;  %v3510_v24 = vpop.f32.mrb[63].mxu1 }
 0x37d   :  { %v3526_v37 = vmax.f32 %v4003_v40, 0.0  ;;  %v4005_v21 = vadd.f32 %v3510_v24, %v5977_v5 }
 0x37e   :  { %3784 = vst.msk [vmem:[%s6368_s3 + $0x1b0] sm:$0xff] %vm5825_vm12, %v3868_v8  ;;  %v3869_v36 = vpack.c.bf16 %v3100_v19, %v3099_v26  ;;  %v3527_v38 = vmax.f32 %v4004_v55, 0.0 }
 0x37f   :  { %v3876_v44 = vpack.c.bf16 %v3526_v37, %v3525_v0  ;;  %v3528_v50 = vmax.f32 %v4005_v21, 0.0 }
 0x380   :  { %3785 = vst.msk [vmem:[%s6368_s3 + $0x1b8] sm:$0xff] %vm5825_vm12, %v3869_v36 }
 0x381   :  { %3812 = vst.msk [vmem:[%s6368_s3 + $0x1f0] sm:$0xff] %vm5825_vm12, %v3876_v44  ;;  %v3877_v48 = vpack.c.bf16 %v3528_v50, %v3527_v38 }
 0x383   :  { %3813 = vst.msk [vmem:[%s6368_s3 + $0x1f8] sm:$0xff] %vm5825_vm12, %v3877_v48 }

// kernel: forward.5
= control target key start
LH: loop header
LB: loop body
LE: loop exit
PB: predicated region body
PF: predicated region fallthrough
CT: control target
= control target key end

     0   :  { %vm1708_vm0 = vmmov 0   ;;  %vm880_vm1 = vcmask 523264   ;;  %s2093_s1 = inlined_call_operand.vmem [shape: bf16[1600,128], index: 1, kind: input, shape index: {}]   ;;  %s2094_s0 = inlined_call_operand.vmem [shape: bf16[8,1600], index: 0, kind: input, shape index: {}]   ;;  %s2095_s3 = inlined_call_operand.vmem [shape: bf16[128,128], index: 3, kind: input, shape index: {}]   ;;  %s2096_s2 = inlined_call_operand.vmem [shape: f32[1,128], index: 2, kind: input, shape index: {}]   ;;  %s2097_s4 = inlined_call_operand.vmem [shape: f32[1,128], index: 4, kind: input, shape index: {}]   ;;  %s2098_s5 = inlined_call_operand.vmem [shape: f32[8,128], index: 5, kind: output, shape index: {}]  }
   0x1   :  { %v1586_v0 = vld [vmem:[%s2093_s1 + $0x40] sm:$0xff]   ;;  %v1590_v4 = vld [vmem:[%s2093_s1 + $0x48] sm:$0xff]   ;;  %v1594_v8 = vld [vmem:[%s2093_s1 + $0x50] sm:$0xff]  }
   0x2   :  { %v1587_v1 = vld [vmem:[%s2093_s1] sm:$0xff]   ;;  %1406 = vmatprep.subr.bf16.mxu0 %v1586_v0  ;;  %v1591_v5 = vld [vmem:[%s2093_s1 + $0x8] sm:$0xff]   ;;  %v1595_v9 = vld [vmem:[%s2093_s1 + $0x10] sm:$0xff]  }
   0x3   :  { %v1588_v2 = vld [vmem:[%s2093_s1 + $0xc0] sm:$0xff]   ;;  %1407 = vmatpush3.bf16.msra.mxu0 %v1587_v1  ;;  %v1592_v6 = vld [vmem:[%s2093_s1 + $0xc8] sm:$0xff]   ;;  %v1596_v10 = vld [vmem:[%s2093_s1 + $0xd0] sm:$0xff]  }
   0x4   :  { %v1589_v3 = vld [vmem:[%s2093_s1 + $0x80] sm:$0xff]   ;;  %1428 = vmatprep.subr.bf16.mxu1 %v1588_v2  ;;  %1408 = vmatprep.subr.bf16.mxu0 %v1590_v4  ;;  %v1593_v7 = vld [vmem:[%s2093_s1 + $0x88] sm:$0xff]   ;;  %v1597_v11 = vld [vmem:[%s2093_s1 + $0x90] sm:$0xff]  }
   0x5   :  { %1429 = vmatpush3.bf16.msra.mxu1 %v1589_v3  ;;  %v1598_v12 = vld [vmem:[%s2093_s1 + $0x58] sm:$0xff]   ;;  %v1602_v16 = vld [vmem:[%s2093_s1 + $0x60] sm:$0xff]   ;;  %v1606_v20 = vld [vmem:[%s2093_s1 + $0x68] sm:$0xff]  }
   0x6   :  { %1430 = vmatprep.subr.bf16.mxu1 %v1592_v6  ;;  %v1599_v13 = vld [vmem:[%s2093_s1 + $0x18] sm:$0xff]   ;;  %v1603_v17 = vld [vmem:[%s2093_s1 + $0x20] sm:$0xff]   ;;  %v1607_v21 = vld [vmem:[%s2093_s1 + $0x28] sm:$0xff]  }
   0x7   :  { %1409 = vmatpush3.bf16.msra.mxu0 %v1591_v5  ;;  %v1600_v14 = vld [vmem:[%s2093_s1 + $0xd8] sm:$0xff]   ;;  %v1604_v18 = vld [vmem:[%s2093_s1 + $0xe0] sm:$0xff]   ;;  %v1608_v22 = vld [vmem:[%s2093_s1 + $0xe8] sm:$0xff]  }
   0x8   :  { %1410 = vmatprep.subr.bf16.mxu0 %v1594_v8  ;;  %v1601_v15 = vld [vmem:[%s2093_s1 + $0x98] sm:$0xff]   ;;  %v1605_v19 = vld [vmem:[%s2093_s1 + $0xa0] sm:$0xff]   ;;  %v1609_v23 = vld [vmem:[%s2093_s1 + $0xa8] sm:$0xff]  }
   0x9   :  { %1431 = vmatpush3.bf16.msra.mxu1 %v1593_v7  ;;  %v1610_v24 = vld [vmem:[%s2093_s1 + $0x70] sm:$0xff]   ;;  %v1614_v28 = vld [vmem:[%s2093_s1 + $0x78] sm:$0xff]   ;;  %v21_v31 = vld [vmem:[%s2094_s0] sm:$0xff] }
   0xa   :  { %1432 = vmatprep.subr.bf16.mxu1 %v1596_v10  ;;  %v1611_v25 = vld [vmem:[%s2093_s1 + $0x30] sm:$0xff]   ;;  %v1615_v29 = vld [vmem:[%s2093_s1 + $0x38] sm:$0xff]   ;;  %v1283_v32 = vcombine.low %v21_v31, %v21_v31  ;;  %v1284_v33 = vcombine.high %v21_v31, %v21_v31  ;;  %v1620_v35 = vld [vmem:[%s2093_s1 + $0x140] sm:$0xff]  }
   0xb   :  { %1411 = vmatpush3.bf16.msra.mxu0 %v1595_v9  ;;  %v1612_v26 = vld [vmem:[%s2093_s1 + $0xf0] sm:$0xff]   ;;  %v1616_v30 = vld [vmem:[%s2093_s1 + $0xf8] sm:$0xff]   ;;  %v22_v36 = vld [vmem:[%s2094_s0 + $0x8] sm:$0xff] }
   0xc   :  { %1412 = vmatprep.subr.bf16.mxu0 %v1598_v12  ;;  %v1613_v27 = vld [vmem:[%s2093_s1 + $0xb0] sm:$0xff]   ;;  %v1619_v34 = vld [vmem:[%s2093_s1 + $0xb8] sm:$0xff]   ;;  %916 = vmatprep.mubr.bf16.mxu0 %v1284_v33  ;;  %v1285_v37 = vcombine.low %v22_v36, %v22_v36  ;;  %v1286_v38 = vcombine.high %v22_v36, %v22_v36  ;;  %v1623_v39 = vld [vmem:[%s2093_s1 + $0x100] sm:$0xff]  }
   0xd   :  { %1433 = vmatpush3.bf16.msra.mxu1 %v1597_v11  ;;  %v1624_v40 = vld [vmem:[%s2093_s1 + $0x1c0] sm:$0xff]   ;;  %v1626_v42 = vld [vmem:[%s2093_s1 + $0x148] sm:$0xff]   ;;  %v1630_v46 = vld [vmem:[%s2093_s1 + $0x150] sm:$0xff]  }
   0xe   :  { %1434 = vmatprep.subr.bf16.mxu1 %v1600_v14  ;;  %956 = vmatprep.mubr.bf16.mxu1 %v1286_v38  ;;  %v1625_v41 = vld [vmem:[%s2093_s1 + $0x180] sm:$0xff]   ;;  %v1627_v43 = vld [vmem:[%s2093_s1 + $0x108] sm:$0xff]   ;;  %v1631_v47 = vld [vmem:[%s2093_s1 + $0x110] sm:$0xff]  }
   0xf   :  { %1413 = vmatpush3.bf16.msra.mxu0 %v1599_v13  ;;  %v1628_v44 = vld [vmem:[%s2093_s1 + $0x1c8] sm:$0xff]   ;;  %v1632_v48 = vld [vmem:[%s2093_s1 + $0x1d0] sm:$0xff]   ;;  %v1634_v50 = vld [vmem:[%s2093_s1 + $0x158] sm:$0xff]  }
  0x10   :  { %1414 = vmatprep.subr.bf16.mxu0 %v1602_v16  ;;  %v1629_v45 = vld [vmem:[%s2093_s1 + $0x188] sm:$0xff]   ;;  %v1633_v49 = vld [vmem:[%s2093_s1 + $0x190] sm:$0xff]   ;;  %v1635_v51 = vld [vmem:[%s2093_s1 + $0x118] sm:$0xff]  }
  0x11   :  { %1435 = vmatpush3.bf16.msra.mxu1 %v1601_v15  ;;  %v1636_v52 = vld [vmem:[%s2093_s1 + $0x1d8] sm:$0xff]   ;;  %v1638_v54 = vld [vmem:[%s2093_s1 + $0x160] sm:$0xff]   ;;  %v1642_v58 = vld [vmem:[%s2093_s1 + $0x168] sm:$0xff]  }
  0x12   :  { %1436 = vmatprep.subr.bf16.mxu1 %v1604_v18  ;;  %v1637_v53 = vld [vmem:[%s2093_s1 + $0x198] sm:$0xff]   ;;  %v1639_v55 = vld [vmem:[%s2093_s1 + $0x120] sm:$0xff]   ;;  %v1643_v59 = vld [vmem:[%s2093_s1 + $0x128] sm:$0xff]  }
  0x13   :  { %1415 = vmatpush3.bf16.msra.mxu0 %v1603_v17  ;;  %v1640_v56 = vld [vmem:[%s2093_s1 + $0x1e0] sm:$0xff]   ;;  %v1644_v60 = vld [vmem:[%s2093_s1 + $0x1e8] sm:$0xff]   ;;  %v1646_v62 = vld [vmem:[%s2093_s1 + $0x170] sm:$0xff]  }
  0x14   :  { %1416 = vmatprep.subr.bf16.mxu0 %v1606_v20  ;;  %v1641_v57 = vld [vmem:[%s2093_s1 + $0x1a0] sm:$0xff]   ;;  %v1645_v61 = vld [vmem:[%s2093_s1 + $0x1a8] sm:$0xff]   ;;  %v1647_v63 = vld [vmem:[%s2093_s1 + $0x130] sm:$0xff]  }
  0x15   :  { %1437 = vmatpush3.bf16.msra.mxu1 %v1605_v19  ;;  %v1648_v0 = vld [vmem:[%s2093_s1 + $0x1f0] sm:$0xff]   ;;  %v1650_v2 = vld [vmem:[%s2093_s1 + $0x178] sm:$0xff]   ;;  %v1656_v9 = vld [vmem:[%s2093_s1 + $0x240] sm:$0xff]  }
  0x16   :  { %1438 = vmatprep.subr.bf16.mxu1 %v1608_v22  ;;  %v1649_v1 = vld [vmem:[%s2093_s1 + $0x1b0] sm:$0xff]   ;;  %v1651_v3 = vld [vmem:[%s2093_s1 + $0x138] sm:$0xff]   ;;  %v1659_v13 = vld [vmem:[%s2093_s1 + $0x200] sm:$0xff]  }
  0x17   :  { %1417 = vmatpush3.bf16.msra.mxu0 %v1607_v21  ;;  %v1652_v4 = vld [vmem:[%s2093_s1 + $0x1f8] sm:$0xff]   ;;  %v23_v5 = vld [vmem:[%s2094_s0 + $0x10] sm:$0xff]  ;;  %v1660_v14 = vld [vmem:[%s2093_s1 + $0x2c0] sm:$0xff]  }
  0x18   :  { %1418 = vmatprep.subr.bf16.mxu0 %v1610_v24  ;;  %v1287_v6 = vcombine.low %v23_v5, %v23_v5  ;;  %v1288_v7 = vcombine.high %v23_v5, %v23_v5  ;;  %v1655_v8 = vld [vmem:[%s2093_s1 + $0x1b8] sm:$0xff]   ;;  %v1661_v15 = vld [vmem:[%s2093_s1 + $0x280] sm:$0xff]   ;;  %v1662_v16 = vld [vmem:[%s2093_s1 + $0x248] sm:$0xff]  }
  0x19   :  { %1439 = vmatpush3.bf16.msra.mxu1 %v1609_v23  ;;  %v24_v10 = vld [vmem:[%s2094_s0 + $0x18] sm:$0xff]  ;;  %v1663_v17 = vld [vmem:[%s2093_s1 + $0x208] sm:$0xff]   ;;  %v1666_v20 = vld [vmem:[%s2093_s1 + $0x250] sm:$0xff]  }
  0x1a   :  { %1440 = vmatprep.subr.bf16.mxu1 %v1612_v26  ;;  %v1289_v11 = vcombine.low %v24_v10, %v24_v10  ;;  %v1290_v12 = vcombine.high %v24_v10, %v24_v10  ;;  %v1664_v18 = vld [vmem:[%s2093_s1 + $0x2c8] sm:$0xff]   ;;  %v1667_v21 = vld [vmem:[%s2093_s1 + $0x210] sm:$0xff]   ;;  %v1670_v24 = vld [vmem:[%s2093_s1 + $0x258] sm:$0xff]  }
  0x1b   :  { %1419 = vmatpush3.bf16.msra.mxu0 %v1611_v25  ;;  %v1665_v19 = vld [vmem:[%s2093_s1 + $0x288] sm:$0xff]   ;;  %v1668_v22 = vld [vmem:[%s2093_s1 + $0x2d0] sm:$0xff]   ;;  %v1671_v25 = vld [vmem:[%s2093_s1 + $0x218] sm:$0xff]  }
  0x1c   :  { %1420 = vmatprep.subr.bf16.mxu0 %v1614_v28  ;;  %v1669_v23 = vld [vmem:[%s2093_s1 + $0x290] sm:$0xff]   ;;  %v1672_v26 = vld [vmem:[%s2093_s1 + $0x2d8] sm:$0xff]   ;;  %v1674_v28 = vld [vmem:[%s2093_s1 + $0x260] sm:$0xff]  }
  0x1d   :  { %1441 = vmatpush3.bf16.msra.mxu1 %v1613_v27  ;;  %v1673_v27 = vld [vmem:[%s2093_s1 + $0x298] sm:$0xff]   ;;  %v1677_v31 = vld [vmem:[%s2093_s1 + $0x2a0] sm:$0xff]   ;;  %v1679_v33 = vld [vmem:[%s2093_s1 + $0x228] sm:$0xff]  }
  0x1e   :  { %1442 = vmatprep.subr.bf16.mxu1 %v1616_v30  ;;  %v1676_v30 = vld [vmem:[%s2093_s1 + $0x2e0] sm:$0xff]   ;;  %v1682_v36 = vld [vmem:[%s2093_s1 + $0x270] sm:$0xff]  }
  0x1f   :  { %1421 = vmatpush3.bf16.msra.mxu0 %v1615_v29  ;;  %v1675_v29 = vld [vmem:[%s2093_s1 + $0x220] sm:$0xff]   ;;  %v1684_v38 = vld [vmem:[%s2093_s1 + $0x2f0] sm:$0xff]  }
  0x20   :  { %1450 = vmatprep.subr.bf16.mxu0 %v1620_v35  ;;  %v1681_v35 = vld [vmem:[%s2093_s1 + $0x2a8] sm:$0xff]  }
  0x21   :  { %1443 = vmatpush3.bf16.msra.mxu1 %v1619_v34  ;;  %v1680_v34 = vld [vmem:[%s2093_s1 + $0x2e8] sm:$0xff]  }
  0x22   :  { %917 = vmatmul.mubr.bf16.vlgmr.msra.gmra.mrb[0].mxu0 %v1283_v32  ;;  %1472 = vmatprep.subr.bf16.mxu1 %v1624_v40  ;;  %v1678_v32 = vld [vmem:[%s2093_s1 + $0x268] sm:$0xff]   ;;  %v1686_v40 = vld [vmem:[%s2093_s1 + $0x278] sm:$0xff]  }
  0x23   :  { %1451 = vmatpush3.bf16.msra.mxu0 %v1623_v39  ;;  %996 = vmatprep.mubr.bf16.mxu0 %v1288_v7  ;;  %v1685_v39 = vld [vmem:[%s2093_s1 + $0x2b0] sm:$0xff]  }
  0x24   :  { %957 = vmatmul.mubr.bf16.vlgmr.msra.gmra.mrb[0].mxu1 %v1285_v37  ;;  %1452 = vmatprep.subr.bf16.mxu0 %v1626_v42  ;;  %v1683_v37 = vld [vmem:[%s2093_s1 + $0x230] sm:$0xff]   ;;  %v1688_v42 = vld [vmem:[%s2093_s1 + $0x2f8] sm:$0xff]  }
  0x25   :  { %1473 = vmatpush3.bf16.msra.mxu1 %v1625_v41  ;;  %1036 = vmatprep.mubr.bf16.mxu1 %v1290_v12  ;;  %v1687_v41 = vld [vmem:[%s2093_s1 + $0x238] sm:$0xff]  }
  0x26   :  { %1474 = vmatprep.subr.bf16.mxu1 %v1628_v44 }
  0x27   :  { %1453 = vmatpush3.bf16.msra.mxu0 %v1627_v43  ;;  %v25_v43 = vld [vmem:[%s2094_s0 + $0x20] sm:$0xff] }
  0x28   :  { %1454 = vmatprep.subr.bf16.mxu0 %v1630_v46  ;;  %v1291_v44 = vcombine.low %v25_v43, %v25_v43  ;;  %v1691_v46 = vld [vmem:[%s2093_s1 + $0x2b8] sm:$0xff]  }
  0x29   :  { %1475 = vmatpush3.bf16.msra.mxu1 %v1629_v45  ;;  %v1292_v45 = vcombine.high %v25_v43, %v25_v43 }
  0x2a   :  { %1476 = vmatprep.subr.bf16.mxu1 %v1632_v48  ;;  %v1707_v48 = vmov 0.0  }
  0x2b   :  { %1455 = vmatpush3.bf16.msra.mxu0 %v1631_v47  ;;  %v26_v47 = vld [vmem:[%s2094_s0 + $0x28] sm:$0xff] }
  0x2c   :  { %1456 = vmatprep.subr.bf16.mxu0 %v1634_v50  ;;  %v1294_v50 = vcombine.high %v26_v47, %v26_v47 }
  0x2d   :  { %1477 = vmatpush3.bf16.msra.mxu1 %v1633_v49  ;;  %v1293_v49 = vcombine.low %v26_v47, %v26_v47 }
  0x2e   :  { %1478 = vmatprep.subr.bf16.mxu1 %v1636_v52  ;;  %v1695_v52 = vld [vmem:[%s2093_s1 + $0x308] sm:$0xff]  }
  0x2f   :  { %1457 = vmatpush3.bf16.msra.mxu0 %v1635_v51  ;;  %v1694_v51 = vld [vmem:[%s2093_s1 + $0x300] sm:$0xff]  }
  0x30   :  { %1458 = vmatprep.subr.bf16.mxu0 %v1638_v54  ;;  %v1697_v54 = vld [vmem:[%s2093_s1 + $0x318] sm:$0xff]  }
  0x31   :  { %1479 = vmatpush3.bf16.msra.mxu1 %v1637_v53  ;;  %v1696_v53 = vld [vmem:[%s2093_s1 + $0x310] sm:$0xff]  }
  0x32   :  { %1480 = vmatprep.subr.bf16.mxu1 %v1640_v56  ;;  %v1699_v56 = vld [vmem:[%s2095_s3] sm:$0xff]  }
  0x33   :  { %1459 = vmatpush3.bf16.msra.mxu0 %v1639_v55  ;;  %v1698_v55 = vld [vmem:[%s2094_s0 + $0x30] ss:$0 sps:$4 sm:$0xff]  }
  0x34   :  { %1460 = vmatprep.subr.bf16.mxu0 %v1642_v58  ;;  %v1701_v58 = vld [vmem:[%s2095_s3 + $0x10] sm:$0xff]  }
  0x35   :  { %1481 = vmatpush3.bf16.msra.mxu1 %v1641_v57  ;;  %v1700_v57 = vld [vmem:[%s2095_s3 + $0x8] sm:$0xff]  }
  0x36   :  { %1482 = vmatprep.subr.bf16.mxu1 %v1644_v60  ;;  %v1703_v60 = vld [vmem:[%s2095_s3 + $0x20] sm:$0xff]  }
  0x37   :  { %1461 = vmatpush3.bf16.msra.mxu0 %v1643_v59  ;;  %v1702_v59 = vld [vmem:[%s2095_s3 + $0x18] sm:$0xff]  }
  0x38   :  { %1462 = vmatprep.subr.bf16.mxu0 %v1646_v62  ;;  %v1705_v62 = vld [vmem:[%s2095_s3 + $0x30] sm:$0xff]  }
  0x39   :  { %1483 = vmatpush3.bf16.msra.mxu1 %v1645_v61  ;;  %v1704_v61 = vld [vmem:[%s2095_s3 + $0x28] sm:$0xff]  }
  0x3a   :  { %1484 = vmatprep.subr.bf16.mxu1 %v1648_v0 }
  0x3b   :  { %1463 = vmatpush3.bf16.msra.mxu0 %v1647_v63  ;;  %v1706_v63 = vld [vmem:[%s2095_s3 + $0x38] sm:$0xff]  }
  0x3c   :  { %1464 = vmatprep.subr.bf16.mxu0 %v1650_v2 }
  0x3d   :  { %1485 = vmatpush3.bf16.msra.mxu1 %v1649_v1  ;;  %v1282_v1 = vld [vmem:[%s2096_s2] ss:$0 sm:$0xff] }
  0x3e   :  { %1486 = vmatprep.subr.bf16.mxu1 %v1652_v4 }
  0x3f   :  { %1465 = vmatpush3.bf16.msra.mxu0 %v1651_v3 }
  0x40   :  { %1494 = vmatprep.subr.bf16.mxu0 %v1656_v9 }
  0x41   :  { %1487 = vmatpush3.bf16.msra.mxu1 %v1655_v8 }
  0x42   :  { %997 = vmatmul.mubr.bf16.vlgmr.msra.gmra.mrb[4].mxu0 %v1287_v6  ;;  %1516 = vmatprep.subr.bf16.mxu1 %v1660_v14 }
  0x43   :  { %1495 = vmatpush3.bf16.msra.mxu0 %v1659_v13  ;;  %1076 = vmatprep.mubr.bf16.mxu0 %v1292_v45 }
  0x44   :  { %1037 = vmatmul.mubr.bf16.vlgmr.msra.gmra.mrb[4].mxu1 %v1289_v11  ;;  %1496 = vmatprep.subr.bf16.mxu0 %v1662_v16 }
  0x45   :  { %1517 = vmatpush3.bf16.msra.mxu1 %v1661_v15  ;;  %1116 = vmatprep.mubr.bf16.mxu1 %v1294_v50 }
  0x46   :  { %1518 = vmatprep.subr.bf16.mxu1 %v1664_v18 }
  0x47   :  { %1497 = vmatpush3.bf16.msra.mxu0 %v1663_v17 }
  0x48   :  { %1498 = vmatprep.subr.bf16.mxu0 %v1666_v20 }
  0x49   :  { %1519 = vmatpush3.bf16.msra.mxu1 %v1665_v19 }
  0x4a   :  { %1520 = vmatprep.subr.bf16.mxu1 %v1668_v22 }
  0x4b   :  { %1499 = vmatpush3.bf16.msra.mxu0 %v1667_v21 }
  0x4c   :  { %1500 = vmatprep.subr.bf16.mxu0 %v1670_v24 }
  0x4d   :  { %1521 = vmatpush3.bf16.msra.mxu1 %v1669_v23 }
  0x4e   :  { %1522 = vmatprep.subr.bf16.mxu1 %v1672_v26 }
  0x4f   :  { %1501 = vmatpush3.bf16.msra.mxu0 %v1671_v25 }
  0x50   :  { %1502 = vmatprep.subr.bf16.mxu0 %v1674_v28 }
  0x51   :  { %1523 = vmatpush3.bf16.msra.mxu1 %v1673_v27 }
  0x52   :  { %1524 = vmatprep.subr.bf16.mxu1 %v1676_v30 }
  0x53   :  { %1503 = vmatpush3.bf16.msra.mxu0 %v1675_v29 }
  0x54   :  { %1504 = vmatprep.subr.bf16.mxu0 %v1678_v32 }
  0x55   :  { %1525 = vmatpush3.bf16.msra.mxu1 %v1677_v31 }
  0x56   :  { %1526 = vmatprep.subr.bf16.mxu1 %v1680_v34 }
  0x57   :  { %1505 = vmatpush3.bf16.msra.mxu0 %v1679_v33 }
  0x58   :  { %1506 = vmatprep.subr.bf16.mxu0 %v1682_v36 }
  0x59   :  { %1527 = vmatpush3.bf16.msra.mxu1 %v1681_v35 }
  0x5a   :  { %1528 = vmatprep.subr.bf16.mxu1 %v1684_v38 }
  0x5b   :  { %1507 = vmatpush3.bf16.msra.mxu0 %v1683_v37 }
  0x5c   :  { %1508 = vmatprep.subr.bf16.mxu0 %v1686_v40 }
  0x5d   :  { %1529 = vmatpush3.bf16.msra.mxu1 %v1685_v39 }
  0x5e   :  { %1530 = vmatprep.subr.bf16.mxu1 %v1688_v42 }
  0x5f   :  { %1509 = vmatpush3.bf16.msra.mxu0 %v1687_v41 }
  0x60   :  { %1552 = vmatprep.subr.bf16.mxu0 %v1707_v48 }
  0x61   :  { %1531 = vmatpush3.bf16.msra.mxu1 %v1691_v46 }
  0x62   :  { %1077 = vmatmul.mubr.bf16.vlgmr.msra.gmra.mrb[8].mxu0 %v1291_v44  ;;  %1564 = vmatprep.subr.bf16.mxu1 %v1707_v48  ;;  %v1397_v44 = vld [vmem:[%s2097_s4] ss:$0 sm:$0xff] }
  0x63   :  { %1553 = vmatpush3.bf16.msra.mxu0 %v1694_v51  ;;  %1560 = vmatprep.mubr.msk.bf16.mxu0 %vm1708_vm0, %v1707_v48 }
  0x64   :  { %1117 = vmatmul.mubr.bf16.vlgmr.msra.gmra.mrb[8].mxu1 %v1293_v49  ;;  %1554 = vmatprep.subr.bf16.mxu0 %v1707_v48 }
  0x65   :  { %1580 = vmatprep.mubr.msk.bf16.mxu1 %vm1708_vm0, %v1707_v48  ;;  %1565 = vmatpush3.bf16.msra.mxu1 %v1699_v56 }
  0x66   :  { %1566 = vmatprep.subr.bf16.mxu1 %v1707_v48 }
  0x67   :  { %1555 = vmatpush3.bf16.msra.mxu0 %v1695_v52 }
  0x68   :  { %1556 = vmatprep.subr.bf16.mxu0 %v1707_v48 }
  0x69   :  { %1567 = vmatpush3.bf16.msra.mxu1 %v1700_v57 }
  0x6a   :  { %1568 = vmatprep.subr.bf16.mxu1 %v1707_v48 }
  0x6b   :  { %1557 = vmatpush3.bf16.msra.mxu0 %v1696_v53 }
  0x6c   :  { %1558 = vmatprep.subr.bf16.mxu0 %v1707_v48 }
  0x6d   :  { %1569 = vmatpush3.bf16.msra.mxu1 %v1701_v58 }
  0x6e   :  { %1570 = vmatprep.subr.bf16.mxu1 %v1707_v48 }
  0x6f   :  { %1559 = vmatpush3.bf16.msra.mxu0 %v1697_v54 }
  0x71   :  { %1571 = vmatpush3.bf16.msra.mxu1 %v1702_v59 }
  0x72   :  { %1561 = vmatmul.mubr.msk.bf16.vlgmr.msra.gmra.mrb[12].mxu0 %vm880_vm1, %v1698_v55  ;;  %1572 = vmatprep.subr.bf16.mxu1 %v1707_v48 }
  0x75   :  { %1573 = vmatpush3.bf16.msra.mxu1 %v1703_v60 }
  0x76   :  { %1574 = vmatprep.subr.bf16.mxu1 %v1707_v48 }
  0x79   :  { %1575 = vmatpush3.bf16.msra.mxu1 %v1704_v61 }
  0x7a   :  { %1576 = vmatprep.subr.bf16.mxu1 %v1707_v48 }
  0x7d   :  { %1577 = vmatpush3.bf16.msra.mxu1 %v1705_v62 }
  0x7e   :  { %1578 = vmatprep.subr.bf16.mxu1 %v1707_v48 }
  0x81   :  { %1579 = vmatpush3.bf16.msra.mxu1 %v1706_v63 }
  0xf5   :  { %v1422_v0 = vpop.f32.mrb[0].mxu0 }
  0xf6   :  { %v1423_v2 = vpop.f32.mrb[1].mxu0 }
  0xf7   :  { %v1424_v3 = vadd.f32 %v1423_v2, %v1422_v0  ;;  %v1425_v4 = vpop.f32.mrb[2].mxu0  ;;  %v1444_v5 = vpop.f32.mrb[0].mxu1 }
  0xf8   :  { %v1426_v6 = vpop.f32.mrb[3].mxu0  ;;  %v1445_v7 = vpop.f32.mrb[1].mxu1 }
  0xf9   :  { %v919_v8 = vadd.f32 %v1424_v3, %v1282_v1  ;;  %v1446_v9 = vadd.f32 %v1445_v7, %v1444_v5  ;;  %v1447_v10 = vpop.f32.mrb[2].mxu1 }
  0xfa   :  { %v1448_v11 = vpop.f32.mrb[3].mxu1 }
  0xfb   :  { %v959_v12 = vadd.f32 %v1446_v9, %v919_v8 }
 0x115   :  { %v1466_v13 = vpop.f32.mrb[4].mxu0 }
 0x116   :  { %v1467_v14 = vpop.f32.mrb[5].mxu0 }
 0x117   :  { %v1468_v15 = vadd.f32 %v1467_v14, %v1466_v13  ;;  %v1469_v16 = vpop.f32.mrb[6].mxu0  ;;  %v1488_v17 = vpop.f32.mrb[4].mxu1 }
 0x118   :  { %v1470_v18 = vpop.f32.mrb[7].mxu0  ;;  %v1489_v20 = vpop.f32.mrb[5].mxu1 }
 0x119   :  { %v999_v19 = vadd.f32 %v1468_v15, %v959_v12  ;;  %v1490_v21 = vadd.f32 %v1489_v20, %v1488_v17  ;;  %v1491_v22 = vpop.f32.mrb[6].mxu1 }
 0x11a   :  { %v1492_v23 = vpop.f32.mrb[7].mxu1 }
 0x11b   :  { %v1039_v24 = vadd.f32 %v1490_v21, %v999_v19 }
 0x135   :  { %v1510_v25 = vpop.f32.mrb[8].mxu0 }
 0x136   :  { %v1511_v26 = vpop.f32.mrb[9].mxu0 }
 0x137   :  { %v1512_v27 = vadd.f32 %v1511_v26, %v1510_v25  ;;  %v1513_v28 = vpop.f32.mrb[10].mxu0  ;;  %v1532_v29 = vpop.f32.mrb[8].mxu1 }
 0x138   :  { %v1514_v30 = vpop.f32.mrb[11].mxu0  ;;  %v1533_v31 = vpop.f32.mrb[9].mxu1 }
 0x139   :  { %v1079_v32 = vadd.f32 %v1512_v27, %v1039_v24  ;;  %v1534_v33 = vadd.f32 %v1533_v31, %v1532_v29  ;;  %v1535_v34 = vpop.f32.mrb[10].mxu1 }
 0x13a   :  { %v1536_v35 = vpop.f32.mrb[11].mxu1 }
 0x13b   :  { %v1119_v36 = vadd.f32 %v1534_v33, %v1079_v32 }
 0x145   :  { %v1158_v37 = vpop.f32.mrb[12].mxu0 }
 0x146   :  { %v1159_v38 = vadd.f32 %v1158_v37, %v1119_v36  ;;  %v1562_v39 = vpop.f32.mrb[13].mxu0 }
 0x147   :  { %v1161_v40 = vpop.f32.mrb[14].mxu0 }
 0x148   :  { %v1164_v41 = vmax.f32 %v1159_v38, 0.0  ;;  %v1563_v42 = vpop.f32.mrb[15].mxu0 }
 0x14a   :  { %v1165_v43 = vpack.c.bf16 %v1164_v41, %v1164_v41 }
 0x14c   :  { %1581 = vmatmul.mubr.bf16.vlgmr.msra.gmra.mrb[12].mxu1 %v1165_v43 }
 0x21f   :  { %v1271_v45 = vpop.f32.mrb[12].mxu1 }
 0x220   :  { %v1272_v46 = vadd.f32 %v1397_v44, %v1271_v45  ;;  %v1582_v47 = vpop.f32.mrb[13].mxu1 }
 0x221   :  { %v1274_v48 = vpop.f32.mrb[14].mxu1 }
 0x222   :  { %1277 = vst [vmem:[%s2098_s5] sm:$0xff] %v1272_v46  ;;  %v1583_v49 = vpop.f32.mrb[15].mxu1 }

</bundles_post_ra>
